<compile_context>
chip_gen: v6e
topology: v6e:2x2x1
jax: 0.10.0
libtpu: 0.0.40
codegen_flags: <defaults>
</compile_context>

<pallas_src>
import math

import jax
import jax.numpy as jnp
from jax.experimental import pallas as pl
from jax.experimental.pallas import tpu as pltpu

NUM_FEATURE_GROUPS = 4   # FPN.num_feature_groups
IN_EPS = 1e-5            # PyTorch InstanceNorm2d default eps


# ----------------------------- fused Pallas kernel -----------------------------

def _make_fused_kernel(H, W, C, S):
    """Fused ScoreHead forward for one sample: (H, W, 4C) bf16 -> (H*W, S) f32."""
    C4 = NUM_FEATURE_GROUPS * C
    HW = H * W
    inv_hw = 1.0 / float(HW)

    def inorm_relu(a, g_ref, b_ref):
        # Single-pass InstanceNorm2d(affine=True) + ReLU.  Biased var via
        # E[x^2] - E[x]^2 (matches PyTorch), folded into one scale/shift pass; f32.
        s1 = jnp.sum(a, axis=0, keepdims=True)                     # (1, Cc)
        s2 = jnp.sum(a * a, axis=0, keepdims=True)                 # (1, Cc)
        mean = s1 * inv_hw
        var = jnp.maximum(s2 * inv_hw - mean * mean, 0.0)
        scale = g_ref[...] * jax.lax.rsqrt(var + IN_EPS)
        shift = b_ref[...] - mean * scale
        return jnp.maximum(a * scale + shift, 0.0)

    def conv3x3(pad_ref, act, w_ref):
        # 3x3 / stride 1 / pad 1 conv as ONE im2col MXU matmul (bf16 in, f32 acc).
        cc = pad_ref.shape[-1]
        pad_ref[1:H + 1, 1:W + 1, :] = act.reshape(H, W, cc)       # halo stays zero
        cols = [pad_ref[ky:ky + H, kx:kx + W, :].reshape(HW, cc)
                for ky in range(3) for kx in range(3)]
        col = jnp.concatenate(cols, axis=1).astype(jnp.bfloat16)   # (HW, 9*cc)
        return jnp.dot(col, w_ref[...], preferred_element_type=jnp.float32)

    def kernel(x_ref, g1, b1, w1, g2, b2, w2, w3, g3, b3, w4, g4, b4, w5, b5,
               o_ref, pad_big, pad_small):
        # Zero the conv halo buffers once per sample (interiors always overwritten).
        pad_big[...] = jnp.zeros_like(pad_big)
        pad_small[...] = jnp.zeros_like(pad_small)

        x0 = x_ref[...].astype(jnp.float32).reshape(HW, C4)        # residual (f32)

        # ResBlock (identity shortcut since c_in == c_out)
        h = inorm_relu(x0, g1, b1)
        h = conv3x3(pad_big, h, w1)
        h = inorm_relu(h, g2, b2)
        h = conv3x3(pad_big, h, w2) + x0

        # AdaptiveFeaturePooling(4): max over the folded feature-group channel slabs
        h = jnp.maximum(jnp.maximum(h[:, 0 * C:1 * C], h[:, 1 * C:2 * C]),
                        jnp.maximum(h[:, 2 * C:3 * C], h[:, 3 * C:4 * C]))

        # ShuffleConv -> IN -> ReLU -> ShuffleConv -> IN -> ReLU
        h = conv3x3(pad_small, h, w3)
        h = inorm_relu(h, g3, b3)
        h = conv3x3(pad_small, h, w4)
        h = inorm_relu(h, g4, b4)

        # Final 1x1 conv + bias.
        y = jnp.dot(h.astype(jnp.bfloat16), w5[...],
                    preferred_element_type=jnp.float32) + b5[...]
        o_ref[...] = y

    return kernel


def _full_spec(shape):
    zero = (0,) * len(shape)
    return pl.BlockSpec(shape, lambda n: zero)


# ------------------------------ ScoreHead.forward ------------------------------

def score_head_forward(x_nchw, params, unpadding=0):
    """ScoreHead.forward(input, unpadding): (N, 4*C, H, W) NCHW -> (N, S, H', W')."""
    N, C4, H, W = x_nchw.shape
    C = params['num_filters']
    S = params['num_scores']
    assert C4 == NUM_FEATURE_GROUPS * C

    # NCHW -> NHWC, bf16 storage.  The channel order is already [group0|group1|...],
    # which is exactly the fold BatchChannels / AdaptiveFeaturePooling expect.
    x = jnp.transpose(x_nchw, (0, 2, 3, 1)).astype(jnp.bfloat16)

    kernel = _make_fused_kernel(H, W, C, S)
    in_specs = [
        pl.BlockSpec((None, H, W, C4), lambda n: (n, 0, 0, 0)),            # x (sample)
        _full_spec((1, C4)), _full_spec((1, C4)), _full_spec((9 * C4, C4)),  # IN1, conv1
        _full_spec((1, C4)), _full_spec((1, C4)), _full_spec((9 * C4, C4)),  # IN2, conv2
        _full_spec((9 * C, C)),                                              # conv3
        _full_spec((1, C)), _full_spec((1, C)),                              # IN3
        _full_spec((9 * C, C)),                                              # conv4
        _full_spec((1, C)), _full_spec((1, C)),                              # IN4
        _full_spec((C, S)), _full_spec((1, S)),                              # conv5 w, b
    ]
    y = pl.pallas_call(
        kernel,
        out_shape=jax.ShapeDtypeStruct((N, H * W, S), jnp.float32),
        grid=(N,),
        in_specs=in_specs,
        out_specs=pl.BlockSpec((None, H * W, S), lambda n: (n, 0, 0)),
        scratch_shapes=[
            pltpu.VMEM((H + 2, W + 2, C4), jnp.float32),   # conv1/conv2 halo buffer
            pltpu.VMEM((H + 2, W + 2, C), jnp.float32),    # conv3/conv4 halo buffer
        ],
        compiler_params=pltpu.CompilerParams(
            dimension_semantics=("parallel",),             # v7x: batch across 2 TCs
            vmem_limit_bytes=32 * 1024 * 1024),            # raise v5e's 16 MiB default
    )(x,
      params['in1_g'], params['in1_b'], params['conv1_w'],
      params['in2_g'], params['in2_b'], params['conv2_w'],
      params['conv3_w'], params['in3_g'], params['in3_b'],
      params['conv4_w'], params['in4_g'], params['in4_b'],
      params['conv5_w'], params['conv5_b'])

    y = y.reshape(N, H, W, S)
    if unpadding:
        # TODO(synk): unpad() is not in the provided source; assumed symmetric crop.
        y = y[:, unpadding:-unpadding, unpadding:-unpadding, :]
    return jnp.transpose(y, (0, 3, 1, 2))                  # back to NCHW


# ------------------------------ parameters ------------------------------

def _channel_shuffle_cols(c, groups):
    # y[:, j] = z[:, src[j]] implements channel_shuffle applied to conv outputs.
    og = c // groups
    return jnp.arange(c).reshape(groups, og).T.reshape(-1)


def _shuffle_conv_weight(key, c_in, c_out, groups):
    """ShuffleConv2d 3x3 (bias=False) densified: block-diagonal grouped weight with
    the channel shuffle folded into the output-channel permutation.
    TODO(synk): ShuffleConv2d is not defined in the provided source; the standard
    grouped-conv-then-channel-shuffle formulation is assumed (same as before)."""
    kg, og = c_in // groups, c_out // groups
    wg = jax.random.normal(key, (groups, 3, 3, kg, og), jnp.float32) / math.sqrt(kg * 9)
    dense = jnp.zeros((3, 3, c_in, c_out), jnp.float32)
    for g in range(groups):
        dense = dense.at[:, :, g * kg:(g + 1) * kg, g * og:(g + 1) * og].set(wg[g])
    return dense[:, :, :, _channel_shuffle_cols(c_out, groups)]


def _replicate_feature_groups(w):
    """Fold the 4 FPN feature groups into channels: the shared (3,3,C,C) weight is
    applied to each group independently -> block-diagonal (3,3,4C,4C)."""
    _, _, cin, cout = w.shape
    g = NUM_FEATURE_GROUPS
    big = jnp.zeros((3, 3, g * cin, g * cout), w.dtype)
    for i in range(g):
        big = big.at[:, :, i * cin:(i + 1) * cin, i * cout:(i + 1) * cout].set(w)
    return big


def _im2col_weight(w):
    # (3,3,Cin,Cout) -> (9*Cin, Cout) bf16, row order (ky, kx, cin) == kernel tap order.
    return w.reshape(9 * w.shape[2], w.shape[3]).astype(jnp.bfloat16)


def init_score_head_params(key, num_filters, num_scores):
    C, G, S = num_filters, NUM_FEATURE_GROUPS, num_scores
    keys = jax.random.split(key, 9)

    def in_params(k, reps):
        g = 1.0 + 0.1 * jax.random.normal(k, (1, C), jnp.float32)
        b = 0.1 * jax.random.normal(jax.random.fold_in(k, 1), (1, C), jnp.float32)
        # same per-channel affine applied to every folded feature group
        return jnp.tile(g, (1, reps)), jnp.tile(b, (1, reps))

    p = {'num_filters': C, 'num_scores': S}
    p['in1_g'], p['in1_b'] = in_params(keys[0], G)
    p['conv1_w'] = _im2col_weight(
        _replicate_feature_groups(_shuffle_conv_weight(keys[1], C, C, 4)))
    p['in2_g'], p['in2_b'] = in_params(keys[2], G)
    p['conv2_w'] = _im2col_weight(
        _replicate_feature_groups(_shuffle_conv_weight(keys[3], C, C, 4)))
    p['conv3_w'] = _im2col_weight(_shuffle_conv_weight(keys[4], C, C, 4))
    p['in3_g'], p['in3_b'] = in_params(keys[5], 1)
    p['conv4_w'] = _im2col_weight(_shuffle_conv_weight(keys[6], C, C, 4))
    p['in4_g'], p['in4_b'] = in_params(keys[7], 1)
    p['conv5_w'] = (jax.random.normal(keys[8], (C, S), jnp.float32)
                    / math.sqrt(C)).astype(jnp.bfloat16)
    init_fg_conf = 0.1
    p['conv5_b'] = jnp.full((1, S), -math.log((1 - init_fg_conf) / init_fg_conf),
                            jnp.float32)
    return p


if __name__ == "__main__":
    key = jax.random.PRNGKey(0)
    k_x, k_p = jax.random.split(key)
    num_filters = 32
    num_scores = 1
    N, H, W = 2, 16, 16

    x = jax.random.normal(k_x, (N, NUM_FEATURE_GROUPS * num_filters, H, W), jnp.float32)
    params = init_score_head_params(k_p, num_filters, num_scores)

    out = jax.block_until_ready(score_head_forward(x, params, unpadding=0))
    assert out.shape == (N, num_scores, H, W), out.shape
    assert bool(jnp.all(jnp.isfinite(out)))
    print("KERNEL_OK")
</pallas_src>

<mosaic_0001>
module attributes {stable_mosaic.version = 11 : i64} {
  func.func @kernel(%arg0: i32, %arg1: memref<1x16x16x128xbf16, #tpu.memory_space<vmem>>, %arg2: memref<1x128xf32, #tpu.memory_space<vmem>>, %arg3: memref<1x128xf32, #tpu.memory_space<vmem>>, %arg4: memref<1152x128xbf16, #tpu.memory_space<vmem>>, %arg5: memref<1x128xf32, #tpu.memory_space<vmem>>, %arg6: memref<1x128xf32, #tpu.memory_space<vmem>>, %arg7: memref<1152x128xbf16, #tpu.memory_space<vmem>>, %arg8: memref<288x32xbf16, #tpu.memory_space<vmem>>, %arg9: memref<1x32xf32, #tpu.memory_space<vmem>>, %arg10: memref<1x32xf32, #tpu.memory_space<vmem>>, %arg11: memref<288x32xbf16, #tpu.memory_space<vmem>>, %arg12: memref<1x32xf32, #tpu.memory_space<vmem>>, %arg13: memref<1x32xf32, #tpu.memory_space<vmem>>, %arg14: memref<32x1xbf16, #tpu.memory_space<vmem>>, %arg15: memref<1x1xf32, #tpu.memory_space<vmem>>, %arg16: memref<1x256x1xf32, #tpu.memory_space<vmem>>, %arg17: memref<18x18x128xf32, #tpu.memory_space<vmem>>, %arg18: memref<18x18x32xf32, #tpu.memory_space<vmem>>) attributes {dimension_semantics = [#tpu.dimension_semantics<parallel>], iteration_bounds = array<i64: 2>, scalar_prefetch = 0 : i64, scratch_operands = 2 : i64, tpu.core_type = #tpu.core_type<tc>, window_params = [{transform_indices = @transform_0, window_bounds = array<i64: 1, 16, 16, 128>}, {pipeline_mode = #tpu.pipeline_mode<synchronous>, transform_indices = @transform_1, window_bounds = array<i64: 1, 128>}, {pipeline_mode = #tpu.pipeline_mode<synchronous>, transform_indices = @transform_2, window_bounds = array<i64: 1, 128>}, {pipeline_mode = #tpu.pipeline_mode<synchronous>, transform_indices = @transform_3, window_bounds = array<i64: 1152, 128>}, {pipeline_mode = #tpu.pipeline_mode<synchronous>, transform_indices = @transform_4, window_bounds = array<i64: 1, 128>}, {pipeline_mode = #tpu.pipeline_mode<synchronous>, transform_indices = @transform_5, window_bounds = array<i64: 1, 128>}, {pipeline_mode = #tpu.pipeline_mode<synchronous>, transform_indices = @transform_6, window_bounds = array<i64: 1152, 128>}, {pipeline_mode = #tpu.pipeline_mode<synchronous>, transform_indices = @transform_7, window_bounds = array<i64: 288, 32>}, {pipeline_mode = #tpu.pipeline_mode<synchronous>, transform_indices = @transform_8, window_bounds = array<i64: 1, 32>}, {pipeline_mode = #tpu.pipeline_mode<synchronous>, transform_indices = @transform_9, window_bounds = array<i64: 1, 32>}, {pipeline_mode = #tpu.pipeline_mode<synchronous>, transform_indices = @transform_10, window_bounds = array<i64: 288, 32>}, {pipeline_mode = #tpu.pipeline_mode<synchronous>, transform_indices = @transform_11, window_bounds = array<i64: 1, 32>}, {pipeline_mode = #tpu.pipeline_mode<synchronous>, transform_indices = @transform_12, window_bounds = array<i64: 1, 32>}, {pipeline_mode = #tpu.pipeline_mode<synchronous>, transform_indices = @transform_13, window_bounds = array<i64: 32, 1>}, {pipeline_mode = #tpu.pipeline_mode<synchronous>, transform_indices = @transform_14, window_bounds = array<i64: 1, 1>}, {transform_indices = @transform_15, window_bounds = array<i64: 1, 256, 1>}]} {
    %cst = arith.constant 0.000000e+00 : f32
    %0 = vector.broadcast %cst : f32 to vector<18x18x128xf32>
    %c0 = arith.constant 0 : index
    %c0_0 = arith.constant 0 : index
    %c0_1 = arith.constant 0 : index
    %1 = vector.load %arg17[%c0, %c0_0, %c0_1] : memref<18x18x128xf32, #tpu.memory_space<vmem>>, vector<18x18x128xf32>
    tpu.vector_store %arg17[%c0, %c0_0, %c0_1], %0 {strides = array<i32>} : memref<18x18x128xf32, #tpu.memory_space<vmem>>, vector<18x18x128xf32>,
    %cst_2 = arith.constant 0.000000e+00 : f32
    %2 = vector.broadcast %cst_2 : f32 to vector<18x18x32xf32>
    %c0_3 = arith.constant 0 : index
    %c0_4 = arith.constant 0 : index
    %c0_5 = arith.constant 0 : index
    %3 = vector.load %arg18[%c0_3, %c0_4, %c0_5] : memref<18x18x32xf32, #tpu.memory_space<vmem>>, vector<18x18x32xf32>
    tpu.vector_store %arg18[%c0_3, %c0_4, %c0_5], %2 {strides = array<i32>} : memref<18x18x32xf32, #tpu.memory_space<vmem>>, vector<18x18x32xf32>,
    %c0_6 = arith.constant 0 : index
    %c0_7 = arith.constant 0 : index
    %c0_8 = arith.constant 0 : index
    %c0_9 = arith.constant 0 : index
    %4 = vector.load %arg1[%c0_6, %c0_7, %c0_8, %c0_9] : memref<1x16x16x128xbf16, #tpu.memory_space<vmem>>, vector<1x16x16x128xbf16>
    %5 = vector.shape_cast %4 : vector<1x16x16x128xbf16> to vector<16x16x128xbf16>
    %6 = arith.extf %5 : vector<16x16x128xbf16> to vector<16x16x128xf32>
    %7 = vector.shape_cast %6 : vector<16x16x128xf32> to vector<256x128xf32>
    %cst_10 = arith.constant dense<0.000000e+00> : vector<128xf32>
    %8 = vector.multi_reduction <add>, %7, %cst_10 [0] : vector<256x128xf32> to vector<128xf32>
    %9 = vector.shape_cast %8 : vector<128xf32> to vector<1x128xf32>
    %10 = arith.mulf %7, %7 : vector<256x128xf32>
    %cst_11 = arith.constant dense<0.000000e+00> : vector<128xf32>
    %11 = vector.multi_reduction <add>, %10, %cst_11 [0] : vector<256x128xf32> to vector<128xf32>
    %12 = vector.shape_cast %11 : vector<128xf32> to vector<1x128xf32>
    %cst_12 = arith.constant 3.906250e-03 : f32
    %13 = vector.broadcast %cst_12 : f32 to vector<1x128xf32>
    %14 = arith.mulf %9, %13 : vector<1x128xf32>
    %cst_13 = arith.constant 3.906250e-03 : f32
    %15 = vector.broadcast %cst_13 : f32 to vector<1x128xf32>
    %16 = arith.mulf %12, %15 : vector<1x128xf32>
    %17 = arith.mulf %14, %14 : vector<1x128xf32>
    %18 = arith.subf %16, %17 : vector<1x128xf32>
    %cst_14 = arith.constant 0.000000e+00 : f32
    %19 = vector.broadcast %cst_14 : f32 to vector<1x128xf32>
    %20 = arith.maximumf %18, %19 : vector<1x128xf32>
    %c0_15 = arith.constant 0 : index
    %c0_16 = arith.constant 0 : index
    %21 = vector.load %arg2[%c0_15, %c0_16] : memref<1x128xf32, #tpu.memory_space<vmem>>, vector<1x128xf32>
    %cst_17 = arith.constant 9.99999974E-6 : f32
    %22 = vector.broadcast %cst_17 : f32 to vector<1x128xf32>
    %23 = arith.addf %20, %22 : vector<1x128xf32>
    %24 = math.rsqrt %23 : vector<1x128xf32>
    %25 = arith.mulf %21, %24 : vector<1x128xf32>
    %c0_18 = arith.constant 0 : index
    %c0_19 = arith.constant 0 : index
    %26 = vector.load %arg3[%c0_18, %c0_19] : memref<1x128xf32, #tpu.memory_space<vmem>>, vector<1x128xf32>
    %27 = arith.mulf %14, %25 : vector<1x128xf32>
    %28 = arith.subf %26, %27 : vector<1x128xf32>
    %29 = vector.broadcast %25 : vector<1x128xf32> to vector<256x128xf32>
    %30 = arith.mulf %7, %29 : vector<256x128xf32>
    %31 = vector.broadcast %28 : vector<1x128xf32> to vector<256x128xf32>
    %32 = arith.addf %30, %31 : vector<256x128xf32>
    %cst_20 = arith.constant 0.000000e+00 : f32
    %33 = vector.broadcast %cst_20 : f32 to vector<256x128xf32>
    %34 = arith.maximumf %32, %33 : vector<256x128xf32>
    %35 = vector.shape_cast %34 : vector<256x128xf32> to vector<16x16x128xf32>
    %c1 = arith.constant 1 : index
    %c1_21 = arith.constant 1 : index
    %c0_22 = arith.constant 0 : index
    %36 = vector.load %arg17[%c1, %c1_21, %c0_22] : memref<18x18x128xf32, #tpu.memory_space<vmem>>, vector<16x16x128xf32>
    tpu.vector_store %arg17[%c1, %c1_21, %c0_22], %35 {strides = array<i32>} : memref<18x18x128xf32, #tpu.memory_space<vmem>>, vector<16x16x128xf32>,
    %c0_23 = arith.constant 0 : index
    %c0_24 = arith.constant 0 : index
    %c0_25 = arith.constant 0 : index
    %37 = vector.load %arg17[%c0_23, %c0_24, %c0_25] : memref<18x18x128xf32, #tpu.memory_space<vmem>>, vector<16x16x128xf32>
    %38 = vector.shape_cast %37 : vector<16x16x128xf32> to vector<256x128xf32>
    %c0_26 = arith.constant 0 : index
    %c1_27 = arith.constant 1 : index
    %c0_28 = arith.constant 0 : index
    %39 = vector.load %arg17[%c0_26, %c1_27, %c0_28] : memref<18x18x128xf32, #tpu.memory_space<vmem>>, vector<16x16x128xf32>
    %40 = vector.shape_cast %39 : vector<16x16x128xf32> to vector<256x128xf32>
    %c0_29 = arith.constant 0 : index
    %c2 = arith.constant 2 : index
    %c0_30 = arith.constant 0 : index
    %41 = vector.load %arg17[%c0_29, %c2, %c0_30] : memref<18x18x128xf32, #tpu.memory_space<vmem>>, vector<16x16x128xf32>
    %42 = vector.shape_cast %41 : vector<16x16x128xf32> to vector<256x128xf32>
    %c1_31 = arith.constant 1 : index
    %c0_32 = arith.constant 0 : index
    %c0_33 = arith.constant 0 : index
    %43 = vector.load %arg17[%c1_31, %c0_32, %c0_33] : memref<18x18x128xf32, #tpu.memory_space<vmem>>, vector<16x16x128xf32>
    %44 = vector.shape_cast %43 : vector<16x16x128xf32> to vector<256x128xf32>
    %c1_34 = arith.constant 1 : index
    %c1_35 = arith.constant 1 : index
    %c0_36 = arith.constant 0 : index
    %45 = vector.load %arg17[%c1_34, %c1_35, %c0_36] : memref<18x18x128xf32, #tpu.memory_space<vmem>>, vector<16x16x128xf32>
    %46 = vector.shape_cast %45 : vector<16x16x128xf32> to vector<256x128xf32>
    %c1_37 = arith.constant 1 : index
    %c2_38 = arith.constant 2 : index
    %c0_39 = arith.constant 0 : index
    %47 = vector.load %arg17[%c1_37, %c2_38, %c0_39] : memref<18x18x128xf32, #tpu.memory_space<vmem>>, vector<16x16x128xf32>
    %48 = vector.shape_cast %47 : vector<16x16x128xf32> to vector<256x128xf32>
    %c2_40 = arith.constant 2 : index
    %c0_41 = arith.constant 0 : index
    %c0_42 = arith.constant 0 : index
    %49 = vector.load %arg17[%c2_40, %c0_41, %c0_42] : memref<18x18x128xf32, #tpu.memory_space<vmem>>, vector<16x16x128xf32>
    %50 = vector.shape_cast %49 : vector<16x16x128xf32> to vector<256x128xf32>
    %c2_43 = arith.constant 2 : index
    %c1_44 = arith.constant 1 : index
    %c0_45 = arith.constant 0 : index
    %51 = vector.load %arg17[%c2_43, %c1_44, %c0_45] : memref<18x18x128xf32, #tpu.memory_space<vmem>>, vector<16x16x128xf32>
    %52 = vector.shape_cast %51 : vector<16x16x128xf32> to vector<256x128xf32>
    %c2_46 = arith.constant 2 : index
    %c2_47 = arith.constant 2 : index
    %c0_48 = arith.constant 0 : index
    %53 = vector.load %arg17[%c2_46, %c2_47, %c0_48] : memref<18x18x128xf32, #tpu.memory_space<vmem>>, vector<16x16x128xf32>
    %54 = vector.shape_cast %53 : vector<16x16x128xf32> to vector<256x128xf32>
    %55 = tpu.concatenate %38, %40, %42, %44, %46, %48, %50, %52, %54 in 1 : vector<256x128xf32>, vector<256x128xf32>, vector<256x128xf32>, vector<256x128xf32>, vector<256x128xf32>, vector<256x128xf32>, vector<256x128xf32>, vector<256x128xf32>, vector<256x128xf32> -> vector<256x1152xf32>
    %56 = arith.truncf %55 : vector<256x1152xf32> to vector<256x1152xbf16>
    %c0_49 = arith.constant 0 : index
    %c0_50 = arith.constant 0 : index
    %57 = vector.load %arg4[%c0_49, %c0_50] : memref<1152x128xbf16, #tpu.memory_space<vmem>>, vector<1152x128xbf16>
    %cst_51 = arith.constant dense<0.000000e+00> : vector<256x128xf32>
    %58 = tpu.matmul %56, %57, %cst_51 {dimension_numbers = #tpu.dot_dimension_numbers<[1], [0], [0], [1], [0, 0, 1, 1], [], []>} : vector<256x1152xbf16>, vector<1152x128xbf16>, vector<256x128xf32> -> vector<256x128xf32>
    %cst_52 = arith.constant dense<0.000000e+00> : vector<128xf32>
    %59 = vector.multi_reduction <add>, %58, %cst_52 [0] : vector<256x128xf32> to vector<128xf32>
    %60 = vector.shape_cast %59 : vector<128xf32> to vector<1x128xf32>
    %61 = arith.mulf %58, %58 : vector<256x128xf32>
    %cst_53 = arith.constant dense<0.000000e+00> : vector<128xf32>
    %62 = vector.multi_reduction <add>, %61, %cst_53 [0] : vector<256x128xf32> to vector<128xf32>
    %63 = vector.shape_cast %62 : vector<128xf32> to vector<1x128xf32>
    %cst_54 = arith.constant 3.906250e-03 : f32
    %64 = vector.broadcast %cst_54 : f32 to vector<1x128xf32>
    %65 = arith.mulf %60, %64 : vector<1x128xf32>
    %cst_55 = arith.constant 3.906250e-03 : f32
    %66 = vector.broadcast %cst_55 : f32 to vector<1x128xf32>
    %67 = arith.mulf %63, %66 : vector<1x128xf32>
    %68 = arith.mulf %65, %65 : vector<1x128xf32>
    %69 = arith.subf %67, %68 : vector<1x128xf32>
    %cst_56 = arith.constant 0.000000e+00 : f32
    %70 = vector.broadcast %cst_56 : f32 to vector<1x128xf32>
    %71 = arith.maximumf %69, %70 : vector<1x128xf32>
    %c0_57 = arith.constant 0 : index
    %c0_58 = arith.constant 0 : index
    %72 = vector.load %arg5[%c0_57, %c0_58] : memref<1x128xf32, #tpu.memory_space<vmem>>, vector<1x128xf32>
    %cst_59 = arith.constant 9.99999974E-6 : f32
    %73 = vector.broadcast %cst_59 : f32 to vector<1x128xf32>
    %74 = arith.addf %71, %73 : vector<1x128xf32>
    %75 = math.rsqrt %74 : vector<1x128xf32>
    %76 = arith.mulf %72, %75 : vector<1x128xf32>
    %c0_60 = arith.constant 0 : index
    %c0_61 = arith.constant 0 : index
    %77 = vector.load %arg6[%c0_60, %c0_61] : memref<1x128xf32, #tpu.memory_space<vmem>>, vector<1x128xf32>
    %78 = arith.mulf %65, %76 : vector<1x128xf32>
    %79 = arith.subf %77, %78 : vector<1x128xf32>
    %80 = vector.broadcast %76 : vector<1x128xf32> to vector<256x128xf32>
    %81 = arith.mulf %58, %80 : vector<256x128xf32>
    %82 = vector.broadcast %79 : vector<1x128xf32> to vector<256x128xf32>
    %83 = arith.addf %81, %82 : vector<256x128xf32>
    %cst_62 = arith.constant 0.000000e+00 : f32
    %84 = vector.broadcast %cst_62 : f32 to vector<256x128xf32>
    %85 = arith.maximumf %83, %84 : vector<256x128xf32>
    %86 = vector.shape_cast %85 : vector<256x128xf32> to vector<16x16x128xf32>
    %c1_63 = arith.constant 1 : index
    %c1_64 = arith.constant 1 : index
    %c0_65 = arith.constant 0 : index
    %87 = vector.load %arg17[%c1_63, %c1_64, %c0_65] : memref<18x18x128xf32, #tpu.memory_space<vmem>>, vector<16x16x128xf32>
    tpu.vector_store %arg17[%c1_63, %c1_64, %c0_65], %86 {strides = array<i32>} : memref<18x18x128xf32, #tpu.memory_space<vmem>>, vector<16x16x128xf32>,
    %c0_66 = arith.constant 0 : index
    %c0_67 = arith.constant 0 : index
    %c0_68 = arith.constant 0 : index
    %88 = vector.load %arg17[%c0_66, %c0_67, %c0_68] : memref<18x18x128xf32, #tpu.memory_space<vmem>>, vector<16x16x128xf32>
    %89 = vector.shape_cast %88 : vector<16x16x128xf32> to vector<256x128xf32>
    %c0_69 = arith.constant 0 : index
    %c1_70 = arith.constant 1 : index
    %c0_71 = arith.constant 0 : index
    %90 = vector.load %arg17[%c0_69, %c1_70, %c0_71] : memref<18x18x128xf32, #tpu.memory_space<vmem>>, vector<16x16x128xf32>
    %91 = vector.shape_cast %90 : vector<16x16x128xf32> to vector<256x128xf32>
    %c0_72 = arith.constant 0 : index
    %c2_73 = arith.constant 2 : index
    %c0_74 = arith.constant 0 : index
    %92 = vector.load %arg17[%c0_72, %c2_73, %c0_74] : memref<18x18x128xf32, #tpu.memory_space<vmem>>, vector<16x16x128xf32>
    %93 = vector.shape_cast %92 : vector<16x16x128xf32> to vector<256x128xf32>
    %c1_75 = arith.constant 1 : index
    %c0_76 = arith.constant 0 : index
    %c0_77 = arith.constant 0 : index
    %94 = vector.load %arg17[%c1_75, %c0_76, %c0_77] : memref<18x18x128xf32, #tpu.memory_space<vmem>>, vector<16x16x128xf32>
    %95 = vector.shape_cast %94 : vector<16x16x128xf32> to vector<256x128xf32>
    %c1_78 = arith.constant 1 : index
    %c1_79 = arith.constant 1 : index
    %c0_80 = arith.constant 0 : index
    %96 = vector.load %arg17[%c1_78, %c1_79, %c0_80] : memref<18x18x128xf32, #tpu.memory_space<vmem>>, vector<16x16x128xf32>
    %97 = vector.shape_cast %96 : vector<16x16x128xf32> to vector<256x128xf32>
    %c1_81 = arith.constant 1 : index
    %c2_82 = arith.constant 2 : index
    %c0_83 = arith.constant 0 : index
    %98 = vector.load %arg17[%c1_81, %c2_82, %c0_83] : memref<18x18x128xf32, #tpu.memory_space<vmem>>, vector<16x16x128xf32>
    %99 = vector.shape_cast %98 : vector<16x16x128xf32> to vector<256x128xf32>
    %c2_84 = arith.constant 2 : index
    %c0_85 = arith.constant 0 : index
    %c0_86 = arith.constant 0 : index
    %100 = vector.load %arg17[%c2_84, %c0_85, %c0_86] : memref<18x18x128xf32, #tpu.memory_space<vmem>>, vector<16x16x128xf32>
    %101 = vector.shape_cast %100 : vector<16x16x128xf32> to vector<256x128xf32>
    %c2_87 = arith.constant 2 : index
    %c1_88 = arith.constant 1 : index
    %c0_89 = arith.constant 0 : index
    %102 = vector.load %arg17[%c2_87, %c1_88, %c0_89] : memref<18x18x128xf32, #tpu.memory_space<vmem>>, vector<16x16x128xf32>
    %103 = vector.shape_cast %102 : vector<16x16x128xf32> to vector<256x128xf32>
    %c2_90 = arith.constant 2 : index
    %c2_91 = arith.constant 2 : index
    %c0_92 = arith.constant 0 : index
    %104 = vector.load %arg17[%c2_90, %c2_91, %c0_92] : memref<18x18x128xf32, #tpu.memory_space<vmem>>, vector<16x16x128xf32>
    %105 = vector.shape_cast %104 : vector<16x16x128xf32> to vector<256x128xf32>
    %106 = tpu.concatenate %89, %91, %93, %95, %97, %99, %101, %103, %105 in 1 : vector<256x128xf32>, vector<256x128xf32>, vector<256x128xf32>, vector<256x128xf32>, vector<256x128xf32>, vector<256x128xf32>, vector<256x128xf32>, vector<256x128xf32>, vector<256x128xf32> -> vector<256x1152xf32>
    %107 = arith.truncf %106 : vector<256x1152xf32> to vector<256x1152xbf16>
    %c0_93 = arith.constant 0 : index
    %c0_94 = arith.constant 0 : index
    %108 = vector.load %arg7[%c0_93, %c0_94] : memref<1152x128xbf16, #tpu.memory_space<vmem>>, vector<1152x128xbf16>
    %cst_95 = arith.constant dense<0.000000e+00> : vector<256x128xf32>
    %109 = tpu.matmul %107, %108, %cst_95 {dimension_numbers = #tpu.dot_dimension_numbers<[1], [0], [0], [1], [0, 0, 1, 1], [], []>} : vector<256x1152xbf16>, vector<1152x128xbf16>, vector<256x128xf32> -> vector<256x128xf32>
    %110 = arith.addf %109, %7 : vector<256x128xf32>
    %111 = vector.extract_strided_slice %110 {offsets = [0, 0], sizes = [256, 32], strides = [1, 1]} : vector<256x128xf32> to vector<256x32xf32>
    %112 = vector.extract_strided_slice %110 {offsets = [0, 32], sizes = [256, 32], strides = [1, 1]} : vector<256x128xf32> to vector<256x32xf32>
    %113 = arith.maximumf %111, %112 : vector<256x32xf32>
    %114 = vector.extract_strided_slice %110 {offsets = [0, 64], sizes = [256, 32], strides = [1, 1]} : vector<256x128xf32> to vector<256x32xf32>
    %115 = vector.extract_strided_slice %110 {offsets = [0, 96], sizes = [256, 32], strides = [1, 1]} : vector<256x128xf32> to vector<256x32xf32>
    %116 = arith.maximumf %114, %115 : vector<256x32xf32>
    %117 = arith.maximumf %113, %116 : vector<256x32xf32>
    %118 = vector.shape_cast %117 : vector<256x32xf32> to vector<16x16x32xf32>
    %c1_96 = arith.constant 1 : index
    %c1_97 = arith.constant 1 : index
    %c0_98 = arith.constant 0 : index
    %119 = vector.load %arg18[%c1_96, %c1_97, %c0_98] : memref<18x18x32xf32, #tpu.memory_space<vmem>>, vector<16x16x32xf32>
    tpu.vector_store %arg18[%c1_96, %c1_97, %c0_98], %118 {strides = array<i32>} : memref<18x18x32xf32, #tpu.memory_space<vmem>>, vector<16x16x32xf32>,
    %c0_99 = arith.constant 0 : index
    %c0_100 = arith.constant 0 : index
    %c0_101 = arith.constant 0 : index
    %120 = vector.load %arg18[%c0_99, %c0_100, %c0_101] : memref<18x18x32xf32, #tpu.memory_space<vmem>>, vector<16x16x32xf32>
    %121 = vector.shape_cast %120 : vector<16x16x32xf32> to vector<256x32xf32>
    %c0_102 = arith.constant 0 : index
    %c1_103 = arith.constant 1 : index
    %c0_104 = arith.constant 0 : index
    %122 = vector.load %arg18[%c0_102, %c1_103, %c0_104] : memref<18x18x32xf32, #tpu.memory_space<vmem>>, vector<16x16x32xf32>
    %123 = vector.shape_cast %122 : vector<16x16x32xf32> to vector<256x32xf32>
    %c0_105 = arith.constant 0 : index
    %c2_106 = arith.constant 2 : index
    %c0_107 = arith.constant 0 : index
    %124 = vector.load %arg18[%c0_105, %c2_106, %c0_107] : memref<18x18x32xf32, #tpu.memory_space<vmem>>, vector<16x16x32xf32>
    %125 = vector.shape_cast %124 : vector<16x16x32xf32> to vector<256x32xf32>
    %c1_108 = arith.constant 1 : index
    %c0_109 = arith.constant 0 : index
    %c0_110 = arith.constant 0 : index
    %126 = vector.load %arg18[%c1_108, %c0_109, %c0_110] : memref<18x18x32xf32, #tpu.memory_space<vmem>>, vector<16x16x32xf32>
    %127 = vector.shape_cast %126 : vector<16x16x32xf32> to vector<256x32xf32>
    %c1_111 = arith.constant 1 : index
    %c1_112 = arith.constant 1 : index
    %c0_113 = arith.constant 0 : index
    %128 = vector.load %arg18[%c1_111, %c1_112, %c0_113] : memref<18x18x32xf32, #tpu.memory_space<vmem>>, vector<16x16x32xf32>
    %129 = vector.shape_cast %128 : vector<16x16x32xf32> to vector<256x32xf32>
    %c1_114 = arith.constant 1 : index
    %c2_115 = arith.constant 2 : index
    %c0_116 = arith.constant 0 : index
    %130 = vector.load %arg18[%c1_114, %c2_115, %c0_116] : memref<18x18x32xf32, #tpu.memory_space<vmem>>, vector<16x16x32xf32>
    %131 = vector.shape_cast %130 : vector<16x16x32xf32> to vector<256x32xf32>
    %c2_117 = arith.constant 2 : index
    %c0_118 = arith.constant 0 : index
    %c0_119 = arith.constant 0 : index
    %132 = vector.load %arg18[%c2_117, %c0_118, %c0_119] : memref<18x18x32xf32, #tpu.memory_space<vmem>>, vector<16x16x32xf32>
    %133 = vector.shape_cast %132 : vector<16x16x32xf32> to vector<256x32xf32>
    %c2_120 = arith.constant 2 : index
    %c1_121 = arith.constant 1 : index
    %c0_122 = arith.constant 0 : index
    %134 = vector.load %arg18[%c2_120, %c1_121, %c0_122] : memref<18x18x32xf32, #tpu.memory_space<vmem>>, vector<16x16x32xf32>
    %135 = vector.shape_cast %134 : vector<16x16x32xf32> to vector<256x32xf32>
    %c2_123 = arith.constant 2 : index
    %c2_124 = arith.constant 2 : index
    %c0_125 = arith.constant 0 : index
    %136 = vector.load %arg18[%c2_123, %c2_124, %c0_125] : memref<18x18x32xf32, #tpu.memory_space<vmem>>, vector<16x16x32xf32>
    %137 = vector.shape_cast %136 : vector<16x16x32xf32> to vector<256x32xf32>
    %138 = tpu.concatenate %121, %123, %125, %127, %129, %131, %133, %135, %137 in 1 : vector<256x32xf32>, vector<256x32xf32>, vector<256x32xf32>, vector<256x32xf32>, vector<256x32xf32>, vector<256x32xf32>, vector<256x32xf32>, vector<256x32xf32>, vector<256x32xf32> -> vector<256x288xf32>
    %139 = arith.truncf %138 : vector<256x288xf32> to vector<256x288xbf16>
    %c0_126 = arith.constant 0 : index
    %c0_127 = arith.constant 0 : index
    %140 = vector.load %arg8[%c0_126, %c0_127] : memref<288x32xbf16, #tpu.memory_space<vmem>>, vector<288x32xbf16>
    %cst_128 = arith.constant dense<0.000000e+00> : vector<256x32xf32>
    %141 = tpu.matmul %139, %140, %cst_128 {dimension_numbers = #tpu.dot_dimension_numbers<[1], [0], [0], [1], [0, 0, 1, 1], [], []>} : vector<256x288xbf16>, vector<288x32xbf16>, vector<256x32xf32> -> vector<256x32xf32>
    %cst_129 = arith.constant dense<0.000000e+00> : vector<32xf32>
    %142 = vector.multi_reduction <add>, %141, %cst_129 [0] : vector<256x32xf32> to vector<32xf32>
    %143 = vector.shape_cast %142 : vector<32xf32> to vector<1x32xf32>
    %144 = arith.mulf %141, %141 : vector<256x32xf32>
    %cst_130 = arith.constant dense<0.000000e+00> : vector<32xf32>
    %145 = vector.multi_reduction <add>, %144, %cst_130 [0] : vector<256x32xf32> to vector<32xf32>
    %146 = vector.shape_cast %145 : vector<32xf32> to vector<1x32xf32>
    %cst_131 = arith.constant 3.906250e-03 : f32
    %147 = vector.broadcast %cst_131 : f32 to vector<1x32xf32>
    %148 = arith.mulf %143, %147 : vector<1x32xf32>
    %cst_132 = arith.constant 3.906250e-03 : f32
    %149 = vector.broadcast %cst_132 : f32 to vector<1x32xf32>
    %150 = arith.mulf %146, %149 : vector<1x32xf32>
    %151 = arith.mulf %148, %148 : vector<1x32xf32>
    %152 = arith.subf %150, %151 : vector<1x32xf32>
    %cst_133 = arith.constant 0.000000e+00 : f32
    %153 = vector.broadcast %cst_133 : f32 to vector<1x32xf32>
    %154 = arith.maximumf %152, %153 : vector<1x32xf32>
    %c0_134 = arith.constant 0 : index
    %c0_135 = arith.constant 0 : index
    %155 = vector.load %arg9[%c0_134, %c0_135] : memref<1x32xf32, #tpu.memory_space<vmem>>, vector<1x32xf32>
    %cst_136 = arith.constant 9.99999974E-6 : f32
    %156 = vector.broadcast %cst_136 : f32 to vector<1x32xf32>
    %157 = arith.addf %154, %156 : vector<1x32xf32>
    %158 = math.rsqrt %157 : vector<1x32xf32>
    %159 = arith.mulf %155, %158 : vector<1x32xf32>
    %c0_137 = arith.constant 0 : index
    %c0_138 = arith.constant 0 : index
    %160 = vector.load %arg10[%c0_137, %c0_138] : memref<1x32xf32, #tpu.memory_space<vmem>>, vector<1x32xf32>
    %161 = arith.mulf %148, %159 : vector<1x32xf32>
    %162 = arith.subf %160, %161 : vector<1x32xf32>
    %163 = vector.broadcast %159 : vector<1x32xf32> to vector<256x32xf32>
    %164 = arith.mulf %141, %163 : vector<256x32xf32>
    %165 = vector.broadcast %162 : vector<1x32xf32> to vector<256x32xf32>
    %166 = arith.addf %164, %165 : vector<256x32xf32>
    %cst_139 = arith.constant 0.000000e+00 : f32
    %167 = vector.broadcast %cst_139 : f32 to vector<256x32xf32>
    %168 = arith.maximumf %166, %167 : vector<256x32xf32>
    %169 = vector.shape_cast %168 : vector<256x32xf32> to vector<16x16x32xf32>
    %c1_140 = arith.constant 1 : index
    %c1_141 = arith.constant 1 : index
    %c0_142 = arith.constant 0 : index
    %170 = vector.load %arg18[%c1_140, %c1_141, %c0_142] : memref<18x18x32xf32, #tpu.memory_space<vmem>>, vector<16x16x32xf32>
    tpu.vector_store %arg18[%c1_140, %c1_141, %c0_142], %169 {strides = array<i32>} : memref<18x18x32xf32, #tpu.memory_space<vmem>>, vector<16x16x32xf32>,
    %c0_143 = arith.constant 0 : index
    %c0_144 = arith.constant 0 : index
    %c0_145 = arith.constant 0 : index
    %171 = vector.load %arg18[%c0_143, %c0_144, %c0_145] : memref<18x18x32xf32, #tpu.memory_space<vmem>>, vector<16x16x32xf32>
    %172 = vector.shape_cast %171 : vector<16x16x32xf32> to vector<256x32xf32>
    %c0_146 = arith.constant 0 : index
    %c1_147 = arith.constant 1 : index
    %c0_148 = arith.constant 0 : index
    %173 = vector.load %arg18[%c0_146, %c1_147, %c0_148] : memref<18x18x32xf32, #tpu.memory_space<vmem>>, vector<16x16x32xf32>
    %174 = vector.shape_cast %173 : vector<16x16x32xf32> to vector<256x32xf32>
    %c0_149 = arith.constant 0 : index
    %c2_150 = arith.constant 2 : index
    %c0_151 = arith.constant 0 : index
    %175 = vector.load %arg18[%c0_149, %c2_150, %c0_151] : memref<18x18x32xf32, #tpu.memory_space<vmem>>, vector<16x16x32xf32>
    %176 = vector.shape_cast %175 : vector<16x16x32xf32> to vector<256x32xf32>
    %c1_152 = arith.constant 1 : index
    %c0_153 = arith.constant 0 : index
    %c0_154 = arith.constant 0 : index
    %177 = vector.load %arg18[%c1_152, %c0_153, %c0_154] : memref<18x18x32xf32, #tpu.memory_space<vmem>>, vector<16x16x32xf32>
    %178 = vector.shape_cast %177 : vector<16x16x32xf32> to vector<256x32xf32>
    %c1_155 = arith.constant 1 : index
    %c1_156 = arith.constant 1 : index
    %c0_157 = arith.constant 0 : index
    %179 = vector.load %arg18[%c1_155, %c1_156, %c0_157] : memref<18x18x32xf32, #tpu.memory_space<vmem>>, vector<16x16x32xf32>
    %180 = vector.shape_cast %179 : vector<16x16x32xf32> to vector<256x32xf32>
    %c1_158 = arith.constant 1 : index
    %c2_159 = arith.constant 2 : index
    %c0_160 = arith.constant 0 : index
    %181 = vector.load %arg18[%c1_158, %c2_159, %c0_160] : memref<18x18x32xf32, #tpu.memory_space<vmem>>, vector<16x16x32xf32>
    %182 = vector.shape_cast %181 : vector<16x16x32xf32> to vector<256x32xf32>
    %c2_161 = arith.constant 2 : index
    %c0_162 = arith.constant 0 : index
    %c0_163 = arith.constant 0 : index
    %183 = vector.load %arg18[%c2_161, %c0_162, %c0_163] : memref<18x18x32xf32, #tpu.memory_space<vmem>>, vector<16x16x32xf32>
    %184 = vector.shape_cast %183 : vector<16x16x32xf32> to vector<256x32xf32>
    %c2_164 = arith.constant 2 : index
    %c1_165 = arith.constant 1 : index
    %c0_166 = arith.constant 0 : index
    %185 = vector.load %arg18[%c2_164, %c1_165, %c0_166] : memref<18x18x32xf32, #tpu.memory_space<vmem>>, vector<16x16x32xf32>
    %186 = vector.shape_cast %185 : vector<16x16x32xf32> to vector<256x32xf32>
    %c2_167 = arith.constant 2 : index
    %c2_168 = arith.constant 2 : index
    %c0_169 = arith.constant 0 : index
    %187 = vector.load %arg18[%c2_167, %c2_168, %c0_169] : memref<18x18x32xf32, #tpu.memory_space<vmem>>, vector<16x16x32xf32>
    %188 = vector.shape_cast %187 : vector<16x16x32xf32> to vector<256x32xf32>
    %189 = tpu.concatenate %172, %174, %176, %178, %180, %182, %184, %186, %188 in 1 : vector<256x32xf32>, vector<256x32xf32>, vector<256x32xf32>, vector<256x32xf32>, vector<256x32xf32>, vector<256x32xf32>, vector<256x32xf32>, vector<256x32xf32>, vector<256x32xf32> -> vector<256x288xf32>
    %190 = arith.truncf %189 : vector<256x288xf32> to vector<256x288xbf16>
    %c0_170 = arith.constant 0 : index
    %c0_171 = arith.constant 0 : index
    %191 = vector.load %arg11[%c0_170, %c0_171] : memref<288x32xbf16, #tpu.memory_space<vmem>>, vector<288x32xbf16>
    %cst_172 = arith.constant dense<0.000000e+00> : vector<256x32xf32>
    %192 = tpu.matmul %190, %191, %cst_172 {dimension_numbers = #tpu.dot_dimension_numbers<[1], [0], [0], [1], [0, 0, 1, 1], [], []>} : vector<256x288xbf16>, vector<288x32xbf16>, vector<256x32xf32> -> vector<256x32xf32>
    %cst_173 = arith.constant dense<0.000000e+00> : vector<32xf32>
    %193 = vector.multi_reduction <add>, %192, %cst_173 [0] : vector<256x32xf32> to vector<32xf32>
    %194 = vector.shape_cast %193 : vector<32xf32> to vector<1x32xf32>
    %195 = arith.mulf %192, %192 : vector<256x32xf32>
    %cst_174 = arith.constant dense<0.000000e+00> : vector<32xf32>
    %196 = vector.multi_reduction <add>, %195, %cst_174 [0] : vector<256x32xf32> to vector<32xf32>
    %197 = vector.shape_cast %196 : vector<32xf32> to vector<1x32xf32>
    %cst_175 = arith.constant 3.906250e-03 : f32
    %198 = vector.broadcast %cst_175 : f32 to vector<1x32xf32>
    %199 = arith.mulf %194, %198 : vector<1x32xf32>
    %cst_176 = arith.constant 3.906250e-03 : f32
    %200 = vector.broadcast %cst_176 : f32 to vector<1x32xf32>
    %201 = arith.mulf %197, %200 : vector<1x32xf32>
    %202 = arith.mulf %199, %199 : vector<1x32xf32>
    %203 = arith.subf %201, %202 : vector<1x32xf32>
    %cst_177 = arith.constant 0.000000e+00 : f32
    %204 = vector.broadcast %cst_177 : f32 to vector<1x32xf32>
    %205 = arith.maximumf %203, %204 : vector<1x32xf32>
    %c0_178 = arith.constant 0 : index
    %c0_179 = arith.constant 0 : index
    %206 = vector.load %arg12[%c0_178, %c0_179] : memref<1x32xf32, #tpu.memory_space<vmem>>, vector<1x32xf32>
    %cst_180 = arith.constant 9.99999974E-6 : f32
    %207 = vector.broadcast %cst_180 : f32 to vector<1x32xf32>
    %208 = arith.addf %205, %207 : vector<1x32xf32>
    %209 = math.rsqrt %208 : vector<1x32xf32>
    %210 = arith.mulf %206, %209 : vector<1x32xf32>
    %c0_181 = arith.constant 0 : index
    %c0_182 = arith.constant 0 : index
    %211 = vector.load %arg13[%c0_181, %c0_182] : memref<1x32xf32, #tpu.memory_space<vmem>>, vector<1x32xf32>
    %212 = arith.mulf %199, %210 : vector<1x32xf32>
    %213 = arith.subf %211, %212 : vector<1x32xf32>
    %214 = vector.broadcast %210 : vector<1x32xf32> to vector<256x32xf32>
    %215 = arith.mulf %192, %214 : vector<256x32xf32>
    %216 = vector.broadcast %213 : vector<1x32xf32> to vector<256x32xf32>
    %217 = arith.addf %215, %216 : vector<256x32xf32>
    %cst_183 = arith.constant 0.000000e+00 : f32
    %218 = vector.broadcast %cst_183 : f32 to vector<256x32xf32>
    %219 = arith.maximumf %217, %218 : vector<256x32xf32>
    %220 = arith.truncf %219 : vector<256x32xf32> to vector<256x32xbf16>
    %c0_184 = arith.constant 0 : index
    %c0_185 = arith.constant 0 : index
    %221 = vector.load %arg14[%c0_184, %c0_185] : memref<32x1xbf16, #tpu.memory_space<vmem>>, vector<32x1xbf16>
    %cst_186 = arith.constant dense<0.000000e+00> : vector<256x1xf32>
    %222 = tpu.matmul %220, %221, %cst_186 {dimension_numbers = #tpu.dot_dimension_numbers<[1], [0], [0], [1], [0, 0, 1, 1], [], []>} : vector<256x32xbf16>, vector<32x1xbf16>, vector<256x1xf32> -> vector<256x1xf32>
    %c0_187 = arith.constant 0 : index
    %c0_188 = arith.constant 0 : index
    %223 = vector.load %arg15[%c0_187, %c0_188] : memref<1x1xf32, #tpu.memory_space<vmem>>, vector<1x1xf32>
    %224 = vector.broadcast %223 : vector<1x1xf32> to vector<256x1xf32>
    %225 = arith.addf %222, %224 : vector<256x1xf32>
    %c0_189 = arith.constant 0 : index
    %c0_190 = arith.constant 0 : index
    %c0_191 = arith.constant 0 : index
    %226 = vector.load %arg16[%c0_189, %c0_190, %c0_191] : memref<1x256x1xf32, #tpu.memory_space<vmem>>, vector<1x256x1xf32>
    %227 = vector.shape_cast %226 : vector<1x256x1xf32> to vector<256x1xf32>
    %228 = vector.shape_cast %225 : vector<256x1xf32> to vector<1x256x1xf32>
    tpu.vector_store %arg16[%c0_189, %c0_190, %c0_191], %228 {strides = array<i32>} : memref<1x256x1xf32, #tpu.memory_space<vmem>>, vector<1x256x1xf32>,
    return
  }
  func.func @transform_0(%arg0: i32) -> (i32, i32, i32, i32) {
    %c0_i32 = arith.constant 0 : i32
    %c0_i32_0 = arith.constant 0 : i32
    %c0_i32_1 = arith.constant 0 : i32
    %c0_i32_2 = arith.constant 0 : i32
    return %arg0, %c0_i32, %c0_i32_0, %c0_i32_1 : i32, i32, i32, i32
  }
  func.func @transform_1(%arg0: i32) -> (i32, i32) {
    %c0_i32 = arith.constant 0 : i32
    %c0_i32_0 = arith.constant 0 : i32
    %c0_i32_1 = arith.constant 0 : i32
    return %c0_i32, %c0_i32_0 : i32, i32
  }
  func.func @transform_2(%arg0: i32) -> (i32, i32) {
    %c0_i32 = arith.constant 0 : i32
    %c0_i32_0 = arith.constant 0 : i32
    %c0_i32_1 = arith.constant 0 : i32
    return %c0_i32, %c0_i32_0 : i32, i32
  }
  func.func @transform_3(%arg0: i32) -> (i32, i32) {
    %c0_i32 = arith.constant 0 : i32
    %c0_i32_0 = arith.constant 0 : i32
    %c0_i32_1 = arith.constant 0 : i32
    return %c0_i32, %c0_i32_0 : i32, i32
  }
  func.func @transform_4(%arg0: i32) -> (i32, i32) {
    %c0_i32 = arith.constant 0 : i32
    %c0_i32_0 = arith.constant 0 : i32
    %c0_i32_1 = arith.constant 0 : i32
    return %c0_i32, %c0_i32_0 : i32, i32
  }
  func.func @transform_5(%arg0: i32) -> (i32, i32) {
    %c0_i32 = arith.constant 0 : i32
    %c0_i32_0 = arith.constant 0 : i32
    %c0_i32_1 = arith.constant 0 : i32
    return %c0_i32, %c0_i32_0 : i32, i32
  }
  func.func @transform_6(%arg0: i32) -> (i32, i32) {
    %c0_i32 = arith.constant 0 : i32
    %c0_i32_0 = arith.constant 0 : i32
    %c0_i32_1 = arith.constant 0 : i32
    return %c0_i32, %c0_i32_0 : i32, i32
  }
  func.func @transform_7(%arg0: i32) -> (i32, i32) {
    %c0_i32 = arith.constant 0 : i32
    %c0_i32_0 = arith.constant 0 : i32
    %c0_i32_1 = arith.constant 0 : i32
    return %c0_i32, %c0_i32_0 : i32, i32
  }
  func.func @transform_8(%arg0: i32) -> (i32, i32) {
    %c0_i32 = arith.constant 0 : i32
    %c0_i32_0 = arith.constant 0 : i32
    %c0_i32_1 = arith.constant 0 : i32
    return %c0_i32, %c0_i32_0 : i32, i32
  }
  func.func @transform_9(%arg0: i32) -> (i32, i32) {
    %c0_i32 = arith.constant 0 : i32
    %c0_i32_0 = arith.constant 0 : i32
    %c0_i32_1 = arith.constant 0 : i32
    return %c0_i32, %c0_i32_0 : i32, i32
  }
  func.func @transform_10(%arg0: i32) -> (i32, i32) {
    %c0_i32 = arith.constant 0 : i32
    %c0_i32_0 = arith.constant 0 : i32
    %c0_i32_1 = arith.constant 0 : i32
    return %c0_i32, %c0_i32_0 : i32, i32
  }
  func.func @transform_11(%arg0: i32) -> (i32, i32) {
    %c0_i32 = arith.constant 0 : i32
    %c0_i32_0 = arith.constant 0 : i32
    %c0_i32_1 = arith.constant 0 : i32
    return %c0_i32, %c0_i32_0 : i32, i32
  }
  func.func @transform_12(%arg0: i32) -> (i32, i32) {
    %c0_i32 = arith.constant 0 : i32
    %c0_i32_0 = arith.constant 0 : i32
    %c0_i32_1 = arith.constant 0 : i32
    return %c0_i32, %c0_i32_0 : i32, i32
  }
  func.func @transform_13(%arg0: i32) -> (i32, i32) {
    %c0_i32 = arith.constant 0 : i32
    %c0_i32_0 = arith.constant 0 : i32
    %c0_i32_1 = arith.constant 0 : i32
    return %c0_i32, %c0_i32_0 : i32, i32
  }
  func.func @transform_14(%arg0: i32) -> (i32, i32) {
    %c0_i32 = arith.constant 0 : i32
    %c0_i32_0 = arith.constant 0 : i32
    %c0_i32_1 = arith.constant 0 : i32
    return %c0_i32, %c0_i32_0 : i32, i32
  }
  func.func @transform_15(%arg0: i32) -> (i32, i32, i32) {
    %c0_i32 = arith.constant 0 : i32
    %c0_i32_0 = arith.constant 0 : i32
    %c0_i32_1 = arith.constant 0 : i32
    return %arg0, %c0_i32, %c0_i32_0 : i32, i32, i32
  }
}

</mosaic_0001>

<bundles_post_ra>
// kernel: tpu_custom_call.1
= control target key start
LH: loop header
LB: loop body
LE: loop exit
PB: predicated region body
PF: predicated region fallthrough
CT: control target
= control target key end

     0   :  { %s17982_s0 = inlined_call_operand.vmem [shape: bf16[2,16,16,128], index: 0, kind: input, shape index: {}]   ;;  %s17983_s1 = inlined_call_operand.vmem [shape: f32[1,128], index: 1, kind: input, shape index: {}]   ;;  %s17984_s2 = inlined_call_operand.vmem [shape: f32[1,128], index: 2, kind: input, shape index: {}]   ;;  %s17985_s3 = inlined_call_operand.hbm [shape: bf16[1152,128], index: 3, kind: input, shape index: {}]   ;;  %s17986_s4 = inlined_call_operand.vmem [shape: f32[1,128], index: 4, kind: input, shape index: {}]   ;;  %s17987_s5 = inlined_call_operand.vmem [shape: f32[1,128], index: 5, kind: input, shape index: {}]   ;;  %s17988_s6 = inlined_call_operand.hbm [shape: bf16[1152,128], index: 6, kind: input, shape index: {}]   ;;  %s17989_s7 = inlined_call_operand.vmem [shape: bf16[288,32], index: 7, kind: input, shape index: {}]   ;;  %s17990_s8 = inlined_call_operand.vmem [shape: f32[1,32], index: 8, kind: input, shape index: {}]   ;;  %s17991_s9 = inlined_call_operand.vmem [shape: f32[1,32], index: 9, kind: input, shape index: {}]   ;;  %s17992_s10 = inlined_call_operand.vmem [shape: bf16[288,32], index: 10, kind: input, shape index: {}]   ;;  %s17993_s11 = inlined_call_operand.vmem [shape: f32[1,32], index: 11, kind: input, shape index: {}]   ;;  %s17994_s12 = inlined_call_operand.vmem [shape: f32[1,32], index: 12, kind: input, shape index: {}]   ;;  %s17995_s13 = inlined_call_operand.vmem [shape: bf16[32,1], index: 13, kind: input, shape index: {}]   ;;  %s17996_s14 = inlined_call_operand.<no memory space> [shape: f32[1,1], index: 14, kind: input, shape index: {}]   ;;  %s17997_s15 = inlined_call_operand.vmem [shape: f32[2,256,1], index: 15, kind: output, shape index: {}]  }
   0x1   :  { %v20_v0 = vstv %s17996_s14 }
   0x2   :  { %21 = vst [vmem:[#allocation4] sm:$0x1] %v20_v0 }
   0x3   :  { %22 = vsyncpa [#allocation6], 0 }
   0x4   :  { %23 = vsyncpa [#allocation8], 0  ;;  %s12908_s20 = smov 0  }
   0x5 LB: > { %s12914_s21 = sadd.s32 4294967295, %s12814_s20   ;;  %p9794_p0 = scmp.ge.s32.totalorder %s12814_s20, 1  ;;  %s12814_s20 = sphi %s12908_s20, %s29_s20  }
   0x6   : > { %p380_p1 = scmp.lt.s32.totalorder %s12814_s20, 3  ;;  %s12816_s14 = smov [#allocation5]  }
   0x7   : > { %s398_s22 = sshll.u32 %s12816_s14, 4  ;;  %p11576_p3 = scmp.eq.s32.totalorder %s12914_s21, 0  ;;  %s399_s22 = int_to_ptr.vmem [resolvable:$true] %s398_s22 }
   0x8   : > { %p12918_p2 = pnand %p9794_p0, %p380_p1  ;;  %s12817_s24 = smov [#allocation7]  }
   0x9   : > { %s417_s25 = sshll.u32 %s12817_s24, 4  ;;  %s12759_s27 = scalar_lea.vmem %s399_s22, 9216  ;;  %s418_s25 = int_to_ptr.vmem [resolvable:$true] %s417_s25 }
   0xa   : > { %p11569_p4 = pneg %p12918_p2  ;;  %p12760_p7 = scmp.ne.s32.totalorder %s399_s22, %s12759_s27 }
   0xb   : > { %p12767_p10 = scmp.lt.s32.totalorder %s399_s22, %s399_s22  ;;  %p12768_p11 = scmp.lt.s32.totalorder %s12759_s27, %s12759_s27 }
   0xc   : > { %p12927_p5 = pnand %p11576_p3, %p11569_p4 }
   0xd   : > { %p12769_p12 = por %p12768_p11, %p12767_p10 }
   0xe   : > { %p12750_p6 = pneg %p12927_p5 }
  0x10   : > { %p12762_p8 = pnand %p12760_p7, %p12750_p6 }
  0x12   : > { %p12763_p9 = pneg %p12762_p8 }
  0x14   : > { %p12770_p13 = pnand %p12769_p12, %p12763_p9 }
  0x16   : > { %12773 = shalt.err (!%p12770_p13)
}
  0x17   : > { %s12818_s28 = smov 64   ;;  %s12819_s29 = smov 4  }
  0x18   : > { %11572 = dma.hbm_to_vmem [thread:$0]  (!%p12927_p5), %s17985_s3, 9216, %s399_s22, [#allocation6], %s12818_s28, %s12818_s28, %s12819_s29  }
  0x19   : > { %s12785_s17 = scalar_lea.vmem %s418_s25, 9216  ;;  %p12793_p7 = scmp.lt.s32.totalorder %s418_s25, %s418_s25 }
  0x1a   : > { %p12786_p0 = scmp.ne.s32.totalorder %s418_s25, %s12785_s17  ;;  %p12794_p8 = scmp.lt.s32.totalorder %s12785_s17, %s12785_s17 }
  0x1c   : > { %p12788_p1 = pnand %p12786_p0, %p12750_p6  ;;  %p12795_p10 = por %p12794_p8, %p12793_p7 }
  0x1e   : > { %p12789_p4 = pneg %p12788_p1 }
  0x20   : > { %p12796_p9 = pnand %p12795_p10, %p12789_p4 }
  0x22   : > { %12799 = shalt.err (!%p12796_p9)
}
  0x23   : > { %11575 = dma.hbm_to_vmem [thread:$0]  (!%p12927_p5), %s17988_s6, 9216, %s418_s25, [#allocation8], %s12818_s28, %s12818_s28, %s12819_s29  }
  0x24   : > { %465 = sbr.rel (%p12918_p2) target bundleno = 2839 (0xb17), region = 80 }
  0x29   : > { %12805 = dma.done.wait (%p11576_p3), [#allocation6], 9216  }
  0x2a   : > { %12807 = vsyncadd (%p11576_p3), [#allocation6], 4294958080 }
  0x2b   : > { %12809 = dma.done.wait (%p11576_p3), [#allocation8], 9216  }
  0x2c   : > { %12811 = vsyncadd (%p11576_p3), [#allocation8], 4294958080  ;;  %v12820_v1 = vmov 0.0   ;;  %v12556_v2 = vld [vmem:[#allocation5 + $0x78] sm:$0xff]   ;;  %v12558_v4 = vld [vmem:[#allocation5 + $0x70] sm:$0xff]   ;;  %p517_p2 = scmp.lt.s32.totalorder %s12914_s21, 1 }
  0x2d   : > { %528 = vst [vmem:[#allocation2] sm:$0xff] %v12820_v1  ;;  %529 = vst [vmem:[#allocation2 + $0x8] sm:$0xff] %v12820_v1  ;;  %v12557_v3 = vld [vmem:[#allocation5 + $0x38] sm:$0xff]   ;;  %10119 = vmatprep.subr.bf16.mxu0 %v12556_v2  ;;  %11545 = vmatprep.subr.bf16.mxu1 %v12556_v2  ;;  %v12559_v5 = vld [vmem:[#allocation5 + $0x30] sm:$0xff]   ;;  %v12821_v45 = vmov 0.0|0.0   ;;  %vm582_vm0 = vcmask 261120  }
  0x2e   : > { %530 = vst [vmem:[#allocation2 + $0x10] sm:$0x3] %v12820_v1  ;;  %531 = vst [vmem:[#allocation2 + $0x18] sm:$0xff] %v12820_v1  ;;  %10120 = vmatpush3.bf16.msra.mxu0 %v12557_v3  ;;  %11553 = vmatpush3.bf16.msra.mxu1 %v12557_v3  ;;  %v12560_v6 = vld [vmem:[#allocation5 + $0x68] sm:$0xff]   ;;  %v12562_v8 = vld [vmem:[#allocation5 + $0x60] sm:$0xff]   ;;  %s18233_s21 = smov (!%p517_p2, %s12914_s21), 1 }
  0x2f   : > { %532 = vst [vmem:[#allocation2 + $0x20] sm:$0xff] %v12820_v1  ;;  %533 = vst [vmem:[#allocation2 + $0x28] sm:$0x3] %v12820_v1  ;;  %10121 = vmatprep.subr.bf16.mxu0 %v12558_v4  ;;  %11546 = vmatprep.subr.bf16.mxu1 %v12558_v4  ;;  %v12561_v7 = vld [vmem:[#allocation5 + $0x28] sm:$0xff]   ;;  %v12563_v9 = vld [vmem:[#allocation5 + $0x20] sm:$0xff]   ;;  %s10038_s14 = sshll.u32 %s18233_s21, 7 }
  0x30   : > { %534 = vst [vmem:[#allocation2 + $0x30] sm:$0xff] %v12820_v1  ;;  %535 = vst [vmem:[#allocation2 + $0x38] sm:$0xff] %v12820_v1  ;;  %v12564_v10 = vld [vmem:[#allocation5 + $0x58] sm:$0xff]   ;;  %s12967_s24 = scalar_lea.vmem %s17982_s0, %s10038_s14  ;;  %v12566_v12 = vld [vmem:[#allocation5 + $0x50] sm:$0xff]   ;;  %vm585_vm1 = vcmask 254976   ;;  %s12822_s18 = smov 32  }
  0x31   : > { %536 = vst [vmem:[#allocation2 + $0x40] sm:$0x3] %v12820_v1  ;;  %537 = vst [vmem:[#allocation2 + $0x48] sm:$0xff] %v12820_v1  ;;  %v12565_v11 = vld [vmem:[#allocation5 + $0x18] sm:$0xff]   ;;  %v12567_v17 = vld [vmem:[#allocation5 + $0x10] sm:$0xff]   ;;  %s12823_s19 = smov 64  }
  0x32   : > { %538 = vst [vmem:[#allocation2 + $0x50] sm:$0xff] %v12820_v1  ;;  %539 = vst [vmem:[#allocation2 + $0x58] sm:$0x3] %v12820_v1  ;;  %10122 = vmatpush3.bf16.msra.mxu0 %v12559_v5  ;;  %11554 = vmatpush3.bf16.msra.mxu1 %v12559_v5  ;;  %v10041_v16 = vld [vmem:[%s12967_s24] sm:$0xff]   ;;  %v12568_v18 = vld [vmem:[#allocation5 + $0x48] sm:$0xff]   ;;  %s12824_s14 = smov 96  }
  0x33   : > { %540 = vst [vmem:[#allocation2 + $0x60] sm:$0xff] %v12820_v1  ;;  %541 = vst [vmem:[#allocation2 + $0x68] sm:$0xff] %v12820_v1  ;;  %10123 = vmatprep.subr.bf16.mxu0 %v12560_v6  ;;  %11547 = vmatprep.subr.bf16.mxu1 %v12560_v6  ;;  %v10104_v19 = vld [vmem:[%s12967_s24 + $0x8] sm:$0xff]   ;;  %v12971_v20 = vunpack.c.l.bf16 %v10041_v16  ;;  %v12973_v21 = vunpack.c.h.bf16 %v10041_v16  ;;  %v10105_v25 = vld [vmem:[%s12967_s24 + $0x10] sm:$0xff]   ;;  %vm6288_vm2 = vcmask 523264   ;;  %vm6321_vm3 = vcmask 785408  }
  0x34   : > { %542 = vst [vmem:[#allocation2 + $0x70] sm:$0x3] %v12820_v1  ;;  %543 = vst [vmem:[#allocation2 + $0x78] sm:$0xff] %v12820_v1  ;;  %v993_v13 = vld [vmem:[#allocation2 + $0x1] sm:$0xff]  ;;  %v12569_v22 = vld [vmem:[#allocation5 + $0x8] sm:$0xff]   ;;  %v12975_v24 = vunpack.c.l.bf16 %v10104_v19  ;;  %v12978_v27 = vunpack.c.h.bf16 %v10104_v19  ;;  %v12982_v29 = vunpack.c.l.bf16 %v10105_v25  ;;  %v12986_v34 = vunpack.c.h.bf16 %v10105_v25  ;;  %s10039_s26 = sshll.u32 %s18233_s21, 8 }
  0x35   : > { %544 = vst [vmem:[#allocation2 + $0x80] sm:$0xff] %v12820_v1  ;;  %545 = vst [vmem:[#allocation2 + $0x88] sm:$0x3] %v12820_v1  ;;  %v994_v14 = vld [vmem:[#allocation2 + $0x9] sm:$0xff]  ;;  %v12570_v23 = vld [vmem:[#allocation5 + $0x40] sm:$0xff]   ;;  %v702_v28 = vadd.f32 %v12973_v21, %v12971_v20  ;;  %v739_v39 = vmul.f32 %v12971_v20, %v12971_v20  ;;  %v740_v40 = vmul.f32 %v12973_v21, %v12973_v21  ;;  %s17881_s29 = scalar_lea.vmem %s17997_s15, %s10039_s26  ;;  %vm9682_vm4 = vcmask 7168  }
  0x36   : > { %546 = vst [vmem:[#allocation2 + $0x90] sm:$0xff] %v12820_v1  ;;  %547 = vst [vmem:[#allocation2 + $0x98] sm:$0xff] %v12820_v1  ;;  %10124 = vmatpush3.bf16.msra.mxu0 %v12561_v7  ;;  %11555 = vmatpush3.bf16.msra.mxu1 %v12561_v7  ;;  %v1251_v15 = vpack.c.bf16 %v994_v14, %v993_v13  ;;  %v12571_v26 = vld [vmem:[#allocation5] sm:$0xff]   ;;  %v10106_v30 = vld [vmem:[%s12967_s24 + $0x18] sm:$0xff]   ;;  %v741_v44 = vmul.f32 %v12975_v24, %v12975_v24 }
  0x37   : > { %548 = vst [vmem:[#allocation2 + $0xa0] sm:$0x3] %v12820_v1  ;;  %549 = vst [vmem:[#allocation2 + $0xa8] sm:$0xff] %v12820_v1  ;;  %10125 = vmatprep.subr.bf16.mxu0 %v12562_v8  ;;  %11548 = vmatprep.subr.bf16.mxu1 %v12562_v8  ;;  %v703_v31 = vadd.f32 %v12975_v24, %v702_v28  ;;  %v12572_v32 = vld [vmem:[#allocation5 + $0xf8] sm:$0xff]   ;;  %v12990_v37 = vunpack.c.l.bf16 %v10106_v30  ;;  %v12997_v42 = vunpack.c.h.bf16 %v10106_v30  ;;  %v10108_v50 = vld [vmem:[%s12967_s24 + $0x28] sm:$0xff]  }
  0x38   : > { %550 = vst [vmem:[#allocation2 + $0xb0] sm:$0xff] %v12820_v1  ;;  %551 = vst [vmem:[#allocation2 + $0xb8] sm:$0x3] %v12820_v1  ;;  %2002 = vmatprep.mubr.bf16.mxu0 %v1251_v15  ;;  %v12573_v33 = vld [vmem:[#allocation5 + $0x178] sm:$0xff]   ;;  %v742_v48 = vmul.f32 %v12978_v27, %v12978_v27  ;;  %v771_v49 = vadd.f32 %v740_v40, %v739_v39  ;;  %v12581_v51 = vld [vmem:[#allocation5 + $0x170] sm:$0xff]   ;;  %v743_v54 = vmul.f32 %v12982_v29, %v12982_v29 }
  0x39   : > { %552 = vst [vmem:[#allocation2 + $0xc0] sm:$0xff] %v12820_v1  ;;  %553 = vst [vmem:[#allocation2 + $0xc8] sm:$0xff] %v12820_v1  ;;  %v704_v35 = vadd.f32 %v12978_v27, %v703_v31  ;;  %v10107_v36 = vld [vmem:[%s12967_s24 + $0x20] sm:$0xff]   ;;  %v13013_v56 = vunpack.c.l.bf16 %v10108_v50  ;;  %v10109_v57 = vld [vmem:[%s12967_s24 + $0x30] sm:$0xff]   ;;  %v744_v59 = vmul.f32 %v12986_v34, %v12986_v34  ;;  %v13019_v62 = vunpack.c.h.bf16 %v10108_v50 }
  0x3a   : > { %554 = vst [vmem:[#allocation2 + $0xd0] sm:$0x3] %v12820_v1  ;;  %555 = vst [vmem:[#allocation2 + $0xd8] sm:$0xff] %v12820_v1  ;;  %10126 = vmatpush3.bf16.msra.mxu0 %v12563_v9  ;;  %11556 = vmatpush3.bf16.msra.mxu1 %v12563_v9  ;;  %v12575_v41 = vld [vmem:[#allocation5 + $0x138] sm:$0xff]   ;;  %v13002_v46 = vunpack.c.l.bf16 %v10107_v36  ;;  %v13008_v52 = vunpack.c.h.bf16 %v10107_v36  ;;  %v772_v55 = vadd.f32 %v771_v49, %v741_v44  ;;  %v12583_v61 = vld [vmem:[#allocation5 + $0x130] sm:$0xff]   ;;  %v13024_v2 = vunpack.c.l.bf16 %v10109_v57 }
  0x3b   : > { %556 = vst [vmem:[#allocation2 + $0xe0] sm:$0xff] %v12820_v1  ;;  %557 = vst [vmem:[#allocation2 + $0xe8] sm:$0x3] %v12820_v1  ;;  %10127 = vmatprep.subr.bf16.mxu0 %v12564_v10  ;;  %11549 = vmatprep.subr.bf16.mxu1 %v12564_v10  ;;  %v705_v38 = vadd.f32 %v12982_v29, %v704_v35  ;;  %v745_v0 = vmul.f32 %v12990_v37, %v12990_v37  ;;  %v10110_v6 = vld [vmem:[%s12967_s24 + $0x38] sm:$0xff]   ;;  %v13030_v7 = vunpack.c.h.bf16 %v10109_v57  ;;  %v12589_v16 = vld [vmem:[#allocation5 + $0x168] sm:$0xff]  }
  0x3c   : > { %558 = vst [vmem:[#allocation2 + $0xf0] sm:$0xff] %v12820_v1  ;;  %559 = vst [vmem:[#allocation2 + $0xf8] sm:$0xff] %v12820_v1  ;;  %v773_v60 = vadd.f32 %v772_v55, %v742_v48  ;;  %v746_v4 = vmul.f32 %v12997_v42, %v12997_v42  ;;  %v747_v9 = vmul.f32 %v13002_v46, %v13002_v46  ;;  %v12591_v30 = vld [vmem:[#allocation5 + $0x128] sm:$0xff]   ;;  %v10114_v49 = vld [vmem:[%s12967_s24 + $0x58] sm:$0xff]  }
  0x3d   : > { %560 = vst [vmem:[#allocation2 + $0x100] sm:$0x3] %v12820_v1  ;;  %561 = vst [vmem:[#allocation2 + $0x108] sm:$0xff] %v12820_v1  ;;  %v706_v43 = vadd.f32 %v12986_v34, %v705_v38  ;;  %v748_v14 = vmul.f32 %v13008_v52, %v13008_v52  ;;  %v749_v19 = vmul.f32 %v13013_v56, %v13013_v56  ;;  %v10112_v31 = vld [vmem:[%s12967_s24 + $0x48] sm:$0xff]   ;;  %v10113_v39 = vld [vmem:[%s12967_s24 + $0x50] sm:$0xff]  }
  0x3e   : > { %562 = vst [vmem:[#allocation2 + $0x110] sm:$0xff] %v12820_v1  ;;  %563 = vst [vmem:[#allocation2 + $0x118] sm:$0x3] %v12820_v1  ;;  %10128 = vmatpush3.bf16.msra.mxu0 %v12565_v11  ;;  %11557 = vmatpush3.bf16.msra.mxu1 %v12565_v11  ;;  %v13035_v11 = vunpack.c.l.bf16 %v10110_v6  ;;  %v751_v35 = vmul.f32 %v13024_v2, %v13024_v2  ;;  %v13057_v38 = vunpack.c.l.bf16 %v10112_v31  ;;  %v13063_v44 = vunpack.c.h.bf16 %v10112_v31  ;;  %v12596_v55 = vld [vmem:[#allocation5 + $0x160] sm:$0xff]  }
  0x3f   : > { %564 = vst [vmem:[#allocation2 + $0x120] sm:$0xff] %v12820_v1  ;;  %565 = vst [vmem:[#allocation2 + $0x128] sm:$0xff] %v12820_v1  ;;  %10129 = vmatprep.subr.bf16.mxu0 %v12566_v12  ;;  %11550 = vmatprep.subr.bf16.mxu1 %v12566_v12  ;;  %v707_v47 = vadd.f32 %v12990_v37, %v706_v43  ;;  %v10111_v12 = vld [vmem:[%s12967_s24 + $0x40] sm:$0xff]   ;;  %v13069_v50 = vunpack.c.l.bf16 %v10113_v39 }
  0x40   : > { %566 = vst [vmem:[#allocation2 + $0x130] sm:$0x3] %v12820_v1  ;;  %567 = vst [vmem:[#allocation2 + $0x138] sm:$0xff] %v12820_v1  ;;  %v12597_v57 = vld [vmem:[#allocation5 + $0x120] sm:$0xff]  }
  0x41   : > { %568 = vst [vmem:[#allocation2 + $0x140] sm:$0xff] %v12820_v1  ;;  %569 = vst [vmem:[#allocation2 + $0x148] sm:$0x3] %v12820_v1  ;;  %v708_v53 = vadd.f32 %v12997_v42, %v707_v47  ;;  %v753_v47 = vmul.f32 %v13035_v11, %v13035_v11 }
  0x42   : > { %570 = vst [vmem:[#allocation2 + $0x150] sm:$0xff] %v12820_v1  ;;  %571 = vst [vmem:[#allocation2 + $0x158] sm:$0xff] %v12820_v1  ;;  %10130 = vmatpush3.bf16.msra.mxu0 %v12567_v17  ;;  %11558 = vmatpush3.bf16.msra.mxu1 %v12567_v17  ;;  %v13041_v17 = vunpack.c.h.bf16 %v10110_v6 }
  0x43   : > { %572 = vst [vmem:[#allocation2 + $0x160] sm:$0x3] %v12820_v1  ;;  %573 = vst [vmem:[#allocation2 + $0x168] sm:$0xff] %v12820_v1  ;;  %10131 = vmatprep.subr.bf16.mxu0 %v12568_v18  ;;  %11551 = vmatprep.subr.bf16.mxu1 %v12568_v18  ;;  %v709_v58 = vadd.f32 %v13002_v46, %v708_v53 }
  0x44   : > { %574 = vst [vmem:[#allocation2 + $0x170] sm:$0xff] %v12820_v1  ;;  %575 = vst [vmem:[#allocation2 + $0x178] sm:$0x3] %v12820_v1  ;;  %v754_v53 = vmul.f32 %v13041_v17, %v13041_v17 }
  0x45   : > { %576 = vst [vmem:[#allocation2 + $0x180] sm:$0xff] %v12820_v1  ;;  %577 = vst [vmem:[#allocation2 + $0x188] sm:$0xff] %v12820_v1  ;;  %v710_v63 = vadd.f32 %v13008_v52, %v709_v58  ;;  %v13074_v58 = vunpack.c.h.bf16 %v10113_v39 }
  0x46   : > { %578 = vst [vmem:[#allocation2 + $0x190] sm:$0x3] %v12820_v1  ;;  %579 = vst [vmem:[#allocation2 + $0x198] sm:$0xff] %v12820_v1  ;;  %10132 = vmatpush3.bf16.msra.mxu0 %v12569_v22  ;;  %11559 = vmatpush3.bf16.msra.mxu1 %v12569_v22 }
  0x47   : > { %580 = vst [vmem:[#allocation2 + $0x1a0] sm:$0xff] %v12820_v1  ;;  %581 = vst [vmem:[#allocation2 + $0x1a8] sm:$0x3] %v12820_v1  ;;  %10133 = vmatprep.subr.bf16.mxu0 %v12570_v23  ;;  %11552 = vmatprep.subr.bf16.mxu1 %v12570_v23  ;;  %v774_v1 = vadd.f32 %v773_v60, %v743_v54  ;;  %v711_v3 = vadd.f32 %v13013_v56, %v710_v63  ;;  %v13046_v23 = vunpack.c.l.bf16 %v10111_v12  ;;  %v10115_v63 = vld [vmem:[%s12967_s24 + $0x60] sm:$0xff]  }
  0x48   : > { %18056 = vst [vmem:[#allocation11_spill] sm:$0xff] %v12971_v20  ;;  %18057 = vst [vmem:[#allocation12_spill] sm:$0xff] %v12973_v21  ;;  %v760_v31 = vmul.f32 %v13074_v58, %v13074_v58 }
  0x49   : > { %18058 = vst [vmem:[#allocation13_spill] sm:$0xff] %v12975_v24  ;;  %18059 = vst [vmem:[#allocation14_spill] sm:$0xff] %v12978_v27  ;;  %v775_v5 = vadd.f32 %v774_v1, %v744_v59  ;;  %v712_v8 = vadd.f32 %v13019_v62, %v711_v3  ;;  %v755_v60 = vmul.f32 %v13046_v23, %v13046_v23 }
  0x4a   : > { %18060 = vst [vmem:[#allocation15_spill] sm:$0xff] %v12982_v29  ;;  %18061 = vst [vmem:[#allocation16_spill] sm:$0xff] %v12986_v34  ;;  %10134 = vmatpush3.bf16.msra.mxu0 %v12571_v26  ;;  %11560 = vmatpush3.bf16.msra.mxu1 %v12571_v26  ;;  %v750_v26 = vmul.f32 %v13019_v62, %v13019_v62 }
  0x4b   : > { %18062 = vst [vmem:[#allocation17_spill] sm:$0xff] %v12990_v37  ;;  %10231 = vmatprep.subr.bf16.mxu1 %v12572_v32  ;;  %18063 = vst [vmem:[#allocation18_spill] sm:$0xff] %v12997_v42  ;;  %10343 = vmatprep.subr.bf16.mxu0 %v12573_v33  ;;  %v776_v10 = vadd.f32 %v775_v5, %v745_v0  ;;  %v713_v13 = vadd.f32 %v13024_v2, %v712_v8  ;;  %v13052_v32 = vunpack.c.h.bf16 %v10111_v12  ;;  %v10116_v12 = vld [vmem:[%s12967_s24 + $0x68] sm:$0xff]  }
  0x4c   : > { %18064 = vst [vmem:[#allocation19_spill] sm:$0xff] %v13002_v46  ;;  %18065 = vst [vmem:[#allocation20_spill] sm:$0xff] %v13008_v52  ;;  %v13080_v0 = vunpack.c.l.bf16 %v10114_v49  ;;  %v13085_v5 = vunpack.c.h.bf16 %v10114_v49  ;;  %v757_v8 = vmul.f32 %v13057_v38, %v13057_v38 }
  0x4d   : > { %2003 = vmatmul.mubr.bf16.vlgmr.msra.gmra.mxu0 %v12821_v45  ;;  %18066 = vst [vmem:[#allocation21_spill] sm:$0xff] %v13013_v56  ;;  %18067 = vst [vmem:[#allocation22_spill] sm:$0xff] %v13019_v62  ;;  %v777_v15 = vadd.f32 %v776_v10, %v746_v4  ;;  %v714_v18 = vadd.f32 %v13030_v7, %v713_v13  ;;  %v756_v3 = vmul.f32 %v13052_v32, %v13052_v32 }
  0x4e   : > { %10344 = vmatpush3.bf16.msra.mxu0 %v12575_v41  ;;  %18068 = vst [vmem:[#allocation23_spill] sm:$0xff] %v13024_v2  ;;  %18069 = vst [vmem:[#allocation24_spill] sm:$0xff] %v13030_v7  ;;  %v752_v41 = vmul.f32 %v13030_v7, %v13030_v7  ;;  %v13090_v10 = vunpack.c.l.bf16 %v10115_v63  ;;  %v761_v39 = vmul.f32 %v13080_v0, %v13080_v0 }
  0x4f   : > { %10345 = vmatprep.subr.bf16.mxu0 %v12581_v51  ;;  %18070 = vst [vmem:[#allocation25_spill] sm:$0xff] %v13035_v11  ;;  %18071 = vst [vmem:[#allocation26_spill] sm:$0xff] %v13041_v17  ;;  %v778_v22 = vadd.f32 %v777_v15, %v747_v9  ;;  %v715_v25 = vadd.f32 %v13035_v11, %v714_v18  ;;  %v13096_v18 = vunpack.c.h.bf16 %v10115_v63 }
  0x50   : > { %18072 = vst [vmem:[#allocation27_spill] sm:$0xff] %v13046_v23  ;;  %18073 = vst [vmem:[#allocation28_spill] sm:$0xff] %v13052_v32 }
  0x51   : > { %v779_v28 = vadd.f32 %v778_v22, %v748_v14  ;;  %v716_v33 = vadd.f32 %v13041_v17, %v715_v25  ;;  %18074 = vst [vmem:[#allocation29_spill] sm:$0xff] %v13057_v38  ;;  %18075 = vst [vmem:[#allocation30_spill] sm:$0xff] %v13063_v44  ;;  %v758_v14 = vmul.f32 %v13063_v44, %v13063_v44 }
  0x52   : > { %10346 = vmatpush3.bf16.msra.mxu0 %v12583_v61  ;;  %18076 = vst [vmem:[#allocation31_spill] sm:$0xff] %v13069_v50  ;;  %18077 = vst [vmem:[#allocation32_spill] sm:$0xff] %v13074_v58  ;;  %v759_v22 = vmul.f32 %v13069_v50, %v13069_v50 }
  0x53   : > { %10347 = vmatprep.subr.bf16.mxu0 %v12589_v16  ;;  %v780_v36 = vadd.f32 %v779_v28, %v749_v19  ;;  %v717_v40 = vadd.f32 %v13046_v23, %v716_v33  ;;  %18078 = vst [vmem:[#allocation33_spill] sm:$0xff] %v13080_v0  ;;  %18079 = vst [vmem:[#allocation34_spill] sm:$0xff] %v13085_v5  ;;  %v12598_v16 = vld [vmem:[#allocation5 + $0x158] sm:$0xff]   ;;  %v13102_v28 = vunpack.c.l.bf16 %v10116_v12 }
  0x54   : > { %18080 = vst [vmem:[#allocation35_spill] sm:$0xff] %v13090_v10  ;;  %18081 = vst [vmem:[#allocation36_spill] sm:$0xff] %v13096_v18 }
  0x55   : > { %v781_v43 = vadd.f32 %v780_v36, %v750_v26  ;;  %v718_v45 = vadd.f32 %v13052_v32, %v717_v40  ;;  %v10117_v26 = vld [vmem:[%s12967_s24 + $0x70] sm:$0xff]   ;;  %18082 = vst [vmem:[#allocation37_spill] sm:$0xff] %v13102_v28 }
  0x56   : > { %10348 = vmatpush3.bf16.msra.mxu0 %v12591_v30 }
  0x57   : > { %v782_v48 = vadd.f32 %v781_v43, %v751_v35  ;;  %v719_v51 = vadd.f32 %v13057_v38, %v718_v45  ;;  %10349 = vmatprep.subr.bf16.mxu0 %v12596_v55  ;;  %v13107_v35 = vunpack.c.h.bf16 %v10116_v12  ;;  %v12600_v43 = vld [vmem:[#allocation5 + $0x118] sm:$0xff]   ;;  %v13113_v45 = vunpack.c.l.bf16 %v10117_v26 }
  0x59   : > { %v783_v54 = vadd.f32 %v782_v48, %v752_v41  ;;  %v720_v59 = vadd.f32 %v13063_v44, %v719_v51  ;;  %18083 = vst [vmem:[#allocation38_spill] sm:$0xff] %v13107_v35  ;;  %v10118_v41 = vld [vmem:[%s12967_s24 + $0x78] sm:$0xff]   ;;  %18084 = vst [vmem:[#allocation39_spill] sm:$0xff] %v13113_v45  ;;  %v762_v48 = vmul.f32 %v13085_v5, %v13085_v5  ;;  %v13118_v51 = vunpack.c.h.bf16 %v10117_v26 }
  0x5a   : > { %10350 = vmatpush3.bf16.msra.mxu0 %v12597_v57  ;;  %v13123_v57 = vunpack.c.l.bf16 %v10118_v41  ;;  %v13128_v63 = vunpack.c.h.bf16 %v10118_v41  ;;  %v766_v12 = vmul.f32 %v13107_v35, %v13107_v35 }
  0x5b   : > { %v784_v61 = vadd.f32 %v783_v54, %v753_v47  ;;  %v721_v1 = vadd.f32 %v13069_v50, %v720_v59  ;;  %10351 = vmatprep.subr.bf16.mxu0 %v12598_v16  ;;  %18085 = vst [vmem:[#allocation40_spill] sm:$0xff] %v13118_v51  ;;  %v763_v54 = vmul.f32 %v13090_v10, %v13090_v10 }
  0x5c   : > { %18086 = vst [vmem:[#allocation41_spill] sm:$0xff] %v13123_v57  ;;  %18087 = vst [vmem:[#allocation42_spill] sm:$0xff] %v13128_v63 }
  0x5d   : > { %v785_v4 = vadd.f32 %v784_v61, %v754_v53  ;;  %v722_v6 = vadd.f32 %v13074_v58, %v721_v1 }
  0x5e   : > { %10352 = vmatpush3.bf16.msra.mxu0 %v12600_v43 }
  0x5f   : > { %v786_v9 = vadd.f32 %v785_v4, %v755_v60  ;;  %v723_v13 = vadd.f32 %v13080_v0, %v722_v6  ;;  %v764_v60 = vmul.f32 %v13096_v18, %v13096_v18  ;;  %v12602_v6 = vld [vmem:[#allocation5 + $0x150] sm:$0xff]  }
  0x60   : > { %10353 = vmatprep.subr.bf16.mxu0 %v12602_v6 }
  0x61   : > { %v787_v15 = vadd.f32 %v786_v9, %v756_v3  ;;  %v724_v19 = vadd.f32 %v13085_v5, %v723_v13  ;;  %v765_v3 = vmul.f32 %v13102_v28, %v13102_v28 }
  0x63   : > { %v788_v25 = vadd.f32 %v787_v15, %v757_v8  ;;  %v725_v30 = vadd.f32 %v13090_v10, %v724_v19  ;;  %v12603_v8 = vld [vmem:[#allocation5 + $0x110] sm:$0xff]   ;;  %v767_v15 = vmul.f32 %v13113_v45, %v13113_v45 }
  0x64   : > { %10354 = vmatpush3.bf16.msra.mxu0 %v12603_v8 }
  0x65   : > { %v789_v33 = vadd.f32 %v788_v25, %v758_v14  ;;  %v726_v36 = vadd.f32 %v13096_v18, %v725_v30  ;;  %v769_v30 = vmul.f32 %v13123_v57, %v13123_v57 }
  0x67   : > { %v790_v40 = vadd.f32 %v789_v33, %v759_v22  ;;  %v727_v47 = vadd.f32 %v13102_v28, %v726_v36  ;;  %v768_v22 = vmul.f32 %v13118_v51, %v13118_v51  ;;  %v770_v36 = vmul.f32 %v13128_v63, %v13128_v63 }
  0x69   : > { %v791_v49 = vadd.f32 %v790_v40, %v760_v31  ;;  %v728_v53 = vadd.f32 %v13107_v35, %v727_v47  ;;  %v12606_v40 = vld [vmem:[#allocation5 + $0x148] sm:$0xff]  }
  0x6a   : > { %10355 = vmatprep.subr.bf16.mxu0 %v12606_v40 }
  0x6b   : > { %v792_v55 = vadd.f32 %v791_v49, %v761_v39  ;;  %v729_v59 = vadd.f32 %v13113_v45, %v728_v53 }
  0x6d   : > { %v793_v61 = vadd.f32 %v792_v55, %v762_v48  ;;  %v730_v1 = vadd.f32 %v13118_v51, %v729_v59 }
  0x6f   : > { %v794_v4 = vadd.f32 %v793_v61, %v763_v54  ;;  %v731_v9 = vadd.f32 %v13123_v57, %v730_v1  ;;  %v12607_v54 = vld [vmem:[#allocation5 + $0x108] sm:$0xff]  }
  0x70   : > { %10356 = vmatpush3.bf16.msra.mxu0 %v12607_v54 }
  0x71   : > { %v795_v13 = vadd.f32 %v794_v4, %v764_v60  ;;  %v732_v14 = vadd.f32 %v13128_v63, %v731_v9  ;;  %v12611_v4 = vld [vmem:[#allocation5 + $0x100] sm:$0xff]  }
  0x73   : > { %v796_v16 = vadd.f32 %v795_v13, %v765_v3  ;;  %v733_v19 = vrot.slane %v732_v14, 4  ;;  %v12610_v3 = vld [vmem:[#allocation5 + $0x140] sm:$0xff]   ;;  %v821_v13 = vlaneseq }
  0x74   : > { %10357 = vmatprep.subr.bf16.mxu0 %v12610_v3 }
  0x75   : > { %v797_v25 = vadd.f32 %v796_v16, %v766_v12  ;;  %v734_v26 = vadd.f32 %v733_v19, %v732_v14  ;;  %10358 = vmatpush3.bf16.msra.mxu0 %v12611_v4  ;;  %v822_v16 = vshrl.u32 %v821_v13, 7  ;;  %v13145_v19 = vld [vmem:[#allocation5 + $0x238] sm:$0xff]  }
  0x76   : > { %11341 = vmatprep.subr.bf16.mxu0 %v13145_v19 }
  0x77   : > { %v798_v31 = vadd.f32 %v797_v25, %v767_v15  ;;  %v735_v33 = vrot.slane %v734_v26, 2  ;;  %v813_v25 = vld [vmem:[%s17983_s1] sm:$0x1] }
  0x79   : > { %v799_v39 = vadd.f32 %v798_v31, %v768_v22  ;;  %v736_v41 = vadd.f32 %v735_v33, %v734_v26  ;;  %v13148_v22 = vsub.s32 0, %v822_v16  ;;  %v817_v31 = vld [vmem:[%s17984_s2] sm:$0x1] }
  0x7b   : > { %v800_v43 = vadd.f32 %v799_v39, %v769_v30  ;;  %v737_v47 = vrot.slane %v736_v41, 1  ;;  %18088 = vst [vmem:[#allocation43_spill] sm:$0xff] %v13148_v22 }
  0x7d   : > { %v801_v48 = vadd.f32 %v800_v43, %v770_v36  ;;  %v738_v49 = vadd.f32 %v737_v47, %v736_v41 }
  0x7f   : > { %v802_v53 = vrot.slane %v801_v48, 4  ;;  %v808_v60 = vmul.f32 0.00390625, %v738_v49 }
  0x81   : > { %v803_v55 = vadd.f32 %v802_v53, %v801_v48  ;;  %v810_v8 = vmul.f32 %v808_v60, %v808_v60 }
  0x83   : > { %v804_v59 = vrot.slane %v803_v55, 2 }
  0x85   : > { %v805_v61 = vadd.f32 %v804_v59, %v803_v55 }
  0x87   : > { %v806_v1 = vrot.slane %v805_v61, 1 }
  0x89   : > { %v807_v6 = vadd.f32 %v806_v1, %v805_v61 }
  0x8b   : > { %v809_v9 = vmul.f32 0.00390625, %v807_v6 }
  0x8d   : > { %v811_v12 = vsub.f32 %v809_v9, %v810_v8 }
  0x8f   : > { %v812_v14 = vmax.f32 %v811_v12, 0.0 }
  0x91   : > { %v814_v15 = vadd.f32 1e-05, %v812_v14 }
  0x93   : > { %12738 = vrsqrt.f32 %v814_v15 }
  0xa0   : > { %v12739_v26 = vpop.eup %12738 }
  0xa1   : > { %v816_v30 = vmul.f32 %v12739_v26, %v813_v25 }
  0xa3   : > { %v818_v33 = vmul.f32 %v816_v30, %v808_v60  ;;  %v13157_v36 = vrot.slane %v816_v30, %v13148_v22 }
  0xa5   : > { %v819_v39 = vsub.f32 %v817_v31, %v818_v33  ;;  %v826_v40 = vmul.f32 %v12971_v20, %v13157_v36  ;;  %v827_v41 = vmul.f32 %v12973_v21, %v13157_v36  ;;  %v848_v43 = vmul.f32 %v13080_v0, %v13157_v36 }
  0xa6   : > { %v849_v47 = vmul.f32 %v13085_v5, %v13157_v36  ;;  %v828_v48 = vmul.f32 %v12975_v24, %v13157_v36  ;;  %v829_v49 = vmul.f32 %v12978_v27, %v13157_v36  ;;  %v850_v53 = vmul.f32 %v13090_v10, %v13157_v36 }
  0xa7   : > { %v13174_v54 = vrot.slane %v819_v39, %v13148_v22  ;;  %v851_v55 = vmul.f32 %v13096_v18, %v13157_v36  ;;  %v830_v59 = vmul.f32 %v12982_v29, %v13157_v36  ;;  %v831_v60 = vmul.f32 %v12986_v34, %v13157_v36 }
  0xa8   : > { %v852_v61 = vmul.f32 %v13102_v28, %v13157_v36  ;;  %v853_v1 = vmul.f32 %v13107_v35, %v13157_v36  ;;  %v832_v3 = vmul.f32 %v12990_v37, %v13157_v36  ;;  %v833_v4 = vmul.f32 %v12997_v42, %v13157_v36  ;;  %v12578_v28 = vld [vmem:[#allocation5 + $0xe8] sm:$0xff]  }
  0xa9   : > { %v864_v6 = vadd.f32 %v13174_v54, %v826_v40  ;;  %v865_v8 = vadd.f32 %v13174_v54, %v827_v41  ;;  %v886_v9 = vadd.f32 %v13174_v54, %v848_v43  ;;  %v887_v12 = vadd.f32 %v13174_v54, %v849_v47 }
  0xaa   : > { %v866_v13 = vadd.f32 %v13174_v54, %v828_v48  ;;  %v867_v14 = vadd.f32 %v13174_v54, %v829_v49  ;;  %v888_v15 = vadd.f32 %v13174_v54, %v850_v53  ;;  %v889_v16 = vadd.f32 %v13174_v54, %v851_v55 }
  0xab   : > { %v896_v25 = vmax.f32 %v864_v6, 0.0  ;;  %v897_v26 = vmax.f32 %v865_v8, 0.0  ;;  %v918_v30 = vmax.f32 %v886_v9, 0.0  ;;  %v919_v31 = vmax.f32 %v887_v12, 0.0 }
  0xac   : > { %v898_v33 = vmax.f32 %v866_v13, 0.0  ;;  %v899_v39 = vmax.f32 %v867_v14, 0.0  ;;  %v920_v40 = vmax.f32 %v888_v15, 0.0  ;;  %v921_v41 = vmax.f32 %v889_v16, 0.0 }
  0xad   : > { %929 = vst [vmem:[#allocation2 + $0x19] sm:$0xff] %v896_v25  ;;  %930 = vst [vmem:[#allocation2 + $0x21] sm:$0xff] %v897_v26  ;;  %v13198_v43 = vpack.c.bf16 %v897_v26, %v896_v25  ;;  %v1359_v47 = vpack.c.bf16 %v919_v31, %v918_v30  ;;  %v13201_v48 = vadd.f32 %v13174_v54, %v830_v59 }
  0xae   : > { %951 = vst [vmem:[#allocation2 + $0x121] sm:$0xff] %v918_v30  ;;  %952 = vst [vmem:[#allocation2 + $0x129] sm:$0xff] %v919_v31  ;;  %v13204_v49 = vadd.f32 %v13174_v54, %v831_v60  ;;  %v13207_v53 = vadd.f32 %v13174_v54, %v852_v61  ;;  %v13210_v55 = vadd.f32 %v13174_v54, %v853_v1 }
  0xaf   : > { %931 = vst [vmem:[#allocation2 + $0x31] sm:$0xff] %v898_v33  ;;  %932 = vst [vmem:[#allocation2 + $0x39] sm:$0xff] %v899_v39  ;;  %2010 = vmatprep.mubr.bf16.mxu0 %v13198_v43  ;;  %2098 = vmatprep.mubr.bf16.mxu1 %v1359_v47  ;;  %v18003_v6 = vmax.f32 %v13201_v48, 0.0  ;;  %v13216_v60 = vadd.f32 %v13174_v54, %v832_v3  ;;  %v13219_v8 = vadd.f32 %v13174_v54, %v833_v4 }
  0xb0   : > { %953 = vst [vmem:[#allocation2 + $0x139] sm:$0xff] %v920_v40  ;;  %954 = vst [vmem:[#allocation2 + $0x141] sm:$0xff] %v921_v41  ;;  %v18002_v59 = vmax.f32 %v13204_v49, 0.0  ;;  %v18001_v9 = vmax.f32 %v13207_v53, 0.0  ;;  %v18000_v61 = vmax.f32 %v13210_v55, 0.0  ;;  %v854_v1 = vmul.f32 %v13113_v45, %v13157_v36 }
  0xb1   : > { %v855_v12 = vmul.f32 %v13118_v51, %v13157_v36  ;;  %933 = vst [vmem:[#allocation2 + $0x49] sm:$0xff] %v18003_v6  ;;  %v17999_v3 = vmax.f32 %v13216_v60, 0.0  ;;  %v17998_v4 = vmax.f32 %v13219_v8, 0.0  ;;  %v834_v13 = vmul.f32 %v13002_v46, %v13157_v36 }
  0xb2   : > { %934 = vst [vmem:[#allocation2 + $0x51] sm:$0xff] %v18002_v59  ;;  %v13235_v14 = vpack.c.bf16 %v899_v39, %v898_v33  ;;  %955 = vst [vmem:[#allocation2 + $0x151] sm:$0xff] %v18001_v9  ;;  %v13242_v15 = vadd.f32 %v13174_v54, %v854_v1  ;;  %v835_v25 = vmul.f32 %v13008_v52, %v13157_v36  ;;  %v18093_v18 = vmax.f32 %v13204_v49, 0.0  ;;  %v12579_v49 = vld [vmem:[#allocation5 + $0xa8] sm:$0xff]  }
  0xb3   : > { %956 = vst [vmem:[#allocation2 + $0x159] sm:$0xff] %v18000_v61  ;;  %v13245_v16 = vadd.f32 %v13174_v54, %v855_v12  ;;  %v1368_v26 = vpack.c.bf16 %v921_v41, %v920_v40  ;;  %935 = vst [vmem:[#allocation2 + $0x61] sm:$0xff] %v17999_v3  ;;  %v13254_v30 = vadd.f32 %v13174_v54, %v834_v13  ;;  %v12574_v61 = vld [vmem:[#allocation5 + $0xb8] sm:$0xff]   ;;  %v12576_v41 = vld [vmem:[#allocation5 + $0xf0] sm:$0xff]  }
  0xb4   : > { %936 = vst [vmem:[#allocation2 + $0x69] sm:$0xff] %v17998_v4  ;;  %v836_v31 = vmul.f32 %v13013_v56, %v13157_v36  ;;  %v837_v33 = vmul.f32 %v13019_v62, %v13157_v36  ;;  %v963_v39 = vld [vmem:[#allocation2 + $0x18] sm:$0xff]  ;;  %v964_v47 = vld [vmem:[#allocation2 + $0x20] sm:$0xff]  ;;  %v13263_v12 = vadd.f32 %v13174_v54, %v835_v25  ;;  %v838_v13 = vmul.f32 %v13024_v2, %v13157_v36 }
  0xb5   : > { %v985_v1 = vld [vmem:[#allocation2 + $0x120] sm:$0xff]  ;;  %v13267_v4 = vpack.c.bf16 %v964_v47, %v963_v39  ;;  %v986_v3 = vld [vmem:[#allocation2 + $0x128] sm:$0xff]  ;;  %v18005_v9 = vmax.f32 %v13254_v30, 0.0  ;;  %v18089_v25 = vmax.f32 %v13242_v15, 0.0  ;;  %v18090_v51 = vmax.f32 %v13245_v16, 0.0 }
  0xb6   : > { %v13271_v59 = vadd.f32 %v13174_v54, %v836_v31  ;;  %v13274_v6 = vadd.f32 %v13174_v54, %v837_v33  ;;  %v13276_v40 = vpack.c.bf16 %v986_v3, %v985_v1  ;;  %v18009_v39 = vmax.f32 %v13263_v12, 0.0  ;;  %v965_v47 = vld [vmem:[#allocation2 + $0x30] sm:$0xff] }
  0xb7   : > { %957 = vst [vmem:[#allocation2 + $0x169] sm:$0xff] %v18089_v25  ;;  %958 = vst [vmem:[#allocation2 + $0x171] sm:$0xff] %v18090_v51  ;;  %2011 = vmatmul.mubr.bf16.gmra.mxu0 %v13267_v4  ;;  %v839_v3 = vmul.f32 %v13030_v7, %v13157_v36  ;;  %v966_v51 = vld [vmem:[#allocation2 + $0x38] sm:$0xff]  ;;  %v13295_v1 = vadd.f32 %v13174_v54, %v838_v13  ;;  %v988_v33 = vld [vmem:[#allocation2 + $0x140] sm:$0xff] }
  0xb8   : > { %937 = vst [vmem:[#allocation2 + $0x79] sm:$0xff] %v18005_v9  ;;  %v18011_v31 = vmax.f32 %v13271_v59, 0.0  ;;  %2099 = vmatmul.mubr.bf16.vlgmr.msra.gmra.mxu1 %v13276_v40  ;;  %2018 = vmatprep.mubr.bf16.mxu0 %v13235_v14  ;;  %938 = vst [vmem:[#allocation2 + $0x81] sm:$0xff] %v18009_v39  ;;  %v12577_v25 = vld [vmem:[#allocation5 + $0xb0] sm:$0xff]   ;;  %v18091_v45 = vmax.f32 %v13274_v6, 0.0  ;;  %v13307_v13 = vpack.c.bf16 %v966_v51, %v965_v47  ;;  %v18094_v47 = vmax.f32 %v13207_v53, 0.0 }
  0xb9   : > { %10232 = vmatpush3.bf16.msra.mxu1 %v12574_v61  ;;  %2106 = vmatprep.mubr.bf16.mxu1 %v1368_v26  ;;  %v987_v9 = vld [vmem:[#allocation2 + $0x138] sm:$0xff]  ;;  %v13302_v35 = vadd.f32 %v13174_v54, %v839_v3  ;;  %v18013_v39 = vmax.f32 %v13295_v1, 0.0  ;;  %v840_v61 = vmul.f32 %v13035_v11, %v13157_v36  ;;  %v18092_v26 = vmax.f32 %v13201_v48, 0.0 }
  0xba   : > { %939 = vst [vmem:[#allocation2 + $0x91] sm:$0xff] %v18011_v31  ;;  %940 = vst [vmem:[#allocation2 + $0x99] sm:$0xff] %v18091_v45  ;;  %10233 = vmatprep.subr.bf16.mxu1 %v12576_v41  ;;  %v841_v3 = vmul.f32 %v13041_v17, %v13157_v36  ;;  %v13318_v41 = vpack.c.bf16 %v988_v33, %v987_v9  ;;  %v842_v48 = vmul.f32 %v13046_v23, %v13157_v36 }
  0xbb   : > { %v13313_v31 = vpack.c.bf16 %v18093_v18, %v18092_v26  ;;  %v18014_v45 = vmax.f32 %v13302_v35, 0.0  ;;  %941 = vst [vmem:[#allocation2 + $0xa9] sm:$0xff] %v18013_v39  ;;  %v13323_v10 = vadd.f32 %v13174_v54, %v840_v61  ;;  %v843_v18 = vmul.f32 %v13052_v32, %v13157_v36  ;;  %v990_v39 = vld [vmem:[#allocation2 + $0x158] sm:$0xff] }
  0xbc   : > { %v18095_v51 = vmax.f32 %v13210_v55, 0.0  ;;  %v13336_v33 = vadd.f32 %v13174_v54, %v841_v3  ;;  %v844_v61 = vmul.f32 %v13057_v38, %v13157_v36  ;;  %v845_v26 = vmul.f32 %v13063_v44, %v13157_v36  ;;  %v967_v3 = vld [vmem:[#allocation2 + $0x48] sm:$0xff]  ;;  %v12584_v38 = vld [vmem:[#allocation5 + $0xd8] sm:$0xff]  }
  0xbd   : > { %10234 = vmatpush3.bf16.msra.mxu1 %v12577_v25  ;;  %942 = vst [vmem:[#allocation2 + $0xb1] sm:$0xff] %v18014_v45  ;;  %v12580_v25 = vld [vmem:[#allocation5 + $0xe0] sm:$0xff]   ;;  %v13344_v53 = vadd.f32 %v13174_v54, %v842_v48  ;;  %v13347_v55 = vadd.f32 %v13174_v54, %v843_v18  ;;  %v968_v48 = vld [vmem:[#allocation2 + $0x50] sm:$0xff]  ;;  %v18096_v5 = vmax.f32 %v13323_v10, 0.0  ;;  %v18098_v44 = vmax.f32 %v13216_v60, 0.0 }
  0xbe   : > { %v1377_v9 = vpack.c.bf16 %v18095_v51, %v18094_v47  ;;  %10235 = vmatprep.subr.bf16.mxu1 %v12578_v28  ;;  %v13352_v51 = vadd.f32 %v13174_v54, %v844_v61  ;;  %v13355_v45 = vadd.f32 %v13174_v54, %v845_v26  ;;  %v846_v28 = vmul.f32 %v13069_v50, %v13157_v36  ;;  %v989_v18 = vld [vmem:[#allocation2 + $0x150] sm:$0xff]  ;;  %v12582_v26 = vld [vmem:[#allocation5 + $0xa0] sm:$0xff]  }
  0xbf   : > { %2019 = vmatmul.mubr.bf16.gmra.mxu0 %v13307_v13  ;;  %943 = vst [vmem:[#allocation2 + $0xc1] sm:$0xff] %v18096_v5  ;;  %v18020_v47 = vmax.f32 %v13344_v53, 0.0  ;;  %v18021_v61 = vmax.f32 %v13347_v55, 0.0  ;;  %v18097_v0 = vmax.f32 %v13336_v33, 0.0  ;;  %v847_v5 = vmul.f32 %v13074_v58, %v13157_v36  ;;  %v12585_v58 = vld [vmem:[#allocation5 + $0x98] sm:$0xff]  }
  0xc0   : > { %2107 = vmatmul.mubr.bf16.gmra.mxu1 %v13318_v41  ;;  %2026 = vmatprep.mubr.bf16.mxu0 %v13313_v31  ;;  %v857_v60 = vmul.f32 %v13128_v63, %v13157_v36 }
  0xc1   : > { %10236 = vmatpush3.bf16.msra.mxu1 %v12579_v49  ;;  %2114 = vmatprep.mubr.bf16.mxu1 %v1377_v9  ;;  %944 = vst [vmem:[#allocation2 + $0xc9] sm:$0xff] %v18097_v0  ;;  %945 = vst [vmem:[#allocation2 + $0xd9] sm:$0xff] %v18020_v47  ;;  %v13376_v49 = vadd.f32 %v13174_v54, %v846_v28  ;;  %v13378_v9 = vpack.c.bf16 %v968_v48, %v967_v3  ;;  %v18100_v47 = vmax.f32 %v13352_v51, 0.0  ;;  %v12586_v48 = vld [vmem:[#allocation5 + $0xd0] sm:$0xff]  }
  0xc2   : > { %10237 = vmatprep.subr.bf16.mxu1 %v12580_v25  ;;  %946 = vst [vmem:[#allocation2 + $0xe1] sm:$0xff] %v18021_v61  ;;  %v13380_v0 = vpack.c.bf16 %v990_v39, %v989_v18  ;;  %v18099_v25 = vmax.f32 %v13219_v8, 0.0  ;;  %v18101_v61 = vmax.f32 %v13355_v45, 0.0  ;;  %v13393_v28 = vadd.f32 %v13174_v54, %v847_v5 }
  0xc3   : > { %947 = vst [vmem:[#allocation2 + $0xf1] sm:$0xff] %v18100_v47  ;;  %v916_v3 = vmax.f32 %v13376_v49, 0.0  ;;  %v856_v39 = vmul.f32 %v13123_v57, %v13157_v36  ;;  %v18103_v8 = vmax.f32 %v13245_v16, 0.0  ;;  %v13411_v5 = vadd.f32 %v13174_v54, %v857_v60  ;;  %v969_v36 = vld [vmem:[#allocation2 + $0x60] sm:$0xff] }
  0xc4   : > { %v13386_v50 = vpack.c.bf16 %v18099_v25, %v18098_v44  ;;  %948 = vst [vmem:[#allocation2 + $0xf9] sm:$0xff] %v18101_v61  ;;  %v18102_v44 = vmax.f32 %v13242_v15, 0.0  ;;  %v18023_v18 = vmax.f32 %v13393_v28, 0.0  ;;  %v992_v25 = vld [vmem:[#allocation2 + $0x170] sm:$0xff] }
  0xc5   : > { %10238 = vmatpush3.bf16.msra.mxu1 %v12582_v26  ;;  %949 = vst [vmem:[#allocation2 + $0x109] sm:$0xff] %v916_v3  ;;  %v13408_v61 = vadd.f32 %v13174_v54, %v856_v39  ;;  %v18024_v16 = vmax.f32 %v13411_v5, 0.0  ;;  %v12587_v26 = vld [vmem:[#allocation5 + $0x90] sm:$0xff]   ;;  %v991_v54 = vld [vmem:[#allocation2 + $0x168] sm:$0xff] }
  0xc6   : > { %v1386_v47 = vpack.c.bf16 %v18103_v8, %v18102_v44  ;;  %10239 = vmatprep.subr.bf16.mxu1 %v12584_v38  ;;  %v970_v38 = vld [vmem:[#allocation2 + $0x68] sm:$0xff]  ;;  %950 = vst [vmem:[#allocation2 + $0x111] sm:$0xff] %v18023_v18  ;;  %v13426_v44 = vpack.c.bf16 %v992_v25, %v991_v54  ;;  %v18104_v8 = vmax.f32 %v13254_v30, 0.0  ;;  %v12594_v25 = vld [vmem:[#allocation5 + $0x1f8] sm:$0xff]  }
  0xc7   : > { %2027 = vmatmul.mubr.bf16.gmra.mxu0 %v13378_v9  ;;  %v18025_v15 = vmax.f32 %v13408_v61, 0.0  ;;  %v12588_v39 = vld [vmem:[#allocation5 + $0xc8] sm:$0xff]   ;;  %960 = vst [vmem:[#allocation2 + $0x189] sm:$0xff] %v18024_v16  ;;  %v13424_v60 = vpack.c.bf16 %v970_v38, %v969_v36  ;;  %v971_v36 = vld [vmem:[#allocation2 + $0x78] sm:$0xff]  ;;  %v972_v38 = vld [vmem:[#allocation2 + $0x80] sm:$0xff] }
  0xc8   : > { %2115 = vmatmul.mubr.bf16.gmra.mxu1 %v13380_v0  ;;  %2034 = vmatprep.mubr.bf16.mxu0 %v13386_v50  ;;  %v12593_v54 = vld [vmem:[#allocation5 + $0x80] sm:$0xff]  }
  0xc9   : > { %10240 = vmatpush3.bf16.msra.mxu1 %v12585_v58  ;;  %2122 = vmatprep.mubr.bf16.mxu1 %v1386_v47  ;;  %959 = vst [vmem:[#allocation2 + $0x181] sm:$0xff] %v18025_v15  ;;  %v18105_v58 = vmax.f32 %v13263_v12, 0.0  ;;  %v12590_v47 = vld [vmem:[#allocation5 + $0x88] sm:$0xff]   ;;  %v12595_v15 = vld [vmem:[#allocation5 + $0x1b8] sm:$0xff]  }
  0xca   : > { %10241 = vmatprep.subr.bf16.mxu1 %v12586_v48  ;;  %v12592_v48 = vld [vmem:[#allocation5 + $0xc0] sm:$0xff]   ;;  %v1026_v12 = vld [vmem:[#allocation2 + $0xa] sm:$0xff] }
  0xcb   : > { %v13432_v18 = vpack.c.bf16 %v18105_v58, %v18104_v8  ;;  %v1025_v30 = vld [vmem:[#allocation2 + $0x2] sm:$0xff]  ;;  %v18106_v8 = vmax.f32 %v13271_v59, 0.0  ;;  %v18107_v58 = vmax.f32 %v13274_v6, 0.0 }
  0xcc   : > { %v1028_v59 = vld [vmem:[#allocation2 + $0x22] sm:$0xff] }
  0xcd   : > { %10242 = vmatpush3.bf16.msra.mxu1 %v12587_v26  ;;  %v13438_v26 = vpack.c.bf16 %v972_v38, %v971_v36  ;;  %v13444_v16 = vpack.c.bf16 %v18107_v58, %v18106_v8  ;;  %v1027_v36 = vld [vmem:[#allocation2 + $0x1a] sm:$0xff]  ;;  %v12601_v38 = vld [vmem:[#allocation5 + $0x1b0] sm:$0xff]   ;;  %v12604_v6 = vld [vmem:[#allocation5 + $0x1e8] sm:$0xff]  }
  0xce   : > { %10243 = vmatprep.subr.bf16.mxu1 %v12588_v39  ;;  %v1252_v39 = vpack.c.bf16 %v1026_v12, %v1025_v30  ;;  %v18108_v12 = vmax.f32 %v13295_v1, 0.0  ;;  %v12605_v8 = vld [vmem:[#allocation5 + $0x1a8] sm:$0xff]   ;;  %v1030_v1 = vld [vmem:[#allocation2 + $0x3a] sm:$0xff] }
  0xcf   : > { %2035 = vmatmul.mubr.bf16.gmra.mxu0 %v13424_v60  ;;  %v976_v58 = vld [vmem:[#allocation2 + $0xb0] sm:$0xff] }
  0xd0   : > { %2123 = vmatmul.mubr.bf16.gmra.mxu1 %v13426_v44  ;;  %2042 = vmatprep.mubr.bf16.mxu0 %v13432_v18 }
  0xd1   : > { %10244 = vmatpush3.bf16.msra.mxu1 %v12590_v47  ;;  %2163 = vmatprep.mubr.bf16.mxu1 %v13267_v4  ;;  %v12599_v47 = vld [vmem:[#allocation5 + $0x1f0] sm:$0xff]  }
  0xd2   : > { %10245 = vmatprep.subr.bf16.mxu1 %v12592_v48  ;;  %v973_v4 = vld [vmem:[#allocation2 + $0x90] sm:$0xff]  ;;  %v974_v48 = vld [vmem:[#allocation2 + $0x98] sm:$0xff] }
  0xd3   : > { %v13449_v30 = vpack.c.bf16 %v974_v48, %v973_v4  ;;  %v12612_v4 = vld [vmem:[#allocation5 + $0x1d8] sm:$0xff]  }
  0xd5   : > { %10246 = vmatpush3.bf16.msra.mxu1 %v12593_v54  ;;  %v13451_v54 = vpack.c.bf16 %v1028_v59, %v1027_v36  ;;  %v18110_v59 = vmax.f32 %v13323_v10, 0.0  ;;  %v1032_v10 = vld [vmem:[#allocation2 + $0x52] sm:$0xff] }
  0xd6   : > { %10455 = vmatprep.subr.bf16.mxu1 %v12594_v25  ;;  %v18109_v25 = vmax.f32 %v13302_v35, 0.0  ;;  %v12609_v35 = vld [vmem:[#allocation5 + $0x1a0] sm:$0xff]  }
  0xd7   : > { %2043 = vmatmul.mubr.bf16.gmra.mxu0 %v13438_v26 }
  0xd8   : > { %2164 = vmatmul.mubr.bf16.vlgmr.msra.gmra.mxu1 %v1252_v39  ;;  %2050 = vmatprep.mubr.bf16.mxu0 %v13444_v16  ;;  %v13457_v39 = vpack.c.bf16 %v18109_v25, %v18108_v12  ;;  %v12614_v12 = vld [vmem:[#allocation5 + $0x198] sm:$0xff]  }
  0xd9   : > { %10456 = vmatpush3.bf16.msra.mxu1 %v12595_v15  ;;  %2171 = vmatprep.mubr.bf16.mxu1 %v13307_v13  ;;  %v12608_v15 = vld [vmem:[#allocation5 + $0x1e0] sm:$0xff]  }
  0xda   : > { %10457 = vmatprep.subr.bf16.mxu1 %v12599_v47  ;;  %v975_v13 = vld [vmem:[#allocation2 + $0xa8] sm:$0xff]  ;;  %v1029_v47 = vld [vmem:[#allocation2 + $0x32] sm:$0xff]  ;;  %v977_v25 = vld [vmem:[#allocation2 + $0xc0] sm:$0xff] }
  0xdb   : > { %v13463_v48 = vpack.c.bf16 %v976_v58, %v975_v13  ;;  %v13465_v36 = vpack.c.bf16 %v1030_v1, %v1029_v47  ;;  %v12618_v13 = vld [vmem:[#allocation5 + $0x1c8] sm:$0xff]   ;;  %v18112_v1 = vmax.f32 %v13344_v53, 0.0 }
  0xdc   : > { %v1034_v53 = vld [vmem:[#allocation2 + $0x6a] sm:$0xff] }
  0xdd   : > { %10458 = vmatpush3.bf16.msra.mxu1 %v12601_v38  ;;  %v18111_v38 = vmax.f32 %v13336_v33, 0.0  ;;  %v12617_v33 = vld [vmem:[#allocation5 + $0x190] sm:$0xff]  }
  0xde   : > { %10459 = vmatprep.subr.bf16.mxu1 %v12604_v6 }
  0xdf   : > { %2051 = vmatmul.mubr.bf16.gmra.mxu0 %v13449_v30  ;;  %v13471_v6 = vpack.c.bf16 %v18111_v38, %v18110_v59  ;;  %v12620_v59 = vld [vmem:[#allocation5 + $0x188] sm:$0xff]   ;;  %v979_v38 = vld [vmem:[#allocation2 + $0xd8] sm:$0xff] }
  0xe0   : > { %2172 = vmatmul.mubr.bf16.gmra.mxu1 %v13451_v54  ;;  %2058 = vmatprep.mubr.bf16.mxu0 %v13457_v39 }
  0xe1   : > { %2179 = vmatprep.mubr.bf16.mxu1 %v13378_v9  ;;  %10460 = vmatpush3.bf16.msra.mxu1 %v12605_v8  ;;  %v12615_v9 = vld [vmem:[#allocation5 + $0x1d0] sm:$0xff]   ;;  %v978_v8 = vld [vmem:[#allocation2 + $0xc8] sm:$0xff] }
  0xe2   : > { %10461 = vmatprep.subr.bf16.mxu1 %v12608_v15  ;;  %v1031_v15 = vld [vmem:[#allocation2 + $0x4a] sm:$0xff]  ;;  %v13477_v58 = vpack.c.bf16 %v978_v8, %v977_v25 }
  0xe3   : > { %v13479_v47 = vpack.c.bf16 %v1032_v10, %v1031_v15  ;;  %v18114_v15 = vmax.f32 %v13352_v51, 0.0  ;;  %v18115_v10 = vmax.f32 %v13355_v45, 0.0  ;;  %v18116_v45 = vmax.f32 %v13393_v28, 0.0 }
  0xe5   : > { %10462 = vmatpush3.bf16.msra.mxu1 %v12609_v35  ;;  %v18113_v35 = vmax.f32 %v13347_v55, 0.0  ;;  %v12623_v55 = vld [vmem:[#allocation5 + $0x180] sm:$0xff]  }
  0xe6   : > { %10463 = vmatprep.subr.bf16.mxu1 %v12612_v4 }
  0xe7   : > { %2059 = vmatmul.mubr.bf16.gmra.mxu0 %v13463_v48  ;;  %v13485_v4 = vpack.c.bf16 %v18113_v35, %v18112_v1  ;;  %v982_v1 = vld [vmem:[#allocation2 + $0xf8] sm:$0xff] }
  0xe8   : > { %2180 = vmatmul.mubr.bf16.gmra.mxu1 %v13465_v36  ;;  %2066 = vmatprep.mubr.bf16.mxu0 %v13471_v6  ;;  %v1035_v35 = vld [vmem:[#allocation2 + $0x7a] sm:$0xff] }
  0xe9   : > { %2187 = vmatprep.mubr.bf16.mxu1 %v13424_v60  ;;  %10464 = vmatpush3.bf16.msra.mxu1 %v12614_v12  ;;  %v12621_v60 = vld [vmem:[#allocation5 + $0x1c0] sm:$0xff]  }
  0xea   : > { %10465 = vmatprep.subr.bf16.mxu1 %v12615_v9  ;;  %v980_v12 = vld [vmem:[#allocation2 + $0xe0] sm:$0xff] }
  0xeb   : > { %v1033_v9 = vld [vmem:[#allocation2 + $0x62] sm:$0xff]  ;;  %v13491_v25 = vpack.c.bf16 %v980_v12, %v979_v38  ;;  %v13513_v38 = vpack.c.bf16 %v18116_v45, %v916_v3  ;;  %v18117_v3 = vmax.f32 %v13408_v61, 0.0  ;;  %v1040_v45 = vld [vmem:[#allocation2 + $0xb2] sm:$0xff] }
  0xec   : > { %v13493_v8 = vpack.c.bf16 %v1034_v53, %v1033_v9  ;;  %v983_v12 = vld [vmem:[#allocation2 + $0x108] sm:$0xff]  ;;  %v984_v9 = vld [vmem:[#allocation2 + $0x110] sm:$0xff] }
  0xed   : > { %10466 = vmatpush3.bf16.msra.mxu1 %v12617_v33  ;;  %v13499_v33 = vpack.c.bf16 %v18115_v10, %v18114_v15  ;;  %v1038_v15 = vld [vmem:[#allocation2 + $0x9a] sm:$0xff]  ;;  %v1041_v61 = vld [vmem:[#allocation2 + $0xc2] sm:$0xff] }
  0xee   : > { %10467 = vmatprep.subr.bf16.mxu1 %v12618_v13  ;;  %v981_v13 = vld [vmem:[#allocation2 + $0xf0] sm:$0xff] }
  0xef   : > { %2067 = vmatmul.mubr.bf16.gmra.mxu0 %v13477_v58 }
  0xf0   : > { %2188 = vmatmul.mubr.bf16.gmra.mxu1 %v13479_v47  ;;  %2074 = vmatprep.mubr.bf16.mxu0 %v13485_v4 }
  0xf1   : > { %2195 = vmatprep.mubr.bf16.mxu1 %v13438_v26  ;;  %10468 = vmatpush3.bf16.msra.mxu1 %v12620_v59  ;;  %v1036_v59 = vld [vmem:[#allocation2 + $0x82] sm:$0xff] }
  0xf2   : > { %10469 = vmatprep.subr.bf16.mxu1 %v12621_v60  ;;  %v13505_v60 = vpack.c.bf16 %v982_v1, %v981_v13  ;;  %v13507_v51 = vpack.c.bf16 %v1036_v59, %v1035_v35  ;;  %v13519_v13 = vpack.c.bf16 %v984_v9, %v983_v12  ;;  %v18118_v1 = vmax.f32 %v13411_v5, 0.0  ;;  %v1039_v59 = vld [vmem:[#allocation2 + $0xaa] sm:$0xff] }
  0xf3   : > { %v13535_v12 = vpack.c.bf16 %v1040_v45, %v1039_v59  ;;  %v12616_v9 = vld [vmem:[#allocation5 + $0x230] sm:$0xff]   ;;  %v12627_v45 = vld [vmem:[#allocation5 + $0x200] sm:$0xff]  }
  0xf4   : > { %v13529_v35 = vpack.c.bf16 %v18118_v1, %v18117_v3  ;;  %v1042_v5 = vld [vmem:[#allocation2 + $0xca] sm:$0xff]  ;;  %v1046_v3 = vld [vmem:[#allocation2 + $0xfa] sm:$0xff] }
  0xf5   : > { %10470 = vmatpush3.bf16.msra.mxu1 %v12623_v55  ;;  %v1037_v55 = vld [vmem:[#allocation2 + $0x92] sm:$0xff]  ;;  %v12626_v1 = vld [vmem:[#allocation5 + $0x208] sm:$0xff]  }
  0xf6   : > { %v13523_v28 = vpack.c.bf16 %v1038_v15, %v1037_v55  ;;  %v12622_v55 = vld [vmem:[#allocation5 + $0x220] sm:$0xff]  }
  0xf7   : > { %2075 = vmatmul.mubr.bf16.gmra.mxu0 %v13491_v25 }
  0xf8   : > { %2196 = vmatmul.mubr.bf16.gmra.mxu1 %v13493_v8  ;;  %2082 = vmatprep.mubr.bf16.mxu0 %v13499_v33 }
  0xf9   : > { %2203 = vmatprep.mubr.bf16.mxu1 %v13449_v30 }
  0xff   : > { %2083 = vmatmul.mubr.bf16.gmra.mxu0 %v13505_v60 }
 0x100   : > { %2204 = vmatmul.mubr.bf16.gmra.mxu1 %v13507_v51  ;;  %2090 = vmatprep.mubr.bf16.mxu0 %v13513_v38 }
 0x101   : > { %2211 = vmatprep.mubr.bf16.mxu1 %v13463_v48 }
 0x107   : > { %2091 = vmatmul.mubr.bf16.gmra.mxu0 %v13519_v13 }
 0x108   : > { %2212 = vmatmul.mubr.bf16.gmra.mxu1 %v13523_v28  ;;  %2324 = vmatprep.mubr.bf16.mxu0 %v13451_v54  ;;  %v12619_v54 = vld [vmem:[#allocation5 + $0x228] sm:$0xff]  }
 0x109   : > { %2219 = vmatprep.mubr.bf16.mxu1 %v13477_v58 }
 0x10d   : > { %v10135_v53 = vpop.f32.mrf.mxu0 }
 0x10f   : > { %v10136_v10 = vpop.f32.mrf.mxu0  ;;  %2325 = vmatmul.mubr.bf16.vlgmr.msra.gmra.mxu0 %v13198_v43  ;;  %v1043_v43 = vld [vmem:[#allocation2 + $0xda] sm:$0xff] }
 0x110   : > { %v13521_v49 = vadd.f32 %v10136_v10, %v10135_v53  ;;  %2220 = vmatmul.mubr.bf16.gmra.mxu1 %v13535_v12  ;;  %2332 = vmatprep.mubr.bf16.mxu0 %v13465_v36  ;;  %v13542_v53 = vpack.c.bf16 %v1042_v5, %v1041_v61  ;;  %v1044_v36 = vld [vmem:[#allocation2 + $0xe2] sm:$0xff]  ;;  %v12625_v10 = vld [vmem:[#allocation5 + $0x210] sm:$0xff]  }
 0x111   : > { %2227 = vmatprep.mubr.bf16.mxu1 %v13491_v25  ;;  %11342 = vmatpush3.bf16.msra.mxu0 %v13145_v19  ;;  %v12624_v19 = vld [vmem:[#allocation5 + $0x218] sm:$0xff]   ;;  %v13548_v15 = vpack.c.bf16 %v1044_v36, %v1043_v43  ;;  %v1050_v5 = vld [vmem:[#allocation2 + $0x12a] sm:$0xff] }
 0x112   : > { %11343 = vmatprep.subr.bf16.mxu0 %v12616_v9  ;;  %v1054_v36 = vld [vmem:[#allocation2 + $0x15a] sm:$0xff] }
 0x115   : > { %11344 = vmatpush3.bf16.msra.mxu0 %v12616_v9  ;;  %v1048_v9 = vld [vmem:[#allocation2 + $0x112] sm:$0xff] }
 0x116   : > { %11345 = vmatprep.subr.bf16.mxu0 %v12619_v54 }
 0x117   : > { %2333 = vmatmul.mubr.bf16.gmra.mxu0 %v13235_v14  ;;  %v1045_v14 = vld [vmem:[#allocation2 + $0xf2] sm:$0xff] }
 0x118   : > { %2228 = vmatmul.mubr.bf16.gmra.mxu1 %v13542_v53  ;;  %2340 = vmatprep.mubr.bf16.mxu0 %v13479_v47  ;;  %v13554_v59 = vpack.c.bf16 %v1046_v3, %v1045_v14 }
 0x119   : > { %2235 = vmatprep.mubr.bf16.mxu1 %v13505_v60  ;;  %11346 = vmatpush3.bf16.msra.mxu0 %v12619_v54 }
 0x11a   : > { %11347 = vmatprep.subr.bf16.mxu0 %v12622_v55 }
 0x11d   : > { %11348 = vmatpush3.bf16.msra.mxu0 %v12622_v55  ;;  %v1052_v55 = vld [vmem:[#allocation2 + $0x142] sm:$0xff] }
 0x11e   : > { %11349 = vmatprep.subr.bf16.mxu0 %v12624_v19 }
 0x11f   : > { %2341 = vmatmul.mubr.bf16.gmra.mxu0 %v13313_v31  ;;  %v1047_v31 = vld [vmem:[#allocation2 + $0x10a] sm:$0xff] }
 0x120   : > { %2236 = vmatmul.mubr.bf16.gmra.mxu1 %v13548_v15  ;;  %2348 = vmatprep.mubr.bf16.mxu0 %v13493_v8  ;;  %v13560_v61 = vpack.c.bf16 %v1048_v9, %v1047_v31 }
 0x121   : > { %2243 = vmatprep.mubr.bf16.mxu1 %v13519_v13  ;;  %11350 = vmatpush3.bf16.msra.mxu0 %v12624_v19  ;;  %v1087_v19 = vld [vmem:[#allocation2 + $0x180] sm:$0xff] }
 0x122   : > { %11351 = vmatprep.subr.bf16.mxu0 %v12625_v10 }
 0x125   : > { %11352 = vmatpush3.bf16.msra.mxu0 %v12625_v10  ;;  %v1088_v10 = vld [vmem:[#allocation2 + $0x188] sm:$0xff] }
 0x126   : > { %11353 = vmatprep.subr.bf16.mxu0 %v12626_v1  ;;  %v13580_v3 = vpack.c.bf16 %v1088_v10, %v1087_v19  ;;  %v1156_v19 = vld [vmem:[#allocation2 + $0x48] sm:$0xff]  ;;  %v1157_v10 = vld [vmem:[#allocation2 + $0x50] sm:$0xff] }
 0x127   : > { %2349 = vmatmul.mubr.bf16.gmra.mxu0 %v13386_v50  ;;  %v1049_v50 = vld [vmem:[#allocation2 + $0x122] sm:$0xff] }
 0x128   : > { %2244 = vmatmul.mubr.bf16.gmra.mxu1 %v13554_v59  ;;  %2356 = vmatprep.mubr.bf16.mxu0 %v13507_v51  ;;  %v13566_v54 = vpack.c.bf16 %v1050_v5, %v1049_v50  ;;  %v1154_v50 = vld [vmem:[#allocation2 + $0x30] sm:$0xff]  ;;  %v1155_v5 = vld [vmem:[#allocation2 + $0x38] sm:$0xff] }
 0x129   : > { %2251 = vmatprep.mubr.bf16.mxu1 %v13276_v40  ;;  %11354 = vmatpush3.bf16.msra.mxu0 %v12626_v1  ;;  %v1051_v40 = vld [vmem:[#allocation2 + $0x13a] sm:$0xff]  ;;  %v1056_v1 = vld [vmem:[#allocation2 + $0x172] sm:$0xff] }
 0x12a   : > { %11355 = vmatprep.subr.bf16.mxu0 %v12627_v45  ;;  %v13572_v43 = vpack.c.bf16 %v1052_v55, %v1051_v40  ;;  %v1188_v40 = vld [vmem:[#allocation2 + $0x49] sm:$0xff]  ;;  %v1189_v55 = vld [vmem:[#allocation2 + $0x51] sm:$0xff] }
 0x12d   : > { %11356 = vmatpush3.bf16.msra.mxu0 %v12627_v45  ;;  %v1186_v45 = vld [vmem:[#allocation2 + $0x31] sm:$0xff] }
 0x12f   : > { %2357 = vmatmul.mubr.bf16.gmra.mxu0 %v13432_v18 }
 0x130   : > { %2252 = vmatmul.mubr.bf16.gmra.mxu1 %v13560_v61  ;;  %2364 = vmatprep.mubr.bf16.mxu0 %v13523_v28 }
 0x131   : > { %2259 = vmatprep.mubr.bf16.mxu1 %v13318_v41  ;;  %v1053_v41 = vld [vmem:[#allocation2 + $0x152] sm:$0xff] }
 0x132   : > { %v13578_v14 = vpack.c.bf16 %v1054_v36, %v1053_v41  ;;  %v1256_v41 = vpack.c.bf16 %v1155_v5, %v1154_v50  ;;  %v1266_v36 = vpack.c.bf16 %v1189_v55, %v1188_v40  ;;  %v1112_v50 = vld [vmem:[#allocation2 + $0x129] sm:$0xff]  ;;  %v1158_v5 = vld [vmem:[#allocation2 + $0x60] sm:$0xff] }
 0x133   : > { %v1159_v40 = vld [vmem:[#allocation2 + $0x68] sm:$0xff] }
 0x137   : > { %2365 = vmatmul.mubr.bf16.gmra.mxu0 %v13444_v16 }
 0x138   : > { %2260 = vmatmul.mubr.bf16.gmra.mxu1 %v13566_v54  ;;  %2372 = vmatprep.mubr.bf16.mxu0 %v13535_v12 }
 0x139   : > { %2267 = vmatprep.mubr.bf16.mxu1 %v13380_v0  ;;  %v1055_v0 = vld [vmem:[#allocation2 + $0x16a] sm:$0xff] }
 0x13a   : > { %v13586_v31 = vpack.c.bf16 %v1056_v1, %v1055_v0  ;;  %v1190_v0 = vld [vmem:[#allocation2 + $0x61] sm:$0xff]  ;;  %v1191_v1 = vld [vmem:[#allocation2 + $0x69] sm:$0xff] }
 0x13f   : > { %2373 = vmatmul.mubr.bf16.gmra.mxu0 %v13457_v39 }
 0x140   : > { %2268 = vmatmul.mubr.bf16.gmra.mxu1 %v13572_v43  ;;  %2380 = vmatprep.mubr.bf16.mxu0 %v13542_v53 }
 0x141   : > { %2275 = vmatprep.mubr.bf16.mxu1 %v13426_v44  ;;  %v1187_v44 = vld [vmem:[#allocation2 + $0x39] sm:$0xff] }
 0x142   : > { %v1257_v9 = vpack.c.bf16 %v1187_v44, %v1186_v45  ;;  %v1265_v45 = vpack.c.bf16 %v1157_v10, %v1156_v19  ;;  %v1275_v44 = vpack.c.bf16 %v1191_v1, %v1190_v0  ;;  %v1114_v19 = vld [vmem:[#allocation2 + $0x141] sm:$0xff]  ;;  %v13603_v0 = vpop.f32.mrf.mxu0  ;;  %v1115_v1 = vld [vmem:[#allocation2 + $0x151] sm:$0xff] }
 0x147   : > { %2381 = vmatmul.mubr.bf16.gmra.mxu0 %v13471_v6 }
 0x148   : > { %2276 = vmatmul.mubr.bf16.gmra.mxu1 %v13578_v14  ;;  %2388 = vmatprep.mubr.bf16.mxu0 %v13548_v15 }
 0x149   : > { %2283 = vmatprep.mubr.bf16.mxu1 %v13580_v3 }
 0x14f   : > { %2389 = vmatmul.mubr.bf16.gmra.mxu0 %v13485_v4 }
 0x150   : > { %2284 = vmatmul.mubr.bf16.gmra.mxu1 %v13586_v31  ;;  %2396 = vmatprep.mubr.bf16.mxu0 %v13554_v59 }
 0x151   : > { %2485 = vmatprep.mubr.bf16.mxu1 %v1257_v9  ;;  %v1111_v9 = vld [vmem:[#allocation2 + $0x121] sm:$0xff] }
 0x152   : > { %v13595_v55 = vpack.c.bf16 %v1112_v50, %v1111_v9 }
 0x157   : > { %2397 = vmatmul.mubr.bf16.gmra.mxu0 %v13499_v33 }
 0x158   : > { %2486 = vmatmul.mubr.bf16.vlgmr.msra.gmra.mxu1 %v1256_v41  ;;  %2404 = vmatprep.mubr.bf16.mxu0 %v13560_v61  ;;  %v1274_v41 = vpack.c.bf16 %v1159_v40, %v1158_v5  ;;  %v1117_v5 = vld [vmem:[#allocation2 + $0x169] sm:$0xff] }
 0x159   : > { %2493 = vmatprep.mubr.bf16.mxu1 %v1266_v36  ;;  %v1113_v36 = vld [vmem:[#allocation2 + $0x139] sm:$0xff] }
 0x15a   : > { %v13600_v10 = vpack.c.bf16 %v1114_v19, %v1113_v36  ;;  %v1152_v36 = vld [vmem:[#allocation2 + $0x18a] sm:$0xff] }
 0x15f   : > { %2405 = vmatmul.mubr.bf16.gmra.mxu0 %v13513_v38 }
 0x160   : > { %2494 = vmatmul.mubr.bf16.gmra.mxu1 %v1265_v45  ;;  %2412 = vmatprep.mubr.bf16.mxu0 %v13566_v54  ;;  %v1116_v45 = vld [vmem:[#allocation2 + $0x159] sm:$0xff] }
 0x161   : > { %2501 = vmatprep.mubr.bf16.mxu1 %v1275_v44  ;;  %v13608_v44 = vpop.f32.mrf.mxu0  ;;  %v13610_v9 = vpack.c.bf16 %v1116_v45, %v1115_v1 }
 0x167   : > { %2413 = vmatmul.mubr.bf16.gmra.mxu0 %v13595_v55 }
 0x168   : > { %2502 = vmatmul.mubr.bf16.gmra.mxu1 %v1274_v41  ;;  %2420 = vmatprep.mubr.bf16.mxu0 %v13572_v43  ;;  %v1151_v41 = vld [vmem:[#allocation2 + $0x182] sm:$0xff] }
 0x169   : > { %2509 = vmatprep.mubr.bf16.mxu1 %v13432_v18  ;;  %v13622_v32 = vpack.c.bf16 %v1152_v36, %v1151_v41 }
 0x16f   : > { %2421 = vmatmul.mubr.bf16.gmra.mxu0 %v13600_v10 }
 0x170   : > { %2510 = vmatmul.mubr.bf16.gmra.mxu1 %v13438_v26  ;;  %2428 = vmatprep.mubr.bf16.mxu0 %v13578_v14  ;;  %v1118_v26 = vld [vmem:[#allocation2 + $0x171] sm:$0xff] }
 0x171   : > { %2517 = vmatprep.mubr.bf16.mxu1 %v13444_v16  ;;  %v13620_v63 = vpack.c.bf16 %v1118_v26, %v1117_v5  ;;  %v1218_v5 = vld [vmem:[#allocation2 + $0x32] sm:$0xff]  ;;  %v1219_v26 = vld [vmem:[#allocation2 + $0x3a] sm:$0xff] }
 0x177   : > { %v10141_v50 = vpop.f32.mrf.mxu0  ;;  %2429 = vmatmul.mubr.bf16.gmra.mxu0 %v13610_v9 }
 0x178   : > { %v10207_v18 = vpop.f32.mrf.mxu1  ;;  %2518 = vmatmul.mubr.bf16.gmra.mxu1 %v13449_v30  ;;  %2436 = vmatprep.mubr.bf16.mxu0 %v13586_v31 }
 0x179   : > { %v10142_v40 = vpop.f32.mrf.mxu0  ;;  %2525 = vmatprep.mubr.bf16.mxu1 %v13457_v39 }
 0x17a   : > { %v13616_v16 = vadd.f32 %v10142_v40, %v10141_v50  ;;  %v10208_v19 = vpop.f32.mrf.mxu1 }
 0x17b   : > { %v13618_v1 = vadd.f32 %v10208_v19, %v10207_v18  ;;  %v10144_v45 = vpop.f32.mrf.mxu0  ;;  %v1258_v19 = vpack.c.bf16 %v1219_v26, %v1218_v5 }
 0x17c   : > { %v10210_v57 = vpop.f32.mrf.mxu1 }
 0x17d   : > { %v10145_v30 = vpop.f32.mrf.mxu0 }
 0x17e   : > { %v13624_v23 = vadd.f32 %v10145_v30, %v10144_v45  ;;  %v10211_v17 = vpop.f32.mrf.mxu1 }
 0x17f   : > { %v13626_v11 = vadd.f32 %v10211_v17, %v10210_v57  ;;  %v10147_v39 = vpop.f32.mrf.mxu0  ;;  %2437 = vmatmul.mubr.bf16.gmra.mxu0 %v13620_v63 }
 0x180   : > { %v10213_v50 = vpop.f32.mrf.mxu1  ;;  %2526 = vmatmul.mubr.bf16.gmra.mxu1 %v13463_v48  ;;  %2444 = vmatprep.mubr.bf16.mxu0 %v13622_v32 }
 0x181   : > { %v10148_v18 = vpop.f32.mrf.mxu0  ;;  %2533 = vmatprep.mubr.bf16.mxu1 %v13471_v6 }
 0x182   : > { %v13632_v40 = vadd.f32 %v10148_v18, %v10147_v39  ;;  %v10214_v41 = vpop.f32.mrf.mxu1 }
 0x183   : > { %v13634_v36 = vadd.f32 %v10214_v41, %v10213_v50  ;;  %v10150_v17 = vpop.f32.mrf.mxu0 }
 0x184   : > { %v10216_v57 = vpop.f32.mrf.mxu1 }
 0x185   : > { %v10151_v45 = vpop.f32.mrf.mxu0 }
 0x186   : > { %v13636_v30 = vadd.f32 %v10151_v45, %v10150_v17  ;;  %v10217_v7 = vpop.f32.mrf.mxu1 }
 0x187   : > { %v13638_v48 = vadd.f32 %v10217_v7, %v10216_v57  ;;  %v10153_v2 = vpop.f32.mrf.mxu0  ;;  %2445 = vmatmul.mubr.bf16.gmra.mxu0 %v13529_v35 }
 0x188   : > { %v10219_v6 = vpop.f32.mrf.mxu1  ;;  %2534 = vmatmul.mubr.bf16.gmra.mxu1 %v13477_v58  ;;  %11357 = vmatprep.mubr.bf16.mxu0 %v1258_v19 }
 0x189   : > { %v10154_v39 = vpop.f32.mrf.mxu0  ;;  %2541 = vmatprep.mubr.bf16.mxu1 %v13485_v4 }
 0x18a   : > { %v13643_v50 = vadd.f32 %v10154_v39, %v10153_v2  ;;  %v10220_v18 = vpop.f32.mrf.mxu1 }
 0x18b   : > { %v13645_v5 = vadd.f32 %v10220_v18, %v10219_v6  ;;  %v10156_v26 = vpop.f32.mrf.mxu0 }
 0x18c   : > { %v10222_v41 = vpop.f32.mrf.mxu1 }
 0x18d   : > { %v10157_v17 = vpop.f32.mrf.mxu0 }
 0x18e   : > { %v13647_v7 = vadd.f32 %v10157_v17, %v10156_v26  ;;  %v10223_v57 = vpop.f32.mrf.mxu1 }
 0x18f   : > { %v13649_v45 = vadd.f32 %v10223_v57, %v10222_v41  ;;  %v10159_v62 = vpop.f32.mrf.mxu0  ;;  %11358 = vmatmul.mubr.bf16.vlgmr.msra.gmra.mxu0 %v13479_v47 }
 0x190   : > { %v10225_v58 = vpop.f32.mrf.mxu1  ;;  %2542 = vmatmul.mubr.bf16.gmra.mxu1 %v13491_v25  ;;  %11361 = vmatprep.mubr.bf16.mxu0 %v13493_v8 }
 0x191   : > { %v10160_v2 = vpop.f32.mrf.mxu0  ;;  %2549 = vmatprep.mubr.bf16.mxu1 %v13499_v33 }
 0x192   : > { %v13655_v4 = vadd.f32 %v10160_v2, %v10159_v62  ;;  %v10226_v19 = vpop.f32.mrf.mxu1 }
 0x193   : > { %v13657_v6 = vadd.f32 %v10226_v19, %v10225_v58  ;;  %v10162_v39 = vpop.f32.mrf.mxu0 }
 0x194   : > { %v10228_v18 = vpop.f32.mrf.mxu1 }
 0x195   : > { %v10163_v26 = vpop.f32.mrf.mxu0 }
 0x196   : > { %v13659_v41 = vadd.f32 %v10163_v26, %v10162_v39  ;;  %v10229_v17 = vpop.f32.mrf.mxu1 }
 0x197   : > { %v13661_v47 = vadd.f32 %v10229_v17, %v10228_v18  ;;  %v10165_v57 = vpop.f32.mrf.mxu0  ;;  %11362 = vmatmul.mubr.bf16.gmra.mxu0 %v13507_v51 }
 0x198   : > { %v10247_v25 = vpop.f32.mrf.mxu1  ;;  %2550 = vmatmul.mubr.bf16.gmra.mxu1 %v13505_v60  ;;  %11365 = vmatprep.mubr.bf16.mxu0 %v13523_v28  ;;  %v10140_v60 = vadd.f32 %v13608_v44, %v13603_v0 }
 0x199   : > { %v10166_v62 = vpop.f32.mrf.mxu0  ;;  %2557 = vmatprep.mubr.bf16.mxu1 %v13513_v38 }
 0x19a   : > { %v13667_v8 = vadd.f32 %v10166_v62, %v10165_v57  ;;  %v10248_v33 = vpop.f32.mrf.mxu1  ;;  %v1175_v62 = vld [vmem:[#allocation2 + $0x128] sm:$0xff] }
 0x19b   : > { %v10249_v58 = vadd.f32 %v10248_v33, %v10247_v25  ;;  %v10168_v2 = vpop.f32.mrf.mxu0  ;;  %v1174_v25 = vld [vmem:[#allocation2 + $0x120] sm:$0xff] }
 0x19c   : > { %v10250_v19 = vpop.f32.mrf.mxu1 }
 0x19d   : > { %v13670_v39 = vadd.f32 %v10249_v58, %v13521_v49  ;;  %v10169_v18 = vpop.f32.mrf.mxu0 }
 0x19e   : > { %v13672_v26 = vadd.f32 %v10169_v18, %v10168_v2  ;;  %v10251_v51 = vpop.f32.mrf.mxu1 }
 0x19f   : > { %v10252_v28 = vadd.f32 %v10251_v51, %v10250_v19  ;;  %v10171_v17 = vpop.f32.mrf.mxu0  ;;  %11366 = vmatmul.mubr.bf16.gmra.mxu0 %v13535_v12  ;;  %v1346_v19 = vpack.c.bf16 %v1175_v62, %v1174_v25 }
 0x1a0   : > { %v10253_v38 = vpop.f32.mrf.mxu1  ;;  %2558 = vmatmul.mubr.bf16.gmra.mxu1 %v13519_v13  ;;  %11369 = vmatprep.mubr.bf16.mxu0 %v13542_v53 }
 0x1a1   : > { %v13679_v57 = vadd.f32 %v10252_v28, %v10140_v60  ;;  %v10172_v49 = vpop.f32.mrf.mxu0  ;;  %2565 = vmatprep.mubr.bf16.mxu1 %v13595_v55 }
 0x1a2   : > { %v13682_v33 = vadd.f32 %v10172_v49, %v10171_v17  ;;  %v10254_v58 = vpop.f32.mrf.mxu1 }
 0x1a3   : > { %v10255_v0 = vadd.f32 %v10254_v58, %v10253_v38  ;;  %v10174_v44 = vpop.f32.mrf.mxu0  ;;  %v1177_v38 = vld [vmem:[#allocation2 + $0x140] sm:$0xff] }
 0x1a4   : > { %v10256_v2 = vpop.f32.mrf.mxu1 }
 0x1a5   : > { %v13685_v12 = vadd.f32 %v10255_v0, %v13616_v16  ;;  %v10175_v13 = vpop.f32.mrf.mxu0  ;;  %v1176_v16 = vld [vmem:[#allocation2 + $0x138] sm:$0xff] }
 0x1a6   : > { %v13687_v18 = vadd.f32 %v10175_v13, %v10174_v44  ;;  %v10257_v53 = vpop.f32.mrf.mxu1  ;;  %v1355_v44 = vpack.c.bf16 %v1177_v38, %v1176_v16 }
 0x1a7   : > { %v10258_v51 = vadd.f32 %v10257_v53, %v10256_v2  ;;  %v10177_v60 = vpop.f32.mrf.mxu0  ;;  %11370 = vmatmul.mubr.bf16.gmra.mxu0 %v13548_v15 }
 0x1a8   : > { %v10259_v55 = vpop.f32.mrf.mxu1  ;;  %2566 = vmatmul.mubr.bf16.gmra.mxu1 %v1346_v19  ;;  %11373 = vmatprep.mubr.bf16.mxu0 %v13554_v59 }
 0x1a9   : > { %v13692_v28 = vadd.f32 %v10258_v51, %v13624_v23  ;;  %v10178_v17 = vpop.f32.mrf.mxu0  ;;  %2573 = vmatprep.mubr.bf16.mxu1 %v13600_v10 }
 0x1aa   : > { %v13695_v49 = vadd.f32 %v10178_v17, %v10177_v60  ;;  %v10260_v25 = vpop.f32.mrf.mxu1  ;;  %v1179_v60 = vld [vmem:[#allocation2 + $0x158] sm:$0xff] }
 0x1ab   : > { %v10261_v62 = vadd.f32 %v10260_v25, %v10259_v55  ;;  %v10180_v58 = vpop.f32.mrf.mxu0 }
 0x1ac   : > { %v10262_v0 = vpop.f32.mrf.mxu1 }
 0x1ad   : > { %v13698_v15 = vadd.f32 %v10261_v62, %v13632_v40  ;;  %v10181_v2 = vpop.f32.mrf.mxu0  ;;  %v1178_v40 = vld [vmem:[#allocation2 + $0x150] sm:$0xff] }
 0x1ae   : > { %v13700_v59 = vadd.f32 %v10181_v2, %v10180_v58  ;;  %v10263_v23 = vpop.f32.mrf.mxu1 }
 0x1af   : > { %v10264_v19 = vadd.f32 %v10263_v23, %v10262_v0  ;;  %v10183_v13 = vpop.f32.mrf.mxu0  ;;  %11374 = vmatmul.mubr.bf16.gmra.mxu0 %v13560_v61  ;;  %v1364_v61 = vpack.c.bf16 %v1179_v60, %v1178_v40  ;;  %v1180_v23 = vld [vmem:[#allocation2 + $0x168] sm:$0xff] }
 0x1b0   : > { %v10265_v10 = vpop.f32.mrf.mxu1  ;;  %2574 = vmatmul.mubr.bf16.gmra.mxu1 %v1355_v44  ;;  %11377 = vmatprep.mubr.bf16.mxu0 %v13566_v54 }
 0x1b1   : > { %v13705_v53 = vadd.f32 %v10264_v19, %v13636_v30  ;;  %v10184_v51 = vpop.f32.mrf.mxu0  ;;  %2581 = vmatprep.mubr.bf16.mxu1 %v13610_v9 }
 0x1b2   : > { %v13708_v55 = vadd.f32 %v10184_v51, %v10183_v13  ;;  %v10266_v17 = vpop.f32.mrf.mxu1 }
 0x1b3   : > { %v10267_v16 = vadd.f32 %v10266_v17, %v10265_v10  ;;  %v13710_v38 = vpop.f32.mrf.mxu0 }
 0x1b4   : > { %v10268_v25 = vpop.f32.mrf.mxu1 }
 0x1b5   : > { %v13713_v62 = vadd.f32 %v10267_v16, %v13643_v50  ;;  %v13715_v54 = vpop.f32.mrf.mxu0  ;;  %v1181_v50 = vld [vmem:[#allocation2 + $0x170] sm:$0xff] }
 0x1b6   : > { %v10269_v30 = vpop.f32.mrf.mxu1 }
 0x1b7   : > { %v10270_v58 = vadd.f32 %v10269_v30, %v10268_v25  ;;  %v10189_v0 = vpop.f32.mrf.mxu0  ;;  %11378 = vmatmul.mubr.bf16.gmra.mxu0 %v13572_v43  ;;  %v1373_v43 = vpack.c.bf16 %v1181_v50, %v1180_v23  ;;  %v1248_v25 = vld [vmem:[#allocation2 + $0x19a] sm:$0xff] }
 0x1b8   : > { %v10271_v9 = vpop.f32.mrf.mxu1  ;;  %2582 = vmatmul.mubr.bf16.gmra.mxu1 %v1364_v61  ;;  %11381 = vmatprep.mubr.bf16.mxu0 %v13578_v14  ;;  %v1249_v61 = vld [vmem:[#allocation2 + $0x1a2] sm:$0xff] }
 0x1b9   : > { %v13720_v44 = vadd.f32 %v10270_v58, %v13647_v7  ;;  %v10190_v2 = vpop.f32.mrf.mxu0  ;;  %2589 = vmatprep.mubr.bf16.mxu1 %v13620_v63 }
 0x1ba   : > { %v13723_v19 = vadd.f32 %v10190_v2, %v10189_v0  ;;  %v10272_v13 = vpop.f32.mrf.mxu1  ;;  %v1217_v2 = vld [vmem:[#allocation2 + $0x1a1] sm:$0xff] }
 0x1bb   : > { %v10273_v10 = vadd.f32 %v10272_v13, %v10271_v9  ;;  %v13725_v51 = vpop.f32.mrf.mxu0  ;;  %v1216_v9 = vld [vmem:[#allocation2 + $0x199] sm:$0xff] }
 0x1bc   : > { %v10274_v40 = vpop.f32.mrf.mxu1 }
 0x1bd   : > { %v13728_v60 = vadd.f32 %v10273_v10, %v13655_v4  ;;  %v13730_v14 = vpop.f32.mrf.mxu0 }
 0x1be   : > { %v10275_v7 = vpop.f32.mrf.mxu1 }
 0x1bf   : > { %v10276_v17 = vadd.f32 %v10275_v7, %v10274_v40  ;;  %v10195_v16 = vpop.f32.mrf.mxu0  ;;  %11382 = vmatmul.mubr.bf16.gmra.mxu0 %v13586_v31  ;;  %v1393_v31 = vpack.c.bf16 %v1249_v61, %v1248_v25 }
 0x1c0   : > { %v10277_v63 = vpop.f32.mrf.mxu1  ;;  %2590 = vmatmul.mubr.bf16.gmra.mxu1 %v1373_v43  ;;  %11385 = vmatprep.mubr.bf16.mxu0 %v13622_v32 }
 0x1c1   : > { %v13735_v30 = vadd.f32 %v10276_v17, %v13659_v41  ;;  %v10196_v58 = vpop.f32.mrf.mxu0  ;;  %2597 = vmatprep.mubr.bf16.mxu1 %v13529_v35  ;;  %v1392_v41 = vpack.c.bf16 %v1217_v2, %v1216_v9 }
 0x1c2   : > { %v13738_v4 = vadd.f32 %v10196_v58, %v10195_v16  ;;  %v10278_v0 = vpop.f32.mrf.mxu1 }
 0x1c3   : > { %v10279_v23 = vadd.f32 %v10278_v0, %v10277_v63  ;;  %v13740_v50 = vpop.f32.mrf.mxu0  ;;  %v12746_v0 = vld [vmem:[#allocation2] sm:$0xff] }
 0x1c4   : > { %v10280_v13 = vpop.f32.mrf.mxu1  ;;  %v13755_v9 = vpack.c.bf16 %v12746_v0, %v12746_v0  ;;  %v12629_v0 = vld [vmem:[#allocation7 + $0x38] sm:$0xff]  }
 0x1c5   : > { %v13743_v32 = vadd.f32 %v10279_v23, %v13667_v8  ;;  %v13745_v10 = vpop.f32.mrf.mxu0 }
 0x1c6   : > { %v10281_v40 = vpop.f32.mrf.mxu1 }
 0x1c7   : > { %v10282_v43 = vadd.f32 %v10281_v40, %v10280_v13  ;;  %v10201_v7 = vpop.f32.mrf.mxu0  ;;  %11386 = vmatmul.mubr.bf16.gmra.mxu0 %v1393_v31 }
 0x1c8   : > { %v10283_v35 = vpop.f32.mrf.mxu1  ;;  %2598 = vmatmul.mubr.bf16.gmra.mxu1 %v13580_v3 }
 0x1c9   : > { %v13749_v17 = vadd.f32 %v10282_v43, %v13672_v26  ;;  %v10202_v16 = vpop.f32.mrf.mxu0  ;;  %2605 = vmatprep.mubr.bf16.mxu1 %v1392_v41 }
 0x1ca   : > { %v13751_v63 = vadd.f32 %v10202_v16, %v10201_v7  ;;  %v10284_v25 = vpop.f32.mrf.mxu1 }
 0x1cb   : > { %v10285_v8 = vadd.f32 %v10284_v25, %v10283_v35  ;;  %v13753_v61 = vpop.f32.mrf.mxu0  ;;  %v12628_v35 = vld [vmem:[#allocation7 + $0x78] sm:$0xff]  }
 0x1cc   : > { %v10286_v58 = vpop.f32.mrf.mxu1  ;;  %10591 = vmatprep.subr.bf16.mxu1 %v12628_v35 }
 0x1cd   : > { %v13758_v2 = vadd.f32 %v10285_v8, %v13682_v33  ;;  %v13760_v23 = vpop.f32.mrf.mxu0  ;;  %10592 = vmatpush3.bf16.msra.mxu1 %v12629_v0 }
 0x1ce   : > { %v10287_v3 = vpop.f32.mrf.mxu1 }
 0x1cf   : > { %v10288_v26 = vadd.f32 %v10287_v3, %v10286_v58  ;;  %v10359_v31 = vpop.f32.mrf.mxu0 }
 0x1d0   : > { %v10289_v13 = vpop.f32.mrf.mxu1  ;;  %2606 = vmatmul.mubr.bf16.gmra.mxu1 %v13755_v9 }
 0x1d1   : > { %v13764_v41 = vadd.f32 %v10288_v26, %v13687_v18  ;;  %v10360_v40 = vpop.f32.mrf.mxu0 }
 0x1d2   : > { %v10290_v43 = vpop.f32.mrf.mxu1  ;;  %v10361_v7 = vadd.f32 %v10360_v40, %v10359_v31 }
 0x1d3   : > { %v10291_v16 = vadd.f32 %v10290_v43, %v10289_v13  ;;  %v10362_v25 = vpop.f32.mrf.mxu0 }
 0x1d4   : > { %v13767_v33 = vadd.f32 %v10361_v7, %v13670_v39  ;;  %v10292_v8 = vpop.f32.mrf.mxu1 }
 0x1d5   : > { %v13770_v58 = vadd.f32 %v10291_v16, %v13695_v49  ;;  %v10363_v3 = vpop.f32.mrf.mxu0 }
 0x1d6   : > { %v10293_v56 = vpop.f32.mrf.mxu1  ;;  %v10364_v52 = vadd.f32 %v10363_v3, %v10362_v25 }
 0x1d7   : > { %v10294_v18 = vadd.f32 %v10293_v56, %v10292_v8  ;;  %v10365_v26 = vpop.f32.mrf.mxu0 }
 0x1d8   : > { %v13773_v31 = vadd.f32 %v10364_v52, %v13679_v57  ;;  %v10295_v13 = vpop.f32.mrf.mxu1  ;;  %v10188_v57 = vadd.f32 %v13715_v54, %v13710_v38 }
 0x1d9   : > { %v13776_v40 = vadd.f32 %v10294_v18, %v13700_v59  ;;  %v10366_v39 = vpop.f32.mrf.mxu0 }
 0x1da   : > { %v10296_v43 = vpop.f32.mrf.mxu1  ;;  %v10367_v7 = vadd.f32 %v10366_v39, %v10365_v26 }
 0x1db   : > { %v10297_v35 = vadd.f32 %v10296_v43, %v10295_v13  ;;  %v10368_v46 = vpop.f32.mrf.mxu0 }
 0x1dc   : > { %v13779_v49 = vadd.f32 %v10367_v7, %v13685_v12  ;;  %v10298_v16 = vpop.f32.mrf.mxu1 }
 0x1dd   : > { %v13782_v25 = vadd.f32 %v10297_v35, %v13708_v55  ;;  %v10369_v56 = vpop.f32.mrf.mxu0  ;;  %v12630_v35 = vld [vmem:[#allocation7 + $0x70] sm:$0xff]  }
 0x1de   : > { %v10299_v8 = vpop.f32.mrf.mxu1  ;;  %v10370_v52 = vadd.f32 %v10369_v56, %v10368_v46  ;;  %10593 = vmatprep.subr.bf16.mxu1 %v12630_v35  ;;  %v10194_v56 = vadd.f32 %v13730_v14, %v13725_v51  ;;  %v10200_v35 = vadd.f32 %v13745_v10, %v13740_v50 }
 0x1df   : > { %v10300_v59 = vadd.f32 %v10299_v8, %v10298_v16  ;;  %v10371_v0 = vpop.f32.mrf.mxu0 }
 0x1e0   : > { %v13787_v3 = vadd.f32 %v10370_v52, %v13692_v28  ;;  %v10301_v18 = vpop.f32.mrf.mxu1 }
 0x1e1   : > { %v13789_v26 = vadd.f32 %v10300_v59, %v10188_v57  ;;  %v10372_v12 = vpop.f32.mrf.mxu0 }
 0x1e2   : > { %v10302_v13 = vpop.f32.mrf.mxu1  ;;  %v10373_v39 = vadd.f32 %v10372_v12, %v10371_v0 }
 0x1e3   : > { %v10303_v43 = vadd.f32 %v10302_v13, %v10301_v18  ;;  %v10374_v55 = vpop.f32.mrf.mxu0 }
 0x1e4   : > { %v13792_v7 = vadd.f32 %v10373_v39, %v13698_v15  ;;  %v10304_v46 = vpop.f32.mrf.mxu1  ;;  %v12631_v15 = vld [vmem:[#allocation7 + $0x30] sm:$0xff]  }
 0x1e5   : > { %v13795_v38 = vadd.f32 %v10303_v43, %v13723_v19  ;;  %v10375_v54 = vpop.f32.mrf.mxu0  ;;  %10594 = vmatpush3.bf16.msra.mxu1 %v12631_v15 }
 0x1e6   : > { %v10305_v16 = vpop.f32.mrf.mxu1  ;;  %v10376_v28 = vadd.f32 %v10375_v54, %v10374_v55 }
 0x1e7   : > { %v10306_v8 = vadd.f32 %v10305_v16, %v10304_v46  ;;  %v10377_v52 = vpop.f32.mrf.mxu0 }
 0x1e8   : > { %v13800_v57 = vadd.f32 %v10376_v28, %v13705_v53  ;;  %v10307_v59 = vpop.f32.mrf.mxu1 }
 0x1e9   : > { %v13802_v0 = vadd.f32 %v10306_v8, %v10194_v56  ;;  %v10378_v18 = vpop.f32.mrf.mxu0 }
 0x1ea   : > { %v10308_v12 = vpop.f32.mrf.mxu1  ;;  %v10379_v19 = vadd.f32 %v10378_v18, %v10377_v52 }
 0x1eb   : > { %v10309_v13 = vadd.f32 %v10308_v12, %v10307_v59  ;;  %v10380_v39 = vpop.f32.mrf.mxu0 }
 0x1ec   : > { %v13805_v43 = vadd.f32 %v10379_v19, %v13713_v62  ;;  %v10310_v55 = vpop.f32.mrf.mxu1  ;;  %v12632_v19 = vld [vmem:[#allocation7 + $0x68] sm:$0xff]  }
 0x1ed   : > { %v13808_v51 = vadd.f32 %v10309_v13, %v13738_v4  ;;  %v10381_v14 = vpop.f32.mrf.mxu0  ;;  %10595 = vmatprep.subr.bf16.mxu1 %v12632_v19 }
 0x1ee   : > { %v10311_v53 = vpop.f32.mrf.mxu1  ;;  %v10382_v46 = vadd.f32 %v10381_v14, %v10380_v39  ;;  %v10206_v39 = vadd.f32 %v13760_v23, %v13753_v61 }
 0x1ef   : > { %v10312_v54 = vadd.f32 %v10311_v53, %v10310_v55  ;;  %v10383_v16 = vpop.f32.mrf.mxu0 }
 0x1f0   : > { %v13813_v28 = vadd.f32 %v10382_v46, %v13720_v44  ;;  %v10313_v56 = vpop.f32.mrf.mxu1 }
 0x1f1   : > { %v13815_v8 = vadd.f32 %v10312_v54, %v10200_v35  ;;  %v10384_v62 = vpop.f32.mrf.mxu0 }
 0x1f2   : > { %v10314_v52 = vpop.f32.mrf.mxu1  ;;  %v10385_v59 = vadd.f32 %v10384_v62, %v10383_v16 }
 0x1f3   : > { %v10315_v15 = vadd.f32 %v10314_v52, %v10313_v56  ;;  %v10386_v4 = vpop.f32.mrf.mxu0 }
 0x1f4   : > { %v13818_v18 = vadd.f32 %v10385_v59, %v13728_v60  ;;  %v10316_v12 = vpop.f32.mrf.mxu1  ;;  %v12633_v60 = vld [vmem:[#allocation7 + $0x28] sm:$0xff]  }
 0x1f5   : > { %v13821_v50 = vadd.f32 %v10315_v15, %v13751_v63  ;;  %v10387_v10 = vpop.f32.mrf.mxu0  ;;  %10596 = vmatpush3.bf16.msra.mxu1 %v12633_v60  ;;  %v12634_v60 = vld [vmem:[#allocation7 + $0x60] sm:$0xff]  }
 0x1f6   : > { %v10317_v13 = vpop.f32.mrf.mxu1  ;;  %v10388_v44 = vadd.f32 %v10387_v10, %v10386_v4  ;;  %10597 = vmatprep.subr.bf16.mxu1 %v12634_v60 }
 0x1f7   : > { %v10318_v55 = vadd.f32 %v10317_v13, %v10316_v12  ;;  %v10389_v14 = vpop.f32.mrf.mxu0 }
 0x1f8   : > { %v13826_v53 = vadd.f32 %v10388_v44, %v13735_v30  ;;  %v10319_v46 = vpop.f32.mrf.mxu1 }
 0x1f9   : > { %v13828_v35 = vadd.f32 %v10318_v55, %v10206_v39  ;;  %v10390_v54 = vpop.f32.mrf.mxu0 }
 0x1fa   : > { %v10320_v16 = vpop.f32.mrf.mxu1  ;;  %v10391_v63 = vadd.f32 %v10390_v54, %v10389_v14 }
 0x1fb   : > { %v10321_v56 = vadd.f32 %v10320_v16, %v10319_v46  ;;  %v10392_v62 = vpop.f32.mrf.mxu0 }
 0x1fc   : > { %v13831_v52 = vadd.f32 %v10391_v63, %v13743_v32  ;;  %v10322_v59 = vpop.f32.mrf.mxu1 }
 0x1fd   : > { %v13834_v61 = vadd.f32 %v10321_v56, %v13618_v1  ;;  %v10393_v23 = vpop.f32.mrf.mxu0 }
 0x1fe   : > { %v10323_v30 = vpop.f32.mrf.mxu1  ;;  %v10394_v15 = vadd.f32 %v10393_v23, %v10392_v62 }
 0x1ff   : > { %v10324_v4 = vadd.f32 %v10323_v30, %v10322_v59  ;;  %v10395_v12 = vpop.f32.mrf.mxu0  ;;  %v12635_v30 = vld [vmem:[#allocation7 + $0x20] sm:$0xff]  }
 0x200   : > { %v13837_v19 = vadd.f32 %v10394_v15, %v13749_v17  ;;  %v10325_v10 = vpop.f32.mrf.mxu1  ;;  %10598 = vmatpush3.bf16.msra.mxu1 %v12635_v30 }
 0x201   : > { %v13840_v13 = vadd.f32 %v10324_v4, %v13626_v11  ;;  %v10396_v44 = vpop.f32.mrf.mxu0 }
 0x202   : > { %v10326_v39 = vpop.f32.mrf.mxu1  ;;  %v10397_v32 = vadd.f32 %v10396_v44, %v10395_v12 }
 0x203   : > { %v10327_v55 = vadd.f32 %v10326_v39, %v10325_v10  ;;  %v10398_v14 = vpop.f32.mrf.mxu0 }
 0x204   : > { %v13843_v1 = vadd.f32 %v10397_v32, %v13758_v2  ;;  %v10328_v46 = vpop.f32.mrf.mxu1 }
 0x205   : > { %v13846_v54 = vadd.f32 %v10327_v55, %v13634_v36  ;;  %v10399_v16 = vpop.f32.mrf.mxu0 }
 0x206   : > { %v10329_v17 = vpop.f32.mrf.mxu1  ;;  %v10400_v63 = vadd.f32 %v10399_v16, %v10398_v14 }
 0x207   : > { %v10330_v56 = vadd.f32 %v10329_v17, %v10328_v46  ;;  %v10401_v11 = vpop.f32.mrf.mxu0 }
 0x208   : > { %v13849_v62 = vadd.f32 %v10400_v63, %v13764_v41  ;;  %v10331_v59 = vpop.f32.mrf.mxu1 }
 0x209   : > { %v13852_v23 = vadd.f32 %v10330_v56, %v13638_v48  ;;  %v10402_v2 = vpop.f32.mrf.mxu0 }
 0x20a   : > { %v10332_v15 = vpop.f32.mrf.mxu1  ;;  %v10403_v4 = vadd.f32 %v10402_v2, %v10401_v11 }
 0x20b   : > { %v10333_v12 = vadd.f32 %v10332_v15, %v10331_v59  ;;  %v10404_v36 = vpop.f32.mrf.mxu0 }
 0x20c   : > { %v13855_v10 = vadd.f32 %v10403_v4, %v13770_v58  ;;  %v10334_v44 = vpop.f32.mrf.mxu1 }
 0x20d   : > { %v13858_v39 = vadd.f32 %v10333_v12, %v13645_v5  ;;  %v10405_v41 = vpop.f32.mrf.mxu0 }
 0x20e   : > { %v10335_v32 = vpop.f32.mrf.mxu1  ;;  %v10406_v55 = vadd.f32 %v10405_v41, %v10404_v36  ;;  %v12636_v36 = vld [vmem:[#allocation7 + $0x58] sm:$0xff]  }
 0x20f   : > { %v10336_v14 = vadd.f32 %v10335_v32, %v10334_v44  ;;  %v10407_v48 = vpop.f32.mrf.mxu0  ;;  %10599 = vmatprep.subr.bf16.mxu1 %v12636_v36 }
 0x210   : > { %v13861_v46 = vadd.f32 %v10406_v55, %v13776_v40  ;;  %v10337_v60 = vpop.f32.mrf.mxu1 }
 0x211   : > { %v13864_v16 = vadd.f32 %v10336_v14, %v13649_v45  ;;  %v10408_v17 = vpop.f32.mrf.mxu0 }
 0x212   : > { %v10338_v63 = vpop.f32.mrf.mxu1  ;;  %v10409_v58 = vadd.f32 %v10408_v17, %v10407_v48  ;;  %v12637_v48 = vld [vmem:[#allocation7 + $0x18] sm:$0xff]  }
 0x213   : > { %v10339_v56 = vadd.f32 %v10338_v63, %v10337_v60  ;;  %v10410_v11 = vpop.f32.mrf.mxu0  ;;  %10600 = vmatpush3.bf16.msra.mxu1 %v12637_v48 }
 0x214   : > { %v13867_v5 = vadd.f32 %v10409_v58, %v13782_v25  ;;  %v10340_v59 = vpop.f32.mrf.mxu1 }
 0x215   : > { %v13870_v2 = vadd.f32 %v10339_v56, %v13657_v6  ;;  %v10411_v30 = vpop.f32.mrf.mxu0 }
 0x216   : > { %v10341_v15 = vpop.f32.mrf.mxu1  ;;  %v10412_v40 = vadd.f32 %v10411_v30, %v10410_v11 }
 0x217   : > { %v10342_v4 = vadd.f32 %v10341_v15, %v10340_v59  ;;  %v10413_v12 = vpop.f32.mrf.mxu0 }
 0x218   : > { %v13873_v45 = vadd.f32 %v10412_v40, %v13789_v26  ;;  %v10471_v44 = vpop.f32.mrf.mxu1 }
 0x219   : > { %v13876_v41 = vadd.f32 %v10342_v4, %v13661_v47  ;;  %v10414_v32 = vpop.f32.mrf.mxu0 }
 0x21a   : > { %v10415_v25 = vadd.f32 %v10414_v32, %v10413_v12  ;;  %v10472_v55 = vpop.f32.mrf.mxu1 }
 0x21b   : > { %v10473_v14 = vadd.f32 %v10472_v55, %v10471_v44  ;;  %v10416_v6 = vpop.f32.mrf.mxu0 }
 0x21c   : > { %v13879_v60 = vadd.f32 %v10415_v25, %v13795_v38  ;;  %v13881_v17 = vpop.f32.mrf.mxu1 }
 0x21d   : > { %v10417_v63 = vpop.f32.mrf.mxu0  ;;  %v13884_v26 = vadd.f32 %v10473_v14, %v13767_v33 }
 0x21e   : > { %v10418_v58 = vadd.f32 %v10417_v63, %v10416_v6  ;;  %v13886_v47 = vpop.f32.mrf.mxu1 }
 0x21f   : > { %v10419_v56 = vpop.f32.mrf.mxu0 }
 0x220   : > { %v13889_v11 = vadd.f32 %v10418_v58, %v13802_v0  ;;  %v13891_v59 = vpop.f32.mrf.mxu1 }
 0x221   : > { %v10420_v30 = vpop.f32.mrf.mxu0 }
 0x222   : > { %v10421_v15 = vadd.f32 %v10420_v30, %v10419_v56  ;;  %v13893_v38 = vpop.f32.mrf.mxu1 }
 0x223   : > { %v10422_v40 = vpop.f32.mrf.mxu0 }
 0x224   : > { %v13896_v4 = vadd.f32 %v10421_v15, %v13808_v51  ;;  %v13898_v33 = vpop.f32.mrf.mxu1 }
 0x225   : > { %v10423_v12 = vpop.f32.mrf.mxu0 }
 0x226   : > { %v10424_v36 = vadd.f32 %v10423_v12, %v10422_v40  ;;  %v13900_v44 = vpop.f32.mrf.mxu1 }
 0x227   : > { %v10425_v32 = vpop.f32.mrf.mxu0 }
 0x228   : > { %v13903_v0 = vadd.f32 %v10424_v36, %v13815_v8  ;;  %v13905_v25 = vpop.f32.mrf.mxu1 }
 0x229   : > { %v10426_v55 = vpop.f32.mrf.mxu0 }
 0x22a   : > { %18119 = vst [vmem:[#allocation44_spill] sm:$0xff] %v13903_v0  ;;  %v10427_v14 = vadd.f32 %v10426_v55, %v10425_v32  ;;  %v13907_v6 = vpop.f32.mrf.mxu1  ;;  %v10479_v0 = vadd.f32 %v13893_v38, %v13891_v59  ;;  %v12649_v38 = vld [vmem:[#allocation7 + $0xa8] sm:$0xff]  }
 0x22b   : > { %v10428_v48 = vpop.f32.mrf.mxu0 }
 0x22c   : > { %v13910_v51 = vadd.f32 %v10427_v14, %v13821_v50  ;;  %v13912_v63 = vpop.f32.mrf.mxu1 }
 0x22d   : > { %v10429_v58 = vpop.f32.mrf.mxu0 }
 0x22e   : > { %v10430_v56 = vadd.f32 %v10429_v58, %v10428_v48  ;;  %v13914_v30 = vpop.f32.mrf.mxu1 }
 0x22f   : > { %v10431_v15 = vpop.f32.mrf.mxu0 }
 0x230   : > { %v13917_v8 = vadd.f32 %v10430_v56, %v13828_v35  ;;  %v13919_v40 = vpop.f32.mrf.mxu1 }
 0x231   : > { %v10432_v12 = vpop.f32.mrf.mxu0 }
 0x232   : > { %18120 = vst [vmem:[#allocation45_spill] sm:$0xff] %v13917_v8  ;;  %v10433_v36 = vadd.f32 %v10432_v12, %v10431_v15  ;;  %v13921_v32 = vpop.f32.mrf.mxu1  ;;  %v12638_v8 = vld [vmem:[#allocation7 + $0x50] sm:$0xff]  }
 0x233   : > { %v10434_v55 = vpop.f32.mrf.mxu0  ;;  %10601 = vmatprep.subr.bf16.mxu1 %v12638_v8 }
 0x234   : > { %v13924_v50 = vadd.f32 %v10433_v36, %v13834_v61  ;;  %v13926_v14 = vpop.f32.mrf.mxu1 }
 0x235   : > { %v10435_v42 = vpop.f32.mrf.mxu0 }
 0x236   : > { %18121 = vst [vmem:[#allocation46_spill] sm:$0xff] %v13924_v50  ;;  %v10436_v48 = vadd.f32 %v10435_v42, %v10434_v55  ;;  %v13928_v58 = vpop.f32.mrf.mxu1 }
 0x237   : > { %v10437_v37 = vpop.f32.mrf.mxu0 }
 0x238   : > { %v13931_v35 = vadd.f32 %v10436_v48, %v13840_v13  ;;  %v13933_v56 = vpop.f32.mrf.mxu1 }
 0x239   : > { %v10438_v34 = vpop.f32.mrf.mxu0 }
 0x23a   : > { %18122 = vst [vmem:[#allocation47_spill] sm:$0xff] %v13931_v35  ;;  %v10439_v15 = vadd.f32 %v10438_v34, %v10437_v37  ;;  %v13935_v12 = vpop.f32.mrf.mxu1  ;;  %v12642_v35 = vld [vmem:[#allocation7 + $0xf8] sm:$0xff]  }
 0x23b   : > { %v10440_v29 = vpop.f32.mrf.mxu0  ;;  %10703 = vmatprep.subr.bf16.mxu0 %v12642_v35  ;;  %v12639_v35 = vld [vmem:[#allocation7 + $0x10] sm:$0xff]  }
 0x23c   : > { %v13938_v61 = vadd.f32 %v10439_v15, %v13846_v54  ;;  %v13940_v36 = vpop.f32.mrf.mxu1  ;;  %10602 = vmatpush3.bf16.msra.mxu1 %v12639_v35 }
 0x23d   : > { %v10441_v27 = vpop.f32.mrf.mxu0 }
 0x23e   : > { %18123 = vst [vmem:[#allocation48_spill] sm:$0xff] %v13938_v61  ;;  %v10442_v42 = vadd.f32 %v10441_v27, %v10440_v29  ;;  %v13942_v55 = vpop.f32.mrf.mxu1 }
 0x23f   : > { %v10443_v24 = vpop.f32.mrf.mxu0 }
 0x240   : > { %v13945_v13 = vadd.f32 %v10442_v42, %v13852_v23  ;;  %v13947_v48 = vpop.f32.mrf.mxu1 }
 0x241   : > { %v10444_v21 = vpop.f32.mrf.mxu0 }
 0x242   : > { %18124 = vst [vmem:[#allocation49_spill] sm:$0xff] %v13945_v13  ;;  %v10445_v34 = vadd.f32 %v10444_v21, %v10443_v24  ;;  %v13949_v37 = vpop.f32.mrf.mxu1 }
 0x243   : > { %v10446_v20 = vpop.f32.mrf.mxu0 }
 0x244   : > { %v13952_v54 = vadd.f32 %v10445_v34, %v13858_v39  ;;  %v13954_v15 = vpop.f32.mrf.mxu1  ;;  %v12643_v39 = vld [vmem:[#allocation7 + $0xb8] sm:$0xff]  }
 0x245   : > { %v10447_v22 = vpop.f32.mrf.mxu0  ;;  %10704 = vmatpush3.bf16.msra.mxu0 %v12643_v39  ;;  %v10482_v39 = vadd.f32 %v13900_v44, %v13898_v33  ;;  %v12641_v33 = vld [vmem:[#allocation7 + $0x8] sm:$0xff]  }
 0x246   : > { %18125 = vst [vmem:[#allocation50_spill] sm:$0xff] %v13952_v54  ;;  %v10448_v27 = vadd.f32 %v10447_v22, %v10446_v20  ;;  %v13956_v29 = vpop.f32.mrf.mxu1 }
 0x247   : > { %v10449_v61 = vpop.f32.mrf.mxu0 }
 0x248   : > { %v13959_v23 = vadd.f32 %v10448_v27, %v13864_v16  ;;  %v13961_v42 = vpop.f32.mrf.mxu1  ;;  %v12644_v27 = vld [vmem:[#allocation7 + $0xf0] sm:$0xff]  }
 0x249   : > { %v10450_v13 = vpop.f32.mrf.mxu0  ;;  %10705 = vmatprep.subr.bf16.mxu0 %v12644_v27 }
 0x24a   : > { %18126 = vst [vmem:[#allocation51_spill] sm:$0xff] %v13959_v23  ;;  %v10451_v21 = vadd.f32 %v10450_v13, %v10449_v61  ;;  %v13963_v24 = vpop.f32.mrf.mxu1  ;;  %v12645_v61 = vld [vmem:[#allocation7 + $0xb0] sm:$0xff]   ;;  %v10476_v13 = vadd.f32 %v13886_v47, %v13881_v17  ;;  %v12648_v17 = vld [vmem:[#allocation7 + $0xe8] sm:$0xff]   ;;  %v10485_v47 = vadd.f32 %v13907_v6, %v13905_v25  ;;  %v2499_v25 = vadd.f32 %v10482_v39, %v13787_v3 }
 0x24b   : > { %v10452_v50 = vpop.f32.mrf.mxu0  ;;  %10706 = vmatpush3.bf16.msra.mxu0 %v12645_v61 }
 0x24c   : > { %v13966_v34 = vadd.f32 %v10451_v21, %v13870_v2  ;;  %v13968_v54 = vpop.f32.mrf.mxu1  ;;  %v2491_v61 = vadd.f32 %v10476_v13, %v13773_v31  ;;  %10707 = vmatprep.subr.bf16.mxu0 %v12648_v17  ;;  %v10491_v31 = vadd.f32 %v13921_v32, %v13919_v40  ;;  %v2504_v13 = vadd.f32 %v10485_v47, %v13792_v7  ;;  %v3065_v32 = vld [vmem:[#allocation2 + $0x1] sm:$0xff]  ;;  %v3066_v47 = vld [vmem:[#allocation2 + $0x9] sm:$0xff] }
 0x24d   : > { %v10453_v20 = vpop.f32.mrf.mxu0  ;;  %v10494_v7 = vadd.f32 %v13928_v58, %v13926_v14  ;;  %v10497_v14 = vadd.f32 %v13935_v12, %v13933_v56 }
 0x24e   : > { %v10454_v22 = vadd.f32 %v10453_v20, %v10452_v50  ;;  %v13970_v16 = vpop.f32.mrf.mxu1  ;;  %v2512_v58 = vadd.f32 %v10491_v31, %v13805_v43 }
 0x24f   : > { %v11359_v23 = vpop.f32.mrf.mxu0  ;;  %10708 = vmatpush3.bf16.msra.mxu0 %v12649_v38  ;;  %v2515_v56 = vadd.f32 %v10494_v7, %v13813_v28  ;;  %v10503_v28 = vadd.f32 %v13949_v37, %v13947_v48  ;;  %v2520_v7 = vadd.f32 %v10497_v14, %v13818_v18  ;;  %v12656_v48 = vld [vmem:[#allocation7 + $0x178] sm:$0xff]   ;;  %v12657_v37 = vld [vmem:[#allocation7 + $0xc8] sm:$0xff]  }
 0x250   : > { %v13977_v2 = vadd.f32 %v10454_v22, %v13876_v41  ;;  %v13979_v21 = vpop.f32.mrf.mxu1  ;;  %v12640_v41 = vld [vmem:[#allocation7 + $0x48] sm:$0xff]   ;;  %v2496_v22 = vadd.f32 %v10479_v0, %v13779_v49  ;;  %v12650_v49 = vld [vmem:[#allocation7 + $0xe0] sm:$0xff]   ;;  %v12658_v18 = vld [vmem:[#allocation7 + $0x138] sm:$0xff]  }
 0x251   : > { %v2648_v50 = vpop.f32.mrf.mxu0  ;;  %10603 = vmatprep.subr.bf16.mxu1 %v12640_v41  ;;  %10709 = vmatprep.subr.bf16.mxu0 %v12650_v49  ;;  %v3322_v49 = vpack.c.bf16 %v3066_v47, %v3065_v32  ;;  %v12655_v47 = vld [vmem:[#allocation7 + $0x90] sm:$0xff]  }
 0x252   : > { %18127 = vst [vmem:[#allocation52_spill] sm:$0xff] %v13977_v2  ;;  %v13983_v20 = vpop.f32.mrf.mxu1  ;;  %v13989_v27 = vadd.f32 %v2648_v50, %v13884_v26  ;;  %v13994_v35 = vadd.f32 %v11359_v23, %v2496_v22  ;;  %10604 = vmatpush3.bf16.msra.mxu1 %v12641_v33  ;;  %v10488_v26 = vadd.f32 %v13914_v30, %v13912_v63  ;;  %v12646_v50 = vld [vmem:[#allocation7 + $0x40] sm:$0xff]  }
 0x253   : > { %v11360_v59 = vpop.f32.mrf.mxu0  ;;  %v12651_v23 = vld [vmem:[#allocation7 + $0xa0] sm:$0xff]   ;;  %10605 = vmatprep.subr.bf16.mxu1 %v12646_v50  ;;  %v12653_v50 = vld [vmem:[#allocation7 + $0x98] sm:$0xff]   ;;  %4073 = vmatprep.mubr.bf16.mxu1 %v3322_v49 }
 0x254   : > { %v13991_v8 = vpop.f32.mrf.mxu1  ;;  %v2812_v3 = vmul.f32 %v13989_v27, %v13989_v27  ;;  %v14008_v39 = vadd.f32 %v11360_v59, %v2499_v25  ;;  %v12647_v30 = vld [vmem:[#allocation7] sm:$0xff]   ;;  %10710 = vmatpush3.bf16.msra.mxu0 %v12651_v23  ;;  %v2814_v59 = vmul.f32 %v13994_v35, %v13994_v35 }
 0x255   : > { %v2651_v44 = vpop.f32.mrf.mxu0 }
 0x256   : > { %v13997_v6 = vpop.f32.mrf.mxu1  ;;  %v13999_v2 = vadd.f32 %v2651_v44, %v2491_v61  ;;  %10606 = vmatpush3.bf16.msra.mxu1 %v12647_v30  ;;  %v12652_v44 = vld [vmem:[#allocation7 + $0xd8] sm:$0xff]   ;;  %v2815_v23 = vmul.f32 %v14008_v39, %v14008_v39 }
 0x257   : > { %v11363_v0 = vpop.f32.mrf.mxu0  ;;  %10711 = vmatprep.subr.bf16.mxu0 %v12652_v44  ;;  %10815 = vmatprep.subr.bf16.mxu1 %v12656_v48 }
 0x258   : > { %18128 = vst [vmem:[#allocation53_spill] sm:$0xff] %v13999_v2  ;;  %v2775_v17 = vadd.f32 %v13999_v2, %v13989_v27  ;;  %v2813_v41 = vmul.f32 %v13999_v2, %v13999_v2  ;;  %v14014_v63 = vpop.f32.mrf.mxu1  ;;  %10712 = vmatpush3.bf16.msra.mxu0 %v12653_v50  ;;  %v12659_v50 = vld [vmem:[#allocation7 + $0x88] sm:$0xff]  }
 0x259   : > { %v2664_v40 = vpop.f32.mrf.mxu0  ;;  %4074 = vmatmul.mubr.bf16.vlgmr.msra.gmra.mxu1 %v13755_v9 }
 0x25a   : > { %v2776_v38 = vadd.f32 %v2775_v17, %v13994_v35  ;;  %v2844_v22 = vadd.f32 %v2813_v41, %v2812_v3  ;;  %v14021_v61 = vpop.f32.mrf.mxu1  ;;  %v14023_v33 = vadd.f32 %v2664_v40, %v2504_v13  ;;  %v2507_v13 = vadd.f32 %v10488_v26, %v13800_v57  ;;  %v12654_v57 = vld [vmem:[#allocation7 + $0xd0] sm:$0xff]   ;;  %10816 = vmatpush3.bf16.msra.mxu1 %v12658_v18 }
 0x25b   : > { %v11364_v25 = vpop.f32.mrf.mxu0  ;;  %v14034_v41 = vadd.f32 %v11363_v0, %v2512_v58  ;;  %v10500_v26 = vadd.f32 %v13942_v55, %v13940_v36  ;;  %10713 = vmatprep.subr.bf16.mxu0 %v12654_v57  ;;  %v10506_v36 = vadd.f32 %v13956_v29, %v13954_v15  ;;  %v10509_v15 = vadd.f32 %v13963_v24, %v13961_v42 }
 0x25c   : > { %v2845_v2 = vadd.f32 %v2844_v22, %v2814_v59  ;;  %v2777_v3 = vadd.f32 %v2776_v38, %v14008_v39  ;;  %v14031_v17 = vpop.f32.mrf.mxu1  ;;  %v2816_v31 = vmul.f32 %v14023_v33, %v14023_v33  ;;  %v14050_v38 = vadd.f32 %v11364_v25, %v2515_v56  ;;  %10714 = vmatpush3.bf16.msra.mxu0 %v12655_v47 }
 0x25d   : > { %v2667_v12 = vpop.f32.mrf.mxu0  ;;  %v2818_v44 = vmul.f32 %v14034_v41, %v14034_v41  ;;  %v2528_v29 = vadd.f32 %v10503_v28, %v13831_v52  ;;  %10715 = vmatprep.subr.bf16.mxu0 %v12657_v37  ;;  %v2531_v57 = vadd.f32 %v10506_v36, %v13837_v19  ;;  %v12661_v52 = vld [vmem:[#allocation7 + $0x80] sm:$0xff]   ;;  %v10515_v19 = vadd.f32 %v13983_v20, %v13979_v21 }
 0x25e   : > { %v2778_v43 = vadd.f32 %v2777_v3, %v14023_v33  ;;  %v2846_v30 = vadd.f32 %v2845_v2, %v2815_v23  ;;  %v14040_v40 = vpop.f32.mrf.mxu1  ;;  %v14042_v32 = vadd.f32 %v2667_v12, %v2507_v13  ;;  %v12660_v23 = vld [vmem:[#allocation7 + $0xc0] sm:$0xff]   ;;  %v2819_v13 = vmul.f32 %v14050_v38, %v14050_v38 }
 0x25f   : > { %v11367_v0 = vpop.f32.mrf.mxu0  ;;  %v10518_v18 = vadd.f32 %v13997_v6, %v13991_v8 }
 0x260   : > { %v2847_v59 = vadd.f32 %v2846_v30, %v2816_v31  ;;  %v2779_v2 = vadd.f32 %v2778_v43, %v14042_v32  ;;  %v2817_v22 = vmul.f32 %v14042_v32, %v14042_v32  ;;  %v14055_v9 = vpop.f32.mrf.mxu1  ;;  %v2523_v31 = vadd.f32 %v10500_v26, %v13826_v53  ;;  %10716 = vmatpush3.bf16.msra.mxu0 %v12659_v50 }
 0x261   : > { %v2680_v55 = vpop.f32.mrf.mxu0  ;;  %v14073_v30 = vadd.f32 %v11367_v0, %v2528_v29  ;;  %10717 = vmatprep.subr.bf16.mxu0 %v12660_v23  ;;  %v10512_v53 = vadd.f32 %v13970_v16, %v13968_v54  ;;  %v2536_v0 = vadd.f32 %v10509_v15, %v13843_v1 }
 0x262   : > { %v2780_v14 = vadd.f32 %v2779_v2, %v14034_v41  ;;  %v2848_v58 = vadd.f32 %v2847_v59, %v2817_v22  ;;  %v14062_v25 = vpop.f32.mrf.mxu1  ;;  %v14064_v49 = vadd.f32 %v2680_v55, %v2520_v7  ;;  %v12662_v2 = vld [vmem:[#allocation7 + $0x170] sm:$0xff]  }
 0x263   : > { %v11368_v3 = vpop.f32.mrf.mxu0  ;;  %10817 = vmatprep.subr.bf16.mxu1 %v12662_v2  ;;  %v2822_v16 = vmul.f32 %v14073_v30, %v14073_v30  ;;  %v2539_v29 = vadd.f32 %v10512_v53, %v13849_v62  ;;  %v10527_v62 = vadd.f32 %v14062_v25, %v14055_v9 }
 0x264   : > { %v2849_v56 = vadd.f32 %v2848_v58, %v2818_v44  ;;  %v2781_v12 = vadd.f32 %v2780_v14, %v14050_v38  ;;  %v10528_v43 = vpop.f32.mrf.mxu1  ;;  %v2820_v28 = vmul.f32 %v14064_v49, %v14064_v49  ;;  %v14086_v36 = vadd.f32 %v11368_v3, %v2531_v57  ;;  %10718 = vmatpush3.bf16.msra.mxu0 %v12661_v52 }
 0x265   : > { %v2683_v42 = vpop.f32.mrf.mxu0  ;;  %v10521_v14 = vadd.f32 %v14021_v61, %v14014_v63  ;;  %v2544_v58 = vadd.f32 %v10515_v19, %v13855_v10 }
 0x266   : > { %v2782_v24 = vadd.f32 %v2781_v12, %v14064_v49  ;;  %v2850_v7 = vadd.f32 %v2849_v56, %v2819_v13  ;;  %v10529_v47 = vpop.f32.mrf.mxu1  ;;  %v14079_v59 = vadd.f32 %v2683_v42, %v2523_v31  ;;  %v2823_v8 = vmul.f32 %v14086_v36, %v14086_v36  ;;  %v12663_v12 = vld [vmem:[#allocation7 + $0x130] sm:$0xff]  }
 0x267   : > { %v11371_v26 = vpop.f32.mrf.mxu0  ;;  %v2547_v13 = vadd.f32 %v10518_v18, %v13861_v46  ;;  %v10524_v42 = vadd.f32 %v14040_v40, %v14031_v17  ;;  %v2552_v46 = vadd.f32 %v10521_v14, %v13867_v5  ;;  %10818 = vmatpush3.bf16.msra.mxu1 %v12663_v12  ;;  %v10530_v19 = vadd.f32 %v10529_v47, %v10528_v43 }
 0x268   : > { %v2851_v22 = vadd.f32 %v2850_v7, %v2820_v28  ;;  %v2783_v55 = vadd.f32 %v2782_v24, %v14079_v59  ;;  %v2821_v48 = vmul.f32 %v14079_v59, %v14079_v59  ;;  %v10531_v37 = vpop.f32.mrf.mxu1  ;;  %v14105_v3 = vadd.f32 %v11371_v26, %v2544_v58 }
 0x269   : > { %v2696_v54 = vpop.f32.mrf.mxu0 }
 0x26a   : > { %v2784_v1 = vadd.f32 %v2783_v55, %v14073_v30  ;;  %v2852_v21 = vadd.f32 %v2851_v22, %v2821_v48  ;;  %v10532_v20 = vpop.f32.mrf.mxu1  ;;  %v14096_v44 = vadd.f32 %v2696_v54, %v2536_v0  ;;  %v2826_v17 = vmul.f32 %v14105_v3, %v14105_v3 }
 0x26b   : > { %v11372_v50 = vpop.f32.mrf.mxu0  ;;  %v10533_v0 = vadd.f32 %v10532_v20, %v10531_v37  ;;  %v2560_v22 = vadd.f32 %v10527_v62, %v13879_v60  ;;  %v2555_v54 = vadd.f32 %v10524_v42, %v13873_v45 }
 0x26c   : > { %v2853_v6 = vadd.f32 %v2852_v21, %v2822_v16  ;;  %v2785_v23 = vadd.f32 %v2784_v1, %v14086_v36  ;;  %v10534_v15 = vpop.f32.mrf.mxu1  ;;  %v2824_v10 = vmul.f32 %v14096_v44, %v14096_v44  ;;  %v14118_v28 = vadd.f32 %v11372_v50, %v2547_v13  ;;  %v12664_v50 = vld [vmem:[#allocation7 + $0x168] sm:$0xff]  }
 0x26d   : > { %v2699_v56 = vpop.f32.mrf.mxu0  ;;  %v2563_v1 = vadd.f32 %v10530_v19, %v13889_v11  ;;  %v2568_v45 = vadd.f32 %v10533_v0, %v13896_v4  ;;  %10819 = vmatprep.subr.bf16.mxu1 %v12664_v50  ;;  %v18129_v19 = vld [vmem:[#allocation44_spill] sm:$0xff] }
 0x26e   : > { %v2786_v63 = vadd.f32 %v2785_v23, %v14096_v44  ;;  %v2854_v61 = vadd.f32 %v2853_v6, %v2823_v8  ;;  %v10535_v31 = vpop.f32.mrf.mxu1  ;;  %v14111_v57 = vadd.f32 %v2699_v56, %v2539_v29  ;;  %v2827_v48 = vmul.f32 %v14118_v28, %v14118_v28  ;;  %v12665_v0 = vld [vmem:[#allocation7 + $0x128] sm:$0xff]  }
 0x26f   : > { %v11375_v52 = vpop.f32.mrf.mxu0  ;;  %v10536_v8 = vadd.f32 %v10535_v31, %v10534_v15  ;;  %10820 = vmatpush3.bf16.msra.mxu1 %v12665_v0 }
 0x270   : > { %v2855_v24 = vadd.f32 %v2854_v61, %v2824_v10  ;;  %v2787_v7 = vadd.f32 %v2786_v63, %v14111_v57  ;;  %v2825_v2 = vmul.f32 %v14111_v57, %v14111_v57  ;;  %v10537_v53 = vpop.f32.mrf.mxu1  ;;  %v14133_v16 = vadd.f32 %v11375_v52, %v2560_v22 }
 0x271   : > { %v2712_v26 = vpop.f32.mrf.mxu0 }
 0x272   : > { %v2788_v40 = vadd.f32 %v2787_v7, %v14105_v3  ;;  %v2856_v9 = vadd.f32 %v2855_v24, %v2825_v2  ;;  %v10538_v25 = vpop.f32.mrf.mxu1  ;;  %v14126_v5 = vadd.f32 %v2712_v26, %v2552_v46  ;;  %v2830_v61 = vmul.f32 %v14133_v16, %v14133_v16 }
 0x273   : > { %v11376_v55 = vpop.f32.mrf.mxu0  ;;  %v10539_v6 = vadd.f32 %v10538_v25, %v10537_v53  ;;  %v2571_v26 = vadd.f32 %v10536_v8, %v18129_v19  ;;  %v12666_v19 = vld [vmem:[#allocation7 + $0x160] sm:$0xff]  }
 0x274   : > { %v2857_v18 = vadd.f32 %v2856_v9, %v2826_v17  ;;  %v2789_v43 = vadd.f32 %v2788_v40, %v14118_v28  ;;  %v10540_v47 = vpop.f32.mrf.mxu1  ;;  %v2828_v60 = vmul.f32 %v14126_v5, %v14126_v5  ;;  %v14142_v13 = vadd.f32 %v11376_v55, %v2563_v1  ;;  %v18130_v40 = vld [vmem:[#allocation45_spill] sm:$0xff]  ;;  %10821 = vmatprep.subr.bf16.mxu1 %v12666_v19 }
 0x275   : > { %v2715_v21 = vpop.f32.mrf.mxu0  ;;  %v2576_v62 = vadd.f32 %v10539_v6, %v13910_v51 }
 0x276   : > { %v2790_v14 = vadd.f32 %v2789_v43, %v14126_v5  ;;  %v2858_v37 = vadd.f32 %v2857_v18, %v2827_v48  ;;  %v10541_v20 = vpop.f32.mrf.mxu1  ;;  %v14139_v58 = vadd.f32 %v2715_v21, %v2555_v54  ;;  %v2831_v24 = vmul.f32 %v14142_v13, %v14142_v13  ;;  %v18131_v54 = vld [vmem:[#allocation46_spill] sm:$0xff] }
 0x277   : > { %v11379_v23 = vpop.f32.mrf.mxu0  ;;  %v10542_v63 = vadd.f32 %v10541_v20, %v10540_v47 }
 0x278   : > { %v2859_v29 = vadd.f32 %v2858_v37, %v2828_v60  ;;  %v2791_v11 = vadd.f32 %v2790_v14, %v14139_v58  ;;  %v2829_v56 = vmul.f32 %v14139_v58, %v14139_v58  ;;  %v10543_v12 = vpop.f32.mrf.mxu1  ;;  %v14157_v17 = vadd.f32 %v11379_v23, %v2576_v62 }
 0x279   : > { %v2728_v10 = vpop.f32.mrf.mxu0  ;;  %v2579_v9 = vadd.f32 %v10542_v63, %v18130_v40 }
 0x27a   : > { %v2792_v15 = vadd.f32 %v2791_v11, %v14133_v16  ;;  %v2860_v31 = vadd.f32 %v2859_v29, %v2829_v56  ;;  %v10544_v42 = vpop.f32.mrf.mxu1  ;;  %v14150_v4 = vadd.f32 %v2728_v10, %v2568_v45  ;;  %v2834_v8 = vmul.f32 %v14157_v17, %v14157_v17 }
 0x27b   : > { %v10545_v52 = vadd.f32 %v10544_v42, %v10543_v12  ;;  %v11380_v46 = vpop.f32.mrf.mxu0  ;;  %v18133_v42 = vld [vmem:[#allocation48_spill] sm:$0xff] }
 0x27c   : > { %v2861_v7 = vadd.f32 %v2860_v31, %v2830_v61  ;;  %v2793_v2 = vadd.f32 %v2792_v15, %v14142_v13  ;;  %v10546_v53 = vpop.f32.mrf.mxu1  ;;  %v2832_v51 = vmul.f32 %v14150_v4, %v14150_v4  ;;  %v14165_v43 = vadd.f32 %v11380_v46, %v2579_v9  ;;  %v18132_v15 = vld [vmem:[#allocation47_spill] sm:$0xff] }
 0x27d   : > { %v2731_v25 = vpop.f32.mrf.mxu0  ;;  %v2584_v1 = vadd.f32 %v10545_v52, %v18131_v54 }
 0x27e   : > { %v2794_v22 = vadd.f32 %v2793_v2, %v14150_v4  ;;  %v2862_v55 = vadd.f32 %v2861_v7, %v2831_v24  ;;  %v10547_v48 = vpop.f32.mrf.mxu1  ;;  %v14163_v18 = vadd.f32 %v2731_v25, %v2571_v26  ;;  %v2835_v12 = vmul.f32 %v14165_v43, %v14165_v43 }
 0x27f   : > { %v11383_v47 = vpop.f32.mrf.mxu0  ;;  %v10548_v14 = vadd.f32 %v10547_v48, %v10546_v53 }
 0x280   : > { %v2863_v21 = vadd.f32 %v2862_v55, %v2832_v51  ;;  %v2795_v60 = vadd.f32 %v2794_v22, %v14163_v18  ;;  %v2833_v37 = vmul.f32 %v14163_v18, %v14163_v18  ;;  %v10549_v20 = vpop.f32.mrf.mxu1  ;;  %v18134_v51 = vld [vmem:[#allocation49_spill] sm:$0xff] }
 0x281   : > { %v2744_v50 = vpop.f32.mrf.mxu0  ;;  %v2587_v31 = vadd.f32 %v10548_v14, %v18132_v15 }
 0x282   : > { %v2796_v6 = vadd.f32 %v2795_v60, %v14157_v17  ;;  %v2864_v23 = vadd.f32 %v2863_v21, %v2833_v37  ;;  %v10550_v45 = vpop.f32.mrf.mxu1  ;;  %v14174_v29 = vadd.f32 %v2744_v50, %v2584_v1 }
 0x283   : > { %v10551_v11 = vadd.f32 %v10550_v45, %v10549_v20  ;;  %v11384_v56 = vpop.f32.mrf.mxu0 }
 0x284   : > { %v2865_v63 = vadd.f32 %v2864_v23, %v2834_v8  ;;  %v2797_v10 = vadd.f32 %v2796_v6, %v14165_v43  ;;  %v10552_v61 = vpop.f32.mrf.mxu1  ;;  %v2836_v24 = vmul.f32 %v14174_v29, %v14174_v29  ;;  %v18135_v8 = vld [vmem:[#allocation50_spill] sm:$0xff] }
 0x285   : > { %v2592_v62 = vadd.f32 %v10551_v11, %v18133_v42  ;;  %v2747_v52 = vpop.f32.mrf.mxu0 }
 0x286   : > { %v2798_v46 = vadd.f32 %v2797_v10, %v14174_v29  ;;  %v2866_v7 = vadd.f32 %v2865_v63, %v2835_v12  ;;  %v10553_v2 = vpop.f32.mrf.mxu1  ;;  %v14184_v53 = vadd.f32 %v2747_v52, %v2587_v31  ;;  %v18136_v31 = vld [vmem:[#allocation51_spill] sm:$0xff] }
 0x287   : > { %v10554_v26 = vadd.f32 %v10553_v2, %v10552_v61  ;;  %v11387_v40 = vpop.f32.mrf.mxu0  ;;  %v14188_v22 = vadd.f32 %v11383_v47, %v2592_v62  ;;  %v12667_v47 = vld [vmem:[#allocation7 + $0x120] sm:$0xff]  }
 0x288   : > { %v2867_v9 = vadd.f32 %v2866_v7, %v2836_v24  ;;  %v2837_v25 = vmul.f32 %v14184_v53, %v14184_v53  ;;  %v10555_v0 = vpop.f32.mrf.mxu1  ;;  %v2799_v48 = vadd.f32 %v2798_v46, %v14184_v53  ;;  %10822 = vmatpush3.bf16.msra.mxu1 %v12667_v47 }
 0x289   : > { %v2595_v55 = vadd.f32 %v10554_v26, %v18134_v51  ;;  %v2760_v1 = vpop.f32.mrf.mxu0  ;;  %v2838_v20 = vmul.f32 %v14188_v22, %v14188_v22 }
 0x28a   : > { %v10556_v54 = vpop.f32.mrf.mxu1  ;;  %v2868_v14 = vadd.f32 %v2867_v9, %v2837_v25  ;;  %v2800_v50 = vadd.f32 %v2799_v48, %v14188_v22 }
 0x28b   : > { %v14192_v21 = vadd.f32 %v11384_v56, %v2595_v55  ;;  %v10557_v60 = vadd.f32 %v10556_v54, %v10555_v0  ;;  %v11388_v45 = vpop.f32.mrf.mxu0  ;;  %v12668_v55 = vld [vmem:[#allocation7 + $0x158] sm:$0xff]  }
 0x28c   : > { %v10558_v37 = vpop.f32.mrf.mxu1  ;;  %v2869_v12 = vadd.f32 %v2868_v14, %v2838_v20  ;;  %10823 = vmatprep.subr.bf16.mxu1 %v12668_v55  ;;  %v12673_v55 = vld [vmem:[#allocation7 + $0x108] sm:$0xff]  }
 0x28d   : > { %v2600_v6 = vadd.f32 %v10557_v60, %v18135_v8  ;;  %v2839_v11 = vmul.f32 %v14192_v21, %v14192_v21  ;;  %v2801_v61 = vadd.f32 %v2800_v50, %v14192_v21  ;;  %v2763_v62 = vpop.f32.mrf.mxu0 }
 0x28e   : > { %v10559_v23 = vpop.f32.mrf.mxu1 }
 0x28f   : > { %v14200_v63 = vadd.f32 %v2760_v1, %v2600_v6  ;;  %v10560_v56 = vadd.f32 %v10559_v23, %v10558_v37  ;;  %v2870_v24 = vadd.f32 %v2869_v12, %v2839_v11  ;;  %v18137_v37 = vld [vmem:[#allocation52_spill] sm:$0xff]  ;;  %v12669_v23 = vld [vmem:[#allocation7 + $0x118] sm:$0xff]  }
 0x290   : > { %v10561_v10 = vpop.f32.mrf.mxu1  ;;  %10824 = vmatpush3.bf16.msra.mxu1 %v12669_v23  ;;  %v12674_v23 = vld [vmem:[#allocation7 + $0x1f8] sm:$0xff]  }
 0x291   : > { %v2840_v15 = vmul.f32 %v14200_v63, %v14200_v63  ;;  %v2603_v42 = vadd.f32 %v10560_v56, %v18136_v31  ;;  %v2802_v46 = vadd.f32 %v2801_v61, %v14200_v63  ;;  %v12670_v31 = vld [vmem:[#allocation7 + $0x150] sm:$0xff]   ;;  %10927 = vmatprep.subr.bf16.mxu0 %v12674_v23 }
 0x292   : > { %v10562_v52 = vpop.f32.mrf.mxu1  ;;  %10825 = vmatprep.subr.bf16.mxu1 %v12670_v31 }
 0x293   : > { %v14207_v7 = vadd.f32 %v2763_v62, %v2603_v42  ;;  %v10563_v2 = vadd.f32 %v10562_v52, %v10561_v10  ;;  %v2871_v26 = vadd.f32 %v2870_v24, %v2840_v15 }
 0x294   : > { %v10564_v19 = vpop.f32.mrf.mxu1 }
 0x295   : > { %v2803_v9 = vadd.f32 %v2802_v46, %v14207_v7  ;;  %v2841_v25 = vmul.f32 %v14207_v7, %v14207_v7  ;;  %v2608_v0 = vadd.f32 %v10563_v2, %v13966_v34 }
 0x296   : > { %v10565_v51 = vpop.f32.mrf.mxu1 }
 0x297   : > { %v2872_v48 = vadd.f32 %v2871_v26, %v2841_v25  ;;  %v14213_v54 = vadd.f32 %v11387_v40, %v2608_v0  ;;  %v10566_v1 = vadd.f32 %v10565_v51, %v10564_v19  ;;  %v12671_v26 = vld [vmem:[#allocation7 + $0x110] sm:$0xff]   ;;  %v12672_v51 = vld [vmem:[#allocation7 + $0x148] sm:$0xff]  }
 0x298   : > { %10826 = vmatpush3.bf16.msra.mxu1 %v12671_v26 }
 0x299   : > { %v2804_v14 = vadd.f32 %v2803_v9, %v14213_v54  ;;  %v2842_v60 = vmul.f32 %v14213_v54, %v14213_v54  ;;  %v2611_v20 = vadd.f32 %v10566_v1, %v18137_v37  ;;  %10827 = vmatprep.subr.bf16.mxu1 %v12672_v51  ;;  %v14224_v37 = vld [vmem:[#allocation2 + $0xa] sm:$0xff] }
 0x29b   : > { %v2873_v50 = vadd.f32 %v2872_v48, %v2842_v60  ;;  %v2772_v8 = vadd.f32 %v11388_v45, %v2611_v20  ;;  %v2886_v48 = vld [vmem:[%s17986_s4] sm:$0x1]  ;;  %v14222_v60 = vld [vmem:[#allocation2 + $0x2] sm:$0xff] }
 0x29c   : > { %10828 = vmatpush3.bf16.msra.mxu1 %v12673_v55  ;;  %v2890_v20 = vld [vmem:[%s17987_s5] sm:$0x1] }
 0x29d   : > { %v2805_v6 = vadd.f32 %v2804_v14, %v2772_v8  ;;  %v2843_v47 = vmul.f32 %v2772_v8, %v2772_v8 }
 0x29f   : > { %v2806_v34 = vrot.slane %v2805_v6, 4  ;;  %v2874_v11 = vadd.f32 %v2873_v50, %v2843_v47 }
 0x2a1   : > { %v2807_v12 = vadd.f32 %v2806_v34, %v2805_v6  ;;  %v2875_v40 = vrot.slane %v2874_v11, 4  ;;  %v18138_v6 = vld [vmem:[#allocation43_spill] sm:$0xff]  ;;  %v3323_v34 = vpack.c.bf16 %v14224_v37, %v14222_v60 }
 0x2a2   : > { %v12683_v37 = vld [vmem:[#allocation7 + $0x1a0] sm:$0xff]  }
 0x2a3   : > { %v2808_v56 = vrot.slane %v2807_v12, 2  ;;  %v2876_v10 = vadd.f32 %v2875_v40, %v2874_v11 }
 0x2a5   : > { %v2809_v61 = vadd.f32 %v2808_v56, %v2807_v12  ;;  %v2877_v15 = vrot.slane %v2876_v10, 2  ;;  %v18139_v56 = vld [vmem:[#allocation53_spill] sm:$0xff] }
 0x2a7   : > { %v2810_v42 = vrot.slane %v2809_v61, 1  ;;  %v2878_v62 = vadd.f32 %v2877_v15, %v2876_v10 }
 0x2a9   : > { %v2811_v52 = vadd.f32 %v2810_v42, %v2809_v61  ;;  %v2879_v46 = vrot.slane %v2878_v62, 1  ;;  %v12678_v61 = vld [vmem:[#allocation7 + $0x140] sm:$0xff]  }
 0x2aa   : > { %10829 = vmatprep.subr.bf16.mxu1 %v12678_v61 }
 0x2ab   : > { %v2880_v24 = vadd.f32 %v2879_v46, %v2878_v62  ;;  %v2881_v45 = vmul.f32 0.00390625, %v2811_v52 }
 0x2ad   : > { %v2882_v2 = vmul.f32 0.00390625, %v2880_v24  ;;  %v2883_v19 = vmul.f32 %v2881_v45, %v2881_v45 }
 0x2af   : > { %v2884_v9 = vsub.f32 %v2882_v2, %v2883_v19 }
 0x2b1   : > { %v2885_v25 = vmax.f32 %v2884_v9, 0.0 }
 0x2b3   : > { %v2887_v0 = vadd.f32 1e-05, %v2885_v25 }
 0x2b5   : > { %12740 = vrsqrt.f32 %v2887_v0 }
 0x2c2   : > { %v12741_v1 = vpop.eup %12740 }
 0x2c3   : > { %v2889_v14 = vmul.f32 %v12741_v1, %v2886_v48 }
 0x2c5   : > { %v2891_v50 = vmul.f32 %v2889_v14, %v2881_v45  ;;  %v2897_v47 = vrot.slane %v2889_v14, %v18138_v6 }
 0x2c7   : > { %v2892_v11 = vsub.f32 %v2890_v20, %v2891_v50  ;;  %v2930_v12 = vmul.f32 %v2897_v47, %v2772_v8  ;;  %v2899_v40 = vmul.f32 %v2897_v47, %v13989_v27  ;;  %v2900_v10 = vmul.f32 %v2897_v47, %v18139_v56 }
 0x2c8   : > { %v2901_v15 = vmul.f32 %v2897_v47, %v13994_v35  ;;  %v2902_v31 = vmul.f32 %v2897_v47, %v14008_v39  ;;  %v2903_v42 = vmul.f32 %v2897_v47, %v14023_v33  ;;  %v2904_v62 = vmul.f32 %v2897_v47, %v14042_v32 }
 0x2c9   : > { %v2935_v52 = vrot.slane %v2892_v11, %v18138_v6  ;;  %v2905_v46 = vmul.f32 %v2897_v47, %v14034_v41  ;;  %v2906_v8 = vmul.f32 %v2897_v47, %v14050_v38  ;;  %v2907_v27 = vmul.f32 %v2897_v47, %v14064_v49 }
 0x2ca   : > { %v2908_v24 = vmul.f32 %v2897_v47, %v14079_v59  ;;  %v2909_v45 = vmul.f32 %v2897_v47, %v14073_v30  ;;  %v2910_v35 = vmul.f32 %v2897_v47, %v14086_v36  ;;  %v2911_v39 = vmul.f32 %v2897_v47, %v14096_v44 }
 0x2cb   : > { %v2968_v33 = vadd.f32 %v2935_v52, %v2930_v12  ;;  %v2912_v32 = vmul.f32 %v2897_v47, %v14111_v57  ;;  %v2913_v2 = vmul.f32 %v2897_v47, %v14105_v3  ;;  %v2914_v41 = vmul.f32 %v2897_v47, %v14118_v28  ;;  %v12679_v57 = vld [vmem:[#allocation7 + $0x100] sm:$0xff]  }
 0x2cc   : > { %v2915_v38 = vmul.f32 %v2897_v47, %v14126_v5  ;;  %v2916_v49 = vmul.f32 %v2897_v47, %v14139_v58  ;;  %v2917_v19 = vmul.f32 %v2897_v47, %v14133_v16  ;;  %v2918_v59 = vmul.f32 %v2897_v47, %v14142_v13  ;;  %10830 = vmatpush3.bf16.msra.mxu1 %v12679_v57 }
 0x2cd   : > { %v3000_v30 = vmax.f32 %v2968_v33, 0.0  ;;  %v2919_v36 = vmul.f32 %v2897_v47, %v14150_v4  ;;  %v2920_v44 = vmul.f32 %v2897_v47, %v14163_v18  ;;  %v2921_v26 = vmul.f32 %v2897_v47, %v14157_v17 }
 0x2ce   : > { %v2922_v3 = vmul.f32 %v2897_v47, %v14165_v43  ;;  %v2923_v28 = vmul.f32 %v2897_v47, %v14174_v29  ;;  %v2924_v5 = vmul.f32 %v2897_v47, %v14184_v53  ;;  %v2925_v58 = vmul.f32 %v2897_v47, %v14188_v22 }
 0x2cf   : > { %v2926_v16 = vmul.f32 %v2897_v47, %v14192_v21  ;;  %v2927_v13 = vmul.f32 %v2897_v47, %v14200_v63  ;;  %v2928_v9 = vmul.f32 %v2897_v47, %v14207_v7  ;;  %v2929_v4 = vmul.f32 %v2897_v47, %v14213_v54  ;;  %3032 = vst [vmem:[#allocation2 + $0x189] sm:$0xff] %v3000_v30 }
 0x2d0   : > { %v14264_v17 = vadd.f32 %v2935_v52, %v2899_v40  ;;  %v14266_v18 = vadd.f32 %v2935_v52, %v2900_v10  ;;  %v14268_v43 = vadd.f32 %v2935_v52, %v2901_v15  ;;  %v14270_v29 = vadd.f32 %v2935_v52, %v2902_v31 }
 0x2d1   : > { %v14272_v53 = vadd.f32 %v2935_v52, %v2903_v42  ;;  %v14274_v22 = vadd.f32 %v2935_v52, %v2904_v62  ;;  %v14276_v21 = vadd.f32 %v2935_v52, %v2905_v46  ;;  %v14278_v63 = vadd.f32 %v2935_v52, %v2906_v8  ;;  %v14327_v8 = vld [vmem:[#allocation7 + $0x238] sm:$0xff]  }
 0x2d2   : > { %v14280_v7 = vadd.f32 %v2935_v52, %v2907_v27  ;;  %v14282_v54 = vadd.f32 %v2935_v52, %v2908_v24  ;;  %v14284_v25 = vadd.f32 %v2935_v52, %v2909_v45  ;;  %v14286_v0 = vadd.f32 %v2935_v52, %v2910_v35  ;;  %11389 = vmatprep.subr.bf16.mxu1 %v14327_v8 }
 0x2d3   : > { %v14288_v51 = vadd.f32 %v2935_v52, %v2911_v39  ;;  %v14290_v55 = vadd.f32 %v2935_v52, %v2912_v32  ;;  %v14292_v48 = vadd.f32 %v2935_v52, %v2913_v2  ;;  %v14294_v1 = vadd.f32 %v2935_v52, %v2914_v41 }
 0x2d4   : > { %v14296_v14 = vadd.f32 %v2935_v52, %v2915_v38  ;;  %v14298_v20 = vadd.f32 %v2935_v52, %v2916_v49  ;;  %v14300_v50 = vadd.f32 %v2935_v52, %v2917_v19  ;;  %v14302_v47 = vadd.f32 %v2935_v52, %v2918_v59 }
 0x2d5   : > { %v14304_v23 = vadd.f32 %v2935_v52, %v2919_v36  ;;  %v14306_v11 = vadd.f32 %v2935_v52, %v2920_v44  ;;  %v14308_v12 = vadd.f32 %v2935_v52, %v2921_v26  ;;  %v14310_v40 = vadd.f32 %v2935_v52, %v2922_v3 }
 0x2d6   : > { %v14312_v56 = vadd.f32 %v2935_v52, %v2923_v28  ;;  %v14314_v10 = vadd.f32 %v2935_v52, %v2924_v5  ;;  %v14316_v61 = vadd.f32 %v2935_v52, %v2925_v58  ;;  %v14318_v15 = vadd.f32 %v2935_v52, %v2926_v16 }
 0x2d7   : > { %v14320_v31 = vadd.f32 %v2935_v52, %v2927_v13  ;;  %v14322_v42 = vadd.f32 %v2935_v52, %v2928_v9  ;;  %v14324_v62 = vadd.f32 %v2935_v52, %v2929_v4  ;;  %v2969_v46 = vmax.f32 %v14264_v17, 0.0 }
 0x2d8   : > { %v2970_v27 = vmax.f32 %v14266_v18, 0.0  ;;  %v2971_v24 = vmax.f32 %v14268_v43, 0.0  ;;  %v2972_v45 = vmax.f32 %v14270_v29, 0.0  ;;  %v2973_v35 = vmax.f32 %v14272_v53, 0.0 }
 0x2d9   : > { %v2974_v39 = vmax.f32 %v14274_v22, 0.0  ;;  %v2975_v33 = vmax.f32 %v14276_v21, 0.0  ;;  %v2976_v32 = vmax.f32 %v14278_v63, 0.0  ;;  %v2977_v52 = vmax.f32 %v14280_v7, 0.0  ;;  %3001 = vst [vmem:[#allocation2 + $0x19] sm:$0xff] %v2969_v46 }
 0x2da   : > { %v2978_v2 = vmax.f32 %v14282_v54, 0.0  ;;  %v2979_v41 = vmax.f32 %v14284_v25, 0.0  ;;  %v2980_v38 = vmax.f32 %v14286_v0, 0.0  ;;  %v2981_v49 = vmax.f32 %v14288_v51, 0.0  ;;  %3002 = vst [vmem:[#allocation2 + $0x21] sm:$0xff] %v2970_v27  ;;  %3003 = vst [vmem:[#allocation2 + $0x31] sm:$0xff] %v2971_v24 }
 0x2db   : > { %3004 = vst [vmem:[#allocation2 + $0x39] sm:$0xff] %v2972_v45  ;;  %3005 = vst [vmem:[#allocation2 + $0x49] sm:$0xff] %v2973_v35  ;;  %v2982_v19 = vmax.f32 %v14290_v55, 0.0  ;;  %v2983_v59 = vmax.f32 %v14292_v48, 0.0  ;;  %v2984_v30 = vmax.f32 %v14294_v1, 0.0  ;;  %v2985_v36 = vmax.f32 %v14296_v14, 0.0 }
 0x2dc   : > { %3006 = vst [vmem:[#allocation2 + $0x51] sm:$0xff] %v2974_v39  ;;  %3007 = vst [vmem:[#allocation2 + $0x61] sm:$0xff] %v2975_v33  ;;  %v2986_v44 = vmax.f32 %v14298_v20, 0.0  ;;  %v2987_v26 = vmax.f32 %v14300_v50, 0.0  ;;  %v2988_v57 = vmax.f32 %v14302_v47, 0.0  ;;  %v2989_v3 = vmax.f32 %v14304_v23, 0.0 }
 0x2dd   : > { %3008 = vst [vmem:[#allocation2 + $0x69] sm:$0xff] %v2976_v32  ;;  %3009 = vst [vmem:[#allocation2 + $0x79] sm:$0xff] %v2977_v52  ;;  %v2990_v28 = vmax.f32 %v14306_v11, 0.0  ;;  %v2991_v5 = vmax.f32 %v14308_v12, 0.0  ;;  %v2992_v58 = vmax.f32 %v14310_v40, 0.0  ;;  %v2993_v16 = vmax.f32 %v14312_v56, 0.0 }
 0x2de   : > { %3010 = vst [vmem:[#allocation2 + $0x81] sm:$0xff] %v2978_v2  ;;  %3011 = vst [vmem:[#allocation2 + $0x91] sm:$0xff] %v2979_v41  ;;  %v2994_v13 = vmax.f32 %v14314_v10, 0.0  ;;  %v2995_v9 = vmax.f32 %v14316_v61, 0.0  ;;  %v2996_v4 = vmax.f32 %v14318_v15, 0.0  ;;  %v2997_v17 = vmax.f32 %v14320_v31, 0.0 }
 0x2df   : > { %3012 = vst [vmem:[#allocation2 + $0x99] sm:$0xff] %v2980_v38  ;;  %3013 = vst [vmem:[#allocation2 + $0xa9] sm:$0xff] %v2981_v49  ;;  %v2998_v18 = vmax.f32 %v14322_v42, 0.0  ;;  %v2999_v43 = vmax.f32 %v14324_v62, 0.0  ;;  %v14360_v29 = vpack.c.bf16 %v2970_v27, %v2969_v46  ;;  %v14362_v53 = vpack.c.bf16 %v2972_v45, %v2971_v24  ;;  %v12675_v23 = vld [vmem:[#allocation7 + $0x1b8] sm:$0xff]   ;;  %v12676_v40 = vld [vmem:[#allocation7 + $0x1f0] sm:$0xff]  }
 0x2e0   : > { %3014 = vst [vmem:[#allocation2 + $0xb1] sm:$0xff] %v2982_v19  ;;  %3015 = vst [vmem:[#allocation2 + $0xc1] sm:$0xff] %v2983_v59  ;;  %v3129_v22 = vld [vmem:[#allocation2 + $0x18] sm:$0xff]  ;;  %v3349_v21 = vpack.c.bf16 %v2974_v39, %v2973_v35  ;;  %v3358_v63 = vpack.c.bf16 %v2976_v32, %v2975_v33  ;;  %v14364_v7 = vpack.c.bf16 %v2978_v2, %v2977_v52  ;;  %v12680_v15 = vld [vmem:[#allocation7 + $0x1e8] sm:$0xff]  }
 0x2e1   : > { %3016 = vst [vmem:[#allocation2 + $0xc9] sm:$0xff] %v2984_v30  ;;  %3017 = vst [vmem:[#allocation2 + $0xd9] sm:$0xff] %v2985_v36  ;;  %v14366_v54 = vpack.c.bf16 %v2980_v38, %v2979_v41  ;;  %4081 = vmatprep.mubr.bf16.mxu1 %v14360_v29  ;;  %v3130_v25 = vld [vmem:[#allocation2 + $0x20] sm:$0xff]  ;;  %v3131_v0 = vld [vmem:[#allocation2 + $0x30] sm:$0xff]  ;;  %v14369_v55 = vpack.c.bf16 %v2982_v19, %v2981_v49  ;;  %v14371_v48 = vpack.c.bf16 %v2984_v30, %v2983_v59 }
 0x2e2   : > { %3018 = vst [vmem:[#allocation2 + $0xe1] sm:$0xff] %v2986_v44  ;;  %3019 = vst [vmem:[#allocation2 + $0xf1] sm:$0xff] %v2987_v26  ;;  %v3132_v51 = vld [vmem:[#allocation2 + $0x38] sm:$0xff]  ;;  %v14373_v1 = vpack.c.bf16 %v2986_v44, %v2985_v36  ;;  %v14375_v14 = vpack.c.bf16 %v2988_v57, %v2987_v26  ;;  %v3324_v20 = vpack.c.bf16 %v3130_v25, %v3129_v22  ;;  %v3100_v42 = vld [vmem:[#allocation2 + $0x22] sm:$0xff] }
 0x2e3   : > { %3020 = vst [vmem:[#allocation2 + $0xf9] sm:$0xff] %v2988_v57  ;;  %3021 = vst [vmem:[#allocation2 + $0x109] sm:$0xff] %v2989_v3  ;;  %v14377_v50 = vpack.c.bf16 %v2990_v28, %v2989_v3  ;;  %v14379_v47 = vpack.c.bf16 %v2992_v58, %v2991_v5  ;;  %v14381_v11 = vpack.c.bf16 %v2994_v13, %v2993_v16  ;;  %v12677_v61 = vld [vmem:[#allocation7 + $0x1b0] sm:$0xff]   ;;  %v3099_v31 = vld [vmem:[#allocation2 + $0x1a] sm:$0xff] }
 0x2e4   : > { %3022 = vst [vmem:[#allocation2 + $0x111] sm:$0xff] %v2990_v28  ;;  %3023 = vst [vmem:[#allocation2 + $0x121] sm:$0xff] %v2991_v5  ;;  %v14383_v12 = vpack.c.bf16 %v2996_v4, %v2995_v9  ;;  %v14385_v56 = vpack.c.bf16 %v2998_v18, %v2997_v17  ;;  %4234 = vmatprep.mubr.bf16.mxu0 %v3324_v20  ;;  %4082 = vmatmul.mubr.bf16.gmra.mxu1 %v3324_v20  ;;  %v3133_v62 = vld [vmem:[#allocation2 + $0x48] sm:$0xff]  ;;  %v3134_v46 = vld [vmem:[#allocation2 + $0x50] sm:$0xff] }
 0x2e5   : > { %3024 = vst [vmem:[#allocation2 + $0x129] sm:$0xff] %v2992_v58  ;;  %3025 = vst [vmem:[#allocation2 + $0x139] sm:$0xff] %v2993_v16  ;;  %v14387_v10 = vpack.c.bf16 %v3132_v51, %v3131_v0  ;;  %4235 = vmatmul.mubr.bf16.vlgmr.msra.gmra.mxu0 %v3323_v34  ;;  %4089 = vmatprep.mubr.bf16.mxu1 %v14362_v53  ;;  %v12681_v27 = vld [vmem:[#allocation7 + $0x1a8] sm:$0xff]   ;;  %v14394_v24 = vpack.c.bf16 %v3100_v42, %v3099_v31  ;;  %v12682_v45 = vld [vmem:[#allocation7 + $0x1e0] sm:$0xff]  }
 0x2e6   : > { %3026 = vst [vmem:[#allocation2 + $0x141] sm:$0xff] %v2994_v13  ;;  %3027 = vst [vmem:[#allocation2 + $0x151] sm:$0xff] %v2995_v9  ;;  %10928 = vmatpush3.bf16.msra.mxu0 %v12675_v23  ;;  %v14397_v60 = vpack.c.bf16 %v3134_v46, %v3133_v62  ;;  %v12684_v34 = vld [vmem:[#allocation7 + $0x1d8] sm:$0xff]   ;;  %v3136_v32 = vld [vmem:[#allocation2 + $0x68] sm:$0xff] }
 0x2e7   : > { %3028 = vst [vmem:[#allocation2 + $0x159] sm:$0xff] %v2996_v4  ;;  %3029 = vst [vmem:[#allocation2 + $0x169] sm:$0xff] %v2997_v17  ;;  %4242 = vmatprep.mubr.bf16.mxu0 %v14387_v10  ;;  %10929 = vmatprep.subr.bf16.mxu0 %v12676_v40  ;;  %v3101_v35 = vld [vmem:[#allocation2 + $0x32] sm:$0xff]  ;;  %v3102_v39 = vld [vmem:[#allocation2 + $0x3a] sm:$0xff] }
 0x2e8   : > { %3030 = vst [vmem:[#allocation2 + $0x171] sm:$0xff] %v2998_v18  ;;  %3031 = vst [vmem:[#allocation2 + $0x181] sm:$0xff] %v2999_v43  ;;  %v3135_v33 = vld [vmem:[#allocation2 + $0x60] sm:$0xff]  ;;  %v14401_v2 = vpack.c.bf16 %v3102_v39, %v3101_v35  ;;  %v12686_v41 = vld [vmem:[#allocation7 + $0x1d0] sm:$0xff]  }
 0x2e9   : > { %v12685_v52 = vld [vmem:[#allocation7 + $0x198] sm:$0xff]   ;;  %v14404_v38 = vpack.c.bf16 %v3136_v32, %v3135_v33  ;;  %v12687_v49 = vld [vmem:[#allocation7 + $0x190] sm:$0xff]   ;;  %v12689_v19 = vld [vmem:[#allocation7 + $0x1c8] sm:$0xff]  }
 0x2ea   : > { %10930 = vmatpush3.bf16.msra.mxu0 %v12677_v61  ;;  %v3103_v59 = vld [vmem:[#allocation2 + $0x4a] sm:$0xff]  ;;  %v3104_v30 = vld [vmem:[#allocation2 + $0x52] sm:$0xff]  ;;  %v3138_v44 = vld [vmem:[#allocation2 + $0x80] sm:$0xff] }
 0x2eb   : > { %10931 = vmatprep.subr.bf16.mxu0 %v12680_v15  ;;  %v3137_v36 = vld [vmem:[#allocation2 + $0x78] sm:$0xff]  ;;  %v12690_v26 = vld [vmem:[#allocation7 + $0x188] sm:$0xff]   ;;  %v14408_v57 = vpack.c.bf16 %v3104_v30, %v3103_v59  ;;  %v12691_v3 = vld [vmem:[#allocation7 + $0x1c0] sm:$0xff]  }
 0x2ec   : > { %4090 = vmatmul.mubr.bf16.gmra.mxu1 %v14387_v10  ;;  %v14411_v28 = vpack.c.bf16 %v3138_v44, %v3137_v36  ;;  %v12692_v5 = vld [vmem:[#allocation7 + $0x180] sm:$0xff]   ;;  %v3106_v16 = vld [vmem:[#allocation2 + $0x6a] sm:$0xff]  ;;  %v3140_v9 = vld [vmem:[#allocation2 + $0x98] sm:$0xff] }
 0x2ed   : > { %4243 = vmatmul.mubr.bf16.gmra.mxu0 %v14394_v24  ;;  %4097 = vmatprep.mubr.bf16.mxu1 %v3349_v21  ;;  %v3105_v58 = vld [vmem:[#allocation2 + $0x62] sm:$0xff]  ;;  %v3139_v13 = vld [vmem:[#allocation2 + $0x90] sm:$0xff]  ;;  %v3107_v18 = vld [vmem:[#allocation2 + $0x7a] sm:$0xff] }
 0x2ee   : > { %4250 = vmatprep.mubr.bf16.mxu0 %v14397_v60  ;;  %10932 = vmatpush3.bf16.msra.mxu0 %v12681_v27  ;;  %v14416_v4 = vpack.c.bf16 %v3106_v16, %v3105_v58  ;;  %v14419_v17 = vpack.c.bf16 %v3140_v9, %v3139_v13  ;;  %v3108_v43 = vld [vmem:[#allocation2 + $0x82] sm:$0xff]  ;;  %v3142_v21 = vld [vmem:[#allocation2 + $0xb0] sm:$0xff]  ;;  %v3145_v61 = vld [vmem:[#allocation2 + $0xd8] sm:$0xff] }
 0x2ef   : > { %10933 = vmatprep.subr.bf16.mxu0 %v12682_v45  ;;  %v3141_v22 = vld [vmem:[#allocation2 + $0xa8] sm:$0xff]  ;;  %v3109_v25 = vld [vmem:[#allocation2 + $0x92] sm:$0xff]  ;;  %v3143_v0 = vld [vmem:[#allocation2 + $0xc0] sm:$0xff] }
 0x2f0   : > { %v3144_v51 = vld [vmem:[#allocation2 + $0xc8] sm:$0xff]  ;;  %v3146_v15 = vld [vmem:[#allocation2 + $0xe0] sm:$0xff]  ;;  %v3147_v45 = vld [vmem:[#allocation2 + $0xf0] sm:$0xff] }
 0x2f1   : > { %v14435_v23 = vpack.c.bf16 %v3144_v51, %v3143_v0  ;;  %v3111_v40 = vld [vmem:[#allocation2 + $0xaa] sm:$0xff]  ;;  %v14443_v42 = vpack.c.bf16 %v3146_v15, %v3145_v61  ;;  %v3116_v33 = vld [vmem:[#allocation2 + $0xe2] sm:$0xff] }
 0x2f2   : > { %10934 = vmatpush3.bf16.msra.mxu0 %v12683_v37  ;;  %v3114_v46 = vld [vmem:[#allocation2 + $0xca] sm:$0xff]  ;;  %v3148_v37 = vld [vmem:[#allocation2 + $0xf8] sm:$0xff]  ;;  %v3151_v59 = vld [vmem:[#allocation2 + $0x120] sm:$0xff] }
 0x2f3   : > { %10935 = vmatprep.subr.bf16.mxu0 %v12684_v34  ;;  %v14453_v39 = vpack.c.bf16 %v3148_v37, %v3147_v45  ;;  %v3149_v32 = vld [vmem:[#allocation2 + $0x108] sm:$0xff]  ;;  %v3155_v9 = vld [vmem:[#allocation2 + $0x150] sm:$0xff] }
 0x2f4   : > { %4098 = vmatmul.mubr.bf16.gmra.mxu1 %v14397_v60  ;;  %v3152_v30 = vld [vmem:[#allocation2 + $0x128] sm:$0xff]  ;;  %v3163_v37 = vld [vmem:[#allocation2 + $0x31] sm:$0xff] }
 0x2f5   : > { %4251 = vmatmul.mubr.bf16.gmra.mxu0 %v14401_v2  ;;  %4105 = vmatprep.mubr.bf16.mxu1 %v3358_v63  ;;  %v14424_v63 = vpack.c.bf16 %v3108_v43, %v3107_v18  ;;  %v14469_v44 = vpack.c.bf16 %v3152_v30, %v3151_v59  ;;  %v3121_v13 = vld [vmem:[#allocation2 + $0x122] sm:$0xff]  ;;  %v3156_v18 = vld [vmem:[#allocation2 + $0x158] sm:$0xff] }
 0x2f6   : > { %4258 = vmatprep.mubr.bf16.mxu0 %v14404_v38  ;;  %10936 = vmatpush3.bf16.msra.mxu0 %v12685_v52  ;;  %v3150_v52 = vld [vmem:[#allocation2 + $0x110] sm:$0xff]  ;;  %v3160_v61 = vld [vmem:[#allocation2 + $0x188] sm:$0xff] }
 0x2f7   : > { %10937 = vmatprep.subr.bf16.mxu0 %v12686_v41  ;;  %v12694_v45 = vld [vmem:[#allocation7 + $0x228] sm:$0xff]   ;;  %v3264_v59 = vld [vmem:[#allocation2 + $0x81] sm:$0xff] }
 0x2f8   : > { %v12699_v30 = vld [vmem:[#allocation7 + $0x200] sm:$0xff]  }
 0x2fa   : > { %10938 = vmatpush3.bf16.msra.mxu0 %v12687_v49  ;;  %v14461_v49 = vpack.c.bf16 %v3150_v52, %v3149_v32  ;;  %v12695_v52 = vld [vmem:[#allocation7 + $0x220] sm:$0xff]  }
 0x2fb   : > { %10939 = vmatprep.subr.bf16.mxu0 %v12689_v19  ;;  %v3117_v19 = vld [vmem:[#allocation2 + $0xf2] sm:$0xff] }
 0x2fc   : > { %4106 = vmatmul.mubr.bf16.gmra.mxu1 %v14404_v38 }
 0x2fd   : > { %4259 = vmatmul.mubr.bf16.gmra.mxu0 %v14408_v57  ;;  %4113 = vmatprep.mubr.bf16.mxu1 %v14364_v7  ;;  %v14427_v7 = vpack.c.bf16 %v3142_v21, %v3141_v22  ;;  %v14485_v22 = vpack.c.bf16 %v3156_v18, %v3155_v9  ;;  %v3123_v21 = vld [vmem:[#allocation2 + $0x13a] sm:$0xff] }
 0x2fe   : > { %4266 = vmatprep.mubr.bf16.mxu0 %v14411_v28  ;;  %10940 = vmatpush3.bf16.msra.mxu0 %v12690_v26  ;;  %v3119_v26 = vld [vmem:[#allocation2 + $0x10a] sm:$0xff] }
 0x2ff   : > { %10941 = vmatprep.subr.bf16.mxu0 %v12691_v3  ;;  %v3153_v3 = vld [vmem:[#allocation2 + $0x138] sm:$0xff] }
 0x302   : > { %10942 = vmatpush3.bf16.msra.mxu0 %v12692_v5  ;;  %v3154_v5 = vld [vmem:[#allocation2 + $0x140] sm:$0xff] }
 0x303   : > { %v14477_v16 = vpack.c.bf16 %v3154_v5, %v3153_v3  ;;  %v3267_v3 = vld [vmem:[#allocation2 + $0xa9] sm:$0xff]  ;;  %v3268_v5 = vld [vmem:[#allocation2 + $0xb1] sm:$0xff] }
 0x304   : > { %4114 = vmatmul.mubr.bf16.gmra.mxu1 %v14411_v28 }
 0x305   : > { %4267 = vmatmul.mubr.bf16.gmra.mxu0 %v14416_v4  ;;  %4121 = vmatprep.mubr.bf16.mxu1 %v14366_v54  ;;  %v3110_v54 = vld [vmem:[#allocation2 + $0x9a] sm:$0xff] }
 0x306   : > { %4274 = vmatprep.mubr.bf16.mxu0 %v14419_v17  ;;  %v14432_v20 = vpack.c.bf16 %v3110_v54, %v3109_v25  ;;  %v3157_v25 = vld [vmem:[#allocation2 + $0x168] sm:$0xff]  ;;  %v3158_v54 = vld [vmem:[#allocation2 + $0x170] sm:$0xff] }
 0x307   : > { %v14493_v51 = vpack.c.bf16 %v3158_v54, %v3157_v25 }
 0x30c   : > { %4122 = vmatmul.mubr.bf16.gmra.mxu1 %v14419_v17 }
 0x30d   : > { %4275 = vmatmul.mubr.bf16.gmra.mxu0 %v14424_v63  ;;  %4129 = vmatprep.mubr.bf16.mxu1 %v14369_v55  ;;  %v3112_v55 = vld [vmem:[#allocation2 + $0xb2] sm:$0xff] }
 0x30e   : > { %4282 = vmatprep.mubr.bf16.mxu0 %v14427_v7  ;;  %v14440_v31 = vpack.c.bf16 %v3112_v55, %v3111_v40  ;;  %v3125_v40 = vld [vmem:[#allocation2 + $0x152] sm:$0xff]  ;;  %v3159_v55 = vld [vmem:[#allocation2 + $0x180] sm:$0xff] }
 0x314   : > { %4130 = vmatmul.mubr.bf16.gmra.mxu1 %v14427_v7 }
 0x315   : > { %4283 = vmatmul.mubr.bf16.gmra.mxu0 %v14432_v20  ;;  %4137 = vmatprep.mubr.bf16.mxu1 %v14371_v48  ;;  %v3113_v48 = vld [vmem:[#allocation2 + $0xc2] sm:$0xff] }
 0x316   : > { %4290 = vmatprep.mubr.bf16.mxu0 %v14435_v23  ;;  %v14450_v35 = vpack.c.bf16 %v3114_v46, %v3113_v48  ;;  %v3127_v48 = vld [vmem:[#allocation2 + $0x16a] sm:$0xff] }
 0x319   : > { %v10607_v62 = vpop.f32.mrf.mxu1 }
 0x31b   : > { %v10608_v27 = vpop.f32.mrf.mxu1 }
 0x31c   : > { %4138 = vmatmul.mubr.bf16.gmra.mxu1 %v14435_v23  ;;  %v14448_v34 = vadd.f32 %v10608_v27, %v10607_v62  ;;  %v14501_v62 = vpack.c.bf16 %v3160_v61, %v3159_v55  ;;  %v12693_v27 = vld [vmem:[#allocation7 + $0x230] sm:$0xff]  }
 0x31d   : > { %4291 = vmatmul.mubr.bf16.gmra.mxu0 %v14440_v31  ;;  %4145 = vmatprep.mubr.bf16.mxu1 %v14373_v1  ;;  %v3115_v1 = vld [vmem:[#allocation2 + $0xda] sm:$0xff] }
 0x31e   : > { %4298 = vmatprep.mubr.bf16.mxu0 %v14443_v42  ;;  %v14458_v41 = vpack.c.bf16 %v3116_v33, %v3115_v1  ;;  %v3259_v1 = vld [vmem:[#allocation2 + $0x49] sm:$0xff]  ;;  %v3260_v33 = vld [vmem:[#allocation2 + $0x51] sm:$0xff] }
 0x324   : > { %4146 = vmatmul.mubr.bf16.gmra.mxu1 %v14443_v42 }
 0x325   : > { %4299 = vmatmul.mubr.bf16.gmra.mxu0 %v14450_v35  ;;  %4153 = vmatprep.mubr.bf16.mxu1 %v14375_v14  ;;  %v3118_v14 = vld [vmem:[#allocation2 + $0xfa] sm:$0xff] }
 0x326   : > { %4306 = vmatprep.mubr.bf16.mxu0 %v14453_v39  ;;  %v14466_v36 = vpack.c.bf16 %v3118_v14, %v3117_v19  ;;  %v12697_v19 = vld [vmem:[#allocation7 + $0x210] sm:$0xff]  }
 0x32c   : > { %4154 = vmatmul.mubr.bf16.gmra.mxu1 %v14453_v39 }
 0x32d   : > { %4307 = vmatmul.mubr.bf16.gmra.mxu0 %v14458_v41  ;;  %4161 = vmatprep.mubr.bf16.mxu1 %v14377_v50  ;;  %v3120_v50 = vld [vmem:[#allocation2 + $0x112] sm:$0xff] }
 0x32e   : > { %4314 = vmatprep.mubr.bf16.mxu0 %v14461_v49  ;;  %v14474_v58 = vpack.c.bf16 %v3120_v50, %v3119_v26 }
 0x334   : > { %4162 = vmatmul.mubr.bf16.gmra.mxu1 %v14461_v49 }
 0x335   : > { %4315 = vmatmul.mubr.bf16.gmra.mxu0 %v14466_v36  ;;  %4169 = vmatprep.mubr.bf16.mxu1 %v14379_v47  ;;  %v3122_v47 = vld [vmem:[#allocation2 + $0x12a] sm:$0xff] }
 0x336   : > { %4322 = vmatprep.mubr.bf16.mxu0 %v14469_v44  ;;  %v14482_v43 = vpack.c.bf16 %v3122_v47, %v3121_v13  ;;  %v3373_v13 = vpack.c.bf16 %v3268_v5, %v3267_v3  ;;  %v18143_v5 = vld [vmem:[#allocation14_spill] sm:$0xff] }
 0x33c   : > { %4170 = vmatmul.mubr.bf16.gmra.mxu1 %v14469_v44 }
 0x33d   : > { %4323 = vmatmul.mubr.bf16.gmra.mxu0 %v14474_v58  ;;  %4177 = vmatprep.mubr.bf16.mxu1 %v14381_v11  ;;  %v3124_v11 = vld [vmem:[#allocation2 + $0x142] sm:$0xff] }
 0x33e   : > { %4330 = vmatprep.mubr.bf16.mxu0 %v14477_v16  ;;  %v14490_v0 = vpack.c.bf16 %v3124_v11, %v3123_v21  ;;  %v3276_v21 = vld [vmem:[#allocation2 + $0x111] sm:$0xff] }
 0x344   : > { %4178 = vmatmul.mubr.bf16.gmra.mxu1 %v14477_v16 }
 0x345   : > { %4331 = vmatmul.mubr.bf16.gmra.mxu0 %v14482_v43  ;;  %4185 = vmatprep.mubr.bf16.mxu1 %v14383_v12  ;;  %v3126_v12 = vld [vmem:[#allocation2 + $0x15a] sm:$0xff] }
 0x346   : > { %4338 = vmatprep.mubr.bf16.mxu0 %v14485_v22  ;;  %v14498_v15 = vpack.c.bf16 %v3126_v12, %v3125_v40 }
 0x34c   : > { %4186 = vmatmul.mubr.bf16.gmra.mxu1 %v14485_v22 }
 0x34d   : > { %4339 = vmatmul.mubr.bf16.gmra.mxu0 %v14490_v0  ;;  %4193 = vmatprep.mubr.bf16.mxu1 %v14385_v56  ;;  %v3128_v56 = vld [vmem:[#allocation2 + $0x172] sm:$0xff] }
 0x34e   : > { %4346 = vmatprep.mubr.bf16.mxu0 %v14493_v51  ;;  %v14506_v46 = vpack.c.bf16 %v3128_v56, %v3127_v48 }
 0x354   : > { %4194 = vmatmul.mubr.bf16.gmra.mxu1 %v14493_v51 }
 0x355   : > { %4347 = vmatmul.mubr.bf16.gmra.mxu0 %v14498_v15  ;;  %4395 = vmatprep.mubr.bf16.mxu1 %v14394_v24  ;;  %v3164_v24 = vld [vmem:[#allocation2 + $0x39] sm:$0xff] }
 0x356   : > { %4354 = vmatprep.mubr.bf16.mxu0 %v14501_v62  ;;  %v3334_v32 = vpack.c.bf16 %v3164_v24, %v3163_v37 }
 0x35c   : > { %4396 = vmatmul.mubr.bf16.vlgmr.msra.gmra.mxu1 %v14360_v29  ;;  %v3337_v29 = vpack.c.bf16 %v3260_v33, %v3259_v1  ;;  %v18141_v33 = vld [vmem:[#allocation12_spill] sm:$0xff] }
 0x35d   : > { %4355 = vmatmul.mubr.bf16.gmra.mxu0 %v14506_v46  ;;  %11390 = vmatpush3.bf16.msra.mxu1 %v14327_v8  ;;  %v12696_v8 = vld [vmem:[#allocation7 + $0x218] sm:$0xff]  }
 0x35e   : > { %4403 = vmatprep.mubr.bf16.mxu1 %v14401_v2  ;;  %4556 = vmatprep.mubr.bf16.mxu0 %v14362_v53  ;;  %v3261_v53 = vld [vmem:[#allocation2 + $0x61] sm:$0xff]  ;;  %v3262_v2 = vld [vmem:[#allocation2 + $0x69] sm:$0xff] }
 0x35f   : > { %11391 = vmatprep.subr.bf16.mxu1 %v12693_v27  ;;  %v3346_v14 = vpack.c.bf16 %v3262_v2, %v3261_v53 }
 0x361   : > { %11392 = vmatpush3.bf16.msra.mxu1 %v12693_v27  ;;  %v3277_v27 = vld [vmem:[#allocation2 + $0x121] sm:$0xff] }
 0x362   : > { %11393 = vmatprep.subr.bf16.mxu1 %v12694_v45 }
 0x364   : > { %4404 = vmatmul.mubr.bf16.gmra.mxu1 %v3334_v32 }
 0x365   : > { %4557 = vmatmul.mubr.bf16.vlgmr.msra.gmra.mxu0 %v14387_v10  ;;  %4411 = vmatprep.mubr.bf16.mxu1 %v14408_v57  ;;  %v12698_v10 = vld [vmem:[#allocation7 + $0x208] sm:$0xff]   ;;  %v3263_v57 = vld [vmem:[#allocation2 + $0x79] sm:$0xff] }
 0x366   : > { %4564 = vmatprep.mubr.bf16.mxu0 %v3337_v29  ;;  %11394 = vmatpush3.bf16.msra.mxu1 %v12694_v45  ;;  %v3355_v26 = vpack.c.bf16 %v3264_v59, %v3263_v57  ;;  %v3278_v45 = vld [vmem:[#allocation2 + $0x129] sm:$0xff] }
 0x367   : > { %11395 = vmatprep.subr.bf16.mxu1 %v12695_v52 }
 0x36a   : > { %11396 = vmatpush3.bf16.msra.mxu1 %v12695_v52 }
 0x36b   : > { %11397 = vmatprep.subr.bf16.mxu1 %v12696_v8 }
 0x36c   : > { %4412 = vmatmul.mubr.bf16.gmra.mxu1 %v3337_v29  ;;  %v3418_v29 = vpack.c.bf16 %v3278_v45, %v3277_v27  ;;  %v18146_v45 = vld [vmem:[#allocation17_spill] sm:$0xff] }
 0x36d   : > { %4565 = vmatmul.mubr.bf16.gmra.mxu0 %v14397_v60  ;;  %4419 = vmatprep.mubr.bf16.mxu1 %v14416_v4  ;;  %v3265_v60 = vld [vmem:[#allocation2 + $0x91] sm:$0xff]  ;;  %v3266_v4 = vld [vmem:[#allocation2 + $0x99] sm:$0xff] }
 0x36e   : > { %4572 = vmatprep.mubr.bf16.mxu0 %v3346_v14  ;;  %11398 = vmatpush3.bf16.msra.mxu1 %v12696_v8  ;;  %v3364_v50 = vpack.c.bf16 %v3266_v4, %v3265_v60  ;;  %v3280_v60 = vld [vmem:[#allocation2 + $0x141] sm:$0xff] }
 0x36f   : > { %11399 = vmatprep.subr.bf16.mxu1 %v12697_v19 }
 0x372   : > { %11400 = vmatpush3.bf16.msra.mxu1 %v12697_v19 }
 0x373   : > { %11401 = vmatprep.subr.bf16.mxu1 %v12698_v10 }
 0x374   : > { %4420 = vmatmul.mubr.bf16.gmra.mxu1 %v3346_v14  ;;  %v18142_v14 = vld [vmem:[#allocation13_spill] sm:$0xff] }
 0x375   : > { %4573 = vmatmul.mubr.bf16.gmra.mxu0 %v14404_v38  ;;  %4427 = vmatprep.mubr.bf16.mxu1 %v14424_v63  ;;  %v3269_v38 = vld [vmem:[#allocation2 + $0xc1] sm:$0xff]  ;;  %v3270_v63 = vld [vmem:[#allocation2 + $0xc9] sm:$0xff] }
 0x376   : > { %4580 = vmatprep.mubr.bf16.mxu0 %v3355_v26  ;;  %11402 = vmatpush3.bf16.msra.mxu1 %v12698_v10  ;;  %v3382_v47 = vpack.c.bf16 %v3270_v63, %v3269_v38 }
 0x377   : > { %11403 = vmatprep.subr.bf16.mxu1 %v12699_v30 }
 0x37a   : > { %11404 = vmatpush3.bf16.msra.mxu1 %v12699_v30 }
 0x37c   : > { %4428 = vmatmul.mubr.bf16.gmra.mxu1 %v3355_v26  ;;  %v3279_v26 = vld [vmem:[#allocation2 + $0x139] sm:$0xff] }
 0x37d   : > { %4581 = vmatmul.mubr.bf16.gmra.mxu0 %v14411_v28  ;;  %4435 = vmatprep.mubr.bf16.mxu1 %v14432_v20  ;;  %v3271_v28 = vld [vmem:[#allocation2 + $0xd9] sm:$0xff]  ;;  %v3272_v20 = vld [vmem:[#allocation2 + $0xe1] sm:$0xff]  ;;  %v3427_v63 = vpack.c.bf16 %v3280_v60, %v3279_v26 }
 0x37e   : > { %4588 = vmatprep.mubr.bf16.mxu0 %v3364_v50  ;;  %v3391_v9 = vpack.c.bf16 %v3272_v20, %v3271_v28  ;;  %v18148_v60 = vld [vmem:[#allocation19_spill] sm:$0xff] }
 0x384   : > { %4436 = vmatmul.mubr.bf16.gmra.mxu1 %v3364_v50 }
 0x385   : > { %4589 = vmatmul.mubr.bf16.gmra.mxu0 %v14419_v17  ;;  %4443 = vmatprep.mubr.bf16.mxu1 %v14440_v31  ;;  %v3273_v17 = vld [vmem:[#allocation2 + $0xf1] sm:$0xff]  ;;  %v3274_v31 = vld [vmem:[#allocation2 + $0xf9] sm:$0xff] }
 0x386   : > { %4596 = vmatprep.mubr.bf16.mxu0 %v3373_v13  ;;  %v3400_v18 = vpack.c.bf16 %v3274_v31, %v3273_v17  ;;  %v18144_v31 = vld [vmem:[#allocation15_spill] sm:$0xff] }
 0x38c   : > { %4444 = vmatmul.mubr.bf16.gmra.mxu1 %v3373_v13 }
 0x38d   : > { %4597 = vmatmul.mubr.bf16.gmra.mxu0 %v14427_v7  ;;  %4451 = vmatprep.mubr.bf16.mxu1 %v14450_v35  ;;  %v10610_v7 = vpop.f32.mrf.mxu1  ;;  %v3275_v35 = vld [vmem:[#allocation2 + $0x109] sm:$0xff] }
 0x38e   : > { %4604 = vmatprep.mubr.bf16.mxu0 %v3382_v47  ;;  %v3409_v54 = vpack.c.bf16 %v3276_v21, %v3275_v35 }
 0x38f   : > { %v10611_v11 = vpop.f32.mrf.mxu1 }
 0x390   : > { %v10612_v55 = vadd.f32 %v10611_v11, %v10610_v7  ;;  %v3281_v11 = vld [vmem:[#allocation2 + $0x151] sm:$0xff] }
 0x394   : > { %4452 = vmatmul.mubr.bf16.gmra.mxu1 %v3382_v47 }
 0x395   : > { %4605 = vmatmul.mubr.bf16.gmra.mxu0 %v14435_v23  ;;  %4459 = vmatprep.mubr.bf16.mxu1 %v14458_v41 }
 0x396   : > { %4612 = vmatprep.mubr.bf16.mxu0 %v3391_v9 }
 0x39c   : > { %4460 = vmatmul.mubr.bf16.gmra.mxu1 %v3391_v9 }
 0x39d   : > { %4613 = vmatmul.mubr.bf16.gmra.mxu0 %v14443_v42  ;;  %4467 = vmatprep.mubr.bf16.mxu1 %v14466_v36  ;;  %v18140_v42 = vld [vmem:[#allocation11_spill] sm:$0xff] }
 0x39e   : > { %4620 = vmatprep.mubr.bf16.mxu0 %v3400_v18  ;;  %v4076_v36 = vadd.f32 %v14448_v34, %v18140_v42 }
 0x3a4   : > { %v10613_v25 = vpop.f32.mrf.mxu1  ;;  %4468 = vmatmul.mubr.bf16.gmra.mxu1 %v3400_v18 }
 0x3a5   : > { %v10719_v23 = vpop.f32.mrf.mxu0  ;;  %4621 = vmatmul.mubr.bf16.gmra.mxu0 %v14453_v39  ;;  %4475 = vmatprep.mubr.bf16.mxu1 %v14474_v58  ;;  %v4079_v58 = vadd.f32 %v10612_v55, %v18141_v33 }
 0x3a6   : > { %4628 = vmatprep.mubr.bf16.mxu0 %v3409_v54  ;;  %v10614_v41 = vpop.f32.mrf.mxu1 }
 0x3a7   : > { %v10615_v40 = vadd.f32 %v10614_v41, %v10613_v25  ;;  %v10720_v12 = vpop.f32.mrf.mxu0  ;;  %v3282_v25 = vld [vmem:[#allocation2 + $0x159] sm:$0xff] }
 0x3a8   : > { %v10721_v61 = vadd.f32 %v10720_v12, %v10719_v23  ;;  %v10616_v48 = vpop.f32.mrf.mxu1 }
 0x3a9   : > { %v10722_v56 = vpop.f32.mrf.mxu0  ;;  %v4084_v10 = vadd.f32 %v10615_v40, %v18142_v14  ;;  %v18145_v40 = vld [vmem:[#allocation16_spill] sm:$0xff] }
 0x3aa   : > { %v14533_v37 = vadd.f32 %v10721_v61, %v4076_v36  ;;  %v10617_v24 = vpop.f32.mrf.mxu1  ;;  %v3436_v36 = vpack.c.bf16 %v3282_v25, %v3281_v11 }
 0x3ab   : > { %v10618_v1 = vadd.f32 %v10617_v24, %v10616_v48  ;;  %v10723_v39 = vpop.f32.mrf.mxu0 }
 0x3ac   : > { %v10724_v32 = vadd.f32 %v10723_v39, %v10722_v56  ;;  %v10619_v52 = vpop.f32.mrf.mxu1  ;;  %4476 = vmatmul.mubr.bf16.gmra.mxu1 %v3409_v54 }
 0x3ad   : > { %v10725_v8 = vpop.f32.mrf.mxu0  ;;  %4629 = vmatmul.mubr.bf16.gmra.mxu0 %v14461_v49  ;;  %4483 = vmatprep.mubr.bf16.mxu1 %v14482_v43  ;;  %v4087_v43 = vadd.f32 %v10618_v1, %v18143_v5  ;;  %v3223_v5 = vld [vmem:[#allocation2 + $0x182] sm:$0xff] }
 0x3ae   : > { %v14538_v34 = vadd.f32 %v10724_v32, %v4079_v58  ;;  %4636 = vmatprep.mubr.bf16.mxu0 %v3418_v29  ;;  %v10620_v53 = vpop.f32.mrf.mxu1  ;;  %v3283_v58 = vld [vmem:[#allocation2 + $0x169] sm:$0xff]  ;;  %v3284_v32 = vld [vmem:[#allocation2 + $0x171] sm:$0xff] }
 0x3af   : > { %v10621_v2 = vadd.f32 %v10620_v53, %v10619_v52  ;;  %v10726_v19 = vpop.f32.mrf.mxu0  ;;  %v18147_v53 = vld [vmem:[#allocation18_spill] sm:$0xff]  ;;  %v3445_v14 = vpack.c.bf16 %v3284_v32, %v3283_v58 }
 0x3b0   : > { %v10727_v57 = vadd.f32 %v10726_v19, %v10725_v8  ;;  %v10622_v59 = vpop.f32.mrf.mxu1 }
 0x3b1   : > { %v10728_v30 = vpop.f32.mrf.mxu0  ;;  %v4092_v18 = vadd.f32 %v10621_v2, %v18144_v31 }
 0x3b2   : > { %v14541_v4 = vadd.f32 %v10727_v57, %v4084_v10  ;;  %v10623_v50 = vpop.f32.mrf.mxu1 }
 0x3b3   : > { %v10624_v3 = vadd.f32 %v10623_v50, %v10622_v59  ;;  %v10729_v49 = vpop.f32.mrf.mxu0 }
 0x3b4   : > { %v10730_v13 = vadd.f32 %v10729_v49, %v10728_v30  ;;  %v10625_v38 = vpop.f32.mrf.mxu1  ;;  %4484 = vmatmul.mubr.bf16.gmra.mxu1 %v3418_v29 }
 0x3b5   : > { %v10731_v47 = vpop.f32.mrf.mxu0  ;;  %4637 = vmatmul.mubr.bf16.gmra.mxu0 %v14469_v44  ;;  %4491 = vmatprep.mubr.bf16.mxu1 %v14490_v0  ;;  %v4095_v0 = vadd.f32 %v10624_v3, %v18145_v40  ;;  %v3288_v40 = vld [vmem:[#allocation2 + $0x1a1] sm:$0xff] }
 0x3b6   : > { %v14546_v28 = vadd.f32 %v10730_v13, %v4087_v43  ;;  %4644 = vmatprep.mubr.bf16.mxu0 %v3427_v63  ;;  %v10626_v20 = vpop.f32.mrf.mxu1  ;;  %v3224_v43 = vld [vmem:[#allocation2 + $0x18a] sm:$0xff] }
 0x3b7   : > { %v10627_v9 = vadd.f32 %v10626_v20, %v10625_v38  ;;  %v10732_v17 = vpop.f32.mrf.mxu0  ;;  %v3285_v38 = vld [vmem:[#allocation2 + $0x181] sm:$0xff] }
 0x3b8   : > { %v10733_v7 = vadd.f32 %v10732_v17, %v10731_v47  ;;  %v10628_v35 = vpop.f32.mrf.mxu1  ;;  %v18149_v17 = vld [vmem:[#allocation20_spill] sm:$0xff] }
 0x3b9   : > { %v10734_v21 = vpop.f32.mrf.mxu0  ;;  %v4100_v24 = vadd.f32 %v10627_v9, %v18146_v45  ;;  %v14567_v9 = vpack.c.bf16 %v3224_v43, %v3223_v5 }
 0x3ba   : > { %v14549_v54 = vadd.f32 %v10733_v7, %v4092_v18  ;;  %v10629_v23 = vpop.f32.mrf.mxu1 }
 0x3bb   : > { %v10630_v41 = vadd.f32 %v10629_v23, %v10628_v35  ;;  %v10735_v44 = vpop.f32.mrf.mxu0 }
 0x3bc   : > { %v10736_v12 = vadd.f32 %v10735_v44, %v10734_v21  ;;  %v10631_v42 = vpop.f32.mrf.mxu1  ;;  %4492 = vmatmul.mubr.bf16.gmra.mxu1 %v3427_v63  ;;  %v3286_v63 = vld [vmem:[#allocation2 + $0x189] sm:$0xff]  ;;  %v3287_v44 = vld [vmem:[#allocation2 + $0x199] sm:$0xff] }
 0x3bd   : > { %v10737_v55 = vpop.f32.mrf.mxu0  ;;  %4645 = vmatmul.mubr.bf16.gmra.mxu0 %v14477_v16  ;;  %4499 = vmatprep.mubr.bf16.mxu1 %v14498_v15  ;;  %v4103_v15 = vadd.f32 %v10630_v41, %v18147_v53  ;;  %v3454_v35 = vpack.c.bf16 %v3286_v63, %v3285_v38  ;;  %v3463_v45 = vpack.c.bf16 %v3288_v40, %v3287_v44  ;;  %v18154_v44 = vld [vmem:[#allocation25_spill] sm:$0xff] }
 0x3be   : > { %v14554_v61 = vadd.f32 %v10736_v12, %v4095_v0  ;;  %4652 = vmatprep.mubr.bf16.mxu0 %v3436_v36  ;;  %v10632_v48 = vpop.f32.mrf.mxu1  ;;  %v18150_v0 = vld [vmem:[#allocation21_spill] sm:$0xff] }
 0x3bf   : > { %v10633_v56 = vadd.f32 %v10632_v48, %v10631_v42  ;;  %v10738_v27 = vpop.f32.mrf.mxu0  ;;  %v3290_v48 = vld [vmem:[#allocation2 + $0x3a] sm:$0xff] }
 0x3c0   : > { %v10739_v1 = vadd.f32 %v10738_v27, %v10737_v55  ;;  %v10634_v39 = vpop.f32.mrf.mxu1  ;;  %v3289_v55 = vld [vmem:[#allocation2 + $0x32] sm:$0xff] }
 0x3c1   : > { %v10740_v33 = vpop.f32.mrf.mxu0  ;;  %v4108_v50 = vadd.f32 %v10633_v56, %v18148_v60  ;;  %v3293_v60 = vld [vmem:[#allocation2 + $0x62] sm:$0xff] }
 0x3c2   : > { %v14557_v52 = vadd.f32 %v10739_v1, %v4100_v24  ;;  %v10635_v29 = vpop.f32.mrf.mxu1 }
 0x3c3   : > { %v10636_v8 = vadd.f32 %v10635_v29, %v10634_v39  ;;  %v10741_v16 = vpop.f32.mrf.mxu0  ;;  %v3329_v39 = vpack.c.bf16 %v3290_v48, %v3289_v55 }
 0x3c4   : > { %v10742_v2 = vadd.f32 %v10741_v16, %v10740_v33  ;;  %v10637_v19 = vpop.f32.mrf.mxu1  ;;  %4500 = vmatmul.mubr.bf16.gmra.mxu1 %v3436_v36  ;;  %v18151_v33 = vld [vmem:[#allocation22_spill] sm:$0xff] }
 0x3c5   : > { %v10743_v10 = vpop.f32.mrf.mxu0  ;;  %4653 = vmatmul.mubr.bf16.gmra.mxu0 %v14485_v22  ;;  %4507 = vmatprep.mubr.bf16.mxu1 %v14506_v46  ;;  %v4111_v31 = vadd.f32 %v10636_v8, %v18149_v17 }
 0x3c6   : > { %v14562_v57 = vadd.f32 %v10742_v2, %v4103_v15  ;;  %4660 = vmatprep.mubr.bf16.mxu0 %v3445_v14  ;;  %v10638_v59 = vpop.f32.mrf.mxu1 }
 0x3c7   : > { %v10639_v30 = vadd.f32 %v10638_v59, %v10637_v19  ;;  %v10744_v26 = vpop.f32.mrf.mxu0  ;;  %v3291_v19 = vld [vmem:[#allocation2 + $0x4a] sm:$0xff] }
 0x3c8   : > { %v10745_v3 = vadd.f32 %v10744_v26, %v10743_v10  ;;  %v10640_v49 = vpop.f32.mrf.mxu1  ;;  %v18152_v10 = vld [vmem:[#allocation23_spill] sm:$0xff] }
 0x3c9   : > { %v10746_v13 = vpop.f32.mrf.mxu0  ;;  %v4116_v12 = vadd.f32 %v10639_v30, %v18150_v0 }
 0x3ca   : > { %v14565_v47 = vadd.f32 %v10745_v3, %v4108_v50  ;;  %v10641_v22 = vpop.f32.mrf.mxu1  ;;  %v3294_v50 = vld [vmem:[#allocation2 + $0x6a] sm:$0xff] }
 0x3cb   : > { %v10642_v20 = vadd.f32 %v10641_v22, %v10640_v49  ;;  %v10747_v46 = vpop.f32.mrf.mxu0  ;;  %v14582_v49 = vld [vmem:[#allocation2] sm:$0xff]  ;;  %v3347_v22 = vpack.c.bf16 %v3294_v50, %v3293_v60  ;;  %v3302_v50 = vld [vmem:[#allocation2 + $0xca] sm:$0xff] }
 0x3cc   : > { %v10748_v18 = vadd.f32 %v10747_v46, %v10746_v13  ;;  %v10643_v7 = vpop.f32.mrf.mxu1  ;;  %4508 = vmatmul.mubr.bf16.gmra.mxu1 %v3445_v14  ;;  %v3292_v14 = vld [vmem:[#allocation2 + $0x52] sm:$0xff]  ;;  %v3301_v60 = vld [vmem:[#allocation2 + $0xc2] sm:$0xff]  ;;  %583 = vst.msk [vmem:[#allocation3] sm:$0xff] %vm582_vm0, %v14582_v49  ;;  %584 = vst.msk [vmem:[#allocation3 + $0x8] sm:$0xff] %vm582_vm0, %v14582_v49 }
 0x3cd   : > { %v10749_v21 = vpop.f32.mrf.mxu0  ;;  %4661 = vmatmul.mubr.bf16.gmra.mxu0 %v14493_v51  ;;  %4515 = vmatprep.mubr.bf16.mxu1 %v14567_v9  ;;  %v4119_v58 = vadd.f32 %v10642_v20, %v18151_v33  ;;  %v3338_v13 = vpack.c.bf16 %v3292_v14, %v3291_v19  ;;  %v18153_v20 = vld [vmem:[#allocation24_spill] sm:$0xff]  ;;  %v3300_v14 = vld [vmem:[#allocation2 + $0xb2] sm:$0xff]  ;;  %586 = vst.msk [vmem:[#allocation3 + $0x10] sm:$0x3] %vm585_vm1, %v14582_v49  ;;  %589 = vst.msk [vmem:[#allocation3 + $0x28] sm:$0x3] %vm585_vm1, %v14582_v49 }
 0x3ce   : > { %v14572_v11 = vadd.f32 %v10748_v18, %v4111_v31  ;;  %4668 = vmatprep.mubr.bf16.mxu0 %v3454_v35  ;;  %v10644_v25 = vpop.f32.mrf.mxu1  ;;  %v3299_v19 = vld [vmem:[#allocation2 + $0xaa] sm:$0xff]  ;;  %587 = vst.msk [vmem:[#allocation3 + $0x18] sm:$0xff] %vm582_vm0, %v14582_v49  ;;  %588 = vst.msk [vmem:[#allocation3 + $0x20] sm:$0xff] %vm582_vm0, %v14582_v49 }
 0x3cf   : > { %v10645_v23 = vadd.f32 %v10644_v25, %v10643_v7  ;;  %v10750_v41 = vpop.f32.mrf.mxu0  ;;  %590 = vst.msk [vmem:[#allocation3 + $0x30] sm:$0xff] %vm582_vm0, %v14582_v49  ;;  %591 = vst.msk [vmem:[#allocation3 + $0x38] sm:$0xff] %vm582_vm0, %v14582_v49 }
 0x3d0   : > { %v10751_v42 = vadd.f32 %v10750_v41, %v10749_v21  ;;  %v10646_v36 = vpop.f32.mrf.mxu1  ;;  %v3296_v41 = vld [vmem:[#allocation2 + $0x82] sm:$0xff]  ;;  %592 = vst.msk [vmem:[#allocation3 + $0x40] sm:$0x3] %vm585_vm1, %v14582_v49  ;;  %595 = vst.msk [vmem:[#allocation3 + $0x58] sm:$0x3] %vm585_vm1, %v14582_v49 }
 0x3d1   : > { %v10752_v56 = vpop.f32.mrf.mxu0  ;;  %v4124_v59 = vadd.f32 %v10645_v23, %v18152_v10  ;;  %v3295_v23 = vld [vmem:[#allocation2 + $0x7a] sm:$0xff]  ;;  %593 = vst.msk [vmem:[#allocation3 + $0x48] sm:$0xff] %vm582_vm0, %v14582_v49  ;;  %594 = vst.msk [vmem:[#allocation3 + $0x50] sm:$0xff] %vm582_vm0, %v14582_v49 }
 0x3d2   : > { %v14575_v27 = vadd.f32 %v10751_v42, %v4116_v12  ;;  %v10647_v51 = vpop.f32.mrf.mxu1  ;;  %v3297_v42 = vld [vmem:[#allocation2 + $0x92] sm:$0xff]  ;;  %v18156_v10 = vld [vmem:[#allocation27_spill] sm:$0xff]  ;;  %596 = vst.msk [vmem:[#allocation3 + $0x60] sm:$0xff] %vm582_vm0, %v14582_v49  ;;  %597 = vst.msk [vmem:[#allocation3 + $0x68] sm:$0xff] %vm582_vm0, %v14582_v49 }
 0x3d3   : > { %v10648_v24 = vadd.f32 %v10647_v51, %v10646_v36  ;;  %v10753_v1 = vpop.f32.mrf.mxu0  ;;  %v3298_v36 = vld [vmem:[#allocation2 + $0x9a] sm:$0xff]  ;;  %v3356_v51 = vpack.c.bf16 %v3296_v41, %v3295_v23  ;;  %598 = vst.msk [vmem:[#allocation3 + $0x70] sm:$0x3] %vm585_vm1, %v14582_v49  ;;  %601 = vst.msk [vmem:[#allocation3 + $0x88] sm:$0x3] %vm585_vm1, %v14582_v49 }
 0x3d4   : > { %v10754_v32 = vadd.f32 %v10753_v1, %v10752_v56  ;;  %v10649_v29 = vpop.f32.mrf.mxu1  ;;  %4516 = vmatmul.mubr.bf16.gmra.mxu1 %v3454_v35  ;;  %v3365_v1 = vpack.c.bf16 %v3298_v36, %v3297_v42  ;;  %v3303_v41 = vld [vmem:[#allocation2 + $0xda] sm:$0xff]  ;;  %v3305_v36 = vld [vmem:[#allocation2 + $0xf2] sm:$0xff]  ;;  %599 = vst.msk [vmem:[#allocation3 + $0x78] sm:$0xff] %vm582_vm0, %v14582_v49  ;;  %600 = vst.msk [vmem:[#allocation3 + $0x80] sm:$0xff] %vm582_vm0, %v14582_v49 }
 0x3d5   : > { %v10755_v8 = vpop.f32.mrf.mxu0  ;;  %4669 = vmatmul.mubr.bf16.gmra.mxu0 %v14501_v62  ;;  %11405 = vmatprep.mubr.bf16.mxu1 %v3329_v39  ;;  %v3462_v62 = vpack.c.bf16 %v14582_v49, %v14582_v49  ;;  %v4127_v46 = vadd.f32 %v10648_v24, %v18153_v20  ;;  %v18155_v39 = vld [vmem:[#allocation26_spill] sm:$0xff]  ;;  %v18157_v20 = vld [vmem:[#allocation28_spill] sm:$0xff]  ;;  %602 = vst.msk [vmem:[#allocation3 + $0x90] sm:$0xff] %vm582_vm0, %v14582_v49  ;;  %603 = vst.msk [vmem:[#allocation3 + $0x98] sm:$0xff] %vm582_vm0, %v14582_v49 }
 0x3d6   : > { %v14579_v16 = vadd.f32 %v10754_v32, %v4119_v58  ;;  %v10650_v53 = vpop.f32.mrf.mxu1  ;;  %4676 = vmatprep.mubr.bf16.mxu0 %v3463_v45  ;;  %604 = vst.msk [vmem:[#allocation3 + $0xa0] sm:$0x3] %vm585_vm1, %v14582_v49  ;;  %607 = vst.msk [vmem:[#allocation3 + $0xb8] sm:$0x3] %vm585_vm1, %v14582_v49 }
 0x3d7   : > { %v10651_v15 = vadd.f32 %v10650_v53, %v10649_v29  ;;  %v10756_v2 = vpop.f32.mrf.mxu0  ;;  %605 = vst.msk [vmem:[#allocation3 + $0xa8] sm:$0xff] %vm582_vm0, %v14582_v49  ;;  %606 = vst.msk [vmem:[#allocation3 + $0xb0] sm:$0xff] %vm582_vm0, %v14582_v49 }
 0x3d8   : > { %v10757_v30 = vadd.f32 %v10756_v2, %v10755_v8  ;;  %v10652_v26 = vpop.f32.mrf.mxu1  ;;  %608 = vst.msk [vmem:[#allocation3 + $0xc0] sm:$0xff] %vm582_vm0, %v14582_v49  ;;  %609 = vst.msk [vmem:[#allocation3 + $0xc8] sm:$0xff] %vm582_vm0, %v14582_v49 }
 0x3d9   : > { %v10758_v3 = vpop.f32.mrf.mxu0  ;;  %v4132_v40 = vadd.f32 %v10651_v15, %v18154_v44  ;;  %v3304_v44 = vld [vmem:[#allocation2 + $0xe2] sm:$0xff]  ;;  %610 = vst.msk [vmem:[#allocation3 + $0xd0] sm:$0x3] %vm585_vm1, %v14582_v49  ;;  %613 = vst.msk [vmem:[#allocation3 + $0xe8] sm:$0x3] %vm585_vm1, %v14582_v49 }
 0x3da   : > { %v14586_v5 = vadd.f32 %v10757_v30, %v4124_v59  ;;  %v10653_v43 = vpop.f32.mrf.mxu1  ;;  %611 = vst.msk [vmem:[#allocation3 + $0xd8] sm:$0xff] %vm582_vm0, %v14582_v49  ;;  %612 = vst.msk [vmem:[#allocation3 + $0xe0] sm:$0xff] %vm582_vm0, %v14582_v49 }
 0x3db   : > { %v10654_v38 = vadd.f32 %v10653_v43, %v10652_v26  ;;  %v10759_v63 = vpop.f32.mrf.mxu0  ;;  %614 = vst.msk [vmem:[#allocation3 + $0xf0] sm:$0xff] %vm582_vm0, %v14582_v49  ;;  %615 = vst.msk [vmem:[#allocation3 + $0xf8] sm:$0xff] %vm582_vm0, %v14582_v49 }
 0x3dc   : > { %v10760_v17 = vadd.f32 %v10759_v63, %v10758_v3  ;;  %v10655_v31 = vpop.f32.mrf.mxu1  ;;  %11406 = vmatmul.mubr.bf16.vlgmr.msra.gmra.mxu1 %v3338_v13  ;;  %v3374_v13 = vpack.c.bf16 %v3300_v14, %v3299_v19  ;;  %616 = vst.msk [vmem:[#allocation3 + $0x100] sm:$0x3] %vm585_vm1, %v14582_v49  ;;  %619 = vst.msk [vmem:[#allocation3 + $0x118] sm:$0x3] %vm585_vm1, %v14582_v49 }
 0x3dd   : > { %v10761_v18 = vpop.f32.mrf.mxu0  ;;  %4677 = vmatmul.mubr.bf16.gmra.mxu0 %v3462_v62  ;;  %11409 = vmatprep.mubr.bf16.mxu1 %v3347_v22  ;;  %v4135_v33 = vadd.f32 %v10654_v38, %v18155_v39  ;;  %v3383_v22 = vpack.c.bf16 %v3302_v50, %v3301_v60  ;;  %617 = vst.msk [vmem:[#allocation3 + $0x108] sm:$0xff] %vm582_vm0, %v14582_v49  ;;  %618 = vst.msk [vmem:[#allocation3 + $0x110] sm:$0xff] %vm582_vm0, %v14582_v49 }
 0x3de   : > { %v14589_v7 = vadd.f32 %v10760_v17, %v4127_v46  ;;  %v10656_v35 = vpop.f32.mrf.mxu1  ;;  %620 = vst.msk [vmem:[#allocation3 + $0x120] sm:$0xff] %vm582_vm0, %v14582_v49  ;;  %621 = vst.msk [vmem:[#allocation3 + $0x128] sm:$0xff] %vm582_vm0, %v14582_v49 }
 0x3df   : > { %v10657_v21 = vadd.f32 %v10656_v35, %v10655_v31  ;;  %v10762_v25 = vpop.f32.mrf.mxu0  ;;  %622 = vst.msk [vmem:[#allocation3 + $0x130] sm:$0x3] %vm585_vm1, %v14582_v49  ;;  %625 = vst.msk [vmem:[#allocation3 + $0x148] sm:$0x3] %vm585_vm1, %v14582_v49 }
 0x3e0   : > { %v10763_v0 = vadd.f32 %v10762_v25, %v10761_v18  ;;  %v10658_v12 = vpop.f32.mrf.mxu1  ;;  %623 = vst.msk [vmem:[#allocation3 + $0x138] sm:$0xff] %vm582_vm0, %v14582_v49  ;;  %624 = vst.msk [vmem:[#allocation3 + $0x140] sm:$0xff] %vm582_vm0, %v14582_v49 }
 0x3e1   : > { %v10764_v55 = vpop.f32.mrf.mxu0  ;;  %v4140_v59 = vadd.f32 %v10657_v21, %v18156_v10  ;;  %626 = vst.msk [vmem:[#allocation3 + $0x150] sm:$0xff] %vm582_vm0, %v14582_v49  ;;  %627 = vst.msk [vmem:[#allocation3 + $0x158] sm:$0xff] %vm582_vm0, %v14582_v49 }
 0x3e2   : > { %v14592_v48 = vadd.f32 %v10763_v0, %v4132_v40  ;;  %v10659_v56 = vpop.f32.mrf.mxu1  ;;  %v18158_v40 = vld [vmem:[#allocation29_spill] sm:$0xff]  ;;  %628 = vst.msk [vmem:[#allocation3 + $0x160] sm:$0x3] %vm585_vm1, %v14582_v49  ;;  %631 = vst.msk [vmem:[#allocation3 + $0x178] sm:$0x3] %vm585_vm1, %v14582_v49 }
 0x3e3   : > { %v10660_v45 = vadd.f32 %v10659_v56, %v10658_v12  ;;  %v10765_v24 = vpop.f32.mrf.mxu0  ;;  %629 = vst.msk [vmem:[#allocation3 + $0x168] sm:$0xff] %vm582_vm0, %v14582_v49  ;;  %630 = vst.msk [vmem:[#allocation3 + $0x170] sm:$0xff] %vm582_vm0, %v14582_v49 }
 0x3e4   : > { %v10766_v58 = vadd.f32 %v10765_v24, %v10764_v55  ;;  %v10661_v32 = vpop.f32.mrf.mxu1  ;;  %11410 = vmatmul.mubr.bf16.gmra.mxu1 %v3356_v51  ;;  %v3306_v55 = vld [vmem:[#allocation2 + $0xfa] sm:$0xff]  ;;  %v3392_v24 = vpack.c.bf16 %v3304_v44, %v3303_v41  ;;  %632 = vst.msk [vmem:[#allocation3 + $0x180] sm:$0xff] %vm582_vm0, %v14582_v49  ;;  %633 = vst.msk [vmem:[#allocation3 + $0x188] sm:$0xff] %vm582_vm0, %v14582_v49 }
 0x3e5   : > { %v10767_v29 = vpop.f32.mrf.mxu0  ;;  %11413 = vmatprep.mubr.bf16.mxu1 %v3365_v1  ;;  %v4143_v46 = vadd.f32 %v10660_v45, %v18157_v20  ;;  %634 = vst.msk [vmem:[#allocation3 + $0x190] sm:$0x3] %vm585_vm1, %v14582_v49  ;;  %637 = vst.msk [vmem:[#allocation3 + $0x1a8] sm:$0x3] %vm585_vm1, %v14582_v49 }
 0x3e6   : > { %v14595_v8 = vadd.f32 %v10766_v58, %v4135_v33  ;;  %v10662_v53 = vpop.f32.mrf.mxu1  ;;  %v3401_v33 = vpack.c.bf16 %v3306_v55, %v3305_v36  ;;  %v18159_v58 = vld [vmem:[#allocation30_spill] sm:$0xff]  ;;  %v3312_v36 = vld [vmem:[#allocation2 + $0x142] sm:$0xff]  ;;  %v18162_v55 = vld [vmem:[#allocation33_spill] sm:$0xff]  ;;  %635 = vst.msk [vmem:[#allocation3 + $0x198] sm:$0xff] %vm582_vm0, %v14582_v49 }
 0x3e7   : > { %v10663_v15 = vadd.f32 %v10662_v53, %v10661_v32  ;;  %v10768_v2 = vpop.f32.mrf.mxu0  ;;  %636 = vst.msk [vmem:[#allocation3 + $0x1a0] sm:$0xff] %vm582_vm0, %v14582_v49 }
 0x3e8   : > { %v10769_v30 = vadd.f32 %v10768_v2, %v10767_v29  ;;  %v10664_v26 = vpop.f32.mrf.mxu1 }
 0x3e9   : > { %v10770_v3 = vpop.f32.mrf.mxu0  ;;  %v4148_v0 = vadd.f32 %v10663_v15, %v18158_v40 }
 0x3ea   : > { %v14598_v62 = vadd.f32 %v10769_v30, %v4140_v59  ;;  %v10665_v43 = vpop.f32.mrf.mxu1  ;;  %v3307_v59 = vld [vmem:[#allocation2 + $0x10a] sm:$0xff]  ;;  %v3308_v30 = vld [vmem:[#allocation2 + $0x112] sm:$0xff] }
 0x3eb   : > { %v10666_v38 = vadd.f32 %v10665_v43, %v10664_v26  ;;  %v10771_v63 = vpop.f32.mrf.mxu0  ;;  %v18160_v26 = vld [vmem:[#allocation31_spill] sm:$0xff]  ;;  %v3410_v20 = vpack.c.bf16 %v3308_v30, %v3307_v59 }
 0x3ec   : > { %v10772_v17 = vadd.f32 %v10771_v63, %v10770_v3  ;;  %v10667_v31 = vpop.f32.mrf.mxu1  ;;  %11414 = vmatmul.mubr.bf16.gmra.mxu1 %v3374_v13  ;;  %v3309_v43 = vld [vmem:[#allocation2 + $0x122] sm:$0xff]  ;;  %v3310_v13 = vld [vmem:[#allocation2 + $0x12a] sm:$0xff] }
 0x3ed   : > { %v10773_v18 = vpop.f32.mrf.mxu0  ;;  %11417 = vmatprep.mubr.bf16.mxu1 %v3383_v22  ;;  %v4151_v32 = vadd.f32 %v10666_v38, %v18159_v58 }
 0x3ee   : > { %v14601_v35 = vadd.f32 %v10772_v17, %v4143_v46  ;;  %v10668_v21 = vpop.f32.mrf.mxu1 }
 0x3ef   : > { %v10669_v25 = vadd.f32 %v10668_v21, %v10667_v31  ;;  %v10774_v23 = vpop.f32.mrf.mxu0  ;;  %v3419_v31 = vpack.c.bf16 %v3310_v13, %v3309_v43  ;;  %v3315_v43 = vld [vmem:[#allocation2 + $0x16a] sm:$0xff]  ;;  %v3316_v13 = vld [vmem:[#allocation2 + $0x172] sm:$0xff] }
 0x3f0   : > { %v10775_v12 = vadd.f32 %v10774_v23, %v10773_v18  ;;  %v10670_v42 = vpop.f32.mrf.mxu1  ;;  %v18161_v18 = vld [vmem:[#allocation32_spill] sm:$0xff] }
 0x3f1   : > { %v10776_v56 = vpop.f32.mrf.mxu0  ;;  %v4156_v60 = vadd.f32 %v10669_v25, %v18160_v26 }
 0x3f2   : > { %v14604_v51 = vadd.f32 %v10775_v12, %v4148_v0  ;;  %v10671_v45 = vpop.f32.mrf.mxu1 }
 0x3f3   : > { %v10672_v1 = vadd.f32 %v10671_v45, %v10670_v42  ;;  %v10777_v39 = vpop.f32.mrf.mxu0  ;;  %v3311_v42 = vld [vmem:[#allocation2 + $0x13a] sm:$0xff] }
 0x3f4   : > { %v10778_v29 = vadd.f32 %v10777_v39, %v10776_v56  ;;  %v10673_v53 = vpop.f32.mrf.mxu1  ;;  %11418 = vmatmul.mubr.bf16.gmra.mxu1 %v3392_v24  ;;  %v3313_v39 = vld [vmem:[#allocation2 + $0x152] sm:$0xff] }
 0x3f5   : > { %v10779_v2 = vpop.f32.mrf.mxu0  ;;  %11421 = vmatprep.mubr.bf16.mxu1 %v3401_v33  ;;  %v4159_v21 = vadd.f32 %v10672_v1, %v18161_v18  ;;  %v3314_v33 = vld [vmem:[#allocation2 + $0x15a] sm:$0xff] }
 0x3f6   : > { %v14607_v15 = vadd.f32 %v10778_v29, %v4151_v32  ;;  %v10674_v19 = vpop.f32.mrf.mxu1  ;;  %v3428_v29 = vpack.c.bf16 %v3312_v36, %v3311_v42 }
 0x3f7   : > { %v10675_v14 = vadd.f32 %v10674_v19, %v10673_v53  ;;  %v10780_v10 = vpop.f32.mrf.mxu0  ;;  %v18163_v19 = vld [vmem:[#allocation34_spill] sm:$0xff] }
 0x3f8   : > { %v10781_v50 = vadd.f32 %v10780_v10, %v10779_v2  ;;  %v10676_v3 = vpop.f32.mrf.mxu1  ;;  %v3437_v2 = vpack.c.bf16 %v3314_v33, %v3313_v39  ;;  %v18166_v33 = vld [vmem:[#allocation37_spill] sm:$0xff] }
 0x3f9   : > { %v10782_v63 = vpop.f32.mrf.mxu0  ;;  %v4164_v56 = vadd.f32 %v10675_v14, %v18162_v55  ;;  %v3319_v55 = vld [vmem:[#allocation2 + $0x19a] sm:$0xff] }
 0x3fa   : > { %v14610_v38 = vadd.f32 %v10781_v50, %v4156_v60  ;;  %v10677_v22 = vpop.f32.mrf.mxu1 }
 0x3fb   : > { %v10678_v46 = vadd.f32 %v10677_v22, %v10676_v3  ;;  %v10783_v17 = vpop.f32.mrf.mxu0 }
 0x3fc   : > { %v10784_v23 = vadd.f32 %v10783_v17, %v10782_v63  ;;  %v10679_v41 = vpop.f32.mrf.mxu1  ;;  %11422 = vmatmul.mubr.bf16.gmra.mxu1 %v3410_v20  ;;  %v18164_v63 = vld [vmem:[#allocation35_spill] sm:$0xff] }
 0x3fd   : > { %v10785_v44 = vpop.f32.mrf.mxu0  ;;  %11425 = vmatprep.mubr.bf16.mxu1 %v3419_v31  ;;  %v4167_v10 = vadd.f32 %v10678_v46, %v18163_v19 }
 0x3fe   : > { %v14613_v25 = vadd.f32 %v10784_v23, %v4159_v21  ;;  %v10680_v40 = vpop.f32.mrf.mxu1  ;;  %v3446_v23 = vpack.c.bf16 %v3316_v13, %v3315_v43 }
 0x3ff   : > { %v10681_v0 = vadd.f32 %v10680_v40, %v10679_v41  ;;  %v10786_v12 = vpop.f32.mrf.mxu0 }
 0x400   : > { %v10787_v45 = vadd.f32 %v10786_v12, %v10785_v44  ;;  %v10682_v24 = vpop.f32.mrf.mxu1  ;;  %v18165_v44 = vld [vmem:[#allocation36_spill] sm:$0xff] }
 0x401   : > { %v10788_v58 = vpop.f32.mrf.mxu0  ;;  %v4172_v22 = vadd.f32 %v10681_v0, %v18164_v63 }
 0x402   : > { %v14616_v1 = vadd.f32 %v10787_v45, %v4164_v56  ;;  %v10683_v32 = vpop.f32.mrf.mxu1  ;;  %v3320_v56 = vld [vmem:[#allocation2 + $0x1a2] sm:$0xff] }
 0x403   : > { %v10789_v53 = vpop.f32.mrf.mxu0  ;;  %v10684_v20 = vadd.f32 %v10683_v32, %v10682_v24 }
 0x404   : > { %v10790_v59 = vadd.f32 %v10789_v53, %v10788_v58  ;;  %v10685_v30 = vpop.f32.mrf.mxu1  ;;  %11426 = vmatmul.mubr.bf16.gmra.mxu1 %v3428_v29 }
 0x405   : > { %v10791_v26 = vpop.f32.mrf.mxu0  ;;  %11429 = vmatprep.mubr.bf16.mxu1 %v3437_v2  ;;  %v4175_v40 = vadd.f32 %v10684_v20, %v18165_v44  ;;  %v3464_v2 = vpack.c.bf16 %v3320_v56, %v3319_v55  ;;  %v18168_v20 = vld [vmem:[#allocation39_spill] sm:$0xff]  ;;  %v5231_v56 = vld [vmem:[#allocation3 + $0x1] sm:$0xff] }
 0x406   : > { %v14619_v60 = vadd.f32 %v10790_v59, %v4167_v10  ;;  %v10686_v14 = vpop.f32.mrf.mxu1 }
 0x407   : > { %v10687_v50 = vadd.f32 %v10686_v14, %v10685_v30  ;;  %v10792_v3 = vpop.f32.mrf.mxu0  ;;  %v18167_v30 = vld [vmem:[#allocation38_spill] sm:$0xff] }
 0x408   : > { %v10793_v17 = vadd.f32 %v10792_v3, %v10791_v26  ;;  %v10688_v31 = vpop.f32.mrf.mxu1 }
 0x409   : > { %v10794_v18 = vpop.f32.mrf.mxu0  ;;  %v4180_v58 = vadd.f32 %v10687_v50, %v18166_v33 }
 0x40a   : > { %v14622_v21 = vadd.f32 %v10793_v17, %v4172_v22  ;;  %v10689_v46 = vpop.f32.mrf.mxu1 }
 0x40b   : > { %v10795_v41 = vpop.f32.mrf.mxu0  ;;  %v10690_v32 = vadd.f32 %v10689_v46, %v10688_v31 }
 0x40c   : > { %v10796_v12 = vadd.f32 %v10795_v41, %v10794_v18  ;;  %v10691_v42 = vpop.f32.mrf.mxu1  ;;  %11430 = vmatmul.mubr.bf16.gmra.mxu1 %v3446_v23 }
 0x40d   : > { %v10797_v36 = vpop.f32.mrf.mxu0  ;;  %11433 = vmatprep.mubr.bf16.mxu1 %v14567_v9  ;;  %v4183_v26 = vadd.f32 %v10690_v32, %v18167_v30  ;;  %v5264_v32 = vld [vmem:[#allocation3 + $0xa] sm:$0xff] }
 0x40e   : > { %v14626_v0 = vadd.f32 %v10796_v12, %v4175_v40  ;;  %v10692_v45 = vpop.f32.mrf.mxu1  ;;  %v18169_v12 = vld [vmem:[#allocation40_spill] sm:$0xff] }
 0x40f   : > { %v14628_v24 = vadd.f32 %v10692_v45, %v10691_v42  ;;  %v10798_v39 = vpop.f32.mrf.mxu0  ;;  %v5232_v45 = vld [vmem:[#allocation3 + $0x9] sm:$0xff] }
 0x410   : > { %v10799_v29 = vadd.f32 %v10798_v39, %v10797_v36  ;;  %v14631_v53 = vpop.f32.mrf.mxu1  ;;  %v5263_v39 = vld [vmem:[#allocation3 + $0x2] sm:$0xff] }
 0x411   : > { %v10800_v19 = vpop.f32.mrf.mxu0  ;;  %v4188_v17 = vadd.f32 %v14628_v24, %v18168_v20 }
 0x412   : > { %v14633_v10 = vadd.f32 %v10799_v29, %v4180_v58  ;;  %v14635_v59 = vpop.f32.mrf.mxu1  ;;  %v11596_v58 = vpack.i.bf16 %v5232_v45, %v5231_v56 }
 0x413   : > { %v10801_v9 = vpop.f32.mrf.mxu0  ;;  %v10696_v31 = vadd.f32 %v14635_v59, %v14631_v53 }
 0x414   : > { %v10802_v14 = vadd.f32 %v10801_v9, %v10800_v19  ;;  %v10697_v3 = vpop.f32.mrf.mxu1  ;;  %11434 = vmatmul.mubr.bf16.gmra.mxu1 %v3464_v2  ;;  %v18170_v2 = vld [vmem:[#allocation41_spill] sm:$0xff]  ;;  %11597 = vrot.lane.b32.xlu1 %v11596_v58, %s12822_s18 }
 0x415   : > { %v14638_v43 = vpop.f32.mrf.mxu0  ;;  %v4191_v42 = vadd.f32 %v10696_v31, %v18169_v12 }
 0x416   : > { %v14640_v50 = vadd.f32 %v10802_v14, %v4183_v26  ;;  %v10698_v13 = vpop.f32.mrf.mxu1  ;;  %v11601_v26 = vpack.i.bf16 %v5264_v32, %v5263_v39 }
 0x417   : > { %v10699_v63 = vadd.f32 %v10698_v13, %v10697_v3  ;;  %v10804_v22 = vpop.f32.mrf.mxu0 }
 0x418   : > { %v10805_v18 = vadd.f32 %v10804_v22, %v14638_v43  ;;  %v10700_v46 = vpop.f32.mrf.mxu1  ;;  %11602 = vrot.lane.b32.xlu1 %v11601_v26, %s12823_s19 }
 0x419   : > { %v10806_v23 = vpop.f32.mrf.mxu0  ;;  %v4196_v19 = vadd.f32 %v10699_v63, %v18170_v2 }
 0x41a   : > { %v14755_v41 = vadd.f32 %v10805_v18, %v4188_v17  ;;  %v10701_v44 = vpop.f32.mrf.mxu1  ;;  %v18172_v17 = vld [vmem:[#allocation42_spill] sm:$0xff] }
 0x41b   : > { %v10807_v40 = vpop.f32.mrf.mxu0  ;;  %v10702_v59 = vadd.f32 %v10701_v44, %v10700_v46 }
 0x41c   : > { %v10808_v36 = vadd.f32 %v10807_v40, %v10806_v23  ;;  %v10831_v49 = vpop.f32.mrf.mxu1 }
 0x41d   : > { %v10809_v55 = vpop.f32.mrf.mxu0  ;;  %v4199_v31 = vadd.f32 %v10702_v59, %v18172_v17 }
 0x41e   : > { %v14758_v24 = vadd.f32 %v10808_v36, %v4191_v42  ;;  %v10832_v33 = vpop.f32.mrf.mxu1 }
 0x41f   : > { %v10810_v29 = vpop.f32.mrf.mxu0  ;;  %v10833_v53 = vadd.f32 %v10832_v33, %v10831_v49 }
 0x420   : > { %v10811_v9 = vadd.f32 %v10810_v29, %v10809_v55  ;;  %v10834_v30 = vpop.f32.mrf.mxu1 }
 0x421   : > { %v4398_v14 = vadd.f32 %v10833_v53, %v14533_v37  ;;  %v10812_v3 = vpop.f32.mrf.mxu0 }
 0x422   : > { %v14763_v43 = vadd.f32 %v10811_v9, %v4196_v19  ;;  %v10835_v13 = vpop.f32.mrf.mxu1 }
 0x423   : > { %v10813_v22 = vpop.f32.mrf.mxu0  ;;  %v10836_v20 = vadd.f32 %v10835_v13, %v10834_v30 }
 0x424   : > { %18171 = vst [vmem:[#allocation44_spill] sm:$0xff] %v14763_v43  ;;  %v10814_v18 = vadd.f32 %v10813_v22, %v10812_v3  ;;  %v10837_v23 = vpop.f32.mrf.mxu1 }
 0x425   : > { %v4401_v63 = vadd.f32 %v10836_v20, %v14538_v34  ;;  %v10943_v46 = vpop.f32.mrf.mxu0 }
 0x426   : > { %v14768_v44 = vadd.f32 %v10814_v18, %v4199_v31  ;;  %v10838_v40 = vpop.f32.mrf.mxu1 }
 0x427   : > { %v10839_v37 = vadd.f32 %v10838_v40, %v10837_v23  ;;  %v10944_v12 = vpop.f32.mrf.mxu0 }
 0x428   : > { %18173 = vst [vmem:[#allocation45_spill] sm:$0xff] %v14768_v44  ;;  %v10945_v42 = vadd.f32 %v10944_v12, %v10943_v46  ;;  %v10840_v36 = vpop.f32.mrf.mxu1 }
 0x429   : > { %v14771_v49 = vadd.f32 %v10839_v37, %v14541_v4  ;;  %v10946_v55 = vpop.f32.mrf.mxu0 }
 0x42a   : > { %v10841_v56 = vpop.f32.mrf.mxu1  ;;  %v14773_v45 = vadd.f32 %v10945_v42, %v4398_v14 }
 0x42b   : > { %v10842_v39 = vadd.f32 %v10841_v56, %v10840_v36  ;;  %v10947_v33 = vpop.f32.mrf.mxu0 }
 0x42c   : > { %v10948_v58 = vadd.f32 %v10947_v33, %v10946_v55  ;;  %v10843_v32 = vpop.f32.mrf.mxu1 }
 0x42d   : > { %v14776_v34 = vadd.f32 %v10842_v39, %v14546_v28  ;;  %v14778_v29 = vpop.f32.mrf.mxu0 }
 0x42e   : > { %v10844_v53 = vpop.f32.mrf.mxu1  ;;  %v14780_v2 = vadd.f32 %v10948_v58, %v4401_v63 }
 0x42f   : > { %v10845_v19 = vadd.f32 %v10844_v53, %v10843_v32  ;;  %v14782_v59 = vpop.f32.mrf.mxu0 }
 0x430   : > { %v10846_v4 = vpop.f32.mrf.mxu1 }
 0x431   : > { %v4414_v9 = vadd.f32 %v10845_v19, %v14549_v54  ;;  %v14785_v30 = vpop.f32.mrf.mxu0 }
 0x432   : > { %v10847_v26 = vpop.f32.mrf.mxu1 }
 0x433   : > { %v10848_v14 = vadd.f32 %v10847_v26, %v10846_v4  ;;  %v14787_v3 = vpop.f32.mrf.mxu0 }
 0x434   : > { %v10849_v13 = vpop.f32.mrf.mxu1 }
 0x435   : > { %v14790_v28 = vadd.f32 %v10848_v14, %v14554_v61  ;;  %v10955_v22 = vpop.f32.mrf.mxu0 }
 0x436   : > { %v10850_v20 = vpop.f32.mrf.mxu1 }
 0x437   : > { %v10851_v17 = vadd.f32 %v10850_v20, %v10849_v13  ;;  %v10956_v31 = vpop.f32.mrf.mxu0 }
 0x438   : > { %v10957_v18 = vadd.f32 %v10956_v31, %v10955_v22  ;;  %v10852_v23 = vpop.f32.mrf.mxu1 }
 0x439   : > { %v14793_v63 = vadd.f32 %v10851_v17, %v14557_v52  ;;  %v14795_v54 = vpop.f32.mrf.mxu0 }
 0x43a   : > { %v10853_v46 = vpop.f32.mrf.mxu1  ;;  %v14797_v40 = vadd.f32 %v10957_v18, %v4414_v9 }
 0x43b   : > { %v10854_v37 = vadd.f32 %v10853_v46, %v10852_v23  ;;  %v14799_v12 = vpop.f32.mrf.mxu0 }
 0x43c   : > { %v10855_v42 = vpop.f32.mrf.mxu1 }
 0x43d   : > { %v14802_v61 = vadd.f32 %v10854_v37, %v14562_v57  ;;  %v14804_v36 = vpop.f32.mrf.mxu0 }
 0x43e   : > { %v10856_v55 = vpop.f32.mrf.mxu1 }
 0x43f   : > { %v10857_v56 = vadd.f32 %v10856_v55, %v10855_v42  ;;  %v14806_v39 = vpop.f32.mrf.mxu0 }
 0x440   : > { %v10858_v52 = vpop.f32.mrf.mxu1 }
 0x441   : > { %v14809_v33 = vadd.f32 %v10857_v56, %v14565_v47  ;;  %v14811_v58 = vpop.f32.mrf.mxu0 }
 0x442   : > { %v10859_v32 = vpop.f32.mrf.mxu1 }
 0x443   : > { %v10860_v53 = vadd.f32 %v10859_v32, %v10858_v52  ;;  %v14813_v19 = vpop.f32.mrf.mxu0 }
 0x444   : > { %v10861_v4 = vpop.f32.mrf.mxu1 }
 0x445   : > { %v14816_v57 = vadd.f32 %v10860_v53, %v14572_v11  ;;  %v14818_v9 = vpop.f32.mrf.mxu0 }
 0x446   : > { %v10862_v26 = vpop.f32.mrf.mxu1 }
 0x447   : > { %v10863_v14 = vadd.f32 %v10862_v26, %v10861_v4  ;;  %v14820_v13 = vpop.f32.mrf.mxu0 }
 0x448   : > { %v10864_v22 = vpop.f32.mrf.mxu1 }
 0x449   : > { %v14823_v47 = vadd.f32 %v10863_v14, %v14575_v27  ;;  %v14825_v20 = vpop.f32.mrf.mxu0 }
 0x44a   : > { %v10865_v17 = vpop.f32.mrf.mxu1 }
 0x44b   : > { %v10866_v31 = vadd.f32 %v10865_v17, %v10864_v22  ;;  %v14827_v18 = vpop.f32.mrf.mxu0 }
 0x44c   : > { %v10867_v23 = vpop.f32.mrf.mxu1 }
 0x44d   : > { %v14830_v11 = vadd.f32 %v10866_v31, %v14579_v16  ;;  %v14832_v46 = vpop.f32.mrf.mxu0 }
 0x44e   : > { %v10868_v37 = vpop.f32.mrf.mxu1 }
 0x44f   : > { %v10869_v42 = vadd.f32 %v10868_v37, %v10867_v23  ;;  %v14834_v55 = vpop.f32.mrf.mxu0 }
 0x450   : > { %v10870_v56 = vpop.f32.mrf.mxu1 }
 0x451   : > { %v14837_v27 = vadd.f32 %v10869_v42, %v14586_v5  ;;  %v14839_v52 = vpop.f32.mrf.mxu0 }
 0x452   : > { %v10871_v32 = vpop.f32.mrf.mxu1 }
 0x453   : > { %18174 = vst [vmem:[#allocation46_spill] sm:$0xff] %v14837_v27  ;;  %v10872_v53 = vadd.f32 %v10871_v32, %v10870_v56  ;;  %v14841_v4 = vpop.f32.mrf.mxu0 }
 0x454   : > { %v10873_v26 = vpop.f32.mrf.mxu1 }
 0x455   : > { %v14844_v16 = vadd.f32 %v10872_v53, %v14589_v7  ;;  %v14846_v14 = vpop.f32.mrf.mxu0 }
 0x456   : > { %v10874_v22 = vpop.f32.mrf.mxu1 }
 0x457   : > { %18175 = vst [vmem:[#allocation47_spill] sm:$0xff] %v14844_v16  ;;  %v10875_v17 = vadd.f32 %v10874_v22, %v10873_v26  ;;  %v14848_v31 = vpop.f32.mrf.mxu0 }
 0x458   : > { %v10876_v23 = vpop.f32.mrf.mxu1 }
 0x459   : > { %v14851_v5 = vadd.f32 %v10875_v17, %v14592_v48  ;;  %v14853_v37 = vpop.f32.mrf.mxu0 }
 0x45a   : > { %18176 = vst [vmem:[#allocation48_spill] sm:$0xff] %v14853_v37  ;;  %v10877_v42 = vpop.f32.mrf.mxu1 }
 0x45b   : > { %v10878_v56 = vadd.f32 %v10877_v42, %v10876_v23  ;;  %v14855_v32 = vpop.f32.mrf.mxu0 }
 0x45c   : > { %18177 = vst [vmem:[#allocation49_spill] sm:$0xff] %v14855_v32  ;;  %v10879_v6 = vpop.f32.mrf.mxu1 }
 0x45d   : > { %v14858_v7 = vadd.f32 %v10878_v56, %v14595_v8  ;;  %v14860_v53 = vpop.f32.mrf.mxu0 }
 0x45e   : > { %v10880_v44 = vpop.f32.mrf.mxu1 }
 0x45f   : > { %18178 = vst [vmem:[#allocation50_spill] sm:$0xff] %v14858_v7  ;;  %v10881_v26 = vadd.f32 %v10880_v44, %v10879_v6  ;;  %v14862_v22 = vpop.f32.mrf.mxu0 }
 0x460   : > { %v10882_v43 = vpop.f32.mrf.mxu1 }
 0x461   : > { %v14865_v48 = vadd.f32 %v10881_v26, %v14598_v62  ;;  %v14867_v17 = vpop.f32.mrf.mxu0 }
 0x462   : > { %v10883_v16 = vpop.f32.mrf.mxu1 }
 0x463   : > { %18179 = vst [vmem:[#allocation51_spill] sm:$0xff] %v14865_v48  ;;  %v10884_v23 = vadd.f32 %v10883_v16, %v10882_v43  ;;  %v14869_v42 = vpop.f32.mrf.mxu0 }
 0x464   : > { %v10885_v27 = vpop.f32.mrf.mxu1 }
 0x465   : > { %v14872_v8 = vadd.f32 %v10884_v23, %v14601_v35  ;;  %v14874_v56 = vpop.f32.mrf.mxu0 }
 0x466   : > { %18181 = vst [vmem:[#allocation53_spill] sm:$0xff] %v14874_v56  ;;  %v10886_v7 = vpop.f32.mrf.mxu1 }
 0x467   : > { %18180 = vst [vmem:[#allocation52_spill] sm:$0xff] %v14872_v8  ;;  %v10887_v6 = vadd.f32 %v10886_v7, %v10885_v27  ;;  %v14876_v44 = vpop.f32.mrf.mxu0 }
 0x468   : > { %18182 = vst [vmem:[#allocation11_spill] sm:$0xff] %v14876_v44  ;;  %v10888_v32 = vpop.f32.mrf.mxu1 }
 0x469   : > { %v14879_v62 = vadd.f32 %v10887_v6, %v14604_v51  ;;  %v14881_v26 = vpop.f32.mrf.mxu0 }
 0x46a   : > { %18184 = vst [vmem:[#allocation13_spill] sm:$0xff] %v14881_v26  ;;  %v10889_v48 = vpop.f32.mrf.mxu1 }
 0x46b   : > { %18183 = vst [vmem:[#allocation12_spill] sm:$0xff] %v14879_v62  ;;  %v10890_v43 = vadd.f32 %v10889_v48, %v10888_v32  ;;  %v14883_v16 = vpop.f32.mrf.mxu0 }
 0x46c   : > { %18185 = vst [vmem:[#allocation14_spill] sm:$0xff] %v14883_v16  ;;  %v10891_v37 = vpop.f32.mrf.mxu1 }
 0x46d   : > { %v14886_v35 = vadd.f32 %v10890_v43, %v14607_v15  ;;  %v14888_v23 = vpop.f32.mrf.mxu0 }
 0x46e   : > { %v10892_v8 = vpop.f32.mrf.mxu1 }
 0x46f   : > { %18186 = vst [vmem:[#allocation15_spill] sm:$0xff] %v14886_v35  ;;  %v10893_v27 = vadd.f32 %v10892_v8, %v10891_v37  ;;  %v14890_v7 = vpop.f32.mrf.mxu0 }
 0x470   : > { %v10894_v44 = vpop.f32.mrf.mxu1 }
 0x471   : > { %v14893_v51 = vadd.f32 %v10893_v27, %v14610_v38  ;;  %v14895_v6 = vpop.f32.mrf.mxu0 }
 0x472   : > { %v10895_v26 = vpop.f32.mrf.mxu1 }
 0x473   : > { %18187 = vst [vmem:[#allocation16_spill] sm:$0xff] %v14893_v51  ;;  %v10896_v32 = vadd.f32 %v10895_v26, %v10894_v44  ;;  %v14897_v48 = vpop.f32.mrf.mxu0 }
 0x474   : > { %v10897_v16 = vpop.f32.mrf.mxu1 }
 0x475   : > { %v14900_v15 = vadd.f32 %v10896_v32, %v14613_v25  ;;  %v14902_v43 = vpop.f32.mrf.mxu0 }
 0x476   : > { %18189 = vst [vmem:[#allocation18_spill] sm:$0xff] %v14902_v43  ;;  %v10898_v35 = vpop.f32.mrf.mxu1 }
 0x477   : > { %18188 = vst [vmem:[#allocation17_spill] sm:$0xff] %v14900_v15  ;;  %v10899_v37 = vadd.f32 %v10898_v35, %v10897_v16  ;;  %v14904_v8 = vpop.f32.mrf.mxu0 }
 0x478   : > { %18190 = vst [vmem:[#allocation19_spill] sm:$0xff] %v14904_v8  ;;  %v10900_v62 = vpop.f32.mrf.mxu1 }
 0x479   : > { %v14907_v38 = vadd.f32 %v10899_v37, %v14616_v1  ;;  %v14909_v56 = vpop.f32.mrf.mxu0 }
 0x47a   : > { %v10901_v27 = vpop.f32.mrf.mxu1  ;;  %18191 = vst [vmem:[#allocation20_spill] sm:$0xff] %v14909_v56 }
 0x47b   : > { %v10902_v51 = vadd.f32 %v10901_v27, %v10900_v62  ;;  %v14914_v15 = vpop.f32.mrf.mxu0 }
 0x47c   : > { %v10903_v44 = vpop.f32.mrf.mxu1 }
 0x47d   : > { %v14912_v26 = vadd.f32 %v10902_v51, %v14619_v60  ;;  %v14919_v1 = vpop.f32.mrf.mxu0 }
 0x47e   : > { %v10904_v25 = vpop.f32.mrf.mxu1 }
 0x47f   : > { %18192 = vst [vmem:[#allocation21_spill] sm:$0xff] %v14912_v26  ;;  %v10905_v32 = vadd.f32 %v10904_v25, %v10903_v44  ;;  %v14924_v60 = vpop.f32.mrf.mxu0 }
 0x480   : > { %v10906_v43 = vpop.f32.mrf.mxu1 }
 0x481   : > { %v14917_v16 = vadd.f32 %v10905_v32, %v14622_v21  ;;  %v14929_v21 = vpop.f32.mrf.mxu0 }
 0x482   : > { %v10907_v35 = vpop.f32.mrf.mxu1 }
 0x483   : > { %18193 = vst [vmem:[#allocation22_spill] sm:$0xff] %v14917_v16  ;;  %v10908_v8 = vadd.f32 %v10907_v35, %v10906_v43 }
 0x484   : > { %v10909_v37 = vpop.f32.mrf.mxu1 }
 0x485   : > { %v14922_v62 = vadd.f32 %v10908_v8, %v14626_v0  ;;  %v14934_v0 = vpop.f32.mrf.mxu0 }
 0x486   : > { %v10910_v27 = vpop.f32.mrf.mxu1 }
 0x487   : > { %18194 = vst [vmem:[#allocation23_spill] sm:$0xff] %v14922_v62  ;;  %v10911_v56 = vadd.f32 %v10910_v27, %v10909_v37 }
 0x488   : > { %v10912_v51 = vpop.f32.mrf.mxu1 }
 0x489   : > { %v14927_v44 = vadd.f32 %v10911_v56, %v14633_v10  ;;  %v14939_v10 = vpop.f32.mrf.mxu0 }
 0x48a   : > { %v10913_v25 = vpop.f32.mrf.mxu1 }
 0x48b   : > { %v10914_v26 = vadd.f32 %v10913_v25, %v10912_v51 }
 0x48c   : > { %v10915_v32 = vpop.f32.mrf.mxu1 }
 0x48d   : > { %v14932_v43 = vadd.f32 %v10914_v26, %v14640_v50  ;;  %v10951_v50 = vadd.f32 %v14782_v59, %v14778_v29  ;;  %v14950_v26 = vpop.f32.mrf.mxu0 }
 0x48e   : > { %v10916_v35 = vpop.f32.mrf.mxu1 }
 0x48f   : > { %v10917_v16 = vadd.f32 %v10916_v35, %v10915_v32  ;;  %v4567_v35 = vadd.f32 %v10951_v50, %v14771_v49  ;;  %v10963_v49 = vadd.f32 %v14806_v39, %v14804_v36 }
 0x490   : > { %v10918_v8 = vpop.f32.mrf.mxu1 }
 0x491   : > { %v14937_v37 = vadd.f32 %v10917_v16, %v14755_v41  ;;  %v10954_v16 = vadd.f32 %v14787_v3, %v14785_v30  ;;  %v4583_v36 = vadd.f32 %v10963_v49, %v14793_v63  ;;  %v10978_v49 = vadd.f32 %v14841_v4, %v14839_v52 }
 0x492   : > { %v10919_v27 = vpop.f32.mrf.mxu1 }
 0x493   : > { %v10920_v62 = vadd.f32 %v10919_v27, %v10918_v8  ;;  %v14959_v8 = vpop.f32.mrf.mxu0  ;;  %v4570_v29 = vadd.f32 %v10954_v16, %v14776_v34  ;;  %v4602_v4 = vadd.f32 %v10978_v49, %v14830_v11 }
 0x494   : > { %v14941_v56 = vpop.f32.mrf.mxu1 }
 0x495   : > { %v14944_v51 = vadd.f32 %v10920_v62, %v14758_v24  ;;  %v14969_v59 = vpop.f32.mrf.mxu0 }
 0x496   : > { %v14946_v25 = vpop.f32.mrf.mxu1 }
 0x497   : > { %18195 = vst [vmem:[#allocation24_spill] sm:$0xff] %v14944_v51  ;;  %v14984_v34 = vpop.f32.mrf.mxu0 }
 0x498   : > { %v14952_v32 = vpop.f32.mrf.mxu1 }
 0x49a   : > { %v14954_v41 = vpop.f32.mrf.mxu1 }
 0x49c   : > { %v11407_v24 = vpop.f32.mrf.mxu1 }
 0x49d   : > { %v14961_v62 = vadd.f32 %v11407_v24, %v4567_v35  ;;  %v10960_v24 = vadd.f32 %v14799_v12, %v14795_v54 }
 0x49e   : > { %v4719_v27 = vpop.f32.mrf.mxu1 }
 0x49f   : > { %v14964_v51 = vadd.f32 %v4719_v27, %v14773_v45  ;;  %4882 = vrot.lane.b32.xlu1 %v14961_v62, %s12824_s14  ;;  %v10966_v45 = vadd.f32 %v14813_v19, %v14811_v58  ;;  %v14994_v58 = vpop.f32.mrf.mxu0  ;;  %v4578_v12 = vadd.f32 %v10960_v24, %v14790_v28  ;;  %v10972_v28 = vadd.f32 %v14827_v18, %v14825_v20 }
 0x4a0   : > { %v11408_v30 = vpop.f32.mrf.mxu1  ;;  %v10990_v18 = vadd.f32 %v14869_v42, %v14867_v17  ;;  %v18196_v42 = vld [vmem:[#allocation48_spill] sm:$0xff] }
 0x4a1   : > { %v14973_v3 = vadd.f32 %v11408_v30, %v4570_v29  ;;  %4878 = vrot.lane.b32.xlu0 %v14964_v51, %s12824_s14  ;;  %v10975_v29 = vadd.f32 %v14834_v55, %v14832_v46  ;;  %v10969_v55 = vadd.f32 %v14820_v13, %v14818_v9  ;;  %v10987_v13 = vadd.f32 %v14862_v22, %v14860_v53 }
 0x4a2   : > { %v4722_v50 = vpop.f32.mrf.mxu1  ;;  %v4594_v11 = vadd.f32 %v10972_v28, %v14816_v57 }
 0x4a3   : > { %v14980_v35 = vadd.f32 %v4722_v50, %v14780_v2  ;;  %4884 = vrot.lane.b32.xlu1 %v14973_v3, %s12824_s14  ;;  %v4586_v2 = vadd.f32 %v10966_v45, %v14802_v61  ;;  %v15010_v61 = vpop.f32.mrf.mxu0  ;;  %v4599_v45 = vadd.f32 %v10975_v29, %v14823_v47  ;;  %v4591_v47 = vadd.f32 %v10969_v55, %v14809_v33 }
 0x4a4   : > { %v11411_v16 = vpop.f32.mrf.mxu1  ;;  %v10981_v33 = vadd.f32 %v14848_v31, %v14846_v14  ;;  %v10999_v31 = vadd.f32 %v14890_v7, %v14888_v23  ;;  %v18201_v7 = vld [vmem:[#allocation53_spill] sm:$0xff] }
 0x4a5   : > { %4880 = vrot.lane.b32.xlu0 %v14980_v35, %s12824_s14  ;;  %v14991_v27 = vadd.f32 %v11411_v16, %v4583_v36  ;;  %v15026_v16 = vpop.f32.mrf.mxu0 }
 0x4a6   : > { %v4735_v39 = vpop.f32.mrf.mxu1 }
 0x4a7   : > { %v15005_v54 = vadd.f32 %v4735_v39, %v14797_v40  ;;  %v15042_v24 = vpop.f32.mrf.mxu0 }
 0x4a8   : > { %v11412_v19 = vpop.f32.mrf.mxu1 }
 0x4a9   : > { %v14998_v30 = vadd.f32 %v11412_v19, %v4586_v2  ;;  %4890 = vrot.lane.b32.xlu0 %v14991_v27, %s12824_s14  ;;  %v4615_v2 = vadd.f32 %v10987_v13, %v14851_v5  ;;  %v18197_v19 = vld [vmem:[#allocation49_spill] sm:$0xff]  ;;  %v18199_v5 = vld [vmem:[#allocation46_spill] sm:$0xff] }
 0x4aa   : > { %v4738_v63 = vpop.f32.mrf.mxu1  ;;  %v10984_v57 = vadd.f32 %v18197_v19, %v18196_v42  ;;  %v18206_v42 = vld [vmem:[#allocation15_spill] sm:$0xff] }
 0x4ab   : > { %4892 = vrot.lane.b32.xlu1 %v14998_v30, %s12824_s14  ;;  %v15014_v50 = vadd.f32 %v4738_v63, %v4578_v12  ;;  %v18198_v63 = vld [vmem:[#allocation50_spill] sm:$0xff]  ;;  %v15058_v12 = vpop.f32.mrf.mxu0 }
 0x4ac   : > { %v11415_v46 = vpop.f32.mrf.mxu1  ;;  %v4618_v49 = vadd.f32 %v10990_v18, %v18198_v63 }
 0x4ad   : > { %4886 = vrot.lane.b32.xlu0 %v15005_v54, %s12824_s14  ;;  %v15021_v52 = vadd.f32 %v11415_v46, %v4599_v45  ;;  %v4607_v46 = vadd.f32 %v10981_v33, %v18199_v5  ;;  %v15074_v13 = vpop.f32.mrf.mxu0  ;;  %v18205_v33 = vld [vmem:[#allocation14_spill] sm:$0xff] }
 0x4ae   : > { %v4751_v40 = vpop.f32.mrf.mxu1 }
 0x4af   : > { %4888 = vrot.lane.b32.xlu1 %v15014_v50, %s12824_s14  ;;  %v15037_v39 = vadd.f32 %v4751_v40, %v4591_v47  ;;  %v11002_v40 = vadd.f32 %v14897_v48, %v14895_v6  ;;  %v18202_v47 = vld [vmem:[#allocation11_spill] sm:$0xff]  ;;  %v18204_v48 = vld [vmem:[#allocation13_spill] sm:$0xff] }
 0x4b0   : > { %v11416_v9 = vpop.f32.mrf.mxu1 }
 0x4b1   : > { %v15031_v36 = vadd.f32 %v11416_v9, %v4602_v4  ;;  %4898 = vrot.lane.b32.xlu0 %v15021_v52, %s12824_s14  ;;  %v18200_v4 = vld [vmem:[#allocation47_spill] sm:$0xff]  ;;  %v4634_v19 = vadd.f32 %v11002_v40, %v18206_v42  ;;  %v18208_v40 = vld [vmem:[#allocation52_spill] sm:$0xff] }
 0x4b2   : > { %v4754_v20 = vpop.f32.mrf.mxu1  ;;  %v4610_v9 = vadd.f32 %v10984_v57, %v18200_v4  ;;  %v15090_v57 = vpop.f32.mrf.mxu0 }
 0x4b3   : > { %4900 = vrot.lane.b32.xlu1 %v15031_v36, %s12824_s14  ;;  %v15046_v22 = vadd.f32 %v4754_v20, %v4594_v11  ;;  %v10993_v20 = vadd.f32 %v18202_v47, %v18201_v7  ;;  %v18203_v11 = vld [vmem:[#allocation12_spill] sm:$0xff]  ;;  %v18210_v7 = vld [vmem:[#allocation19_spill] sm:$0xff] }
 0x4b4   : > { %v11419_v53 = vpop.f32.mrf.mxu1 }
 0x4b5   : > { %4894 = vrot.lane.b32.xlu0 %v15037_v39, %s12824_s14  ;;  %v15053_v29 = vadd.f32 %v11419_v53, %v4615_v2  ;;  %v4631_v53 = vadd.f32 %v10999_v31, %v18203_v11  ;;  %v10996_v2 = vadd.f32 %v18205_v33, %v18204_v48  ;;  %v18212_v48 = vld [vmem:[#allocation21_spill] sm:$0xff] }
 0x4b6   : > { %v4767_v17 = vpop.f32.mrf.mxu1 }
 0x4b7   : > { %4896 = vrot.lane.b32.xlu1 %v15046_v22, %s12824_s14  ;;  %v15069_v28 = vadd.f32 %v4767_v17, %v4607_v46 }
 0x4b8   : > { %v11420_v14 = vpop.f32.mrf.mxu1 }
 0x4b9   : > { %v15063_v55 = vadd.f32 %v11420_v14, %v4618_v49  ;;  %4906 = vrot.lane.b32.xlu0 %v15053_v29, %s12824_s14  ;;  %v11011_v49 = vadd.f32 %v14924_v60, %v14919_v1  ;;  %v18207_v14 = vld [vmem:[#allocation51_spill] sm:$0xff]  ;;  %v18209_v60 = vld [vmem:[#allocation18_spill] sm:$0xff] }
 0x4ba   : > { %v4770_v45 = vpop.f32.mrf.mxu1  ;;  %v4623_v31 = vadd.f32 %v10993_v20, %v18207_v14  ;;  %v11005_v47 = vadd.f32 %v18210_v7, %v18209_v60  ;;  %v11026_v14 = vadd.f32 %v15026_v16, %v15010_v61  ;;  %v11020_v16 = vadd.f32 %v14969_v59, %v14959_v8 }
 0x4bb   : > { %4908 = vrot.lane.b32.xlu1 %v15063_v55, %s12824_s14  ;;  %v15078_v18 = vadd.f32 %v4770_v45, %v4610_v9  ;;  %v11014_v45 = vadd.f32 %v14934_v0, %v14929_v21  ;;  %v4626_v9 = vadd.f32 %v10996_v2, %v18208_v40  ;;  %v4647_v11 = vadd.f32 %v11011_v49, %v14907_v38  ;;  %v18211_v0 = vld [vmem:[#allocation20_spill] sm:$0xff] }
 0x4bc   : > { %v11423_v23 = vpop.f32.mrf.mxu1  ;;  %v18213_v38 = vld [vmem:[#allocation16_spill] sm:$0xff]  ;;  %v10923_v60 = vadd.f32 %v14946_v25, %v14941_v56 }
 0x4bd   : > { %4902 = vrot.lane.b32.xlu0 %v15069_v28, %s12824_s14  ;;  %v15085_v17 = vadd.f32 %v11423_v23, %v4631_v53  ;;  %v11033_v23 = vpop.f32.mrf.mxu0  ;;  %v11008_v53 = vadd.f32 %v14914_v15, %v18211_v0  ;;  %v4650_v33 = vadd.f32 %v11014_v45, %v18212_v48  ;;  %v18216_v25 = vld [vmem:[#allocation44_spill] sm:$0xff] }
 0x4be   : > { %v4783_v6 = vpop.f32.mrf.mxu1  ;;  %v4518_v8 = vadd.f32 %v10923_v60, %v18216_v25 }
 0x4bf   : > { %4904 = vrot.lane.b32.xlu1 %v15078_v18, %s12824_s14  ;;  %v15101_v4 = vadd.f32 %v4783_v6, %v4623_v31  ;;  %v11034_v2 = vpop.f32.mrf.mxu0 }
 0x4c0   : > { %v11424_v63 = vpop.f32.mrf.mxu1 }
 0x4c1   : > { %v15095_v5 = vadd.f32 %v11424_v63, %v4634_v19  ;;  %4914 = vrot.lane.b32.xlu0 %v15085_v17, %s12824_s14  ;;  %v11023_v19 = vadd.f32 %v14994_v58, %v14984_v34  ;;  %v4639_v63 = vadd.f32 %v11005_v47, %v18213_v38  ;;  %v11036_v40 = vpop.f32.mrf.mxu0  ;;  %v11017_v58 = vadd.f32 %v14950_v26, %v14939_v10 }
 0x4c2   : > { %v4786_v46 = vpop.f32.mrf.mxu1  ;;  %v4666_v10 = vadd.f32 %v11026_v14, %v14932_v43  ;;  %v18217_v43 = vld [vmem:[#allocation23_spill] sm:$0xff] }
 0x4c3   : > { %4916 = vrot.lane.b32.xlu1 %v15095_v5, %s12824_s14  ;;  %v15108_v20 = vadd.f32 %v4786_v46, %v4626_v9  ;;  %v18214_v46 = vld [vmem:[#allocation17_spill] sm:$0xff]  ;;  %v11037_v26 = vpop.f32.mrf.mxu0 }
 0x4c4   : > { %v11427_v1 = vpop.f32.mrf.mxu1  ;;  %v4642_v45 = vadd.f32 %v11008_v53, %v18214_v46  ;;  %v11038_v59 = vadd.f32 %v11037_v26, %v11036_v40 }
 0x4c5   : > { %4910 = vrot.lane.b32.xlu0 %v15101_v4, %s12824_s14  ;;  %v15115_v6 = vadd.f32 %v11427_v1, %v4647_v11  ;;  %v4663_v1 = vadd.f32 %v11023_v19, %v14927_v44  ;;  %v10926_v44 = vadd.f32 %v14954_v41, %v14952_v32  ;;  %v11035_v11 = vadd.f32 %v11034_v2, %v11033_v23  ;;  %v18218_v23 = vld [vmem:[#allocation45_spill] sm:$0xff] }
 0x4c6   : > { %v4799_v21 = vpop.f32.mrf.mxu1  ;;  %v11029_v41 = vadd.f32 %v15058_v12, %v15042_v24 }
 0x4c7   : > { %4912 = vrot.lane.b32.xlu1 %v15108_v20, %s12824_s14  ;;  %v15129_v31 = vadd.f32 %v4799_v21, %v4639_v63  ;;  %v18215_v21 = vld [vmem:[#allocation22_spill] sm:$0xff]  ;;  %v4521_v2 = vadd.f32 %v10926_v44, %v18218_v23  ;;  %v4679_v19 = vadd.f32 %v11035_v11, %v4518_v8  ;;  %v11032_v63 = vadd.f32 %v15090_v57, %v15074_v13 }
 0x4c8   : > { %v11428_v42 = vpop.f32.mrf.mxu1  ;;  %v4655_v0 = vadd.f32 %v11017_v58, %v18215_v21  ;;  %v4671_v24 = vadd.f32 %v11029_v41, %v14937_v37  ;;  %v15192_v37 = vpop.permute.xlu1 %11597 }
 0x4c9   : > { %v15123_v49 = vadd.f32 %v11428_v42, %v4650_v33  ;;  %4922 = vrot.lane.b32.xlu0 %v15115_v6, %s12824_s14  ;;  %v4658_v33 = vadd.f32 %v11020_v16, %v18217_v43  ;;  %v4682_v14 = vadd.f32 %v11038_v59, %v4521_v2 }
 0x4ca   : > { %v4802_v15 = vpop.f32.mrf.mxu1 }
 0x4cb   : > { %4924 = vrot.lane.b32.xlu1 %v15123_v49, %s12824_s14  ;;  %v15136_v9 = vadd.f32 %v4802_v15, %v4642_v45 }
 0x4cc   : > { %v11431_v34 = vpop.f32.mrf.mxu1  ;;  %v15194_v57 = vpop.permute.xlu1 %11602 }
 0x4cd   : > { %4918 = vrot.lane.b32.xlu0 %v15129_v31, %s12824_s14  ;;  %v15145_v7 = vadd.f32 %v11431_v34, %v4663_v1  ;;  %v18219_v34 = vld [vmem:[#allocation24_spill] sm:$0xff] }
 0x4ce   : > { %v4815_v61 = vpop.f32.mrf.mxu1  ;;  %v4674_v58 = vadd.f32 %v11032_v63, %v18219_v34 }
 0x4cf   : > { %4920 = vrot.lane.b32.xlu1 %v15136_v9, %s12824_s14  ;;  %v15158_v48 = vadd.f32 %v4815_v61, %v4655_v0 }
 0x4d0   : > { %v11432_v47 = vpop.f32.mrf.mxu1 }
 0x4d1   : > { %v15153_v53 = vadd.f32 %v11432_v47, %v4666_v10  ;;  %4930 = vrot.lane.b32.xlu0 %v15145_v7, %s12824_s14 }
 0x4d2   : > { %v4818_v56 = vpop.f32.mrf.mxu1 }
 0x4d3   : > { %4932 = vrot.lane.b32.xlu1 %v15153_v53, %s12824_s14  ;;  %v15166_v42 = vadd.f32 %v4818_v56, %v4658_v33  ;;  %v12701_v56 = vld [vmem:[%s17989_s7 + $0x80] sm:$0xff]  }
 0x4d4   : > { %v11435_v32 = vpop.f32.mrf.mxu1 }
 0x4d5   : > { %4926 = vrot.lane.b32.xlu0 %v15158_v48, %s12824_s14  ;;  %v15172_v15 = vadd.f32 %v11435_v32, %v4679_v19 }
 0x4d6   : > { %v4831_v38 = vpop.f32.mrf.mxu1 }
 0x4d7   : > { %4928 = vrot.lane.b32.xlu1 %v15166_v42, %s12824_s14  ;;  %v15181_v40 = vadd.f32 %v4831_v38, %v4671_v24 }
 0x4d8   : > { %v11436_v46 = vpop.f32.mrf.mxu1 }
 0x4d9   : > { %v15177_v12 = vadd.f32 %v11436_v46, %v4682_v14  ;;  %4938 = vrot.lane.b32.xlu0 %v15172_v15, %s12824_s14 }
 0x4da   : > { %v4834_v45 = vpop.f32.mrf.mxu1 }
 0x4db   : > { %4940 = vrot.lane.b32.xlu1 %v15177_v12, %s12824_s14  ;;  %v15186_v13 = vadd.f32 %v4834_v45, %v4674_v58 }
 0x4dd   : > { %4934 = vrot.lane.b32.xlu0 %v15181_v40, %s12824_s14 }
 0x4df   : > { %4936 = vrot.lane.b32.xlu1 %v15186_v13, %s12824_s14 }
 0x511   : > { %v4883_v1 = vpop.permute.xlu1 %4882 }
 0x512   : > { %v15197_v61 = vmax.f32 %v14961_v62, %v4883_v1 }
 0x513   : > { %v4879_v16 = vpop.permute.xlu0 %4878 }
 0x514   : > { %5042 = vrot.lane.b32.xlu0 %v15197_v61, %s12823_s19  ;;  %v15202_v10 = vmax.f32 %v14964_v51, %v4879_v16 }
 0x515   : > { %v4885_v60 = vpop.permute.xlu1 %4884 }
 0x516   : > { %v15205_v26 = vmax.f32 %v14973_v3, %v4885_v60  ;;  %v12700_v3 = vld [vmem:[%s17989_s7 + $0x88] sm:$0xff]  }
 0x517   : > { %v4881_v47 = vpop.permute.xlu0 %4880  ;;  %11437 = vmatprep.subr.bf16.mxu1 %v12700_v3 }
 0x518   : > { %5038 = vrot.lane.b32.xlu0 %v15202_v10, %s12823_s19  ;;  %5044 = vrot.lane.b32.xlu1 %v15205_v26, %s12823_s19  ;;  %v15212_v62 = vmax.f32 %v14980_v35, %v4881_v47 }
 0x519   : > { %11438 = vmatpush3.bf16.msra.mxu1 %v12700_v3 }
 0x51a   : > { %11439 = vmatprep.subr.bf16.mxu1 %v12701_v56 }
 0x51b   : > { %v4891_v44 = vpop.permute.xlu0 %4890 }
 0x51c   : > { %v15215_v11 = vmax.f32 %v14991_v27, %v4891_v44  ;;  %5040 = vrot.lane.b32.xlu1 %v15212_v62, %s12823_s19 }
 0x51d   : > { %v4893_v51 = vpop.permute.xlu1 %4892  ;;  %11440 = vmatpush3.bf16.msra.mxu1 %v12701_v56  ;;  %v12707_v56 = vld [vmem:[%s17989_s7 + $0x28] sm:$0xff]  }
 0x51e   : > { %v15223_v21 = vmax.f32 %v14998_v30, %v4893_v51  ;;  %5050 = vrot.lane.b32.xlu0 %v15215_v11, %s12823_s19 }
 0x51f   : > { %v4887_v35 = vpop.permute.xlu0 %4886 }
 0x520   : > { %v15228_v0 = vmax.f32 %v15005_v54, %v4887_v35  ;;  %5052 = vrot.lane.b32.xlu1 %v15223_v21, %s12823_s19 }
 0x521   : > { %v4889_v27 = vpop.permute.xlu1 %4888 }
 0x522   : > { %v15236_v30 = vmax.f32 %v15014_v50, %v4889_v27  ;;  %5046 = vrot.lane.b32.xlu0 %v15228_v0, %s12823_s19  ;;  %v12706_v27 = vld [vmem:[%s17989_s7 + $0x68] sm:$0xff]  }
 0x523   : > { %v4899_v25 = vpop.permute.xlu0 %4898 }
 0x524   : > { %v15241_v54 = vmax.f32 %v15021_v52, %v4899_v25  ;;  %5048 = vrot.lane.b32.xlu1 %v15236_v30, %s12823_s19  ;;  %v12708_v25 = vld [vmem:[%s17989_s7 + $0x60] sm:$0xff]  }
 0x525   : > { %v4901_v8 = vpop.permute.xlu1 %4900 }
 0x526   : > { %v15246_v59 = vmax.f32 %v15031_v36, %v4901_v8  ;;  %5058 = vrot.lane.b32.xlu0 %v15241_v54, %s12823_s19  ;;  %v12709_v8 = vld [vmem:[%s17989_s7 + $0x20] sm:$0xff]  }
 0x527   : > { %v4895_v50 = vpop.permute.xlu0 %4894 }
 0x528   : > { %v15251_v43 = vmax.f32 %v15037_v39, %v4895_v50  ;;  %5060 = vrot.lane.b32.xlu1 %v15246_v59, %s12823_s19 }
 0x529   : > { %v4897_v52 = vpop.permute.xlu1 %4896 }
 0x52a   : > { %v15256_v33 = vmax.f32 %v15046_v22, %v4897_v52  ;;  %5054 = vrot.lane.b32.xlu0 %v15251_v43, %s12823_s19 }
 0x52b   : > { %v4907_v32 = vpop.permute.xlu0 %4906 }
 0x52c   : > { %v15261_v36 = vmax.f32 %v15053_v29, %v4907_v32  ;;  %5056 = vrot.lane.b32.xlu1 %v15256_v33, %s12823_s19 }
 0x52d   : > { %v4909_v41 = vpop.permute.xlu1 %4908 }
 0x52e   : > { %v15266_v39 = vmax.f32 %v15063_v55, %v4909_v41  ;;  %5066 = vrot.lane.b32.xlu0 %v15261_v36, %s12823_s19 }
 0x52f   : > { %v4903_v23 = vpop.permute.xlu0 %4902 }
 0x530   : > { %v15271_v22 = vmax.f32 %v15069_v28, %v4903_v23  ;;  %5068 = vrot.lane.b32.xlu1 %v15266_v39, %s12823_s19 }
 0x531   : > { %v4905_v2 = vpop.permute.xlu1 %4904 }
 0x532   : > { %v15276_v29 = vmax.f32 %v15078_v18, %v4905_v2  ;;  %5062 = vrot.lane.b32.xlu0 %v15271_v22, %s12823_s19 }
 0x533   : > { %v4915_v19 = vpop.permute.xlu0 %4914 }
 0x534   : > { %v15281_v55 = vmax.f32 %v15085_v17, %v4915_v19  ;;  %5064 = vrot.lane.b32.xlu1 %v15276_v29, %s12823_s19 }
 0x535   : > { %v4917_v38 = vpop.permute.xlu1 %4916 }
 0x536   : > { %v15286_v28 = vmax.f32 %v15095_v5, %v4917_v38  ;;  %5074 = vrot.lane.b32.xlu0 %v15281_v55, %s12823_s19 }
 0x537   : > { %v4911_v63 = vpop.permute.xlu0 %4910 }
 0x538   : > { %v15291_v18 = vmax.f32 %v15101_v4, %v4911_v63  ;;  %5076 = vrot.lane.b32.xlu1 %v15286_v28, %s12823_s19 }
 0x539   : > { %v4913_v14 = vpop.permute.xlu1 %4912 }
 0x53a   : > { %v15296_v17 = vmax.f32 %v15108_v20, %v4913_v14  ;;  %5070 = vrot.lane.b32.xlu0 %v15291_v18, %s12823_s19  ;;  %v12710_v14 = vld [vmem:[%s17989_s7 + $0x58] sm:$0xff]  }
 0x53b   : > { %v4923_v46 = vpop.permute.xlu0 %4922 }
 0x53c   : > { %v15301_v5 = vmax.f32 %v15115_v6, %v4923_v46  ;;  %5072 = vrot.lane.b32.xlu1 %v15296_v17, %s12823_s19 }
 0x53d   : > { %v4925_v24 = vpop.permute.xlu1 %4924 }
 0x53e   : > { %v15306_v4 = vmax.f32 %v15123_v49, %v4925_v24  ;;  %5082 = vrot.lane.b32.xlu0 %v15301_v5, %s12823_s19 }
 0x53f   : > { %v4919_v45 = vpop.permute.xlu0 %4918 }
 0x540   : > { %v15311_v20 = vmax.f32 %v15129_v31, %v4919_v45  ;;  %5084 = vrot.lane.b32.xlu1 %v15306_v4, %s12823_s19 }
 0x541   : > { %v4921_v34 = vpop.permute.xlu1 %4920 }
 0x542   : > { %v15316_v6 = vmax.f32 %v15136_v9, %v4921_v34  ;;  %5078 = vrot.lane.b32.xlu0 %v15311_v20, %s12823_s19 }
 0x543   : > { %v4931_v58 = vpop.permute.xlu0 %4930 }
 0x544   : > { %v15321_v49 = vmax.f32 %v15145_v7, %v4931_v58  ;;  %5080 = vrot.lane.b32.xlu1 %v15316_v6, %s12823_s19 }
 0x545   : > { %v4933_v1 = vpop.permute.xlu1 %4932 }
 0x546   : > { %v15326_v31 = vmax.f32 %v15153_v53, %v4933_v1  ;;  %5090 = vrot.lane.b32.xlu0 %v15321_v49, %s12823_s19 }
 0x547   : > { %v4927_v16 = vpop.permute.xlu0 %4926 }
 0x548   : > { %v15331_v9 = vmax.f32 %v15158_v48, %v4927_v16  ;;  %5092 = vrot.lane.b32.xlu1 %v15326_v31, %s12823_s19 }
 0x549   : > { %v4929_v60 = vpop.permute.xlu1 %4928 }
 0x54a   : > { %v15336_v7 = vmax.f32 %v15166_v42, %v4929_v60  ;;  %5086 = vrot.lane.b32.xlu0 %v15331_v9, %s12823_s19 }
 0x54b   : > { %v4939_v47 = vpop.permute.xlu0 %4938 }
 0x54c   : > { %v15341_v53 = vmax.f32 %v15172_v15, %v4939_v47  ;;  %5088 = vrot.lane.b32.xlu1 %v15336_v7, %s12823_s19  ;;  %v12702_v15 = vld [vmem:[%s17989_s7 + $0x78] sm:$0xff]  }
 0x54d   : > { %v4941_v44 = vpop.permute.xlu1 %4940  ;;  %11063 = vmatprep.subr.bf16.mxu0 %v12702_v15 }
 0x54e   : > { %v15346_v48 = vmax.f32 %v15177_v12, %v4941_v44  ;;  %5098 = vrot.lane.b32.xlu0 %v15341_v53, %s12823_s19  ;;  %v12703_v12 = vld [vmem:[%s17989_s7 + $0x38] sm:$0xff]   ;;  %v12713_v44 = vld [vmem:[%s17989_s7 + $0x10] sm:$0xff]  }
 0x54f   : > { %v4935_v51 = vpop.permute.xlu0 %4934  ;;  %11064 = vmatpush3.bf16.msra.mxu0 %v12703_v12 }
 0x550   : > { %v15351_v42 = vmax.f32 %v15181_v40, %v4935_v51  ;;  %5100 = vrot.lane.b32.xlu1 %v15346_v48, %s12823_s19  ;;  %v12704_v40 = vld [vmem:[%s17989_s7 + $0x70] sm:$0xff]  }
 0x551   : > { %v4937_v3 = vpop.permute.xlu1 %4936  ;;  %11065 = vmatprep.subr.bf16.mxu0 %v12704_v40 }
 0x552   : > { %v15359_v35 = vmax.f32 %v15186_v13, %v4937_v3  ;;  %5094 = vrot.lane.b32.xlu0 %v15351_v42, %s12823_s19  ;;  %v12705_v13 = vld [vmem:[%s17989_s7 + $0x30] sm:$0xff]  }
 0x553   : > { %11066 = vmatpush3.bf16.msra.mxu0 %v12705_v13 }
 0x554   : > { %5096 = vrot.lane.b32.xlu1 %v15359_v35, %s12823_s19  ;;  %11067 = vmatprep.subr.bf16.mxu0 %v12706_v27  ;;  %v12715_v27 = vld [vmem:[%s17989_s7 + $0x8] sm:$0xff]  }
 0x557   : > { %11068 = vmatpush3.bf16.msra.mxu0 %v12707_v56 }
 0x558   : > { %11069 = vmatprep.subr.bf16.mxu0 %v12708_v25 }
 0x55b   : > { %11070 = vmatpush3.bf16.msra.mxu0 %v12709_v8  ;;  %v12717_v8 = vld [vmem:[%s17989_s7] sm:$0xff]  }
 0x55c   : > { %11071 = vmatprep.subr.bf16.mxu0 %v12710_v14 }
 0x586   : > { %v5043_v50 = vpop.permute.xlu0 %5042 }
 0x587   : > { %v5136_v52 = vmax.f32 %v15197_v61, %v5043_v50 }
 0x589   : > { %5169 = vst.msk [vmem:[#allocation3 + $0x31] sm:$0xff] %vm582_vm0, %v5136_v52 }
 0x58a   : > { %v5039_v32 = vpop.permute.xlu0 %5038  ;;  %v5045_v41 = vpop.permute.xlu1 %5044 }
 0x58b   : > { %v5134_v23 = vmax.f32 %v15202_v10, %v5039_v32  ;;  %v5137_v2 = vmax.f32 %v15205_v26, %v5045_v41  ;;  %v12711_v10 = vld [vmem:[%s17989_s7 + $0x18] sm:$0xff]  }
 0x58c   : > { %11072 = vmatpush3.bf16.msra.mxu0 %v12711_v10 }
 0x58d   : > { %5167 = vst.msk [vmem:[#allocation3 + $0x19] sm:$0xff] %vm582_vm0, %v5134_v23  ;;  %5170 = vst.msk [vmem:[#allocation3 + $0x39] sm:$0xff] %vm582_vm0, %v5137_v2 }
 0x58e   : > { %v5041_v19 = vpop.permute.xlu1 %5040 }
 0x58f   : > { %v5135_v38 = vmax.f32 %v15212_v62, %v5041_v19 }
 0x590   : > { %v5051_v63 = vpop.permute.xlu0 %5050  ;;  %v15403_v24 = vld [vmem:[#allocation3 + $0x30] sm:$0xff] }
 0x591   : > { %5168 = vst.msk [vmem:[#allocation3 + $0x21] sm:$0xff] %vm582_vm0, %v5135_v38  ;;  %v5140_v61 = vmax.f32 %v15215_v11, %v5051_v63  ;;  %v15424_v15 = vld [vmem:[#allocation3 + $0x31] sm:$0xff] }
 0x592   : > { %v5053_v26 = vpop.permute.xlu1 %5052 }
 0x593   : > { %5173 = vst.msk [vmem:[#allocation3 + $0x61] sm:$0xff] %vm582_vm0, %v5140_v61  ;;  %v5141_v46 = vmax.f32 %v15223_v21, %v5053_v26  ;;  %v12712_v21 = vld [vmem:[%s17989_s7 + $0x50] sm:$0xff]  }
 0x594   : > { %v5047_v62 = vpop.permute.xlu0 %5046  ;;  %v5456_v45 = vld [vmem:[#allocation3 + $0x32] sm:$0xff]  ;;  %v5457_v34 = vld [vmem:[#allocation3 + $0x3a] sm:$0xff]  ;;  %11073 = vmatprep.subr.bf16.mxu0 %v12712_v21 }
 0x595   : > { %v15405_v11 = vld [vmem:[#allocation3 + $0x38] sm:$0xff]  ;;  %5174 = vst.msk [vmem:[#allocation3 + $0x69] sm:$0xff] %vm582_vm0, %v5141_v46  ;;  %v5138_v58 = vmax.f32 %v15228_v0, %v5047_v62  ;;  %v6452_v1 = vpack.c.bf16 %v5457_v34, %v5456_v45  ;;  %11074 = vmatpush3.bf16.msra.mxu0 %v12713_v44  ;;  %v11616_v25 = vpack.i.bf16 %v5457_v34, %v5456_v45 }
 0x596   : > { %v11606_v16 = vpack.i.bf16 %v15405_v11, %v15403_v24  ;;  %v5049_v60 = vpop.permute.xlu1 %5048  ;;  %v15411_v47 = vld [vmem:[#allocation3 + $0x39] sm:$0xff] }
 0x597   : > { %5171 = vst.msk [vmem:[#allocation3 + $0x49] sm:$0xff] %vm582_vm0, %v5138_v58  ;;  %v5139_v51 = vmax.f32 %v15236_v30, %v5049_v60  ;;  %11441 = vmatprep.mubr.msk.bf16.mxu1 %vm582_vm0, %v6452_v1  ;;  %v11611_v12 = vpack.i.bf16 %v15411_v47, %v15424_v15  ;;  %v12714_v30 = vld [vmem:[%s17989_s7 + $0x48] sm:$0xff]  }
 0x598   : > { %11607 = vrot.lane.b32.xlu0 %v11606_v16, %s12823_s19  ;;  %11622 = vrot.lane.b32.xlu1 %v11606_v16, %s12824_s14  ;;  %v5059_v0 = vpop.permute.xlu0 %5058  ;;  %v5359_v52 = vld [vmem:[#allocation3 + $0x1a] sm:$0xff]  ;;  %v5360_v32 = vld [vmem:[#allocation3 + $0x22] sm:$0xff] }
 0x599   : > { %5172 = vst.msk [vmem:[#allocation3 + $0x51] sm:$0xff] %vm582_vm0, %v5139_v51  ;;  %v5144_v3 = vmax.f32 %v15241_v54, %v5059_v0  ;;  %11075 = vmatprep.subr.bf16.mxu0 %v12714_v30  ;;  %v11636_v14 = vpack.i.bf16 %v5360_v32, %v5359_v52  ;;  %v15480_v60 = vld [vmem:[#allocation3 + $0x19] sm:$0xff] }
 0x59a   : > { %v5061_v40 = vpop.permute.xlu1 %5060  ;;  %11076 = vmatpush3.bf16.msra.mxu0 %v12715_v27  ;;  %v15476_v1 = vld [vmem:[#allocation3 + $0x60] sm:$0xff] }
 0x59b   : > { %5177 = vst.msk [vmem:[#allocation3 + $0x91] sm:$0xff] %vm582_vm0, %v5144_v3  ;;  %v5145_v13 = vmax.f32 %v15246_v59, %v5061_v40  ;;  %v12716_v59 = vld [vmem:[%s17989_s7 + $0x40] sm:$0xff]   ;;  %v15496_v40 = vld [vmem:[#allocation3 + $0x61] sm:$0xff] }
 0x59c   : > { %11612 = vrot.lane.b32.xlu0 %v11611_v12, %s12824_s14  ;;  %11627 = vrot.lane.b32.xlu1 %v11611_v12, %s12822_s18  ;;  %v5055_v54 = vpop.permute.xlu0 %5054  ;;  %v5460_v23 = vld [vmem:[#allocation3 + $0x62] sm:$0xff]  ;;  %v5461_v2 = vld [vmem:[#allocation3 + $0x6a] sm:$0xff] }
 0x59d   : > { %5178 = vst.msk [vmem:[#allocation3 + $0x99] sm:$0xff] %vm582_vm0, %v5145_v13  ;;  %v5142_v56 = vmax.f32 %v15251_v43, %v5055_v54  ;;  %v15451_v43 = vld [vmem:[#allocation3 + $0x20] sm:$0xff]  ;;  %11077 = vmatprep.subr.bf16.mxu0 %v12716_v59  ;;  %v6458_v62 = vpack.c.bf16 %v5461_v2, %v5460_v23  ;;  %v15466_v45 = vld [vmem:[#allocation3 + $0x68] sm:$0xff] }
 0x59e   : > { %v5057_v50 = vpop.permute.xlu1 %5056  ;;  %11078 = vmatpush3.bf16.msra.mxu0 %v12717_v8  ;;  %v15486_v51 = vld [vmem:[#allocation3 + $0x69] sm:$0xff] }
 0x59f   : > { %5175 = vst.msk [vmem:[#allocation3 + $0x79] sm:$0xff] %vm582_vm0, %v5142_v56  ;;  %v5143_v41 = vmax.f32 %v15256_v33, %v5057_v50  ;;  %v15460_v33 = vld [vmem:[#allocation3 + $0x18] sm:$0xff]  ;;  %v11666_v50 = vpack.i.bf16 %v5461_v2, %v5460_v23 }
 0x5a0   : > { %11617 = vrot.lane.b32.xlu0 %v11616_v25, %s12822_s18  ;;  %11632 = vrot.lane.b32.xlu1 %v11616_v25, %s12823_s19  ;;  %v5067_v19 = vpop.permute.xlu0 %5066  ;;  %v15454_v38 = vld [vmem:[#allocation3 + $0x4a] sm:$0xff]  ;;  %v15456_v63 = vld [vmem:[#allocation3 + $0x52] sm:$0xff]  ;;  %v11641_v46 = vpack.i.bf16 %v15451_v43, %v15460_v33 }
 0x5a1   : > { %5176 = vst.msk [vmem:[#allocation3 + $0x81] sm:$0xff] %vm582_vm0, %v5143_v41  ;;  %v5148_v61 = vmax.f32 %v15261_v36, %v5067_v19  ;;  %v6455_v10 = vpack.c.bf16 %v15456_v63, %v15454_v38  ;;  %v15472_v36 = vld [vmem:[#allocation3 + $0x21] sm:$0xff]  ;;  %v15518_v32 = vld [vmem:[#allocation3 + $0x50] sm:$0xff] }
 0x5a2   : > { %v5069_v26 = vpop.permute.xlu1 %5068  ;;  %v11646_v44 = vpack.i.bf16 %v15472_v36, %v15480_v60 }
 0x5a3   : > { %5181 = vst.msk [vmem:[#allocation3 + $0xc1] sm:$0xff] %vm582_vm0, %v5148_v61  ;;  %v5149_v34 = vmax.f32 %v15266_v39, %v5069_v26  ;;  %11442 = vmatmul.mubr.msk.bf16.vlgmr.msra.gmra.mxu1 %vm582_vm0, %v6455_v10  ;;  %v11656_v39 = vpack.i.bf16 %v15466_v45, %v15476_v1 }
 0x5a4   : > { %11637 = vrot.lane.b32.xlu0 %v11636_v14, %s12822_s18  ;;  %11642 = vrot.lane.b32.xlu1 %v11641_v46, %s12824_s14  ;;  %v5063_v58 = vpop.permute.xlu0 %5062  ;;  %v15491_v3 = vld [vmem:[#allocation3 + $0x92] sm:$0xff] }
 0x5a5   : > { %11445 = vmatprep.mubr.msk.bf16.mxu1 %vm582_vm0, %v6458_v62  ;;  %5182 = vst.msk [vmem:[#allocation3 + $0xc9] sm:$0xff] %vm582_vm0, %v5149_v34  ;;  %v5146_v16 = vmax.f32 %v15271_v22, %v5063_v58  ;;  %v15493_v22 = vld [vmem:[#allocation3 + $0x9a] sm:$0xff]  ;;  %v15542_v62 = vld [vmem:[#allocation3 + $0x51] sm:$0xff]  ;;  %v15550_v58 = vld [vmem:[#allocation3 + $0x49] sm:$0xff] }
 0x5a6   : > { %v5065_v21 = vpop.permute.xlu1 %5064  ;;  %v6464_v25 = vpack.c.bf16 %v15493_v22, %v15491_v3 }
 0x5a7   : > { %5179 = vst.msk [vmem:[#allocation3 + $0xa9] sm:$0xff] %vm582_vm0, %v5146_v16  ;;  %v5147_v0 = vmax.f32 %v15276_v29, %v5065_v21  ;;  %v11661_v29 = vpack.i.bf16 %v15486_v51, %v15496_v40 }
 0x5a8   : > { %11657 = vrot.lane.b32.xlu0 %v11656_v39, %s12823_s19  ;;  %11647 = vrot.lane.b32.xlu1 %v11646_v44, %s12822_s18  ;;  %v5075_v12 = vpop.permute.xlu0 %5074  ;;  %v15498_v30 = vld [vmem:[#allocation3 + $0x7a] sm:$0xff]  ;;  %v15500_v13 = vld [vmem:[#allocation3 + $0x82] sm:$0xff] }
 0x5a9   : > { %5180 = vst.msk [vmem:[#allocation3 + $0xb1] sm:$0xff] %vm582_vm0, %v5147_v0  ;;  %v5152_v27 = vmax.f32 %v15281_v55, %v5075_v12  ;;  %v6461_v54 = vpack.c.bf16 %v15500_v13, %v15498_v30 }
 0x5aa   : > { %v5077_v56 = vpop.permute.xlu1 %5076 }
 0x5ab   : > { %5185 = vst.msk [vmem:[#allocation3 + $0xf1] sm:$0xff] %vm582_vm0, %v5152_v27  ;;  %v5153_v59 = vmax.f32 %v15286_v28, %v5077_v56  ;;  %11446 = vmatmul.mubr.msk.bf16.gmra.mxu1 %vm582_vm0, %v6461_v54 }
 0x5ac   : > { %11662 = vrot.lane.b32.xlu0 %v11661_v29, %s12824_s14  ;;  %11652 = vrot.lane.b32.xlu1 %v11636_v14, %s12823_s19  ;;  %v5071_v55 = vpop.permute.xlu0 %5070  ;;  %v15523_v41 = vld [vmem:[#allocation3 + $0xc2] sm:$0xff]  ;;  %v15525_v19 = vld [vmem:[#allocation3 + $0xca] sm:$0xff] }
 0x5ad   : > { %11449 = vmatprep.mubr.msk.bf16.mxu1 %vm582_vm0, %v6464_v25  ;;  %5186 = vst.msk [vmem:[#allocation3 + $0xf9] sm:$0xff] %vm582_vm0, %v5153_v59  ;;  %v5150_v8 = vmax.f32 %v15291_v18, %v5071_v55  ;;  %v15528_v14 = vld [vmem:[#allocation3 + $0x48] sm:$0xff]  ;;  %v6470_v46 = vpack.c.bf16 %v15525_v19, %v15523_v41  ;;  %v15576_v59 = vld [vmem:[#allocation3 + $0x98] sm:$0xff] }
 0x5ae   : > { %v5073_v52 = vpop.permute.xlu1 %5072 }
 0x5af   : > { %5183 = vst.msk [vmem:[#allocation3 + $0xd9] sm:$0xff] %vm582_vm0, %v5150_v8  ;;  %v5151_v28 = vmax.f32 %v15296_v17, %v5073_v52  ;;  %v11686_v17 = vpack.i.bf16 %v15518_v32, %v15528_v14 }
 0x5b0   : > { %11667 = vrot.lane.b32.xlu0 %v11666_v50, %s12822_s18  ;;  %11672 = vrot.lane.b32.xlu1 %v11656_v39, %s12824_s14  ;;  %v5083_v61 = vpop.permute.xlu0 %5082  ;;  %v15530_v18 = vld [vmem:[#allocation3 + $0xaa] sm:$0xff]  ;;  %v15532_v23 = vld [vmem:[#allocation3 + $0xb2] sm:$0xff]  ;;  %v11691_v39 = vpack.i.bf16 %v15542_v62, %v15550_v58 }
 0x5b1   : > { %5184 = vst.msk [vmem:[#allocation3 + $0xe1] sm:$0xff] %vm582_vm0, %v5151_v28  ;;  %v5156_v2 = vmax.f32 %v15301_v5, %v5083_v61  ;;  %v6467_v10 = vpack.c.bf16 %v15532_v23, %v15530_v18 }
 0x5b2   : > { %v5085_v26 = vpop.permute.xlu1 %5084 }
 0x5b3   : > { %5189 = vst.msk [vmem:[#allocation3 + $0x121] sm:$0xff] %vm582_vm0, %v5156_v2  ;;  %v5157_v34 = vmax.f32 %v15306_v4, %v5085_v26  ;;  %11450 = vmatmul.mubr.msk.bf16.gmra.mxu1 %vm582_vm0, %v6467_v10 }
 0x5b4   : > { %11687 = vrot.lane.b32.xlu0 %v11686_v17, %s12823_s19  ;;  %11677 = vrot.lane.b32.xlu1 %v11661_v29, %s12822_s18  ;;  %v5079_v5 = vpop.permute.xlu0 %5078  ;;  %v15559_v44 = vld [vmem:[#allocation3 + $0xf2] sm:$0xff]  ;;  %v15561_v0 = vld [vmem:[#allocation3 + $0xfa] sm:$0xff] }
 0x5b5   : > { %11453 = vmatprep.mubr.msk.bf16.mxu1 %vm582_vm0, %v6470_v46  ;;  %5190 = vst.msk [vmem:[#allocation3 + $0x129] sm:$0xff] %vm582_vm0, %v5157_v34  ;;  %v5154_v16 = vmax.f32 %v15311_v20, %v5079_v5  ;;  %v6476_v25 = vpack.c.bf16 %v15561_v0, %v15559_v44 }
 0x5b6   : > { %v5081_v21 = vpop.permute.xlu1 %5080 }
 0x5b7   : > { %5187 = vst.msk [vmem:[#allocation3 + $0x109] sm:$0xff] %vm582_vm0, %v5154_v16  ;;  %v5155_v4 = vmax.f32 %v15316_v6, %v5081_v21  ;;  %v11696_v6 = vpack.i.bf16 %v15456_v63, %v15454_v38  ;;  %v15584_v38 = vld [vmem:[#allocation3 + $0x90] sm:$0xff]  ;;  %v11726_v21 = vpack.i.bf16 %v15493_v22, %v15491_v3 }
 0x5b8   : > { %11692 = vrot.lane.b32.xlu0 %v11691_v39, %s12824_s14  ;;  %11682 = vrot.lane.b32.xlu1 %v11666_v50, %s12823_s19  ;;  %v5091_v12 = vpop.permute.xlu0 %5090  ;;  %v15564_v27 = vld [vmem:[#allocation3 + $0xda] sm:$0xff]  ;;  %v15566_v20 = vld [vmem:[#allocation3 + $0xe2] sm:$0xff]  ;;  %v11716_v8 = vpack.i.bf16 %v15576_v59, %v15584_v38 }
 0x5b9   : > { %5188 = vst.msk [vmem:[#allocation3 + $0x111] sm:$0xff] %vm582_vm0, %v5155_v4  ;;  %v5160_v29 = vmax.f32 %v15321_v49, %v5091_v12  ;;  %v6473_v54 = vpack.c.bf16 %v15566_v20, %v15564_v27  ;;  %v5399_v12 = vld [vmem:[#allocation3 + $0x80] sm:$0xff] }
 0x5ba   : > { %v5093_v56 = vpop.permute.xlu1 %5092 }
 0x5bb   : > { %5193 = vst.msk [vmem:[#allocation3 + $0x151] sm:$0xff] %vm582_vm0, %v5160_v29  ;;  %v5161_v55 = vmax.f32 %v15326_v31, %v5093_v56  ;;  %11454 = vmatmul.mubr.msk.bf16.gmra.mxu1 %vm582_vm0, %v6473_v54  ;;  %v15590_v31 = vld [vmem:[#allocation3 + $0x99] sm:$0xff] }
 0x5bc   : > { %11697 = vrot.lane.b32.xlu0 %v11696_v6, %s12822_s18  ;;  %11702 = vrot.lane.b32.xlu1 %v11686_v17, %s12824_s14  ;;  %v5087_v49 = vpop.permute.xlu0 %5086  ;;  %v15595_v28 = vld [vmem:[#allocation3 + $0x122] sm:$0xff]  ;;  %v15597_v61 = vld [vmem:[#allocation3 + $0x12a] sm:$0xff]  ;;  %v5398_v54 = vld [vmem:[#allocation3 + $0x78] sm:$0xff] }
 0x5bd   : > { %11457 = vmatprep.mubr.msk.bf16.mxu1 %vm582_vm0, %v6476_v25  ;;  %5194 = vst.msk [vmem:[#allocation3 + $0x159] sm:$0xff] %vm582_vm0, %v5161_v55  ;;  %v5158_v63 = vmax.f32 %v15331_v9, %v5087_v49  ;;  %v15600_v9 = vld [vmem:[#allocation3 + $0x91] sm:$0xff]  ;;  %v6482_v5 = vpack.c.bf16 %v15597_v61, %v15595_v28  ;;  %v11746_v3 = vpack.i.bf16 %v5399_v12, %v5398_v54  ;;  %v15641_v25 = vld [vmem:[#allocation3 + $0x81] sm:$0xff]  ;;  %v15647_v55 = vld [vmem:[#allocation3 + $0x79] sm:$0xff] }
 0x5be   : > { %v5089_v50 = vpop.permute.xlu1 %5088  ;;  %v11751_v49 = vpack.i.bf16 %v15641_v25, %v15647_v55  ;;  %v15685_v12 = vld [vmem:[#allocation3 + $0xb1] sm:$0xff] }
 0x5bf   : > { %5191 = vst.msk [vmem:[#allocation3 + $0x139] sm:$0xff] %vm582_vm0, %v5158_v63  ;;  %v5159_v52 = vmax.f32 %v15336_v7, %v5089_v50  ;;  %v11721_v7 = vpack.i.bf16 %v15590_v31, %v15600_v9 }
 0x5c0   : > { %11717 = vrot.lane.b32.xlu0 %v11716_v8, %s12823_s19  ;;  %11707 = vrot.lane.b32.xlu1 %v11691_v39, %s12822_s18  ;;  %v5099_v2 = vpop.permute.xlu0 %5098  ;;  %v15602_v17 = vld [vmem:[#allocation3 + $0x10a] sm:$0xff]  ;;  %v15604_v10 = vld [vmem:[#allocation3 + $0x112] sm:$0xff] }
 0x5c1   : > { %5192 = vst.msk [vmem:[#allocation3 + $0x141] sm:$0xff] %vm582_vm0, %v5159_v52  ;;  %v5164_v26 = vmax.f32 %v15341_v53, %v5099_v2  ;;  %v6479_v46 = vpack.c.bf16 %v15604_v10, %v15602_v17  ;;  %v11756_v2 = vpack.i.bf16 %v15500_v13, %v15498_v30  ;;  %v15675_v30 = vld [vmem:[#allocation3 + $0xc1] sm:$0xff] }
 0x5c2   : > { %v5101_v34 = vpop.permute.xlu1 %5100 }
 0x5c3   : > { %5197 = vst.msk [vmem:[#allocation3 + $0x181] sm:$0xff] %vm582_vm0, %v5164_v26  ;;  %v5165_v16 = vmax.f32 %v15346_v48, %v5101_v34  ;;  %11458 = vmatmul.mubr.msk.bf16.gmra.mxu1 %vm582_vm0, %v6479_v46  ;;  %v5405_v46 = vld [vmem:[#allocation3 + $0xc8] sm:$0xff]  ;;  %v5404_v34 = vld [vmem:[#allocation3 + $0xc0] sm:$0xff] }
 0x5c4   : > { %11722 = vrot.lane.b32.xlu0 %v11721_v7, %s12824_s14  ;;  %11712 = vrot.lane.b32.xlu1 %v11696_v6, %s12823_s19  ;;  %v5095_v53 = vpop.permute.xlu0 %5094  ;;  %v15627_v29 = vld [vmem:[#allocation3 + $0x152] sm:$0xff]  ;;  %v15629_v6 = vld [vmem:[#allocation3 + $0x15a] sm:$0xff] }
 0x5c5   : > { %11461 = vmatprep.mubr.msk.bf16.mxu1 %vm582_vm0, %v6482_v5  ;;  %5198 = vst.msk [vmem:[#allocation3 + $0x189] sm:$0xff] %vm582_vm0, %v5165_v16  ;;  %v5162_v39 = vmax.f32 %v15351_v42, %v5095_v53  ;;  %v11776_v5 = vpack.i.bf16 %v5405_v46, %v5404_v34  ;;  %v15671_v16 = vld [vmem:[#allocation3 + $0xc9] sm:$0xff]  ;;  %v11786_v53 = vpack.i.bf16 %v15525_v19, %v15523_v41  ;;  %v5409_v19 = vld [vmem:[#allocation3 + $0xf8] sm:$0xff]  ;;  %v5439_v46 = vld [vmem:[#allocation3 + $0xe1] sm:$0xff] }
 0x5c6   : > { %v5097_v4 = vpop.permute.xlu1 %5096  ;;  %v11781_v13 = vpack.i.bf16 %v15671_v16, %v15675_v30  ;;  %v11816_v41 = vpack.i.bf16 %v15532_v23, %v15530_v18  ;;  %v11846_v18 = vpack.i.bf16 %v15561_v0, %v15559_v44  ;;  %v5407_v23 = vld [vmem:[#allocation3 + $0xe0] sm:$0xff]  ;;  %v11876_v44 = vpack.i.bf16 %v15566_v20, %v15564_v27  ;;  %v5413_v0 = vld [vmem:[#allocation3 + $0x128] sm:$0xff] }
 0x5c7   : > { %5195 = vst.msk [vmem:[#allocation3 + $0x169] sm:$0xff] %vm582_vm0, %v5162_v39  ;;  %v5163_v48 = vmax.f32 %v15359_v35, %v5097_v4  ;;  %v6488_v35 = vpack.c.bf16 %v15629_v6, %v15627_v29  ;;  %v5403_v39 = vld [vmem:[#allocation3 + $0xb0] sm:$0xff]  ;;  %v5438_v34 = vld [vmem:[#allocation3 + $0xd9] sm:$0xff]  ;;  %v11906_v20 = vpack.i.bf16 %v15597_v61, %v15595_v28 }
 0x5c8   : > { %11727 = vrot.lane.b32.xlu0 %v11726_v21, %s12822_s18  ;;  %11732 = vrot.lane.b32.xlu1 %v11716_v8, %s12824_s14  ;;  %v15632_v56 = vld [vmem:[#allocation3 + $0x13a] sm:$0xff]  ;;  %v15634_v42 = vld [vmem:[#allocation3 + $0x142] sm:$0xff]  ;;  %v15734_v61 = vld [vmem:[#allocation3 + $0x111] sm:$0xff] }
 0x5c9   : > { %5196 = vst.msk [vmem:[#allocation3 + $0x171] sm:$0xff] %vm582_vm0, %v5163_v48  ;;  %v6485_v22 = vpack.c.bf16 %v15634_v42, %v15632_v56  ;;  %v15689_v48 = vld [vmem:[#allocation3 + $0xa9] sm:$0xff] }
 0x5ca   : > { %v11811_v54 = vpack.i.bf16 %v15685_v12, %v15689_v48 }
 0x5cb   : > { %11462 = vmatmul.mubr.msk.bf16.gmra.mxu1 %vm582_vm0, %v6485_v22 }
 0x5cc   : > { %11747 = vrot.lane.b32.xlu0 %v11746_v3, %s12823_s19  ;;  %11737 = vrot.lane.b32.xlu1 %v11721_v7, %s12822_s18  ;;  %v15652_v63 = vld [vmem:[#allocation3 + $0x182] sm:$0xff]  ;;  %v15654_v8 = vld [vmem:[#allocation3 + $0x18a] sm:$0xff] }
 0x5cd   : > { %11465 = vmatprep.mubr.msk.bf16.mxu1 %vm582_vm0, %v6488_v35  ;;  %v6494_v7 = vpack.c.bf16 %v15654_v8, %v15652_v63  ;;  %v5441_v35 = vld [vmem:[#allocation3 + $0xf9] sm:$0xff] }
 0x5d0   : > { %11752 = vrot.lane.b32.xlu0 %v11751_v49, %s12824_s14  ;;  %11742 = vrot.lane.b32.xlu1 %v11726_v21, %s12823_s19  ;;  %v15657_v50 = vld [vmem:[#allocation3 + $0x16a] sm:$0xff]  ;;  %v15659_v52 = vld [vmem:[#allocation3 + $0x172] sm:$0xff] }
 0x5d1   : > { %v6491_v26 = vpack.c.bf16 %v15659_v52, %v15657_v50  ;;  %v5402_v21 = vld [vmem:[#allocation3 + $0xa8] sm:$0xff] }
 0x5d2   : > { %v11806_v4 = vpack.i.bf16 %v5403_v39, %v5402_v21  ;;  %v5445_v39 = vld [vmem:[#allocation3 + $0x129] sm:$0xff]  ;;  %v5444_v21 = vld [vmem:[#allocation3 + $0x121] sm:$0xff] }
 0x5d3   : > { %11466 = vmatmul.mubr.msk.bf16.gmra.mxu1 %vm582_vm0, %v6491_v26  ;;  %v5406_v26 = vld [vmem:[#allocation3 + $0xd8] sm:$0xff] }
 0x5d4   : > { %11757 = vrot.lane.b32.xlu0 %v11756_v2, %s12822_s18  ;;  %11762 = vrot.lane.b32.xlu1 %v11746_v3, %s12824_s14  ;;  %v5408_v3 = vld [vmem:[#allocation3 + $0xf0] sm:$0xff] }
 0x5d5   : > { %11469 = vmatprep.mubr.msk.bf16.mxu1 %vm582_vm0, %v6494_v7  ;;  %v11836_v22 = vpack.i.bf16 %v5409_v19, %v5408_v3  ;;  %v11866_v7 = vpack.i.bf16 %v5407_v23, %v5406_v26  ;;  %v5411_v3 = vld [vmem:[#allocation3 + $0x110] sm:$0xff]  ;;  %v5200_v26 = vld [vmem:[#allocation3 + $0x8] sm:$0xff] }
 0x5d8   : > { %11777 = vrot.lane.b32.xlu0 %v11776_v5, %s12823_s19  ;;  %11767 = vrot.lane.b32.xlu1 %v11751_v49, %s12822_s18  ;;  %v5440_v49 = vld [vmem:[#allocation3 + $0xf1] sm:$0xff] }
 0x5dc   : > { %11782 = vrot.lane.b32.xlu0 %v11781_v13, %s12824_s14  ;;  %11772 = vrot.lane.b32.xlu1 %v11756_v2, %s12823_s19  ;;  %v11841_v2 = vpack.i.bf16 %v5441_v35, %v5440_v49  ;;  %v5199_v35 = vld [vmem:[#allocation3] sm:$0xff]  ;;  %v5410_v49 = vld [vmem:[#allocation3 + $0x108] sm:$0xff] }
 0x5dd   : > { %v11926_v23 = vpack.i.bf16 %v5411_v3, %v5410_v49 }
 0x5e0   : > { %11787 = vrot.lane.b32.xlu0 %v11786_v53, %s12822_s18  ;;  %11792 = vrot.lane.b32.xlu1 %v11776_v5, %s12824_s14  ;;  %v11871_v5 = vpack.i.bf16 %v5439_v46, %v5438_v34  ;;  %v11605_v34 = vunpack.i.h.bf16 %v15194_v57 }
 0x5e4   : > { %11807 = vrot.lane.b32.xlu0 %v11806_v4, %s12823_s19  ;;  %11797 = vrot.lane.b32.xlu1 %v11781_v13, %s12822_s18  ;;  %v5412_v13 = vld [vmem:[#allocation3 + $0x120] sm:$0xff] }
 0x5e8   : > { %11812 = vrot.lane.b32.xlu0 %v11811_v54, %s12824_s14  ;;  %11802 = vrot.lane.b32.xlu1 %v11786_v53, %s12823_s19  ;;  %v11896_v53 = vpack.i.bf16 %v5413_v0, %v5412_v13 }
 0x5ec   : > { %11817 = vrot.lane.b32.xlu0 %v11816_v41, %s12822_s18  ;;  %11822 = vrot.lane.b32.xlu1 %v11806_v4, %s12824_s14 }
 0x5f0   : > { %11837 = vrot.lane.b32.xlu0 %v11836_v22, %s12823_s19  ;;  %11827 = vrot.lane.b32.xlu1 %v11811_v54, %s12822_s18  ;;  %v11901_v54 = vpack.i.bf16 %v5445_v39, %v5444_v21 }
 0x5f4   : > { %11842 = vrot.lane.b32.xlu0 %v11841_v2, %s12824_s14  ;;  %11832 = vrot.lane.b32.xlu1 %v11816_v41, %s12823_s19 }
 0x5f8   : > { %11847 = vrot.lane.b32.xlu0 %v11846_v18, %s12822_s18  ;;  %11852 = vrot.lane.b32.xlu1 %v11836_v22, %s12824_s14  ;;  %v11599_v22 = vunpack.i.l.bf16 %v15192_v37 }
 0x5fa   : > { %v6256_v46 = vsel %vm582_vm0, %v5199_v35, %v11599_v22 }
 0x5fc   : > { %11867 = vrot.lane.b32.xlu0 %v11866_v7, %s12823_s19  ;;  %11857 = vrot.lane.b32.xlu1 %v11841_v2, %s12822_s18  ;;  %v11600_v2 = vunpack.i.h.bf16 %v15192_v37  ;;  %v15740_v37 = vld [vmem:[#allocation3 + $0x109] sm:$0xff] }
 0x5fd   : > { %v11931_v0 = vpack.i.bf16 %v15734_v61, %v15740_v37 }
 0x600   : > { %11872 = vrot.lane.b32.xlu0 %v11871_v5, %s12824_s14  ;;  %11862 = vrot.lane.b32.xlu1 %v11846_v18, %s12823_s19 }
 0x604   : > { %11877 = vrot.lane.b32.xlu0 %v11876_v44, %s12822_s18  ;;  %11882 = vrot.lane.b32.xlu1 %v11866_v7, %s12824_s14  ;;  %v11604_v7 = vunpack.i.l.bf16 %v15194_v57 }
 0x606   : > { %v6289_v13 = vsel %vm6288_vm2, %v6256_v46, %v11604_v7 }
 0x608   : > { %11897 = vrot.lane.b32.xlu0 %v11896_v53, %s12823_s19  ;;  %11887 = vrot.lane.b32.xlu1 %v11871_v5, %s12822_s18  ;;  %v6257_v5 = vsel %vm582_vm0, %v5200_v26, %v11600_v2 }
 0x60a   : > { %v11608_v4 = vpop.permute.xlu0 %11607  ;;  %v15717_v41 = vpop.permute.xlu1 %11622 }
 0x60b   : > { %v11610_v3 = vunpack.i.h.bf16 %v11608_v4  ;;  %v11609_v22 = vunpack.i.l.bf16 %v11608_v4  ;;  %v11936_v4 = vpack.i.bf16 %v15604_v10, %v15602_v17  ;;  %v5416_v17 = vld [vmem:[#allocation3 + $0x150] sm:$0xff] }
 0x60c   : > { %11902 = vrot.lane.b32.xlu0 %v11901_v54, %s12824_s14  ;;  %11892 = vrot.lane.b32.xlu1 %v11876_v44, %s12823_s19 }
 0x60e   : > { %v11613_v27 = vpop.permute.xlu0 %11612  ;;  %v15723_v19 = vpop.permute.xlu1 %11627 }
 0x60f   : > { %v11614_v49 = vunpack.i.l.bf16 %v11613_v27  ;;  %v11615_v7 = vunpack.i.h.bf16 %v11613_v27 }
 0x610   : > { %11907 = vrot.lane.b32.xlu0 %v11906_v20, %s12822_s18  ;;  %11912 = vrot.lane.b32.xlu1 %v11896_v53, %s12824_s14 }
 0x612   : > { %v15729_v18 = vpop.permute.xlu0 %11617  ;;  %v15732_v28 = vpop.permute.xlu1 %11632 }
 0x614   : > { %11927 = vrot.lane.b32.xlu0 %v11926_v23, %s12823_s19  ;;  %11917 = vrot.lane.b32.xlu1 %v11901_v54, %s12822_s18  ;;  %v6290_v54 = vsel %vm6288_vm2, %v6257_v5, %v11605_v34 }
 0x616   : > { %v11638_v44 = vpop.permute.xlu0 %11637  ;;  %v11643_v21 = vpop.permute.xlu1 %11642 }
 0x617   : > { %v11640_v53 = vunpack.i.h.bf16 %v11638_v44  ;;  %v11639_v39 = vunpack.i.l.bf16 %v11638_v44  ;;  %v11645_v35 = vunpack.i.h.bf16 %v11643_v21  ;;  %v11644_v57 = vunpack.i.l.bf16 %v11643_v21 }
 0x618   : > { %11932 = vrot.lane.b32.xlu0 %v11931_v0, %s12824_s14  ;;  %11922 = vrot.lane.b32.xlu1 %v11906_v20, %s12823_s19 }
 0x619   : > { %v6354_v2 = vsel %vm582_vm0, %v15480_v60, %v11639_v39  ;;  %v6355_v26 = vsel %vm582_vm0, %v15472_v36, %v11640_v53  ;;  %v6323_v34 = vsel %vm6321_vm3, %v6290_v54, %v11645_v35  ;;  %v6322_v5 = vsel %vm6321_vm3, %v6289_v13, %v11644_v57  ;;  %v5417_v36 = vld [vmem:[#allocation3 + $0x158] sm:$0xff] }
 0x61a   : > { %v15753_v46 = vpop.permute.xlu0 %11657  ;;  %v6386_v44 = vsel %vm6288_vm2, %v6354_v2, %v11609_v22  ;;  %v6387_v21 = vsel %vm6288_vm2, %v6355_v26, %v11610_v3  ;;  %v11648_v60 = vpop.permute.xlu1 %11647  ;;  %v6450_v10 = vpack.c.bf16 %v6323_v34, %v6322_v5  ;;  %v11956_v3 = vpack.i.bf16 %v5417_v36, %v5416_v17  ;;  %v15767_v35 = vld [vmem:[#allocation3 + $0x159] sm:$0xff]  ;;  %v15771_v13 = vld [vmem:[#allocation3 + $0x151] sm:$0xff] }
 0x61b   : > { %v6418_v39 = vsel %vm6321_vm3, %v6386_v44, %v11614_v49  ;;  %v6419_v27 = vsel %vm6321_vm3, %v6387_v21, %v11615_v7  ;;  %v11650_v49 = vunpack.i.h.bf16 %v11648_v60  ;;  %v11649_v2 = vunpack.i.l.bf16 %v11648_v60 }
 0x61c   : > { %11937 = vrot.lane.b32.xlu0 %v11936_v4, %s12822_s18  ;;  %11942 = vrot.lane.b32.xlu1 %v11926_v23, %s12824_s14  ;;  %v6451_v20 = vpack.c.bf16 %v6419_v27, %v6418_v39  ;;  %v11961_v23 = vpack.i.bf16 %v15767_v35, %v15771_v13  ;;  %v11620_v21 = vunpack.i.h.bf16 %v15729_v18  ;;  %v11619_v34 = vunpack.i.l.bf16 %v15729_v18  ;;  %v15789_v39 = vld [vmem:[#allocation3 + $0x140] sm:$0xff]  ;;  %v15800_v18 = vld [vmem:[#allocation3 + $0x138] sm:$0xff] }
 0x61d   : > { %v6259_v60 = vsel %vm582_vm0, %v15451_v43, %v11650_v49  ;;  %v6258_v36 = vsel %vm582_vm0, %v15460_v33, %v11649_v2  ;;  %v11624_v43 = vunpack.i.l.bf16 %v15717_v41  ;;  %v11981_v33 = vpack.i.bf16 %v15789_v39, %v15800_v18 }
 0x61e   : > { %v15765_v53 = vpop.permute.xlu0 %11662  ;;  %6722 = vmatprep.mubr.bf16.mxu0 %v6451_v20  ;;  %v11653_v22 = vpop.permute.xlu1 %11652  ;;  %v11625_v20 = vunpack.i.h.bf16 %v15717_v41  ;;  %v6357_v49 = vsel %vm582_vm0, %v15411_v47, %v11620_v21 }
 0x61f   : > { %6723 = vmatmul.mubr.bf16.vlgmr.msra.gmra.mxu0 %v6450_v10  ;;  %v11655_v26 = vunpack.i.h.bf16 %v11653_v22  ;;  %v11654_v7 = vunpack.i.l.bf16 %v11653_v22  ;;  %v15806_v10 = vld [vmem:[#allocation3 + $0x141] sm:$0xff]  ;;  %v6356_v22 = vsel %vm582_vm0, %v15424_v15, %v11619_v34  ;;  %v11991_v34 = vpack.i.bf16 %v15634_v42, %v15632_v56 }
 0x620   : > { %11957 = vrot.lane.b32.xlu0 %v11956_v3, %s12823_s19  ;;  %11947 = vrot.lane.b32.xlu1 %v11931_v0, %s12822_s18  ;;  %v15783_v0 = vpack.i.bf16 %v15629_v6, %v15627_v29  ;;  %v11665_v42 = vunpack.i.h.bf16 %v15765_v53 }
 0x621   : > { %v6291_v29 = vsel %vm6288_vm2, %v6258_v36, %v11654_v7  ;;  %v6292_v6 = vsel %vm6288_vm2, %v6259_v60, %v11655_v26  ;;  %v15815_v7 = vld [vmem:[#allocation3 + $0x139] sm:$0xff] }
 0x622   : > { %v15773_v57 = vpop.permute.xlu0 %11667  ;;  %v15777_v54 = vpop.permute.xlu1 %11672  ;;  %v6324_v60 = vsel %vm6321_vm3, %v6291_v29, %v11624_v43  ;;  %v6325_v36 = vsel %vm6321_vm3, %v6292_v6, %v11625_v20  ;;  %v11986_v47 = vpack.i.bf16 %v15806_v10, %v15815_v7  ;;  %v11635_v29 = vunpack.i.h.bf16 %v15732_v28 }
 0x624   : > { %11962 = vrot.lane.b32.xlu0 %v11961_v23, %s12824_s14  ;;  %11952 = vrot.lane.b32.xlu1 %v11936_v4, %s12823_s19 }
 0x626   : > { %v11688_v44 = vpop.permute.xlu0 %11687  ;;  %v15787_v5 = vpop.permute.xlu1 %11677 }
 0x627   : > { %v11690_v4 = vunpack.i.h.bf16 %v11688_v44  ;;  %v11689_v27 = vunpack.i.l.bf16 %v11688_v44 }
 0x628   : > { %11967 = vrot.lane.b32.xlu0 %v15783_v0, %s12822_s18  ;;  %11972 = vrot.lane.b32.xlu1 %v11956_v3, %s12824_s14 }
 0x629   : > { %v6388_v41 = vsel %vm6288_vm2, %v6356_v22, %v11689_v27  ;;  %v6389_v44 = vsel %vm6288_vm2, %v6357_v49, %v11690_v4  ;;  %v11630_v27 = vunpack.i.h.bf16 %v15723_v19  ;;  %v11629_v4 = vunpack.i.l.bf16 %v15723_v19 }
 0x62a   : > { %v11693_v17 = vpop.permute.xlu0 %11692  ;;  %v15812_v26 = vpop.permute.xlu1 %11682  ;;  %v6453_v49 = vpack.c.bf16 %v6325_v36, %v6324_v60  ;;  %v11664_v19 = vunpack.i.l.bf16 %v15765_v53 }
 0x62b   : > { %v11695_v2 = vunpack.i.h.bf16 %v11693_v17  ;;  %v11694_v3 = vunpack.i.l.bf16 %v11693_v17  ;;  %v6260_v60 = vsel %vm582_vm0, %v15403_v24, %v11629_v4  ;;  %v5420_v4 = vld [vmem:[#allocation3 + $0x180] sm:$0xff] }
 0x62c   : > { %11982 = vrot.lane.b32.xlu0 %v11981_v33, %s12823_s19  ;;  %11977 = vrot.lane.b32.xlu1 %v11961_v23, %s12822_s18  ;;  %v11634_v23 = vunpack.i.l.bf16 %v15732_v28 }
 0x62d   : > { %v6420_v15 = vsel %vm6321_vm3, %v6388_v41, %v11694_v3  ;;  %v6421_v21 = vsel %vm6321_vm3, %v6389_v44, %v11695_v2  ;;  %v11660_v3 = vunpack.i.h.bf16 %v15753_v46  ;;  %v11659_v2 = vunpack.i.l.bf16 %v15753_v46 }
 0x62e   : > { %v11698_v43 = vpop.permute.xlu0 %11697  ;;  %v6454_v6 = vpack.c.bf16 %v6421_v21, %v6420_v15  ;;  %v11703_v22 = vpop.permute.xlu1 %11702  ;;  %v6261_v46 = vsel %vm582_vm0, %v15405_v11, %v11630_v27 }
 0x62f   : > { %v11700_v20 = vunpack.i.h.bf16 %v11698_v43  ;;  %v11699_v17 = vunpack.i.l.bf16 %v11698_v43  ;;  %v11705_v41 = vunpack.i.h.bf16 %v11703_v22  ;;  %v11704_v56 = vunpack.i.l.bf16 %v11703_v22  ;;  %v15862_v22 = vld [vmem:[#allocation3 + $0x189] sm:$0xff] }
 0x630   : > { %11987 = vrot.lane.b32.xlu0 %v11986_v47, %s12824_s14  ;;  %6730 = vmatprep.mubr.bf16.mxu0 %v6454_v6  ;;  %v6294_v21 = vsel %vm6288_vm2, %v6261_v46, %v11635_v29  ;;  %v5421_v6 = vld [vmem:[#allocation3 + $0x188] sm:$0xff] }
 0x631   : > { %v6358_v28 = vsel %vm582_vm0, %v15550_v58, %v11699_v17  ;;  %v6359_v44 = vsel %vm582_vm0, %v15542_v62, %v11700_v20  ;;  %11997 = vrot.lane.b32.xlu1 %v11981_v33, %s12824_s14  ;;  %6731 = vmatmul.mubr.bf16.gmra.mxu0 %v6453_v49  ;;  %v6293_v58 = vsel %vm6288_vm2, %v6260_v60, %v11634_v23  ;;  %v15867_v49 = vld [vmem:[#allocation3 + $0x181] sm:$0xff]  ;;  %v11670_v60 = vunpack.i.h.bf16 %v15773_v57 }
 0x632   : > { %v15846_v36 = vpop.permute.xlu0 %11717  ;;  %v6390_v15 = vsel %vm6288_vm2, %v6358_v28, %v11659_v2  ;;  %v6391_v53 = vsel %vm6288_vm2, %v6359_v44, %v11660_v3  ;;  %v11708_v62 = vpop.permute.xlu1 %11707  ;;  %v6326_v11 = vsel %vm6321_vm3, %v6293_v58, %v11704_v56  ;;  %v6327_v24 = vsel %vm6321_vm3, %v6294_v21, %v11705_v41  ;;  %v15875_v41 = vld [vmem:[#allocation3 + $0x170] sm:$0xff] }
 0x633   : > { %v6422_v33 = vsel %vm6321_vm3, %v6390_v15, %v11664_v19  ;;  %v6423_v43 = vsel %vm6321_vm3, %v6391_v53, %v11665_v42  ;;  %v15860_v29 = vpack.i.bf16 %v5421_v6, %v5420_v4  ;;  %v6456_v17 = vpack.c.bf16 %v6327_v24, %v6326_v11  ;;  %v15888_v58 = vld [vmem:[#allocation3 + $0x171] sm:$0xff] }
 0x634   : > { %11992 = vrot.lane.b32.xlu0 %v11991_v34, %s12822_s18  ;;  %v6457_v27 = vpack.c.bf16 %v6423_v43, %v6422_v33  ;;  %v11710_v56 = vunpack.i.h.bf16 %v11708_v62  ;;  %v11709_v42 = vunpack.i.l.bf16 %v11708_v62  ;;  %v11669_v15 = vunpack.i.l.bf16 %v15773_v57  ;;  %v15898_v57 = vld [vmem:[#allocation3 + $0x169] sm:$0xff] }
 0x635   : > { %12002 = vrot.lane.b32.xlu1 %v11986_v47, %s12822_s18  ;;  %v12021_v47 = vpack.i.bf16 %v15862_v22, %v15867_v49  ;;  %v11675_v11 = vunpack.i.h.bf16 %v15777_v54  ;;  %v11674_v24 = vunpack.i.l.bf16 %v15777_v54 }
 0x636   : > { %v15858_v20 = vpop.permute.xlu0 %11722  ;;  %6738 = vmatprep.mubr.bf16.mxu0 %v6457_v27  ;;  %v11713_v23 = vpop.permute.xlu1 %11712  ;;  %v6263_v21 = vsel %vm582_vm0, %v15518_v32, %v11710_v56  ;;  %v12041_v27 = vpack.i.bf16 %v15654_v8, %v15652_v63  ;;  %v6360_v4 = vsel %vm582_vm0, %v15496_v40, %v11669_v15  ;;  %v11680_v8 = vunpack.i.h.bf16 %v15787_v5 }
 0x637   : > { %v11715_v19 = vunpack.i.h.bf16 %v11713_v23  ;;  %v11714_v28 = vunpack.i.l.bf16 %v11713_v23  ;;  %v6361_v23 = vsel %vm582_vm0, %v15486_v51, %v11670_v60  ;;  %v12036_v51 = vpack.i.bf16 %v15659_v52, %v15657_v50 }
 0x638   : > { %12017 = vrot.lane.b32.xlu0 %v15860_v29, %s12823_s19  ;;  %v11679_v60 = vunpack.i.l.bf16 %v15787_v5  ;;  %v11685_v15 = vunpack.i.h.bf16 %v15812_v26  ;;  %v11720_v50 = vunpack.i.h.bf16 %v15846_v36  ;;  %v11719_v52 = vunpack.i.l.bf16 %v15846_v36  ;;  %v5423_v36 = vld [vmem:[#allocation3 + $0x1a0] sm:$0xff] }
 0x639   : > { %12007 = vrot.lane.b32.xlu1 %v11991_v34, %s12823_s19  ;;  %6739 = vmatmul.mubr.bf16.gmra.mxu0 %v6456_v17  ;;  %v15880_v34 = vld [vmem:[#allocation3 + $0x168] sm:$0xff]  ;;  %v6296_v6 = vsel %vm6288_vm2, %v6263_v21, %v11715_v19  ;;  %v11725_v5 = vunpack.i.h.bf16 %v15858_v20 }
 0x63a   : > { %v15869_v3 = vpop.permute.xlu0 %11727  ;;  %v15873_v2 = vpop.permute.xlu1 %11732  ;;  %v12026_v46 = vpack.i.bf16 %v15875_v41, %v15880_v34  ;;  %v6329_v63 = vsel %vm6321_vm3, %v6296_v6, %v11675_v11 }
 0x63c   : > { %12022 = vrot.lane.b32.xlu0 %v12021_v47, %s12824_s14 }
 0x63d   : > { %12012 = vrot.lane.b32.xlu1 %v15783_v0, %s12823_s19  ;;  %v6262_v0 = vsel %vm582_vm0, %v15528_v14, %v11709_v42  ;;  %v12031_v14 = vpack.i.bf16 %v15888_v58, %v15898_v57 }
 0x63e   : > { %v11748_v44 = vpop.permute.xlu0 %11747  ;;  %v15886_v53 = vpop.permute.xlu1 %11737  ;;  %v6295_v43 = vsel %vm6288_vm2, %v6262_v0, %v11714_v28 }
 0x63f   : > { %v11750_v62 = vunpack.i.h.bf16 %v11748_v44  ;;  %v11749_v33 = vunpack.i.l.bf16 %v11748_v44  ;;  %v6328_v19 = vsel %vm6321_vm3, %v6295_v43, %v11674_v24  ;;  %v5486_v44 = vld [vmem:[#allocation3 + $0x19a] sm:$0xff] }
 0x640   : > { %12027 = vrot.lane.b32.xlu0 %v12026_v46, %s12823_s19  ;;  %v6459_v24 = vpack.c.bf16 %v6329_v63, %v6328_v19 }
 0x641   : > { %12057 = vrot.lane.b32.xlu1 %v12026_v46, %s12824_s14  ;;  %v6392_v54 = vsel %vm6288_vm2, %v6360_v4, %v11749_v33  ;;  %v6393_v42 = vsel %vm6288_vm2, %v6361_v23, %v11750_v62  ;;  %v5487_v46 = vld [vmem:[#allocation3 + $0x1a2] sm:$0xff]  ;;  %v11684_v33 = vunpack.i.l.bf16 %v15812_v26  ;;  %v11724_v4 = vunpack.i.l.bf16 %v15858_v20 }
 0x642   : > { %v11753_v32 = vpop.permute.xlu0 %11752  ;;  %v15910_v56 = vpop.permute.xlu1 %11742  ;;  %v6497_v62 = vpack.c.bf16 %v5487_v46, %v5486_v44  ;;  %v5454_v44 = vld [vmem:[#allocation3 + $0x199] sm:$0xff]  ;;  %v5455_v46 = vld [vmem:[#allocation3 + $0x1a1] sm:$0xff] }
 0x643   : > { %v11755_v17 = vunpack.i.h.bf16 %v11753_v32  ;;  %v11754_v47 = vunpack.i.l.bf16 %v11753_v32 }
 0x644   : > { %12032 = vrot.lane.b32.xlu0 %v12031_v14, %s12824_s14  ;;  %11470 = vmatmul.mubr.msk.bf16.gmra.mxu1 %vm582_vm0, %v6497_v62 }
 0x645   : > { %12062 = vrot.lane.b32.xlu1 %v12031_v14, %s12822_s18  ;;  %v6424_v40 = vsel %vm6321_vm3, %v6392_v54, %v11754_v47  ;;  %v6425_v28 = vsel %vm6321_vm3, %v6393_v42, %v11755_v17  ;;  %v5422_v17 = vld [vmem:[#allocation3 + $0x198] sm:$0xff]  ;;  %v6265_v47 = vsel %vm582_vm0, %v15466_v45, %v11680_v8  ;;  %v6264_v54 = vsel %vm582_vm0, %v15476_v1, %v11679_v60 }
 0x646   : > { %v11758_v21 = vpop.permute.xlu0 %11757  ;;  %v6460_v0 = vpack.c.bf16 %v6425_v28, %v6424_v40  ;;  %v11763_v11 = vpop.permute.xlu1 %11762  ;;  %v6298_v19 = vsel %vm6288_vm2, %v6265_v47, %v11685_v15  ;;  %v12046_v28 = vpack.i.bf16 %v5423_v36, %v5422_v17  ;;  %v11735_v47 = vunpack.i.h.bf16 %v15873_v2 }
 0x647   : > { %v11760_v43 = vunpack.i.h.bf16 %v11758_v21  ;;  %v11759_v6 = vunpack.i.l.bf16 %v11758_v21  ;;  %v11765_v32 = vunpack.i.h.bf16 %v11763_v11  ;;  %v11764_v14 = vunpack.i.l.bf16 %v11763_v11 }
 0x648   : > { %12037 = vrot.lane.b32.xlu0 %v12036_v51, %s12822_s18  ;;  %6746 = vmatprep.mubr.bf16.mxu0 %v6460_v0  ;;  %v12051_v0 = vpack.i.bf16 %v5455_v46, %v5454_v44 }
 0x649   : > { %v6362_v26 = vsel %vm582_vm0, %v15647_v55, %v11759_v6  ;;  %v6363_v23 = vsel %vm582_vm0, %v15641_v25, %v11760_v43  ;;  %12067 = vrot.lane.b32.xlu1 %v12036_v51, %s12823_s19  ;;  %6747 = vmatmul.mubr.bf16.gmra.mxu0 %v6459_v24  ;;  %v6297_v25 = vsel %vm6288_vm2, %v6264_v54, %v11684_v33  ;;  %v11730_v24 = vunpack.i.h.bf16 %v15869_v3 }
 0x64a   : > { %v15940_v42 = vpop.permute.xlu0 %11777  ;;  %v6394_v20 = vsel %vm6288_vm2, %v6362_v26, %v11719_v52  ;;  %v6395_v55 = vsel %vm6288_vm2, %v6363_v23, %v11720_v50  ;;  %v11768_v63 = vpop.permute.xlu1 %11767  ;;  %v6330_v8 = vsel %vm6321_vm3, %v6297_v25, %v11764_v14  ;;  %v6331_v1 = vsel %vm6321_vm3, %v6298_v19, %v11765_v32  ;;  %v5209_v52 = vld [vmem:[#allocation3 + $0x78] sm:$0xff]  ;;  %v5210_v32 = vld [vmem:[#allocation3 + $0x80] sm:$0xff] }
 0x64b   : > { %v6426_v51 = vsel %vm6321_vm3, %v6394_v20, %v11724_v4  ;;  %v6427_v45 = vsel %vm6321_vm3, %v6395_v55, %v11725_v5  ;;  %v6462_v21 = vpack.c.bf16 %v6331_v1, %v6330_v8  ;;  %v11769_v43 = vunpack.i.l.bf16 %v11768_v63 }
 0x64c   : > { %12042 = vrot.lane.b32.xlu0 %v12041_v27, %s12822_s18  ;;  %v6463_v40 = vpack.c.bf16 %v6427_v45, %v6426_v51  ;;  %v11770_v27 = vunpack.i.h.bf16 %v11768_v63  ;;  %v11729_v50 = vunpack.i.l.bf16 %v15869_v3  ;;  %v11734_v54 = vunpack.i.l.bf16 %v15873_v2 }
 0x64d   : > { %12072 = vrot.lane.b32.xlu1 %v15860_v29, %s12824_s14  ;;  %v6266_v4 = vsel %vm582_vm0, %v5209_v52, %v11769_v43  ;;  %v6365_v55 = vsel %vm582_vm0, %v15590_v31, %v11730_v24  ;;  %v11739_v31 = vunpack.i.l.bf16 %v15886_v53 }
 0x64e   : > { %v15954_v60 = vpop.permute.xlu0 %11782  ;;  %6754 = vmatprep.mubr.bf16.mxu0 %v6463_v40  ;;  %v11773_v15 = vpop.permute.xlu1 %11772  ;;  %v6267_v5 = vsel %vm582_vm0, %v5210_v32, %v11770_v27  ;;  %v6364_v3 = vsel %vm582_vm0, %v15600_v9, %v11729_v50  ;;  %v11740_v9 = vunpack.i.h.bf16 %v15886_v53 }
 0x64f   : > { %v11775_v29 = vunpack.i.h.bf16 %v11773_v15  ;;  %v11774_v6 = vunpack.i.l.bf16 %v11773_v15  ;;  %v11744_v15 = vunpack.i.l.bf16 %v15910_v56  ;;  %v11785_v50 = vunpack.i.h.bf16 %v15954_v60 }
 0x650   : > { %12047 = vrot.lane.b32.xlu0 %v12046_v28, %s12823_s19  ;;  %v11745_v28 = vunpack.i.h.bf16 %v15910_v56  ;;  %v11784_v53 = vunpack.i.l.bf16 %v15954_v60  ;;  %v6269_v32 = vsel %vm582_vm0, %v15576_v59, %v11740_v9  ;;  %v5214_v9 = vld [vmem:[#allocation3 + $0xb0] sm:$0xff] }
 0x651   : > { %6755 = vmatmul.mubr.bf16.gmra.mxu0 %v6462_v21  ;;  %v6299_v17 = vsel %vm6288_vm2, %v6266_v4, %v11774_v6  ;;  %v6300_v36 = vsel %vm6288_vm2, %v6267_v5, %v11775_v29  ;;  %v11780_v29 = vunpack.i.h.bf16 %v15940_v42  ;;  %v11779_v6 = vunpack.i.l.bf16 %v15940_v42 }
 0x652   : > { %v15957_v62 = vpop.permute.xlu0 %11787  ;;  %v15959_v33 = vpop.permute.xlu1 %11792  ;;  %v6332_v8 = vsel %vm6321_vm3, %v6299_v17, %v11734_v54  ;;  %v6333_v1 = vsel %vm6321_vm3, %v6300_v36, %v11735_v47  ;;  %v6268_v42 = vsel %vm582_vm0, %v15584_v38, %v11739_v31 }
 0x653   : > { %v6465_v43 = vpack.c.bf16 %v6333_v1, %v6332_v8  ;;  %v6301_v60 = vsel %vm6288_vm2, %v6268_v42, %v11744_v15  ;;  %v11790_v1 = vunpack.i.h.bf16 %v15957_v62 }
 0x654   : > { %12052 = vrot.lane.b32.xlu0 %v12051_v0, %s12824_s14 }
 0x656   : > { %v11808_v11 = vpop.permute.xlu0 %11807  ;;  %v15964_v14 = vpop.permute.xlu1 %11797 }
 0x657   : > { %v11810_v26 = vunpack.i.h.bf16 %v11808_v11  ;;  %v11809_v23 = vunpack.i.l.bf16 %v11808_v11 }
 0x659   : > { %v6396_v51 = vsel %vm6288_vm2, %v6364_v3, %v11809_v23  ;;  %v6397_v45 = vsel %vm6288_vm2, %v6365_v55, %v11810_v26 }
 0x65a   : > { %v11813_v20 = vpop.permute.xlu0 %11812  ;;  %v15976_v63 = vpop.permute.xlu1 %11802 }
 0x65b   : > { %v11815_v25 = vunpack.i.h.bf16 %v11813_v20  ;;  %v11814_v19 = vunpack.i.l.bf16 %v11813_v20 }
 0x65d   : > { %v6428_v2 = vsel %vm6321_vm3, %v6396_v51, %v11814_v19  ;;  %v6429_v40 = vsel %vm6321_vm3, %v6397_v45, %v11815_v25 }
 0x65e   : > { %v11818_v44 = vpop.permute.xlu0 %11817  ;;  %v6466_v46 = vpack.c.bf16 %v6429_v40, %v6428_v2  ;;  %v11823_v27 = vpop.permute.xlu1 %11822  ;;  %v11789_v2 = vunpack.i.l.bf16 %v15957_v62  ;;  %v5213_v40 = vld [vmem:[#allocation3 + $0xa8] sm:$0xff] }
 0x65f   : > { %v11820_v21 = vunpack.i.h.bf16 %v11818_v44  ;;  %v11819_v0 = vunpack.i.l.bf16 %v11818_v44  ;;  %v11825_v11 = vunpack.i.h.bf16 %v11823_v27  ;;  %v11824_v24 = vunpack.i.l.bf16 %v11823_v27 }
 0x660   : > { %6762 = vmatprep.mubr.bf16.mxu0 %v6466_v46  ;;  %v11795_v27 = vunpack.i.h.bf16 %v15959_v33  ;;  %v6368_v62 = vsel %vm582_vm0, %v15675_v30, %v11789_v2  ;;  %v11800_v30 = vunpack.i.h.bf16 %v15964_v14 }
 0x661   : > { %v6366_v52 = vsel %vm582_vm0, %v15689_v48, %v11819_v0  ;;  %v6367_v56 = vsel %vm582_vm0, %v15685_v12, %v11820_v21  ;;  %6763 = vmatmul.mubr.bf16.gmra.mxu0 %v6465_v43  ;;  %v6302_v48 = vsel %vm6288_vm2, %v6269_v32, %v11745_v28  ;;  %v6334_v59 = vsel %vm6321_vm3, %v6301_v60, %v11824_v24 }
 0x662   : > { %v16000_v5 = vpop.permute.xlu0 %11837  ;;  %v6398_v4 = vsel %vm6288_vm2, %v6366_v52, %v11779_v6  ;;  %v6399_v26 = vsel %vm6288_vm2, %v6367_v56, %v11780_v29  ;;  %v11828_v23 = vpop.permute.xlu1 %11827  ;;  %v6335_v36 = vsel %vm6321_vm3, %v6302_v48, %v11825_v11  ;;  %v11794_v43 = vunpack.i.l.bf16 %v15959_v33 }
 0x663   : > { %v6430_v12 = vsel %vm6321_vm3, %v6398_v4, %v11784_v53  ;;  %v6431_v17 = vsel %vm6321_vm3, %v6399_v26, %v11785_v50  ;;  %v6468_v20 = vpack.c.bf16 %v6335_v36, %v6334_v59  ;;  %v11830_v25 = vunpack.i.h.bf16 %v11828_v23 }
 0x664   : > { %v6469_v38 = vpack.c.bf16 %v6431_v17, %v6430_v12  ;;  %v11829_v19 = vunpack.i.l.bf16 %v11828_v23  ;;  %v6369_v6 = vsel %vm582_vm0, %v15671_v16, %v11790_v1  ;;  %v11799_v16 = vunpack.i.l.bf16 %v15964_v14  ;;  %v5215_v14 = vld [vmem:[#allocation3 + $0xc0] sm:$0xff] }
 0x665   : > { %v6271_v28 = vsel %vm582_vm0, %v5214_v9, %v11830_v25  ;;  %v11805_v4 = vunpack.i.h.bf16 %v15976_v63  ;;  %v11804_v48 = vunpack.i.l.bf16 %v15976_v63  ;;  %v11840_v36 = vunpack.i.h.bf16 %v16000_v5 }
 0x666   : > { %v16010_v47 = vpop.permute.xlu0 %11842  ;;  %6770 = vmatprep.mubr.bf16.mxu0 %v6469_v38  ;;  %v11833_v54 = vpop.permute.xlu1 %11832  ;;  %v6270_v44 = vsel %vm582_vm0, %v5213_v40, %v11829_v19  ;;  %v11839_v38 = vunpack.i.l.bf16 %v16000_v5  ;;  %v6272_v5 = vsel %vm582_vm0, %v5215_v14, %v11799_v16  ;;  %v5217_v16 = vld [vmem:[#allocation3 + $0xd8] sm:$0xff] }
 0x667   : > { %v11835_v51 = vunpack.i.h.bf16 %v11833_v54  ;;  %v11834_v45 = vunpack.i.l.bf16 %v11833_v54  ;;  %v5343_v54 = vld [vmem:[#allocation3 + $0xd9] sm:$0xff] }
 0x669   : > { %6771 = vmatmul.mubr.bf16.gmra.mxu0 %v6468_v20  ;;  %v6303_v21 = vsel %vm6288_vm2, %v6270_v44, %v11834_v45  ;;  %v6304_v0 = vsel %vm6288_vm2, %v6271_v28, %v11835_v51  ;;  %v5344_v20 = vld [vmem:[#allocation3 + $0xe1] sm:$0xff]  ;;  %v11845_v45 = vunpack.i.h.bf16 %v16010_v47  ;;  %v6305_v44 = vsel %vm6288_vm2, %v6272_v5, %v11804_v48 }
 0x66a   : > { %v16012_v3 = vpop.permute.xlu0 %11847  ;;  %v16014_v55 = vpop.permute.xlu1 %11852  ;;  %v6336_v56 = vsel %vm6321_vm3, %v6303_v21, %v11794_v43  ;;  %v6337_v32 = vsel %vm6321_vm3, %v6304_v0, %v11795_v27  ;;  %v5216_v51 = vld [vmem:[#allocation3 + $0xc8] sm:$0xff] }
 0x66b   : > { %v6471_v59 = vpack.c.bf16 %v6337_v32, %v6336_v56  ;;  %v6273_v2 = vsel %vm582_vm0, %v5216_v51, %v11800_v30  ;;  %v11849_v30 = vunpack.i.l.bf16 %v16012_v3 }
 0x66e   : > { %v11868_v8 = vpop.permute.xlu0 %11867  ;;  %v16018_v31 = vpop.permute.xlu1 %11857 }
 0x66f   : > { %v11870_v46 = vunpack.i.h.bf16 %v11868_v8  ;;  %v11869_v15 = vunpack.i.l.bf16 %v11868_v8  ;;  %v11844_v8 = vunpack.i.l.bf16 %v16010_v47 }
 0x671   : > { %v6400_v53 = vsel %vm6288_vm2, %v6368_v62, %v11869_v15  ;;  %v6401_v52 = vsel %vm6288_vm2, %v6369_v6, %v11870_v46  ;;  %v6306_v46 = vsel %vm6288_vm2, %v6273_v2, %v11805_v4  ;;  %v5218_v4 = vld [vmem:[#allocation3 + $0xe0] sm:$0xff] }
 0x672   : > { %v11873_v29 = vpop.permute.xlu0 %11872  ;;  %v16030_v50 = vpop.permute.xlu1 %11862 }
 0x673   : > { %v11875_v11 = vunpack.i.h.bf16 %v11873_v29  ;;  %v11874_v24 = vunpack.i.l.bf16 %v11873_v29 }
 0x675   : > { %v6432_v33 = vsel %vm6321_vm3, %v6400_v53, %v11874_v24  ;;  %v6433_v42 = vsel %vm6321_vm3, %v6401_v52, %v11875_v11 }
 0x676   : > { %v11878_v26 = vpop.permute.xlu0 %11877  ;;  %v6472_v60 = vpack.c.bf16 %v6433_v42, %v6432_v33  ;;  %v11883_v17 = vpop.permute.xlu1 %11882  ;;  %v11850_v42 = vunpack.i.h.bf16 %v16012_v3  ;;  %v11854_v3 = vunpack.i.l.bf16 %v16014_v55 }
 0x677   : > { %v11880_v23 = vunpack.i.h.bf16 %v11878_v26  ;;  %v11879_v12 = vunpack.i.l.bf16 %v11878_v26  ;;  %v11885_v25 = vunpack.i.h.bf16 %v11883_v17  ;;  %v11884_v19 = vunpack.i.l.bf16 %v11883_v17 }
 0x678   : > { %6778 = vmatprep.mubr.bf16.mxu0 %v6472_v60 }
 0x679   : > { %v6370_v63 = vsel %vm582_vm0, %v5343_v54, %v11879_v12  ;;  %v6371_v1 = vsel %vm582_vm0, %v5344_v20, %v11880_v23  ;;  %6779 = vmatmul.mubr.bf16.gmra.mxu0 %v6471_v59  ;;  %v6338_v0 = vsel %vm6321_vm3, %v6305_v44, %v11884_v19  ;;  %v6339_v27 = vsel %vm6321_vm3, %v6306_v46, %v11885_v25 }
 0x67a   : > { %v16050_v40 = vpop.permute.xlu0 %11897  ;;  %v6402_v9 = vsel %vm6288_vm2, %v6370_v63, %v11839_v38  ;;  %v6403_v28 = vsel %vm6288_vm2, %v6371_v1, %v11840_v36  ;;  %v11888_v47 = vpop.permute.xlu1 %11887  ;;  %v6474_v6 = vpack.c.bf16 %v6339_v27, %v6338_v0  ;;  %v5345_v36 = vld [vmem:[#allocation3 + $0xf1] sm:$0xff]  ;;  %v5346_v38 = vld [vmem:[#allocation3 + $0xf9] sm:$0xff]  ;;  %v11855_v54 = vunpack.i.h.bf16 %v16014_v55 }
 0x67b   : > { %v6434_v15 = vsel %vm6321_vm3, %v6402_v9, %v11844_v8  ;;  %v6435_v21 = vsel %vm6321_vm3, %v6403_v28, %v11845_v45  ;;  %v11890_v53 = vunpack.i.h.bf16 %v11888_v47  ;;  %v11889_v52 = vunpack.i.l.bf16 %v11888_v47 }
 0x67c   : > { %v6475_v43 = vpack.c.bf16 %v6435_v21, %v6434_v15  ;;  %v6372_v25 = vsel %vm582_vm0, %v5345_v36, %v11849_v30  ;;  %v6373_v19 = vsel %vm582_vm0, %v5346_v38, %v11850_v42  ;;  %v11860_v9 = vunpack.i.h.bf16 %v16018_v31 }
 0x67d   : > { %v6275_v60 = vsel %vm582_vm0, %v5218_v4, %v11890_v53  ;;  %v6274_v48 = vsel %vm582_vm0, %v5217_v16, %v11889_v52  ;;  %v11859_v28 = vunpack.i.l.bf16 %v16018_v31  ;;  %v11865_v44 = vunpack.i.h.bf16 %v16030_v50 }
 0x67e   : > { %v16060_v29 = vpop.permute.xlu0 %11902  ;;  %6786 = vmatprep.mubr.bf16.mxu0 %v6475_v43  ;;  %v11893_v62 = vpop.permute.xlu1 %11892  ;;  %v11864_v15 = vunpack.i.l.bf16 %v16030_v50 }
 0x67f   : > { %v11895_v56 = vunpack.i.h.bf16 %v11893_v62  ;;  %v11894_v32 = vunpack.i.l.bf16 %v11893_v62  ;;  %v11900_v62 = vunpack.i.h.bf16 %v16050_v40  ;;  %v11905_v31 = vunpack.i.h.bf16 %v16060_v29 }
 0x681   : > { %6787 = vmatmul.mubr.bf16.gmra.mxu0 %v6474_v6  ;;  %v6307_v17 = vsel %vm6288_vm2, %v6274_v48, %v11894_v32  ;;  %v6308_v59 = vsel %vm6288_vm2, %v6275_v60, %v11895_v56  ;;  %v11899_v6 = vunpack.i.l.bf16 %v16050_v40  ;;  %v5219_v56 = vld [vmem:[#allocation3 + $0xf0] sm:$0xff]  ;;  %v5220_v32 = vld [vmem:[#allocation3 + $0xf8] sm:$0xff] }
 0x682   : > { %v16062_v11 = vpop.permute.xlu0 %11907  ;;  %v16064_v24 = vpop.permute.xlu1 %11912  ;;  %v6340_v1 = vsel %vm6321_vm3, %v6307_v17, %v11854_v3  ;;  %v6341_v2 = vsel %vm6321_vm3, %v6308_v59, %v11855_v54  ;;  %v6277_v30 = vsel %vm582_vm0, %v5220_v32, %v11860_v9  ;;  %v6276_v40 = vsel %vm582_vm0, %v5219_v56, %v11859_v28 }
 0x683   : > { %v6477_v43 = vpack.c.bf16 %v6341_v2, %v6340_v1  ;;  %v6309_v48 = vsel %vm6288_vm2, %v6276_v40, %v11864_v15  ;;  %v11909_v1 = vunpack.i.l.bf16 %v16062_v11  ;;  %v5221_v2 = vld [vmem:[#allocation3 + $0x108] sm:$0xff] }
 0x686   : > { %v11928_v33 = vpop.permute.xlu0 %11927  ;;  %v16068_v26 = vpop.permute.xlu1 %11917 }
 0x687   : > { %v11930_v23 = vunpack.i.h.bf16 %v11928_v33  ;;  %v11929_v12 = vunpack.i.l.bf16 %v11928_v33  ;;  %v11904_v33 = vunpack.i.l.bf16 %v16060_v29  ;;  %v6310_v29 = vsel %vm6288_vm2, %v6277_v30, %v11865_v44 }
 0x688   : > { %v11920_v30 = vunpack.i.h.bf16 %v16068_v26  ;;  %v11919_v40 = vunpack.i.l.bf16 %v16068_v26 }
 0x689   : > { %v6404_v8 = vsel %vm6288_vm2, %v6372_v25, %v11929_v12  ;;  %v6405_v63 = vsel %vm6288_vm2, %v6373_v19, %v11930_v23 }
 0x68a   : > { %v11933_v20 = vpop.permute.xlu0 %11932  ;;  %v16078_v45 = vpop.permute.xlu1 %11922 }
 0x68b   : > { %v11935_v14 = vunpack.i.h.bf16 %v11933_v20  ;;  %v11934_v51 = vunpack.i.l.bf16 %v11933_v20 }
 0x68d   : > { %v6436_v5 = vsel %vm6321_vm3, %v6404_v8, %v11934_v51  ;;  %v6437_v55 = vsel %vm6321_vm3, %v6405_v63, %v11935_v14  ;;  %v11910_v63 = vunpack.i.h.bf16 %v16062_v11  ;;  %v11914_v11 = vunpack.i.l.bf16 %v16064_v24 }
 0x68e   : > { %v11938_v46 = vpop.permute.xlu0 %11937  ;;  %v6478_v47 = vpack.c.bf16 %v6437_v55, %v6436_v5  ;;  %v11943_v27 = vpop.permute.xlu1 %11942  ;;  %v5222_v5 = vld [vmem:[#allocation3 + $0x110] sm:$0xff] }
 0x68f   : > { %v11940_v21 = vunpack.i.h.bf16 %v11938_v46  ;;  %v11939_v0 = vunpack.i.l.bf16 %v11938_v46  ;;  %v11945_v53 = vunpack.i.h.bf16 %v11943_v27  ;;  %v11944_v52 = vunpack.i.l.bf16 %v11943_v27 }
 0x690   : > { %6794 = vmatprep.mubr.bf16.mxu0 %v6478_v47  ;;  %v11915_v27 = vunpack.i.h.bf16 %v16064_v24 }
 0x691   : > { %v6374_v50 = vsel %vm582_vm0, %v15740_v37, %v11939_v0  ;;  %v6375_v42 = vsel %vm582_vm0, %v15734_v61, %v11940_v21  ;;  %6795 = vmatmul.mubr.bf16.gmra.mxu0 %v6477_v43  ;;  %v6342_v12 = vsel %vm6321_vm3, %v6309_v48, %v11944_v52  ;;  %v6343_v17 = vsel %vm6321_vm3, %v6310_v29, %v11945_v53  ;;  %v5349_v21 = vld [vmem:[#allocation3 + $0x121] sm:$0xff]  ;;  %v5350_v0 = vld [vmem:[#allocation3 + $0x129] sm:$0xff] }
 0x692   : > { %v16100_v16 = vpop.permute.xlu0 %11957  ;;  %v6406_v4 = vsel %vm6288_vm2, %v6374_v50, %v11899_v6  ;;  %v6407_v60 = vsel %vm6288_vm2, %v6375_v42, %v11900_v62  ;;  %v11948_v23 = vpop.permute.xlu1 %11947  ;;  %v6480_v54 = vpack.c.bf16 %v6343_v17, %v6342_v12  ;;  %v6376_v62 = vsel %vm582_vm0, %v5349_v21, %v11909_v1 }
 0x693   : > { %v6438_v37 = vsel %vm6321_vm3, %v6406_v4, %v11904_v33  ;;  %v6439_v61 = vsel %vm6321_vm3, %v6407_v60, %v11905_v31  ;;  %v11950_v25 = vunpack.i.h.bf16 %v11948_v23  ;;  %v11949_v19 = vunpack.i.l.bf16 %v11948_v23 }
 0x694   : > { %v6481_v59 = vpack.c.bf16 %v6439_v61, %v6438_v37  ;;  %v6377_v6 = vsel %vm582_vm0, %v5350_v0, %v11910_v63  ;;  %v11925_v4 = vunpack.i.h.bf16 %v16078_v45  ;;  %v11924_v29 = vunpack.i.l.bf16 %v16078_v45 }
 0x695   : > { %v6279_v9 = vsel %vm582_vm0, %v5222_v5, %v11950_v25  ;;  %v6278_v28 = vsel %vm582_vm0, %v5221_v2, %v11949_v19  ;;  %v11960_v17 = vunpack.i.h.bf16 %v16100_v16  ;;  %v5223_v25 = vld [vmem:[#allocation3 + $0x120] sm:$0xff]  ;;  %v5224_v19 = vld [vmem:[#allocation3 + $0x128] sm:$0xff] }
 0x696   : > { %v16110_v36 = vpop.permute.xlu0 %11962  ;;  %6802 = vmatprep.mubr.bf16.mxu0 %v6481_v59  ;;  %v11953_v38 = vpop.permute.xlu1 %11952  ;;  %v11959_v59 = vunpack.i.l.bf16 %v16100_v16  ;;  %v6280_v16 = vsel %vm582_vm0, %v5223_v25, %v11919_v40 }
 0x697   : > { %v11955_v14 = vunpack.i.h.bf16 %v11953_v38  ;;  %v11954_v51 = vunpack.i.l.bf16 %v11953_v38  ;;  %v11965_v26 = vunpack.i.h.bf16 %v16110_v36  ;;  %v6313_v5 = vsel %vm6288_vm2, %v6280_v16, %v11924_v29  ;;  %v5227_v16 = vld [vmem:[#allocation3 + $0x150] sm:$0xff] }
 0x699   : > { %6803 = vmatmul.mubr.bf16.gmra.mxu0 %v6480_v54  ;;  %v6311_v47 = vsel %vm6288_vm2, %v6278_v28, %v11954_v51  ;;  %v6312_v15 = vsel %vm6288_vm2, %v6279_v9, %v11955_v14  ;;  %v11964_v14 = vunpack.i.l.bf16 %v16110_v36 }
 0x69a   : > { %v16112_v3 = vpop.permute.xlu0 %11967  ;;  %v16114_v20 = vpop.permute.xlu1 %11972  ;;  %v6344_v33 = vsel %vm6321_vm3, %v6311_v47, %v11914_v11  ;;  %v6345_v50 = vsel %vm6321_vm3, %v6312_v15, %v11915_v27 }
 0x69b   : > { %v6483_v12 = vpack.c.bf16 %v6345_v50, %v6344_v33 }
 0x69e   : > { %v11983_v8 = vpop.permute.xlu0 %11982  ;;  %v16118_v55 = vpop.permute.xlu1 %11977 }
 0x69f   : > { %v11985_v44 = vunpack.i.h.bf16 %v11983_v8  ;;  %v11984_v46 = vunpack.i.l.bf16 %v11983_v8  ;;  %v6281_v8 = vsel %vm582_vm0, %v5224_v19, %v11920_v30  ;;  %v11974_v30 = vunpack.i.l.bf16 %v16114_v20 }
 0x6a0   : > { %v6314_v36 = vsel %vm6288_vm2, %v6281_v8, %v11925_v4 }
 0x6a1   : > { %v6408_v32 = vsel %vm6288_vm2, %v6376_v62, %v11984_v46  ;;  %v6409_v31 = vsel %vm6288_vm2, %v6377_v6, %v11985_v44  ;;  %v11970_v6 = vunpack.i.h.bf16 %v16112_v3 }
 0x6a2   : > { %v11988_v43 = vpop.permute.xlu0 %11987 }
 0x6a3   : > { %v11990_v53 = vunpack.i.h.bf16 %v11988_v43  ;;  %v11989_v52 = vunpack.i.l.bf16 %v11988_v43  ;;  %v11998_v56 = vpop.permute.xlu1 %11997 }
 0x6a4   : > { %v12000_v38 = vunpack.i.h.bf16 %v11998_v56  ;;  %v11999_v54 = vunpack.i.l.bf16 %v11998_v56 }
 0x6a5   : > { %v6440_v42 = vsel %vm6321_vm3, %v6408_v32, %v11989_v52  ;;  %v6441_v24 = vsel %vm6321_vm3, %v6409_v31, %v11990_v53  ;;  %v11969_v53 = vunpack.i.l.bf16 %v16112_v3 }
 0x6a6   : > { %v11993_v60 = vpop.permute.xlu0 %11992  ;;  %v6484_v48 = vpack.c.bf16 %v6441_v24, %v6440_v42  ;;  %v6346_v28 = vsel %vm6321_vm3, %v6313_v5, %v11999_v54  ;;  %v6347_v44 = vsel %vm6321_vm3, %v6314_v36, %v12000_v38  ;;  %v11975_v24 = vunpack.i.h.bf16 %v16114_v20 }
 0x6a7   : > { %v11995_v23 = vunpack.i.h.bf16 %v11993_v60  ;;  %v11994_v37 = vunpack.i.l.bf16 %v11993_v60  ;;  %v12003_v61 = vpop.permute.xlu1 %12002  ;;  %v6486_v21 = vpack.c.bf16 %v6347_v44, %v6346_v28  ;;  %v6380_v3 = vsel %vm582_vm0, %v15771_v13, %v11969_v53 }
 0x6a8   : > { %6810 = vmatprep.mubr.bf16.mxu0 %v6484_v48  ;;  %v12005_v0 = vunpack.i.h.bf16 %v12003_v61  ;;  %v12004_v27 = vunpack.i.l.bf16 %v12003_v61  ;;  %v11980_v13 = vunpack.i.h.bf16 %v16118_v55 }
 0x6a9   : > { %v6378_v45 = vsel %vm582_vm0, %v15815_v7, %v11994_v37  ;;  %v6379_v51 = vsel %vm582_vm0, %v15806_v10, %v11995_v23  ;;  %6811 = vmatmul.mubr.bf16.gmra.mxu0 %v6483_v12  ;;  %v11979_v12 = vunpack.i.l.bf16 %v16118_v55 }
 0x6aa   : > { %v16148_v63 = vpop.permute.xlu0 %12017  ;;  %v6410_v1 = vsel %vm6288_vm2, %v6378_v45, %v11959_v59  ;;  %v6411_v2 = vsel %vm6288_vm2, %v6379_v51, %v11960_v17  ;;  %v6283_v56 = vsel %vm582_vm0, %v15789_v39, %v12005_v0  ;;  %v6282_v32 = vsel %vm582_vm0, %v15800_v18, %v12004_v27 }
 0x6ab   : > { %v12008_v9 = vpop.permute.xlu1 %12007  ;;  %v6442_v7 = vsel %vm6321_vm3, %v6410_v1, %v11964_v14  ;;  %v6443_v10 = vsel %vm6321_vm3, %v6411_v2, %v11965_v26  ;;  %v6381_v39 = vsel %vm582_vm0, %v15767_v35, %v11970_v6  ;;  %v12020_v14 = vunpack.i.h.bf16 %v16148_v63  ;;  %v5228_v1 = vld [vmem:[#allocation3 + $0x158] sm:$0xff] }
 0x6ac   : > { %v6487_v46 = vpack.c.bf16 %v6443_v10, %v6442_v7  ;;  %v12010_v11 = vunpack.i.h.bf16 %v12008_v9  ;;  %v12009_v43 = vunpack.i.l.bf16 %v12008_v9  ;;  %v12019_v45 = vunpack.i.l.bf16 %v16148_v63 }
 0x6ad   : > { %v6285_v9 = vsel %vm582_vm0, %v5228_v1, %v11980_v13  ;;  %v6284_v63 = vsel %vm582_vm0, %v5227_v16, %v11979_v12  ;;  %v11443_v1 = vpop.f32.mrf.mxu1 }
 0x6ae   : > { %v16158_v47 = vpop.permute.xlu0 %12022  ;;  %6818 = vmatprep.mubr.bf16.mxu0 %v6487_v46  ;;  %v6315_v50 = vsel %vm6288_vm2, %v6282_v32, %v12009_v43  ;;  %v6316_v42 = vsel %vm6288_vm2, %v6283_v56, %v12010_v11 }
 0x6af   : > { %v12013_v15 = vpop.permute.xlu1 %12012  ;;  %v6348_v23 = vsel %vm6321_vm3, %v6315_v50, %v11974_v30  ;;  %v6349_v37 = vsel %vm6321_vm3, %v6316_v42, %v11975_v24  ;;  %v12025_v2 = vunpack.i.h.bf16 %v16158_v47  ;;  %v12024_v55 = vunpack.i.l.bf16 %v16158_v47 }
 0x6b0   : > { %v12015_v35 = vunpack.i.h.bf16 %v12013_v15  ;;  %v12014_v38 = vunpack.i.l.bf16 %v12013_v15  ;;  %v6489_v26 = vpack.c.bf16 %v6349_v37, %v6348_v23 }
 0x6b1   : > { %6819 = vmatmul.mubr.bf16.gmra.mxu0 %v6486_v21 }
 0x6b2   : > { %v12028_v62 = vpop.permute.xlu0 %12027  ;;  %v6317_v44 = vsel %vm6288_vm2, %v6284_v63, %v12014_v38  ;;  %v6318_v46 = vsel %vm6288_vm2, %v6285_v9, %v12015_v35 }
 0x6b3   : > { %v12058_v52 = vpop.permute.xlu1 %12057  ;;  %v12030_v31 = vunpack.i.h.bf16 %v12028_v62  ;;  %v12029_v33 = vunpack.i.l.bf16 %v12028_v62 }
 0x6b4   : > { %v12060_v51 = vunpack.i.h.bf16 %v12058_v52  ;;  %v12059_v8 = vunpack.i.l.bf16 %v12058_v52 }
 0x6b5   : > { %v6412_v48 = vsel %vm6288_vm2, %v6380_v3, %v12029_v33  ;;  %v6413_v29 = vsel %vm6288_vm2, %v6381_v39, %v12030_v31 }
 0x6b6   : > { %v12033_v40 = vpop.permute.xlu0 %12032  ;;  %v6351_v15 = vsel %vm6321_vm3, %v6318_v46, %v12060_v51 }
 0x6b7   : > { %v12035_v4 = vunpack.i.h.bf16 %v12033_v40  ;;  %v12034_v60 = vunpack.i.l.bf16 %v12033_v40  ;;  %v12063_v18 = vpop.permute.xlu1 %12062 }
 0x6b8   : > { %v12065_v0 = vunpack.i.h.bf16 %v12063_v18  ;;  %v12064_v27 = vunpack.i.l.bf16 %v12063_v18 }
 0x6b9   : > { %v6444_v20 = vsel %vm6321_vm3, %v6412_v48, %v12034_v60  ;;  %v6445_v61 = vsel %vm6321_vm3, %v6413_v29, %v12035_v4 }
 0x6ba   : > { %v12038_v17 = vpop.permute.xlu0 %12037  ;;  %v6490_v59 = vpack.c.bf16 %v6445_v61, %v6444_v20  ;;  %v6287_v42 = vsel %vm582_vm0, %v15875_v41, %v12065_v0  ;;  %v6286_v24 = vsel %vm582_vm0, %v15880_v34, %v12064_v27 }
 0x6bb   : > { %v12040_v54 = vunpack.i.h.bf16 %v12038_v17  ;;  %v12039_v25 = vunpack.i.l.bf16 %v12038_v17  ;;  %v12068_v19 = vpop.permute.xlu1 %12067 }
 0x6bc   : > { %6826 = vmatprep.mubr.bf16.mxu0 %v6490_v59  ;;  %v12070_v43 = vunpack.i.h.bf16 %v12068_v19  ;;  %v12069_v62 = vunpack.i.l.bf16 %v12068_v19 }
 0x6bd   : > { %v6382_v5 = vsel %vm582_vm0, %v15898_v57, %v12039_v25  ;;  %v6383_v36 = vsel %vm582_vm0, %v15888_v58, %v12040_v54  ;;  %6827 = vmatmul.mubr.bf16.gmra.mxu0 %v6489_v26  ;;  %v6350_v58 = vsel %vm6321_vm3, %v6317_v44, %v12059_v8 }
 0x6be   : > { %v12043_v7 = vpop.permute.xlu0 %12042  ;;  %v6414_v10 = vsel %vm6288_vm2, %v6382_v5, %v12019_v45  ;;  %v6415_v28 = vsel %vm6288_vm2, %v6383_v36, %v12020_v14  ;;  %v6492_v56 = vpack.c.bf16 %v6351_v15, %v6350_v58  ;;  %v6319_v30 = vsel %vm6288_vm2, %v6286_v24, %v12069_v62 }
 0x6bf   : > { %v6446_v47 = vsel %vm6321_vm3, %v6414_v10, %v12024_v55  ;;  %v6447_v57 = vsel %vm6321_vm3, %v6415_v28, %v12025_v2  ;;  %v12073_v11 = vpop.permute.xlu1 %12072  ;;  %v12045_v53 = vunpack.i.h.bf16 %v12043_v7  ;;  %v12044_v52 = vunpack.i.l.bf16 %v12043_v7  ;;  %v6885_v55 = vpop.f32.mrf.mxu1 }
 0x6c0   : > { %v6493_v21 = vpack.c.bf16 %v6447_v57, %v6446_v47  ;;  %v12075_v32 = vunpack.i.h.bf16 %v12073_v11  ;;  %v12074_v31 = vunpack.i.l.bf16 %v12073_v11  ;;  %v6320_v40 = vsel %vm6288_vm2, %v6287_v42, %v12070_v43 }
 0x6c1   : > { %v6385_v39 = vsel %vm582_vm0, %v15862_v22, %v12045_v53  ;;  %v6384_v4 = vsel %vm582_vm0, %v15867_v49, %v12044_v52  ;;  %v11444_v36 = vpop.f32.mrf.mxu1 }
 0x6c2   : > { %v12048_v6 = vpop.permute.xlu0 %12047  ;;  %6834 = vmatprep.mubr.bf16.mxu0 %v6493_v21  ;;  %v6352_v48 = vsel %vm6321_vm3, %v6319_v30, %v12074_v31  ;;  %v6353_v41 = vsel %vm6321_vm3, %v6320_v40, %v12075_v32 }
 0x6c3   : > { %v12050_v33 = vunpack.i.h.bf16 %v12048_v6  ;;  %v12049_v50 = vunpack.i.l.bf16 %v12048_v6  ;;  %v6495_v61 = vpack.c.bf16 %v6353_v41, %v6352_v48  ;;  %v6888_v63 = vpop.f32.mrf.mxu1 }
 0x6c5   : > { %6835 = vmatmul.mubr.bf16.gmra.mxu0 %v6492_v56  ;;  %v6416_v34 = vsel %vm6288_vm2, %v6384_v4, %v12049_v50  ;;  %v6417_v29 = vsel %vm6288_vm2, %v6385_v39, %v12050_v33  ;;  %v16240_v28 = vpop.f32.mrf.mxu1  ;;  %v7367_v39 = vld [vmem:[#allocation3 + $0x9] sm:$0xff] }
 0x6c6   : > { %v12053_v3 = vpop.permute.xlu0 %12052 }
 0x6c7   : > { %v12055_v60 = vunpack.i.h.bf16 %v12053_v3  ;;  %v12054_v18 = vunpack.i.l.bf16 %v12053_v3  ;;  %v6901_v47 = vpop.f32.mrf.mxu1  ;;  %v7366_v3 = vld [vmem:[#allocation3 + $0x1] sm:$0xff] }
 0x6c8   : > { %v12076_v4 = vpack.i.bf16 %v7367_v39, %v7366_v3 }
 0x6c9   : > { %v6448_v23 = vsel %vm6321_vm3, %v6416_v34, %v12054_v18  ;;  %v6449_v37 = vsel %vm6321_vm3, %v6417_v29, %v12055_v60  ;;  %v16248_v58 = vpop.f32.mrf.mxu1 }
 0x6ca   : > { %v6496_v20 = vpack.c.bf16 %v6449_v37, %v6448_v23  ;;  %12077 = vrot.lane.b32.xlu1 %v12076_v4, %s12822_s18  ;;  %v12718_v37 = vld [vmem:[%s17992_s10 + $0x88] sm:$0xff]  }
 0x6cb   : > { %v6904_v21 = vpop.f32.mrf.mxu1  ;;  %11473 = vmatprep.subr.bf16.mxu0 %v12718_v37 }
 0x6cc   : > { %6842 = vmatprep.mubr.bf16.mxu0 %v6496_v20  ;;  %11474 = vmatpush3.bf16.msra.mxu0 %v12718_v37  ;;  %v7557_v37 = vld [vmem:[#allocation3 + $0x1a0] sm:$0xff] }
 0x6cd   : > { %6843 = vmatmul.mubr.bf16.gmra.mxu0 %v6495_v61  ;;  %v16254_v27 = vpop.f32.mrf.mxu1 }
 0x6cf   : > { %v16258_v43 = vpop.f32.mrf.mxu1 }
 0x6d1   : > { %v16264_v53 = vpop.f32.mrf.mxu1 }
 0x6d3   : > { %v16270_v32 = vpop.f32.mrf.mxu1 }
 0x6d5   : > { %v16274_v33 = vpop.f32.mrf.mxu1 }
 0x6d7   : > { %v16278_v42 = vpop.f32.mrf.mxu1 }
 0x6d9   : > { %v16282_v30 = vpop.f32.mrf.mxu1 }
 0x6db   : > { %v16287_v60 = vpop.f32.mrf.mxu1 }
 0x6dd   : > { %v16293_v29 = vpop.f32.mrf.mxu1 }
 0x6df   : > { %v11079_v22 = vpop.f32.mrf.mxu0 }
 0x6e1   : > { %v11080_v49 = vpop.f32.mrf.mxu0 }
 0x6e2   : > { %v16216_v13 = vadd.f32 %v11080_v49, %v11079_v22 }
 0x6e3   : > { %v11082_v12 = vpop.f32.mrf.mxu0 }
 0x6e4   : > { %v16303_v22 = vadd.f32 %v16216_v13, %v6885_v55 }
 0x6e5   : > { %v11083_v35 = vpop.f32.mrf.mxu0 }
 0x6e6   : > { %v11084_v48 = vadd.f32 %v11083_v35, %v11082_v12 }
 0x6e8   : > { %v16300_v20 = vadd.f32 %v11084_v48, %v6888_v63 }
 0x6ea   : > { %18220 = vst [vmem:[#allocation25_spill] sm:$0xff] %v16300_v20  ;;  %v7082_v3 = vmul.f32 %v16300_v20, %v16300_v20 }
 0x6ec   : > { %v7114_v39 = vsel %vm582_vm0, %v7082_v3, 0.0 }
 0x6f1   : > { %v11085_v17 = vpop.f32.mrf.mxu0 }
 0x6f3   : > { %v11086_v59 = vpop.f32.mrf.mxu0 }
 0x6f4   : > { %v11087_v41 = vadd.f32 %v11086_v59, %v11085_v17  ;;  %v16309_v17 = vpop.f32.mrf.mxu1 }
 0x6f5   : > { %v11088_v38 = vpop.f32.mrf.mxu0 }
 0x6f6   : > { %v16305_v49 = vadd.f32 %v11443_v1, %v11087_v41  ;;  %v16329_v55 = vpop.f32.mrf.mxu1 }
 0x6f7   : > { %v11089_v54 = vpop.f32.mrf.mxu0 }
 0x6f8   : > { %v11090_v61 = vadd.f32 %v11089_v54, %v11088_v38  ;;  %18221 = vst [vmem:[#allocation26_spill] sm:$0xff] %v16305_v49  ;;  %v7081_v38 = vmul.f32 %v16303_v22, %v16303_v22  ;;  %v7083_v54 = vmul.f32 %v16305_v49, %v16305_v49 }
 0x6f9   : > { %v11091_v25 = vpop.f32.mrf.mxu0 }
 0x6fa   : > { %v16315_v63 = vadd.f32 %v11444_v36, %v11090_v61  ;;  %v7012_v36 = vsel %vm582_vm0, %v16303_v22, 0.0  ;;  %v7116_v41 = vsel %vm582_vm0, %v7083_v54, 0.0  ;;  %v7398_v61 = vld [vmem:[#allocation3 + $0x2] sm:$0xff]  ;;  %v12719_v54 = vld [vmem:[%s17992_s10 + $0x80] sm:$0xff]  }
 0x6fb   : > { %v11092_v19 = vpop.f32.mrf.mxu0  ;;  %11475 = vmatprep.subr.bf16.mxu0 %v12719_v54 }
 0x6fc   : > { %v11093_v12 = vadd.f32 %v11092_v19, %v11091_v25  ;;  %18222 = vst [vmem:[#allocation27_spill] sm:$0xff] %v16315_v63  ;;  %v7013_v19 = vsel %vm582_vm0, %v16300_v20, 0.0  ;;  %v7084_v4 = vmul.f32 %v16315_v63, %v16315_v63  ;;  %11476 = vmatpush3.bf16.msra.mxu0 %v12719_v54 }
 0x6fd   : > { %v16218_v26 = vpop.f32.mrf.mxu0 }
 0x6fe   : > { %v16323_v25 = vadd.f32 %v11093_v12, %v6901_v47  ;;  %v7015_v47 = vsel %vm582_vm0, %v16305_v49, 0.0  ;;  %v7017_v12 = vsel %vm582_vm0, %v16315_v63, 0.0 }
 0x6ff   : > { %v16220_v14 = vpop.f32.mrf.mxu0 }
 0x700   : > { %v11096_v13 = vadd.f32 %v16220_v14, %v16218_v26 }
 0x702   : > { %v16342_v48 = vadd.f32 %v11096_v13, %v6904_v21 }
 0x709   : > { %v16222_v45 = vpop.f32.mrf.mxu0 }
 0x70b   : > { %v16224_v51 = vpop.f32.mrf.mxu0 }
 0x70c   : > { %v11099_v1 = vadd.f32 %v16224_v51, %v16222_v45  ;;  %v7113_v45 = vsel %vm582_vm0, %v7081_v38, 0.0  ;;  %v7014_v51 = vadd.f32 %v7013_v19, %v7012_v36  ;;  %v7399_v38 = vld [vmem:[#allocation3 + $0xa] sm:$0xff]  ;;  %v16358_v19 = vpop.f32.mrf.mxu1 }
 0x70d   : > { %v16226_v8 = vpop.f32.mrf.mxu0  ;;  %v7115_v36 = vadd.f32 %v7114_v39, %v7113_v45 }
 0x70e   : > { %v16351_v3 = vadd.f32 %v16240_v28, %v11099_v1  ;;  %v7016_v49 = vadd.f32 %v7015_v47, %v7014_v51  ;;  %v12081_v28 = vpack.i.bf16 %v7399_v38, %v7398_v61  ;;  %v7118_v1 = vsel %vm582_vm0, %v7084_v4, 0.0 }
 0x70f   : > { %v16228_v16 = vpop.f32.mrf.mxu0  ;;  %v7117_v39 = vadd.f32 %v7116_v41, %v7115_v36  ;;  %v7021_v47 = vsel %vm582_vm0, %v16342_v48, 0.0 }
 0x710   : > { %v11102_v26 = vadd.f32 %v16228_v16, %v16226_v8  ;;  %v7085_v8 = vmul.f32 %v16323_v25, %v16323_v25  ;;  %v7556_v16 = vld [vmem:[#allocation3 + $0x198] sm:$0xff]  ;;  %12082 = vrot.lane.b32.xlu1 %v12081_v28, %s12823_s19  ;;  %v7087_v4 = vmul.f32 %v16351_v3, %v16351_v3  ;;  %v7023_v61 = vsel %vm582_vm0, %v16351_v3, 0.0 }
 0x711   : > { %v16230_v2 = vpop.f32.mrf.mxu0  ;;  %v12086_v13 = vpack.i.bf16 %v7557_v37, %v7556_v16 }
 0x712   : > { %v16361_v20 = vadd.f32 %v16248_v58, %v11102_v26  ;;  %v7018_v58 = vadd.f32 %v7017_v12, %v7016_v49  ;;  %v7120_v26 = vsel %vm582_vm0, %v7085_v8, 0.0  ;;  %v7119_v49 = vadd.f32 %v7118_v1, %v7117_v39 }
 0x713   : > { %v16232_v5 = vpop.f32.mrf.mxu0  ;;  %12087 = vrot.lane.b32.xlu0 %v12086_v13, %s12823_s19  ;;  %v7124_v13 = vsel %vm582_vm0, %v7087_v4, 0.0 }
 0x714   : > { %v11105_v21 = vadd.f32 %v16232_v5, %v16230_v2  ;;  %v7019_v2 = vsel %vm582_vm0, %v16323_v25, 0.0  ;;  %v7086_v5 = vmul.f32 %v16342_v48, %v16342_v48  ;;  %v7088_v41 = vmul.f32 %v16361_v20, %v16361_v20 }
 0x715   : > { %v16234_v9 = vpop.f32.mrf.mxu0  ;;  %v7020_v51 = vadd.f32 %v7019_v2, %v7018_v58  ;;  %v7025_v38 = vsel %vm582_vm0, %v16361_v20, 0.0 }
 0x716   : > { %v16380_v45 = vadd.f32 %v11105_v21, %v16258_v43  ;;  %v7122_v37 = vsel %vm582_vm0, %v7086_v5, 0.0 }
 0x717   : > { %v16236_v7 = vpop.f32.mrf.mxu0  ;;  %v7022_v12 = vadd.f32 %v7021_v47, %v7020_v51 }
 0x718   : > { %v11108_v16 = vadd.f32 %v16236_v7, %v16234_v9  ;;  %v16384_v7 = vpop.f32.mrf.mxu1  ;;  %v7089_v54 = vmul.f32 %v16380_v45, %v16380_v45 }
 0x71a   : > { %v16394_v43 = vadd.f32 %v11108_v16, %v16270_v32  ;;  %v16408_v32 = vpop.f32.mrf.mxu1 }
 0x71c   : > { %v7029_v47 = vsel %vm582_vm0, %v16394_v43, 0.0 }
 0x721   : > { %v16238_v10 = vpop.f32.mrf.mxu0 }
 0x723   : > { %v16242_v44 = vpop.f32.mrf.mxu0 }
 0x724   : > { %v11111_v9 = vadd.f32 %v16242_v44, %v16238_v10  ;;  %v7121_v44 = vadd.f32 %v7120_v26, %v7119_v49  ;;  %v7128_v26 = vsel %vm582_vm0, %v7089_v54, 0.0 }
 0x725   : > { %v16244_v46 = vpop.f32.mrf.mxu0 }
 0x726   : > { %v16406_v36 = vadd.f32 %v16254_v27, %v11111_v9  ;;  %v7123_v28 = vadd.f32 %v7122_v37, %v7121_v44  ;;  %v16434_v9 = vpop.f32.mrf.mxu1 }
 0x727   : > { %v16246_v57 = vpop.f32.mrf.mxu0 }
 0x728   : > { %v11114_v10 = vadd.f32 %v16246_v57, %v16244_v46  ;;  %v7024_v46 = vadd.f32 %v7023_v61, %v7022_v12  ;;  %v7126_v57 = vsel %vm582_vm0, %v7088_v41, 0.0  ;;  %v7125_v5 = vadd.f32 %v7124_v13, %v7123_v28  ;;  %v6968_v13 = vpop.f32.mrf.mxu1 }
 0x729   : > { %v16250_v15 = vpop.f32.mrf.mxu0  ;;  %v7091_v4 = vmul.f32 %v16406_v36, %v16406_v36  ;;  %v7031_v41 = vsel %vm582_vm0, %v16406_v36, 0.0 }
 0x72a   : > { %v16418_v2 = vadd.f32 %v16264_v53, %v11114_v10  ;;  %v7026_v16 = vadd.f32 %v7025_v38, %v7024_v46 }
 0x72b   : > { %v16252_v0 = vpop.f32.mrf.mxu0 }
 0x72c   : > { %v11117_v21 = vadd.f32 %v16252_v0, %v16250_v15  ;;  %v7027_v15 = vsel %vm582_vm0, %v16380_v45, 0.0  ;;  %v7090_v0 = vmul.f32 %v16394_v43, %v16394_v43  ;;  %v7092_v37 = vmul.f32 %v16418_v2, %v16418_v2 }
 0x72d   : > { %v16256_v11 = vpop.f32.mrf.mxu0 }
 0x72e   : > { %v16423_v39 = vadd.f32 %v11117_v21, %v16278_v42  ;;  %v7130_v51 = vsel %vm582_vm0, %v7090_v0, 0.0  ;;  %v7134_v46 = vsel %vm582_vm0, %v7092_v37, 0.0 }
 0x72f   : > { %v16260_v62 = vpop.f32.mrf.mxu0 }
 0x730   : > { %v11120_v27 = vadd.f32 %v16260_v62, %v16256_v11  ;;  %v7127_v11 = vadd.f32 %v7126_v57, %v7125_v5  ;;  %v7028_v62 = vadd.f32 %v7027_v15, %v7026_v16  ;;  %v7093_v10 = vmul.f32 %v16423_v39, %v16423_v39 }
 0x731   : > { %v7035_v57 = vsel %vm582_vm0, %v16423_v39, 0.0 }
 0x732   : > { %v16444_v61 = vadd.f32 %v11120_v27, %v16287_v60 }
 0x734   : > { %v7094_v15 = vmul.f32 %v16444_v61, %v16444_v61 }
 0x739   : > { %v16262_v6 = vpop.f32.mrf.mxu0 }
 0x73b   : > { %v16266_v52 = vpop.f32.mrf.mxu0 }
 0x73c   : > { %v11123_v53 = vadd.f32 %v16266_v52, %v16262_v6  ;;  %v7129_v6 = vadd.f32 %v7128_v26, %v7127_v11  ;;  %v7030_v52 = vadd.f32 %v7029_v47, %v7028_v62  ;;  %v16476_v47 = vpop.f32.mrf.mxu1  ;;  %v7138_v11 = vsel %vm582_vm0, %v7094_v15, 0.0 }
 0x73d   : > { %v16268_v56 = vpop.f32.mrf.mxu0 }
 0x73e   : > { %v16452_v12 = vadd.f32 %v16274_v33, %v11123_v53  ;;  %v7131_v60 = vadd.f32 %v7130_v51, %v7129_v6  ;;  %v7032_v38 = vadd.f32 %v7031_v41, %v7030_v52 }
 0x73f   : > { %v16272_v31 = vpop.f32.mrf.mxu0 }
 0x740   : > { %v11126_v42 = vadd.f32 %v16272_v31, %v16268_v56  ;;  %v7132_v56 = vsel %vm582_vm0, %v7091_v4, 0.0  ;;  %v7033_v31 = vsel %vm582_vm0, %v16418_v2, 0.0  ;;  %v7095_v5 = vmul.f32 %v16452_v12, %v16452_v12 }
 0x741   : > { %v16276_v50 = vpop.f32.mrf.mxu0  ;;  %v7133_v0 = vadd.f32 %v7132_v56, %v7131_v60  ;;  %v7039_v62 = vsel %vm582_vm0, %v16452_v12, 0.0 }
 0x742   : > { %v16457_v54 = vadd.f32 %v16282_v30, %v11126_v42  ;;  %v7037_v30 = vsel %vm582_vm0, %v16444_v61, 0.0  ;;  %v7140_v41 = vsel %vm582_vm0, %v7095_v5, 0.0 }
 0x743   : > { %v16280_v24 = vpop.f32.mrf.mxu0 }
 0x744   : > { %v11129_v21 = vadd.f32 %v16280_v24, %v16276_v50  ;;  %v7034_v50 = vadd.f32 %v7033_v31, %v7032_v38  ;;  %v7136_v24 = vsel %vm582_vm0, %v7093_v10, 0.0  ;;  %v7096_v4 = vmul.f32 %v16457_v54, %v16457_v54 }
 0x745   : > { %v16284_v40 = vpop.f32.mrf.mxu0  ;;  %v7041_v37 = vsel %vm582_vm0, %v16457_v54, 0.0 }
 0x746   : > { %v16472_v16 = vadd.f32 %v11129_v21, %v16309_v17 }
 0x747   : > { %v16289_v18 = vpop.f32.mrf.mxu0 }
 0x748   : > { %v11132_v33 = vadd.f32 %v16289_v18, %v16284_v40  ;;  %v7135_v40 = vadd.f32 %v7134_v46, %v7133_v0  ;;  %v7036_v18 = vadd.f32 %v7035_v57, %v7034_v50  ;;  %v7097_v6 = vmul.f32 %v16472_v16, %v16472_v16 }
 0x74a   : > { %v16484_v42 = vadd.f32 %v11132_v33, %v16358_v19  ;;  %v6981_v19 = vpop.f32.mrf.mxu1  ;;  %v7144_v46 = vsel %vm582_vm0, %v7097_v6, 0.0 }
 0x74c   : > { %v7045_v57 = vsel %vm582_vm0, %v16484_v42, 0.0 }
 0x751   : > { %v16291_v34 = vpop.f32.mrf.mxu0 }
 0x753   : > { %v16295_v23 = vpop.f32.mrf.mxu0 }
 0x754   : > { %v11135_v26 = vadd.f32 %v16295_v23, %v16291_v34  ;;  %v7137_v34 = vadd.f32 %v7136_v24, %v7135_v40  ;;  %v7038_v23 = vadd.f32 %v7037_v30, %v7036_v18 }
 0x755   : > { %v16307_v35 = vpop.f32.mrf.mxu0 }
 0x756   : > { %v16496_v52 = vadd.f32 %v16293_v29, %v11135_v26  ;;  %v7139_v10 = vadd.f32 %v7138_v11, %v7137_v34  ;;  %v7040_v56 = vadd.f32 %v7039_v62, %v7038_v23 }
 0x757   : > { %v16311_v59 = vpop.f32.mrf.mxu0 }
 0x758   : > { %v11138_v17 = vadd.f32 %v16311_v59, %v16307_v35  ;;  %v7142_v35 = vsel %vm582_vm0, %v7096_v4, 0.0  ;;  %v7141_v29 = vadd.f32 %v7140_v41, %v7139_v10  ;;  %v7042_v60 = vadd.f32 %v7041_v37, %v7040_v56 }
 0x759   : > { %v16335_v14 = vpop.f32.mrf.mxu0  ;;  %v7099_v15 = vmul.f32 %v16496_v52, %v16496_v52 }
 0x75a   : > { %v16504_v31 = vadd.f32 %v16329_v55, %v11138_v17  ;;  %v11468_v55 = vpop.f32.mrf.mxu1  ;;  %v7143_v0 = vadd.f32 %v7142_v35, %v7141_v29 }
 0x75b   : > { %v16363_v63 = vpop.f32.mrf.mxu0  ;;  %v7148_v18 = vsel %vm582_vm0, %v7099_v15, 0.0 }
 0x75c   : > { %v11141_v51 = vadd.f32 %v16363_v63, %v16335_v14  ;;  %v7043_v63 = vsel %vm582_vm0, %v16472_v16, 0.0  ;;  %v7098_v14 = vmul.f32 %v16484_v42, %v16484_v42  ;;  %v7100_v30 = vmul.f32 %v16504_v31, %v16504_v31  ;;  %v6984_v11 = vpop.f32.mrf.mxu1 }
 0x75d   : > { %v16388_v8 = vpop.f32.mrf.mxu0  ;;  %v7044_v50 = vadd.f32 %v7043_v63, %v7042_v60  ;;  %v7145_v26 = vadd.f32 %v7144_v46, %v7143_v0 }
 0x75e   : > { %v16509_v38 = vadd.f32 %v11141_v51, %v16408_v32  ;;  %v7047_v32 = vsel %vm582_vm0, %v16496_v52, 0.0  ;;  %v7150_v23 = vsel %vm582_vm0, %v7100_v30, 0.0  ;;  %v16541_v10 = vpop.f32.mrf.mxu1 }
 0x75f   : > { %v16411_v1 = vpop.f32.mrf.mxu0  ;;  %v7046_v40 = vadd.f32 %v7045_v57, %v7044_v50 }
 0x760   : > { %v11144_v21 = vadd.f32 %v16411_v1, %v16388_v8  ;;  %v7146_v1 = vsel %vm582_vm0, %v7098_v14, 0.0  ;;  %v7051_v51 = vsel %vm582_vm0, %v16509_v38, 0.0 }
 0x761   : > { %v7147_v62 = vadd.f32 %v7146_v1, %v7145_v26  ;;  %v7048_v17 = vadd.f32 %v7047_v32, %v7046_v40 }
 0x762   : > { %v16522_v5 = vadd.f32 %v11144_v21, %v6968_v13 }
 0x763   : > { %v7149_v6 = vadd.f32 %v7148_v18, %v7147_v62 }
 0x764   : > { %v7102_v41 = vmul.f32 %v16522_v5, %v16522_v5 }
 0x765   : > { %v7151_v14 = vadd.f32 %v7150_v23, %v7149_v6 }
 0x766   : > { %v7154_v60 = vsel %vm582_vm0, %v7102_v41, 0.0 }
 0x769   : > { %v16425_v58 = vpop.f32.mrf.mxu0 }
 0x76b   : > { %v11146_v49 = vpop.f32.mrf.mxu0 }
 0x76c   : > { %v11147_v33 = vadd.f32 %v11146_v49, %v16425_v58  ;;  %v7101_v58 = vmul.f32 %v16509_v38, %v16509_v38 }
 0x76d   : > { %v11148_v44 = vpop.f32.mrf.mxu0 }
 0x76f   : > { %v11149_v28 = vpop.f32.mrf.mxu0 }
 0x770   : > { %v11150_v24 = vadd.f32 %v11149_v28, %v11148_v44  ;;  %v7049_v44 = vsel %vm582_vm0, %v16504_v31, 0.0  ;;  %v16530_v28 = vadd.f32 %v16384_v7, %v11147_v33 }
 0x771   : > { %v11151_v27 = vpop.f32.mrf.mxu0  ;;  %v7050_v7 = vadd.f32 %v7049_v44, %v7048_v17 }
 0x772   : > { %v16533_v13 = vadd.f32 %v16434_v9, %v11150_v24  ;;  %v7053_v9 = vsel %vm582_vm0, %v16522_v5, 0.0  ;;  %v7103_v56 = vmul.f32 %v16530_v28, %v16530_v28  ;;  %v7055_v46 = vsel %vm582_vm0, %v16530_v28, 0.0 }
 0x773   : > { %v11152_v53 = vpop.f32.mrf.mxu0  ;;  %v7052_v21 = vadd.f32 %v7051_v51, %v7050_v7 }
 0x774   : > { %v11153_v4 = vadd.f32 %v11152_v53, %v11151_v27  ;;  %v7152_v27 = vsel %vm582_vm0, %v7101_v58, 0.0  ;;  %v7156_v24 = vsel %vm582_vm0, %v7103_v56, 0.0 }
 0x775   : > { %v11154_v59 = vpop.f32.mrf.mxu0  ;;  %v7153_v33 = vadd.f32 %v7152_v27, %v7151_v14  ;;  %v7054_v0 = vadd.f32 %v7053_v9, %v7052_v21 }
 0x776   : > { %v16547_v35 = vadd.f32 %v11153_v4, %v6981_v19  ;;  %v6997_v19 = vpop.f32.mrf.mxu1 }
 0x777   : > { %v11155_v8 = vpop.f32.mrf.mxu0  ;;  %v7155_v30 = vadd.f32 %v7154_v60, %v7153_v33  ;;  %v7056_v26 = vadd.f32 %v7055_v46, %v7054_v0 }
 0x778   : > { %v11156_v37 = vadd.f32 %v11155_v8, %v11154_v59  ;;  %v7104_v59 = vmul.f32 %v16533_v13, %v16533_v13  ;;  %v7057_v8 = vsel %vm582_vm0, %v16533_v13, 0.0  ;;  %v7105_v1 = vmul.f32 %v16547_v35, %v16547_v35 }
 0x779   : > { %v7058_v62 = vadd.f32 %v7057_v8, %v7056_v26 }
 0x77a   : > { %v16554_v57 = vadd.f32 %v11156_v37, %v6984_v11  ;;  %v7158_v40 = vsel %vm582_vm0, %v7104_v59, 0.0  ;;  %v7157_v11 = vadd.f32 %v7156_v24, %v7155_v30 }
 0x77c   : > { %v7106_v18 = vmul.f32 %v16554_v57, %v16554_v57  ;;  %v7061_v23 = vsel %vm582_vm0, %v16554_v57, 0.0  ;;  %v7159_v37 = vadd.f32 %v7158_v40, %v7157_v11 }
 0x77d   : > { %v11157_v49 = vpop.f32.mrf.mxu0 }
 0x77f   : > { %v11158_v34 = vpop.f32.mrf.mxu0 }
 0x780   : > { %v11159_v63 = vadd.f32 %v11158_v34, %v11157_v49  ;;  %v7059_v49 = vsel %vm582_vm0, %v16547_v35, 0.0  ;;  %v11472_v34 = vpop.f32.mrf.mxu1 }
 0x781   : > { %v11160_v53 = vpop.f32.mrf.mxu0  ;;  %v7060_v6 = vadd.f32 %v7059_v49, %v7058_v62 }
 0x782   : > { %v16562_v32 = vadd.f32 %v16476_v47, %v11159_v63  ;;  %v7160_v47 = vsel %vm582_vm0, %v7105_v1, 0.0  ;;  %v7000_v14 = vpop.f32.mrf.mxu1 }
 0x783   : > { %v11161_v29 = vpop.f32.mrf.mxu0  ;;  %v7161_v56 = vadd.f32 %v7160_v47, %v7159_v37  ;;  %v7062_v63 = vadd.f32 %v7061_v23, %v7060_v6 }
 0x784   : > { %v11162_v15 = vadd.f32 %v11161_v29, %v11160_v53  ;;  %v7107_v51 = vmul.f32 %v16562_v32, %v16562_v32  ;;  %v7063_v27 = vsel %vm582_vm0, %v16562_v32, 0.0 }
 0x785   : > { %v11163_v50 = vpop.f32.mrf.mxu0  ;;  %v7064_v33 = vadd.f32 %v7063_v27, %v7062_v63 }
 0x786   : > { %v16569_v44 = vadd.f32 %v11468_v55, %v11162_v15  ;;  %v7162_v55 = vsel %vm582_vm0, %v7106_v18, 0.0  ;;  %v7164_v59 = vsel %vm582_vm0, %v7107_v51, 0.0 }
 0x787   : > { %v11164_v58 = vpop.f32.mrf.mxu0  ;;  %v7163_v15 = vadd.f32 %v7162_v55, %v7161_v56 }
 0x788   : > { %v11165_v4 = vadd.f32 %v11164_v58, %v11163_v50  ;;  %v7108_v53 = vmul.f32 %v16569_v44, %v16569_v44  ;;  %v7065_v29 = vsel %vm582_vm0, %v16569_v44, 0.0 }
 0x789   : > { %v11166_v17 = vpop.f32.mrf.mxu0  ;;  %v7165_v1 = vadd.f32 %v7164_v59, %v7163_v15  ;;  %v7066_v30 = vadd.f32 %v7065_v29, %v7064_v33 }
 0x78a   : > { %v16576_v41 = vadd.f32 %v11165_v4, %v6997_v19  ;;  %v7166_v50 = vsel %vm582_vm0, %v7108_v53, 0.0 }
 0x78b   : > { %v11167_v7 = vpop.f32.mrf.mxu0  ;;  %v7167_v4 = vadd.f32 %v7166_v50, %v7165_v1 }
 0x78c   : > { %v11168_v9 = vadd.f32 %v11167_v7, %v11166_v17  ;;  %v7109_v60 = vmul.f32 %v16576_v41, %v16576_v41  ;;  %v7067_v19 = vsel %vm582_vm0, %v16576_v41, 0.0 }
 0x78d   : > { %v11169_v21 = vpop.f32.mrf.mxu0  ;;  %v7068_v18 = vadd.f32 %v7067_v19, %v7066_v30 }
 0x78e   : > { %v16588_v46 = vadd.f32 %v11168_v9, %v7000_v14  ;;  %v7168_v40 = vsel %vm582_vm0, %v7109_v60, 0.0 }
 0x78f   : > { %v11170_v0 = vpop.f32.mrf.mxu0  ;;  %v7169_v51 = vadd.f32 %v7168_v40, %v7167_v4  ;;  %v7187_v4 = vld [vmem:[%s17990_s8] sm:$0x1] }
 0x790   : > { %v7110_v24 = vmul.f32 %v16588_v46, %v16588_v46  ;;  %v11171_v8 = vadd.f32 %v11170_v0, %v11169_v21  ;;  %v7069_v58 = vsel %vm582_vm0, %v16588_v46, 0.0 }
 0x791   : > { %v11172_v26 = vpop.f32.mrf.mxu0  ;;  %v7070_v37 = vadd.f32 %v7069_v58, %v7068_v18 }
 0x792   : > { %v16599_v49 = vadd.f32 %v16541_v10, %v11171_v8  ;;  %v7170_v62 = vsel %vm582_vm0, %v7110_v24, 0.0 }
 0x793   : > { %v11173_v11 = vpop.f32.mrf.mxu0  ;;  %v7171_v55 = vadd.f32 %v7170_v62, %v7169_v51 }
 0x794   : > { %v7071_v17 = vsel %vm582_vm0, %v16599_v49, 0.0  ;;  %v7111_v47 = vmul.f32 %v16599_v49, %v16599_v49  ;;  %v11174_v23 = vadd.f32 %v11173_v11, %v11172_v26 }
 0x795   : > { %v7072_v10 = vadd.f32 %v7071_v17, %v7070_v37  ;;  %v7191_v17 = vld [vmem:[%s17991_s9] sm:$0x1]  ;;  %v12720_v37 = vld [vmem:[%s17992_s10 + $0x78] sm:$0xff]  }
 0x796   : > { %v7172_v6 = vsel %vm582_vm0, %v7111_v47, 0.0  ;;  %v7009_v7 = vadd.f32 %v11472_v34, %v11174_v23  ;;  %v18223_v23 = vld [vmem:[#allocation43_spill] sm:$0xff]  ;;  %11193 = vmatprep.subr.bf16.mxu1 %v12720_v37 }
 0x797   : > { %v7173_v9 = vadd.f32 %v7172_v6, %v7171_v55  ;;  %v12721_v6 = vld [vmem:[%s17992_s10 + $0x38] sm:$0xff]  }
 0x798   : > { %v7073_v27 = vsel %vm582_vm0, %v7009_v7, 0.0  ;;  %v7112_v53 = vmul.f32 %v7009_v7, %v7009_v7  ;;  %11194 = vmatpush3.bf16.msra.mxu1 %v12721_v6 }
 0x799   : > { %v7074_v56 = vadd.f32 %v7073_v27, %v7072_v10 }
 0x79a   : > { %v7174_v63 = vsel %vm582_vm0, %v7112_v53, 0.0  ;;  %v18224_v53 = vld [vmem:[#allocation25_spill] sm:$0xff] }
 0x79b   : > { %v7075_v14 = vrot.slane %v7074_v56, 4  ;;  %v7175_v21 = vadd.f32 %v7174_v63, %v7173_v9 }
 0x79d   : > { %v7076_v59 = vadd.f32 %v7075_v14, %v7074_v56  ;;  %v7176_v29 = vrot.slane %v7175_v21, 4  ;;  %v18225_v56 = vld [vmem:[#allocation26_spill] sm:$0xff]  ;;  %v18226_v14 = vld [vmem:[#allocation27_spill] sm:$0xff] }
 0x79f   : > { %v7077_v60 = vrot.slane %v7076_v59, 2  ;;  %v7177_v15 = vadd.f32 %v7176_v29, %v7175_v21 }
 0x7a1   : > { %v7078_v33 = vadd.f32 %v7077_v60, %v7076_v59  ;;  %v7178_v0 = vrot.slane %v7177_v15, 2 }
 0x7a3   : > { %v7079_v50 = vrot.slane %v7078_v33, 1  ;;  %v7179_v19 = vadd.f32 %v7178_v0, %v7177_v15 }
 0x7a5   : > { %v7080_v34 = vadd.f32 %v7079_v50, %v7078_v33  ;;  %v7180_v24 = vrot.slane %v7179_v19, 1  ;;  %v12722_v33 = vld [vmem:[%s17992_s10 + $0x70] sm:$0xff]  }
 0x7a6   : > { %11195 = vmatprep.subr.bf16.mxu1 %v12722_v33 }
 0x7a7   : > { %v7181_v8 = vadd.f32 %v7180_v24, %v7179_v19  ;;  %v7182_v1 = vmul.f32 0.00390625, %v7080_v34 }
 0x7a9   : > { %v7183_v30 = vmul.f32 0.00390625, %v7181_v8  ;;  %v7184_v26 = vmul.f32 %v7182_v1, %v7182_v1 }
 0x7ab   : > { %v7185_v40 = vsub.f32 %v7183_v30, %v7184_v26 }
 0x7ad   : > { %v7186_v58 = vmax.f32 %v7185_v40, 0.0  ;;  %v12727_v40 = vld [vmem:[%s17992_s10 + $0x20] sm:$0xff]  }
 0x7af   : > { %v7188_v18 = vadd.f32 1e-05, %v7186_v58 }
 0x7b1   : > { %12742 = vrsqrt.f32 %v7188_v18 }
 0x7be   : > { %v12743_v11 = vpop.eup %12742 }
 0x7bf   : > { %v7190_v62 = vmul.f32 %v12743_v11, %v7187_v4 }
 0x7c1   : > { %v7192_v47 = vmul.f32 %v7190_v62, %v7182_v1  ;;  %v7198_v51 = vrot.slane %v7190_v62, %v18223_v23 }
 0x7c3   : > { %v7193_v55 = vsub.f32 %v7191_v17, %v7192_v47  ;;  %v7231_v10 = vmul.f32 %v7198_v51, %v7009_v7  ;;  %v7200_v27 = vmul.f32 %v7198_v51, %v16303_v22  ;;  %v7201_v9 = vmul.f32 %v7198_v51, %v18224_v53 }
 0x7c4   : > { %v7202_v63 = vmul.f32 %v7198_v51, %v18225_v56  ;;  %v7203_v21 = vmul.f32 %v7198_v51, %v18226_v14  ;;  %v7204_v59 = vmul.f32 %v7198_v51, %v16323_v25  ;;  %v7205_v29 = vmul.f32 %v7198_v51, %v16342_v48  ;;  %v12723_v25 = vld [vmem:[%s17992_s10 + $0x30] sm:$0xff]   ;;  %v12729_v14 = vld [vmem:[%s17992_s10 + $0x18] sm:$0xff]  }
 0x7c5   : > { %v16629_v60 = vrot.slane %v7193_v55, %v18223_v23  ;;  %v7206_v15 = vmul.f32 %v7198_v51, %v16351_v3  ;;  %v7207_v7 = vmul.f32 %v7198_v51, %v16361_v20  ;;  %v7208_v22 = vmul.f32 %v7198_v51, %v16380_v45  ;;  %11196 = vmatpush3.bf16.msra.mxu1 %v12723_v25 }
 0x7c6   : > { %v7209_v48 = vmul.f32 %v7198_v51, %v16394_v43  ;;  %v7210_v0 = vmul.f32 %v7198_v51, %v16406_v36  ;;  %v7211_v50 = vmul.f32 %v7198_v51, %v16418_v2  ;;  %v7212_v3 = vmul.f32 %v7198_v51, %v16423_v39 }
 0x7c7   : > { %v7269_v20 = vadd.f32 %v16629_v60, %v7231_v10  ;;  %v7213_v45 = vmul.f32 %v7198_v51, %v16444_v61  ;;  %v7214_v19 = vmul.f32 %v7198_v51, %v16452_v12  ;;  %v7215_v34 = vmul.f32 %v7198_v51, %v16457_v54  ;;  %v12724_v12 = vld [vmem:[%s17992_s10 + $0x68] sm:$0xff]  }
 0x7c8   : > { %v7216_v24 = vmul.f32 %v7198_v51, %v16472_v16  ;;  %v7217_v8 = vmul.f32 %v7198_v51, %v16484_v42  ;;  %v7218_v43 = vmul.f32 %v7198_v51, %v16496_v52  ;;  %v7219_v36 = vmul.f32 %v7198_v51, %v16504_v31  ;;  %v12725_v54 = vld [vmem:[%s17992_s10 + $0x28] sm:$0xff]   ;;  %11197 = vmatprep.subr.bf16.mxu1 %v12724_v12  ;;  %v12731_v12 = vld [vmem:[%s17992_s10 + $0x10] sm:$0xff]  }
 0x7c9   : > { %v7301_v2 = vmax.f32 %v7269_v20, 0.0  ;;  %v7220_v39 = vmul.f32 %v7198_v51, %v16509_v38  ;;  %v7221_v1 = vmul.f32 %v7198_v51, %v16522_v5  ;;  %v7222_v61 = vmul.f32 %v7198_v51, %v16530_v28  ;;  %11198 = vmatpush3.bf16.msra.mxu1 %v12725_v54 }
 0x7ca   : > { %v7223_v16 = vmul.f32 %v7198_v51, %v16533_v13  ;;  %v7224_v42 = vmul.f32 %v7198_v51, %v16547_v35  ;;  %v7225_v52 = vmul.f32 %v7198_v51, %v16554_v57  ;;  %v7226_v31 = vmul.f32 %v7198_v51, %v16562_v32 }
 0x7cb   : > { %v7227_v38 = vmul.f32 %v7198_v51, %v16569_v44  ;;  %v7228_v5 = vmul.f32 %v7198_v51, %v16576_v41  ;;  %v7229_v28 = vmul.f32 %v7198_v51, %v16588_v46  ;;  %v7230_v30 = vmul.f32 %v7198_v51, %v16599_v49  ;;  %7333 = vst.msk [vmem:[#allocation3 + $0x189] sm:$0xff] %vm582_vm0, %v7301_v2  ;;  %v12726_v49 = vld [vmem:[%s17992_s10 + $0x60] sm:$0xff]  }
 0x7cc   : > { %v7238_v26 = vadd.f32 %v16629_v60, %v7200_v27  ;;  %v7239_v13 = vadd.f32 %v16629_v60, %v7201_v9  ;;  %v7240_v35 = vadd.f32 %v16629_v60, %v7202_v63  ;;  %v7241_v57 = vadd.f32 %v16629_v60, %v7203_v21  ;;  %11199 = vmatprep.subr.bf16.mxu1 %v12726_v49  ;;  %v12728_v63 = vld [vmem:[%s17992_s10 + $0x58] sm:$0xff]  }
 0x7cd   : > { %v7242_v32 = vadd.f32 %v16629_v60, %v7204_v59  ;;  %v7243_v44 = vadd.f32 %v16629_v60, %v7205_v29  ;;  %v7244_v41 = vadd.f32 %v16629_v60, %v7206_v15  ;;  %v7245_v46 = vadd.f32 %v16629_v60, %v7207_v7  ;;  %11200 = vmatpush3.bf16.msra.mxu1 %v12727_v40 }
 0x7ce   : > { %v7246_v58 = vadd.f32 %v16629_v60, %v7208_v22  ;;  %v7247_v18 = vadd.f32 %v16629_v60, %v7209_v48  ;;  %v7248_v4 = vadd.f32 %v16629_v60, %v7210_v0  ;;  %v7249_v11 = vadd.f32 %v16629_v60, %v7211_v50  ;;  %11201 = vmatprep.subr.bf16.mxu1 %v12728_v63 }
 0x7cf   : > { %v7250_v62 = vadd.f32 %v16629_v60, %v7212_v3  ;;  %v16690_v17 = vadd.f32 %v16629_v60, %v7213_v45  ;;  %v16693_v47 = vadd.f32 %v16629_v60, %v7214_v19  ;;  %v16696_v51 = vadd.f32 %v16629_v60, %v7215_v34 }
 0x7d0   : > { %v16699_v37 = vadd.f32 %v16629_v60, %v7216_v24  ;;  %v16702_v6 = vadd.f32 %v16629_v60, %v7217_v8  ;;  %v16705_v55 = vadd.f32 %v16629_v60, %v7218_v43  ;;  %v16708_v10 = vadd.f32 %v16629_v60, %v7219_v36 }
 0x7d1   : > { %v16711_v27 = vadd.f32 %v16629_v60, %v7220_v39  ;;  %v16714_v53 = vadd.f32 %v16629_v60, %v7221_v1  ;;  %v16717_v9 = vadd.f32 %v16629_v60, %v7222_v61  ;;  %v16720_v56 = vadd.f32 %v16629_v60, %v7223_v16  ;;  %11202 = vmatpush3.bf16.msra.mxu1 %v12729_v14  ;;  %v12730_v61 = vld [vmem:[%s17992_s10 + $0x50] sm:$0xff]  }
 0x7d2   : > { %v16729_v21 = vadd.f32 %v16629_v60, %v7224_v42  ;;  %v16732_v59 = vadd.f32 %v16629_v60, %v7225_v52  ;;  %v16735_v29 = vadd.f32 %v16629_v60, %v7226_v31  ;;  %v16738_v15 = vadd.f32 %v16629_v60, %v7227_v38  ;;  %11203 = vmatprep.subr.bf16.mxu1 %v12730_v61 }
 0x7d3   : > { %v16741_v7 = vadd.f32 %v16629_v60, %v7228_v5  ;;  %v16744_v22 = vadd.f32 %v16629_v60, %v7229_v28  ;;  %v16747_v33 = vadd.f32 %v16629_v60, %v7230_v30  ;;  %v7270_v25 = vmax.f32 %v7238_v26, 0.0 }
 0x7d4   : > { %v7271_v48 = vmax.f32 %v7239_v13, 0.0  ;;  %v7272_v0 = vmax.f32 %v7240_v35, 0.0  ;;  %v7273_v50 = vmax.f32 %v7241_v57, 0.0  ;;  %v7274_v3 = vmax.f32 %v7242_v32, 0.0  ;;  %v12732_v57 = vld [vmem:[%s17992_s10 + $0x48] sm:$0xff]  }
 0x7d5   : > { %v7275_v20 = vmax.f32 %v7243_v44, 0.0  ;;  %v7276_v45 = vmax.f32 %v7244_v41, 0.0  ;;  %v7277_v19 = vmax.f32 %v7245_v46, 0.0  ;;  %v7278_v34 = vmax.f32 %v7246_v58, 0.0  ;;  %7302 = vst.msk [vmem:[#allocation3 + $0x19] sm:$0xff] %vm582_vm0, %v7270_v25  ;;  %11204 = vmatpush3.bf16.msra.mxu1 %v12731_v12  ;;  %v12733_v32 = vld [vmem:[%s17992_s10 + $0x8] sm:$0xff]  }
 0x7d6   : > { %v7279_v24 = vmax.f32 %v7247_v18, 0.0  ;;  %v7280_v8 = vmax.f32 %v7248_v4, 0.0  ;;  %v7281_v43 = vmax.f32 %v7249_v11, 0.0  ;;  %v7282_v36 = vmax.f32 %v7250_v62, 0.0  ;;  %7303 = vst.msk [vmem:[#allocation3 + $0x21] sm:$0xff] %vm582_vm0, %v7271_v48  ;;  %7304 = vst.msk [vmem:[#allocation3 + $0x31] sm:$0xff] %vm582_vm0, %v7272_v0  ;;  %11205 = vmatprep.subr.bf16.mxu1 %v12732_v57 }
 0x7d7   : > { %7305 = vst.msk [vmem:[#allocation3 + $0x39] sm:$0xff] %vm582_vm0, %v7273_v50  ;;  %7306 = vst.msk [vmem:[#allocation3 + $0x49] sm:$0xff] %vm582_vm0, %v7274_v3  ;;  %v7283_v60 = vmax.f32 %v16690_v17, 0.0  ;;  %v7284_v2 = vmax.f32 %v16693_v47, 0.0  ;;  %v7285_v39 = vmax.f32 %v16696_v51, 0.0  ;;  %v7286_v1 = vmax.f32 %v16699_v37, 0.0 }
 0x7d8   : > { %7307 = vst.msk [vmem:[#allocation3 + $0x51] sm:$0xff] %vm582_vm0, %v7275_v20  ;;  %7308 = vst.msk [vmem:[#allocation3 + $0x61] sm:$0xff] %vm582_vm0, %v7276_v45  ;;  %v7287_v54 = vmax.f32 %v16702_v6, 0.0  ;;  %v7288_v16 = vmax.f32 %v16705_v55, 0.0  ;;  %v7289_v42 = vmax.f32 %v16708_v10, 0.0  ;;  %v7290_v52 = vmax.f32 %v16711_v27, 0.0 }
 0x7d9   : > { %7309 = vst.msk [vmem:[#allocation3 + $0x69] sm:$0xff] %vm582_vm0, %v7277_v19  ;;  %7310 = vst.msk [vmem:[#allocation3 + $0x79] sm:$0xff] %vm582_vm0, %v7278_v34  ;;  %v7291_v31 = vmax.f32 %v16714_v53, 0.0  ;;  %v7292_v38 = vmax.f32 %v16717_v9, 0.0  ;;  %v7293_v5 = vmax.f32 %v16720_v56, 0.0  ;;  %v7294_v28 = vmax.f32 %v16729_v21, 0.0  ;;  %11206 = vmatpush3.bf16.msra.mxu1 %v12733_v32 }
 0x7da   : > { %7311 = vst.msk [vmem:[#allocation3 + $0x81] sm:$0xff] %vm582_vm0, %v7279_v24  ;;  %7312 = vst.msk [vmem:[#allocation3 + $0x91] sm:$0xff] %vm582_vm0, %v7280_v8  ;;  %v7295_v30 = vmax.f32 %v16732_v59, 0.0  ;;  %v7296_v26 = vmax.f32 %v16735_v29, 0.0  ;;  %v7297_v13 = vmax.f32 %v16738_v15, 0.0  ;;  %v7298_v35 = vmax.f32 %v16741_v7, 0.0 }
 0x7db   : > { %7313 = vst.msk [vmem:[#allocation3 + $0x99] sm:$0xff] %vm582_vm0, %v7281_v43  ;;  %7314 = vst.msk [vmem:[#allocation3 + $0xa9] sm:$0xff] %vm582_vm0, %v7282_v36  ;;  %v7299_v44 = vmax.f32 %v16744_v22, 0.0  ;;  %v7300_v41 = vmax.f32 %v16747_v33, 0.0 }
 0x7dc   : > { %7315 = vst.msk [vmem:[#allocation3 + $0xb1] sm:$0xff] %vm582_vm0, %v7283_v60  ;;  %7316 = vst.msk [vmem:[#allocation3 + $0xc1] sm:$0xff] %vm582_vm0, %v7284_v2  ;;  %v16808_v46 = vld [vmem:[#allocation3 + $0x18] sm:$0xff] }
 0x7dd   : > { %7317 = vst.msk [vmem:[#allocation3 + $0xc9] sm:$0xff] %vm582_vm0, %v7285_v39  ;;  %7318 = vst.msk [vmem:[#allocation3 + $0xd9] sm:$0xff] %vm582_vm0, %v7286_v1  ;;  %v7494_v58 = vld [vmem:[#allocation3 + $0x1a] sm:$0xff]  ;;  %v7495_v4 = vld [vmem:[#allocation3 + $0x22] sm:$0xff] }
 0x7de   : > { %7319 = vst.msk [vmem:[#allocation3 + $0xe1] sm:$0xff] %vm582_vm0, %v7287_v54  ;;  %7320 = vst.msk [vmem:[#allocation3 + $0xf1] sm:$0xff] %vm582_vm0, %v7288_v16  ;;  %v7590_v49 = vld [vmem:[#allocation3 + $0x32] sm:$0xff]  ;;  %v7591_v40 = vld [vmem:[#allocation3 + $0x3a] sm:$0xff]  ;;  %v12091_v47 = vpack.i.bf16 %v7495_v4, %v7494_v58 }
 0x7df   : > { %7321 = vst.msk [vmem:[#allocation3 + $0xf9] sm:$0xff] %vm582_vm0, %v7289_v42  ;;  %7322 = vst.msk [vmem:[#allocation3 + $0x109] sm:$0xff] %vm582_vm0, %v7290_v52  ;;  %v8584_v18 = vpack.c.bf16 %v7591_v40, %v7590_v49  ;;  %v16812_v11 = vld [vmem:[#allocation3 + $0x20] sm:$0xff]  ;;  %v16814_v62 = vld [vmem:[#allocation3 + $0x4a] sm:$0xff]  ;;  %v12111_v54 = vpack.i.bf16 %v7591_v40, %v7590_v49 }
 0x7e0   : > { %7323 = vst.msk [vmem:[#allocation3 + $0x111] sm:$0xff] %vm582_vm0, %v7291_v31  ;;  %7324 = vst.msk [vmem:[#allocation3 + $0x121] sm:$0xff] %vm582_vm0, %v7292_v38  ;;  %v16816_v17 = vld [vmem:[#allocation3 + $0x19] sm:$0xff]  ;;  %v12106_v51 = vpack.i.bf16 %v16812_v11, %v16808_v46  ;;  %v16822_v6 = vld [vmem:[#allocation3 + $0x62] sm:$0xff]  ;;  %12092 = vrot.lane.b32.xlu0 %v12091_v47, %s12822_s18 }
 0x7e1   : > { %7325 = vst.msk [vmem:[#allocation3 + $0x129] sm:$0xff] %vm582_vm0, %v7293_v5  ;;  %7326 = vst.msk [vmem:[#allocation3 + $0x139] sm:$0xff] %vm582_vm0, %v7294_v28  ;;  %v16820_v37 = vld [vmem:[#allocation3 + $0x52] sm:$0xff]  ;;  %v16824_v55 = vld [vmem:[#allocation3 + $0x6a] sm:$0xff]  ;;  %11477 = vmatprep.mubr.msk.bf16.mxu0 %vm582_vm0, %v8584_v18 }
 0x7e2   : > { %7327 = vst.msk [vmem:[#allocation3 + $0x141] sm:$0xff] %vm582_vm0, %v7295_v30  ;;  %7328 = vst.msk [vmem:[#allocation3 + $0x151] sm:$0xff] %vm582_vm0, %v7296_v26  ;;  %v8587_v10 = vpack.c.bf16 %v16820_v37, %v16814_v62  ;;  %v16829_v27 = vld [vmem:[#allocation3 + $0x30] sm:$0xff]  ;;  %v16831_v53 = vld [vmem:[#allocation3 + $0x38] sm:$0xff]  ;;  %12107 = vrot.lane.b32.xlu1 %v12106_v51, %s12824_s14  ;;  %v8590_v56 = vpack.c.bf16 %v16824_v55, %v16822_v6  ;;  %v12141_v4 = vpack.i.bf16 %v16820_v37, %v16814_v62 }
 0x7e3   : > { %7329 = vst.msk [vmem:[#allocation3 + $0x159] sm:$0xff] %vm582_vm0, %v7297_v13  ;;  %7330 = vst.msk [vmem:[#allocation3 + $0x169] sm:$0xff] %vm582_vm0, %v7298_v35  ;;  %v16833_v9 = vld [vmem:[#allocation3 + $0x21] sm:$0xff]  ;;  %v12096_v63 = vpack.i.bf16 %v16831_v53, %v16829_v27  ;;  %v16845_v21 = vld [vmem:[#allocation3 + $0x31] sm:$0xff] }
 0x7e4   : > { %7331 = vst.msk [vmem:[#allocation3 + $0x171] sm:$0xff] %vm582_vm0, %v7299_v44  ;;  %7332 = vst.msk [vmem:[#allocation3 + $0x181] sm:$0xff] %vm582_vm0, %v7300_v41  ;;  %11478 = vmatmul.mubr.msk.bf16.vlgmr.msra.gmra.mxu0 %vm582_vm0, %v8587_v10  ;;  %v12116_v14 = vpack.i.bf16 %v16833_v9, %v16816_v17  ;;  %v16847_v59 = vld [vmem:[#allocation3 + $0x39] sm:$0xff]  ;;  %v16851_v15 = vld [vmem:[#allocation3 + $0x82] sm:$0xff] }
 0x7e5   : > { %11481 = vmatprep.mubr.msk.bf16.mxu0 %vm582_vm0, %v8590_v56  ;;  %v16849_v29 = vld [vmem:[#allocation3 + $0x7a] sm:$0xff]  ;;  %v7602_v7 = vld [vmem:[#allocation3 + $0xc2] sm:$0xff]  ;;  %v7603_v22 = vld [vmem:[#allocation3 + $0xca] sm:$0xff]  ;;  %12097 = vrot.lane.b32.xlu0 %v12096_v63, %s12823_s19  ;;  %v12101_v45 = vpack.i.bf16 %v16847_v59, %v16845_v21 }
 0x7e6   : > { %12117 = vrot.lane.b32.xlu1 %v12116_v14, %s12822_s18  ;;  %v16855_v33 = vld [vmem:[#allocation3 + $0x92] sm:$0xff]  ;;  %v16857_v25 = vld [vmem:[#allocation3 + $0x9a] sm:$0xff]  ;;  %v7605_v0 = vld [vmem:[#allocation3 + $0xe2] sm:$0xff]  ;;  %v16859_v20 = vpack.i.bf16 %v7603_v22, %v7602_v7  ;;  %v8593_v24 = vpack.c.bf16 %v16851_v15, %v16849_v29  ;;  %v8602_v49 = vpack.c.bf16 %v7603_v22, %v7602_v7 }
 0x7e7   : > { %v7604_v48 = vld [vmem:[#allocation3 + $0xda] sm:$0xff]  ;;  %v7606_v50 = vld [vmem:[#allocation3 + $0xf2] sm:$0xff]  ;;  %v16869_v8 = vld [vmem:[#allocation3 + $0x10a] sm:$0xff]  ;;  %v8596_v36 = vpack.c.bf16 %v16857_v25, %v16855_v33 }
 0x7e8   : > { %v7607_v3 = vld [vmem:[#allocation3 + $0xfa] sm:$0xff]  ;;  %v16863_v19 = vpack.i.bf16 %v7605_v0, %v7604_v48  ;;  %v7609_v43 = vld [vmem:[#allocation3 + $0x112] sm:$0xff]  ;;  %v7610_v60 = vld [vmem:[#allocation3 + $0x122] sm:$0xff] }
 0x7e9   : > { %v16865_v34 = vpack.i.bf16 %v7607_v3, %v7606_v50  ;;  %12102 = vrot.lane.b32.xlu0 %v12101_v45, %s12824_s14  ;;  %v7611_v2 = vld [vmem:[#allocation3 + $0x12a] sm:$0xff]  ;;  %v16876_v39 = vpack.i.bf16 %v7609_v43, %v16869_v8  ;;  %v16879_v1 = vld [vmem:[#allocation3 + $0x13a] sm:$0xff]  ;;  %v16881_v61 = vld [vmem:[#allocation3 + $0x142] sm:$0xff]  ;;  %v8608_v56 = vpack.c.bf16 %v7607_v3, %v7606_v50  ;;  %v8611_v7 = vpack.c.bf16 %v7609_v43, %v16869_v8 }
 0x7ea   : > { %12127 = vrot.lane.b32.xlu1 %v12091_v47, %s12823_s19  ;;  %v16883_v12 = vpack.i.bf16 %v7611_v2, %v7610_v60  ;;  %v16886_v16 = vld [vmem:[#allocation3 + $0x48] sm:$0xff]  ;;  %v16888_v42 = vld [vmem:[#allocation3 + $0x152] sm:$0xff]  ;;  %v7615_v52 = vld [vmem:[#allocation3 + $0x15a] sm:$0xff]  ;;  %v16892_v31 = vpack.i.bf16 %v16881_v61, %v16879_v1  ;;  %v8605_v47 = vpack.c.bf16 %v7605_v0, %v7604_v48  ;;  %v8614_v22 = vpack.c.bf16 %v7611_v2, %v7610_v60 }
 0x7eb   : > { %v16894_v38 = vld [vmem:[#allocation3 + $0x50] sm:$0xff]  ;;  %v16901_v30 = vpack.i.bf16 %v7615_v52, %v16888_v42  ;;  %v16935_v51 = vld [vmem:[#allocation3 + $0x60] sm:$0xff]  ;;  %v16937_v10 = vld [vmem:[#allocation3 + $0x68] sm:$0xff]  ;;  %v12171_v48 = vpack.i.bf16 %v16824_v55, %v16822_v6  ;;  %v8620_v6 = vpack.c.bf16 %v7615_v52, %v16888_v42  ;;  %v12201_v60 = vpack.i.bf16 %v16851_v15, %v16849_v29 }
 0x7ec   : > { %11482 = vmatmul.mubr.msk.bf16.gmra.mxu0 %vm582_vm0, %v8593_v24  ;;  %v16896_v5 = vld [vmem:[#allocation3 + $0x16a] sm:$0xff]  ;;  %v16898_v28 = vld [vmem:[#allocation3 + $0x172] sm:$0xff]  ;;  %v12121_v57 = vpack.i.bf16 %v16894_v38, %v16886_v16  ;;  %v16945_v62 = vld [vmem:[#allocation3 + $0x61] sm:$0xff]  ;;  %v12231_v15 = vpack.i.bf16 %v16857_v25, %v16855_v33 }
 0x7ed   : > { %11485 = vmatprep.mubr.msk.bf16.mxu0 %vm582_vm0, %v8596_v36  ;;  %12112 = vrot.lane.b32.xlu0 %v12111_v54, %s12822_s18  ;;  %v16905_v26 = vld [vmem:[#allocation3 + $0xaa] sm:$0xff]  ;;  %v16907_v13 = vld [vmem:[#allocation3 + $0xb2] sm:$0xff]  ;;  %v12501_v35 = vpack.i.bf16 %v16898_v28, %v16896_v5  ;;  %v7533_v50 = vld [vmem:[#allocation3 + $0x80] sm:$0xff]  ;;  %v8623_v2 = vpack.c.bf16 %v16898_v28, %v16896_v5 }
 0x7ee   : > { %12137 = vrot.lane.b32.xlu1 %v12096_v63, %s12824_s14  ;;  %v8599_v32 = vpack.c.bf16 %v16907_v13, %v16905_v26  ;;  %v16915_v44 = vld [vmem:[#allocation3 + $0x49] sm:$0xff]  ;;  %v16917_v41 = vld [vmem:[#allocation3 + $0x51] sm:$0xff]  ;;  %v12151_v63 = vpack.i.bf16 %v16937_v10, %v16935_v51  ;;  %v16964_v24 = vld [vmem:[#allocation3 + $0x79] sm:$0xff]  ;;  %v12261_v33 = vpack.i.bf16 %v16907_v13, %v16905_v26 }
 0x7ef   : > { %v12131_v40 = vpack.i.bf16 %v16917_v41, %v16915_v44  ;;  %v12734_v58 = vld [vmem:[%s17992_s10 + $0x40] sm:$0xff]   ;;  %v7532_v0 = vld [vmem:[#allocation3 + $0x78] sm:$0xff]  ;;  %v16966_v8 = vld [vmem:[#allocation3 + $0x81] sm:$0xff] }
 0x7f0   : > { %v12735_v18 = vld [vmem:[%s17992_s10] sm:$0xff]   ;;  %11207 = vmatprep.subr.bf16.mxu1 %v12734_v58  ;;  %v12181_v3 = vpack.i.bf16 %v7533_v50, %v7532_v0  ;;  %v12191_v55 = vpack.i.bf16 %v16966_v8, %v16964_v24  ;;  %v7618_v43 = vld [vmem:[#allocation3 + $0x182] sm:$0xff] }
 0x7f1   : > { %12122 = vrot.lane.b32.xlu0 %v12121_v57, %s12823_s19  ;;  %11208 = vmatpush3.bf16.msra.mxu1 %v12735_v18  ;;  %v16947_v37 = vld [vmem:[#allocation3 + $0x69] sm:$0xff]  ;;  %v16985_v52 = vld [vmem:[#allocation3 + $0x91] sm:$0xff]  ;;  %v7538_v25 = vld [vmem:[#allocation3 + $0xc0] sm:$0xff] }
 0x7f2   : > { %12147 = vrot.lane.b32.xlu1 %v12101_v45, %s12822_s18  ;;  %v12161_v14 = vpack.i.bf16 %v16947_v37, %v16945_v62  ;;  %v8617_v45 = vpack.c.bf16 %v16881_v61, %v16879_v1  ;;  %v7619_v36 = vld [vmem:[#allocation3 + $0x18a] sm:$0xff]  ;;  %v7535_v61 = vld [vmem:[#allocation3 + $0x98] sm:$0xff]  ;;  %v7541_v26 = vld [vmem:[#allocation3 + $0xe0] sm:$0xff] }
 0x7f3   : > { %v7534_v1 = vld [vmem:[#allocation3 + $0x90] sm:$0xff]  ;;  %v7573_v0 = vld [vmem:[#allocation3 + $0xe1] sm:$0xff] }
 0x7f4   : > { %11486 = vmatmul.mubr.msk.bf16.gmra.mxu0 %vm582_vm0, %v8599_v32  ;;  %v12211_v42 = vpack.i.bf16 %v7535_v61, %v7534_v1  ;;  %v7536_v32 = vld [vmem:[#allocation3 + $0xa8] sm:$0xff]  ;;  %v7569_v18 = vld [vmem:[#allocation3 + $0xb1] sm:$0xff]  ;;  %v17030_v1 = vpop.permute.xlu0 %12087 }
 0x7f5   : > { %11489 = vmatprep.mubr.msk.bf16.mxu0 %vm582_vm0, %v8602_v49  ;;  %12132 = vrot.lane.b32.xlu0 %v12131_v40, %s12824_s14  ;;  %v7537_v49 = vld [vmem:[#allocation3 + $0xb0] sm:$0xff] }
 0x7f6   : > { %12157 = vrot.lane.b32.xlu1 %v12111_v54, %s12823_s19  ;;  %v8626_v54 = vpack.c.bf16 %v7619_v36, %v7618_v43  ;;  %v7568_v58 = vld [vmem:[#allocation3 + $0xa9] sm:$0xff]  ;;  %v7575_v43 = vld [vmem:[#allocation3 + $0xf9] sm:$0xff] }
 0x7f9   : > { %12142 = vrot.lane.b32.xlu0 %v12141_v4, %s12822_s18 }
 0x7fa   : > { %12167 = vrot.lane.b32.xlu1 %v12121_v57, %s12824_s14  ;;  %v16987_v57 = vld [vmem:[#allocation3 + $0x99] sm:$0xff] }
 0x7fb   : > { %v12221_v29 = vpack.i.bf16 %v16987_v57, %v16985_v52 }
 0x7fc   : > { %11490 = vmatmul.mubr.msk.bf16.gmra.mxu0 %vm582_vm0, %v8605_v47  ;;  %v7539_v47 = vld [vmem:[#allocation3 + $0xc8] sm:$0xff] }
 0x7fd   : > { %11493 = vmatprep.mubr.msk.bf16.mxu0 %vm582_vm0, %v8608_v56  ;;  %12152 = vrot.lane.b32.xlu0 %v12151_v63, %s12823_s19  ;;  %v12271_v56 = vpack.i.bf16 %v7539_v47, %v7538_v25 }
 0x7fe   : > { %12177 = vrot.lane.b32.xlu1 %v12131_v40, %s12822_s18  ;;  %v12241_v40 = vpack.i.bf16 %v7537_v49, %v7536_v32 }
 0x801   : > { %12162 = vrot.lane.b32.xlu0 %v12161_v14, %s12824_s14 }
 0x802   : > { %12187 = vrot.lane.b32.xlu1 %v12141_v4, %s12823_s19  ;;  %v12251_v4 = vpack.i.bf16 %v7569_v18, %v7568_v58  ;;  %v7334_v58 = vld [vmem:[#allocation3] sm:$0xff]  ;;  %v7335_v18 = vld [vmem:[#allocation3 + $0x8] sm:$0xff] }
 0x804   : > { %11494 = vmatmul.mubr.msk.bf16.gmra.mxu0 %vm582_vm0, %v8611_v7 }
 0x805   : > { %11497 = vmatprep.mubr.msk.bf16.mxu0 %vm582_vm0, %v8614_v22  ;;  %12172 = vrot.lane.b32.xlu0 %v12171_v48, %s12822_s18  ;;  %v7540_v22 = vld [vmem:[#allocation3 + $0xd8] sm:$0xff] }
 0x806   : > { %12197 = vrot.lane.b32.xlu1 %v12151_v63, %s12824_s14  ;;  %v7570_v63 = vld [vmem:[#allocation3 + $0xc1] sm:$0xff]  ;;  %v12301_v13 = vpack.i.bf16 %v7541_v26, %v7540_v22 }
 0x807   : > { %v7546_v22 = vld [vmem:[#allocation3 + $0x120] sm:$0xff]  ;;  %v7547_v26 = vld [vmem:[#allocation3 + $0x128] sm:$0xff] }
 0x809   : > { %12182 = vrot.lane.b32.xlu0 %v12181_v3, %s12823_s19 }
 0x80a   : > { %12207 = vrot.lane.b32.xlu1 %v12161_v14, %s12822_s18  ;;  %v7571_v14 = vld [vmem:[#allocation3 + $0xc9] sm:$0xff] }
 0x80b   : > { %v12281_v7 = vpack.i.bf16 %v7571_v14, %v7570_v63 }
 0x80c   : > { %11498 = vmatmul.mubr.msk.bf16.gmra.mxu0 %vm582_vm0, %v8617_v45  ;;  %v7543_v45 = vld [vmem:[#allocation3 + $0xf8] sm:$0xff] }
 0x80d   : > { %11501 = vmatprep.mubr.msk.bf16.mxu0 %vm582_vm0, %v8620_v6  ;;  %12192 = vrot.lane.b32.xlu0 %v12191_v55, %s12824_s14 }
 0x80e   : > { %12217 = vrot.lane.b32.xlu1 %v12171_v48, %s12823_s19  ;;  %v7572_v48 = vld [vmem:[#allocation3 + $0xd9] sm:$0xff] }
 0x80f   : > { %v12311_v50 = vpack.i.bf16 %v7573_v0, %v7572_v48 }
 0x811   : > { %12202 = vrot.lane.b32.xlu0 %v12201_v60, %s12822_s18 }
 0x812   : > { %12227 = vrot.lane.b32.xlu1 %v12181_v3, %s12824_s14  ;;  %v7542_v3 = vld [vmem:[#allocation3 + $0xf0] sm:$0xff] }
 0x813   : > { %v12331_v6 = vpack.i.bf16 %v7543_v45, %v7542_v3 }
 0x814   : > { %11502 = vmatmul.mubr.msk.bf16.gmra.mxu0 %vm582_vm0, %v8623_v2  ;;  %v7545_v2 = vld [vmem:[#allocation3 + $0x110] sm:$0xff] }
 0x815   : > { %11505 = vmatprep.mubr.msk.bf16.mxu0 %vm582_vm0, %v8626_v54  ;;  %12212 = vrot.lane.b32.xlu0 %v12211_v42, %s12823_s19 }
 0x816   : > { %12237 = vrot.lane.b32.xlu1 %v12191_v55, %s12822_s18  ;;  %v7574_v55 = vld [vmem:[#allocation3 + $0xf1] sm:$0xff] }
 0x817   : > { %v12341_v36 = vpack.i.bf16 %v7575_v43, %v7574_v55  ;;  %v12391_v55 = vpack.i.bf16 %v7547_v26, %v7546_v22 }
 0x819   : > { %12222 = vrot.lane.b32.xlu0 %v12221_v29, %s12824_s14 }
 0x81a   : > { %12247 = vrot.lane.b32.xlu1 %v12201_v60, %s12823_s19  ;;  %v12078_v60 = vpop.permute.xlu1 %12077 }
 0x81b   : > { %v12080_v49 = vunpack.i.h.bf16 %v12078_v60 }
 0x81d   : > { %12232 = vrot.lane.b32.xlu0 %v12231_v15, %s12822_s18 }
 0x81e   : > { %12257 = vrot.lane.b32.xlu1 %v12211_v42, %s12824_s14  ;;  %v12083_v61 = vpop.permute.xlu1 %12082  ;;  %v7576_v42 = vld [vmem:[#allocation3 + $0x109] sm:$0xff] }
 0x821   : > { %12242 = vrot.lane.b32.xlu0 %v12241_v40, %s12823_s19 }
 0x822   : > { %12267 = vrot.lane.b32.xlu1 %v12221_v29, %s12822_s18  ;;  %v7577_v29 = vld [vmem:[#allocation3 + $0x111] sm:$0xff] }
 0x825   : > { %12252 = vrot.lane.b32.xlu0 %v12251_v4, %s12824_s14 }
 0x826   : > { %12277 = vrot.lane.b32.xlu1 %v12231_v15, %s12823_s19 }
 0x829   : > { %12262 = vrot.lane.b32.xlu0 %v12261_v33, %s12822_s18 }
 0x82a   : > { %12287 = vrot.lane.b32.xlu1 %v12241_v40, %s12824_s14  ;;  %v12079_v40 = vunpack.i.l.bf16 %v12078_v60 }
 0x82c   : > { %v8390_v63 = vsel %vm582_vm0, %v7334_v58, %v12079_v40 }
 0x82d   : > { %12272 = vrot.lane.b32.xlu0 %v12271_v56, %s12823_s19 }
 0x82e   : > { %12297 = vrot.lane.b32.xlu1 %v12251_v4, %s12822_s18  ;;  %v12085_v4 = vunpack.i.h.bf16 %v12083_v61 }
 0x831   : > { %12282 = vrot.lane.b32.xlu0 %v12281_v7, %s12824_s14 }
 0x832   : > { %12307 = vrot.lane.b32.xlu1 %v12261_v33, %s12823_s19  ;;  %v12084_v33 = vunpack.i.l.bf16 %v12083_v61  ;;  %v17050_v61 = vld [vmem:[#allocation3 + $0x129] sm:$0xff] }
 0x835   : > { %12292 = vrot.lane.b32.xlu0 %v16859_v20, %s12822_s18 }
 0x836   : > { %12317 = vrot.lane.b32.xlu1 %v12271_v56, %s12824_s14  ;;  %v8391_v56 = vsel %vm582_vm0, %v7335_v18, %v12080_v49 }
 0x837   : > { %v8423_v3 = vsel %vm6288_vm2, %v8391_v56, %v12085_v4 }
 0x839   : > { %12302 = vrot.lane.b32.xlu0 %v12301_v13, %s12823_s19 }
 0x83a   : > { %12327 = vrot.lane.b32.xlu1 %v12281_v7, %s12822_s18 }
 0x83d   : > { %12312 = vrot.lane.b32.xlu0 %v12311_v50, %s12824_s14 }
 0x83e   : > { %12337 = vrot.lane.b32.xlu1 %v16859_v20, %s12823_s19  ;;  %v7544_v20 = vld [vmem:[#allocation3 + $0x108] sm:$0xff] }
 0x83f   : > { %v12361_v54 = vpack.i.bf16 %v7545_v2, %v7544_v20  ;;  %v17048_v2 = vld [vmem:[#allocation3 + $0x121] sm:$0xff] }
 0x840   : > { %v12401_v40 = vpack.i.bf16 %v17050_v61, %v17048_v2 }
 0x841   : > { %12322 = vrot.lane.b32.xlu0 %v16863_v19, %s12822_s18 }
 0x842   : > { %12347 = vrot.lane.b32.xlu1 %v12301_v13, %s12824_s14 }
 0x845   : > { %12332 = vrot.lane.b32.xlu0 %v12331_v6, %s12823_s19 }
 0x846   : > { %12357 = vrot.lane.b32.xlu1 %v12311_v50, %s12822_s18  ;;  %v8422_v50 = vsel %vm6288_vm2, %v8390_v63, %v12084_v33 }
 0x849   : > { %12342 = vrot.lane.b32.xlu0 %v12341_v36, %s12824_s14 }
 0x84a   : > { %12367 = vrot.lane.b32.xlu1 %v16863_v19, %s12823_s19  ;;  %v12371_v19 = vpack.i.bf16 %v7577_v29, %v7576_v42 }
 0x84d   : > { %12352 = vrot.lane.b32.xlu0 %v16865_v34, %s12822_s18 }
 0x84e   : > { %12377 = vrot.lane.b32.xlu1 %v12331_v6, %s12824_s14 }
 0x851   : > { %12362 = vrot.lane.b32.xlu0 %v12361_v54, %s12823_s19 }
 0x852   : > { %12387 = vrot.lane.b32.xlu1 %v12341_v36, %s12822_s18  ;;  %v12093_v15 = vpop.permute.xlu0 %12092 }
 0x853   : > { %v12095_v14 = vunpack.i.h.bf16 %v12093_v15  ;;  %v12094_v7 = vunpack.i.l.bf16 %v12093_v15 }
 0x854   : > { %v12108_v32 = vpop.permute.xlu1 %12107 }
 0x855   : > { %12372 = vrot.lane.b32.xlu0 %v12371_v19, %s12824_s14  ;;  %v12109_v0 = vunpack.i.l.bf16 %v12108_v32  ;;  %v8487_v43 = vsel %vm582_vm0, %v16833_v9, %v12095_v14  ;;  %v8486_v36 = vsel %vm582_vm0, %v16816_v17, %v12094_v7  ;;  %v7548_v14 = vld [vmem:[#allocation3 + $0x138] sm:$0xff]  ;;  %v7549_v7 = vld [vmem:[#allocation3 + $0x140] sm:$0xff] }
 0x856   : > { %12397 = vrot.lane.b32.xlu1 %v16865_v34, %s12823_s19  ;;  %v12110_v34 = vunpack.i.h.bf16 %v12108_v32 }
 0x857   : > { %v12098_v25 = vpop.permute.xlu0 %12097  ;;  %v8454_v9 = vsel %vm6321_vm3, %v8422_v50, %v12109_v0 }
 0x858   : > { %v12118_v47 = vpop.permute.xlu1 %12117  ;;  %v12100_v13 = vunpack.i.h.bf16 %v12098_v25  ;;  %v12099_v48 = vunpack.i.l.bf16 %v12098_v25  ;;  %v8455_v29 = vsel %vm6321_vm3, %v8423_v3, %v12110_v34 }
 0x859   : > { %12382 = vrot.lane.b32.xlu0 %v16876_v39, %s12822_s18  ;;  %v8582_v18 = vpack.c.bf16 %v8455_v29, %v8454_v9  ;;  %v12119_v4 = vunpack.i.l.bf16 %v12118_v47 }
 0x85a   : > { %12407 = vrot.lane.b32.xlu1 %v12361_v54, %s12824_s14  ;;  %v8518_v54 = vsel %vm6288_vm2, %v8486_v36, %v12099_v48  ;;  %v8519_v42 = vsel %vm6288_vm2, %v8487_v43, %v12100_v13 }
 0x85b   : > { %v12103_v45 = vpop.permute.xlu0 %12102 }
 0x85c   : > { %v12128_v6 = vpop.permute.xlu1 %12127  ;;  %v12105_v60 = vunpack.i.h.bf16 %v12103_v45  ;;  %v12104_v20 = vunpack.i.l.bf16 %v12103_v45  ;;  %v12421_v45 = vpack.i.bf16 %v7549_v7, %v7548_v14  ;;  %v17097_v14 = vld [vmem:[#allocation3 + $0x158] sm:$0xff] }
 0x85d   : > { %12392 = vrot.lane.b32.xlu0 %v12391_v55, %s12823_s19  ;;  %v12130_v22 = vunpack.i.h.bf16 %v12128_v6  ;;  %v12129_v26 = vunpack.i.l.bf16 %v12128_v6 }
 0x85e   : > { %12417 = vrot.lane.b32.xlu1 %v12371_v19, %s12822_s18  ;;  %v8550_v17 = vsel %vm6321_vm3, %v8518_v54, %v12104_v20  ;;  %v8551_v15 = vsel %vm6321_vm3, %v8519_v42, %v12105_v60  ;;  %v12120_v19 = vunpack.i.h.bf16 %v12118_v47  ;;  %v17076_v20 = vld [vmem:[#allocation3 + $0x139] sm:$0xff] }
 0x85f   : > { %v12113_v32 = vpop.permute.xlu0 %12112  ;;  %v8583_v58 = vpack.c.bf16 %v8551_v15, %v8550_v17 }
 0x860   : > { %v12138_v49 = vpop.permute.xlu1 %12137  ;;  %v12115_v56 = vunpack.i.h.bf16 %v12113_v32  ;;  %v12114_v63 = vunpack.i.l.bf16 %v12113_v32  ;;  %v8393_v47 = vsel %vm582_vm0, %v16812_v11, %v12120_v19 }
 0x861   : > { %12402 = vrot.lane.b32.xlu0 %v12401_v40, %s12824_s14  ;;  %8854 = vmatprep.mubr.bf16.mxu1 %v8583_v58  ;;  %v12140_v34 = vunpack.i.h.bf16 %v12138_v49  ;;  %v12139_v0 = vunpack.i.l.bf16 %v12138_v49  ;;  %v8425_v54 = vsel %vm6288_vm2, %v8393_v47, %v12130_v22 }
 0x862   : > { %12427 = vrot.lane.b32.xlu1 %v16876_v39, %s12823_s19  ;;  %8855 = vmatmul.mubr.bf16.vlgmr.msra.gmra.mxu1 %v8582_v18  ;;  %v8392_v39 = vsel %vm582_vm0, %v16808_v46, %v12119_v4  ;;  %v8489_v6 = vsel %vm582_vm0, %v16847_v59, %v12115_v56  ;;  %v8488_v43 = vsel %vm582_vm0, %v16845_v21, %v12114_v63  ;;  %v17095_v63 = vld [vmem:[#allocation3 + $0x150] sm:$0xff] }
 0x863   : > { %v12123_v33 = vpop.permute.xlu0 %12122  ;;  %v8424_v46 = vsel %vm6288_vm2, %v8392_v39, %v12129_v26  ;;  %v8457_v21 = vsel %vm6321_vm3, %v8425_v54, %v12140_v34  ;;  %v12451_v47 = vpack.i.bf16 %v17097_v14, %v17095_v63 }
 0x864   : > { %v12148_v25 = vpop.permute.xlu1 %12147  ;;  %v12125_v13 = vunpack.i.h.bf16 %v12123_v33  ;;  %v12124_v48 = vunpack.i.l.bf16 %v12123_v33  ;;  %v8456_v59 = vsel %vm6321_vm3, %v8424_v46, %v12139_v0 }
 0x865   : > { %12412 = vrot.lane.b32.xlu0 %v16883_v12, %s12822_s18  ;;  %v8585_v58 = vpack.c.bf16 %v8457_v21, %v8456_v59  ;;  %v12150_v18 = vunpack.i.h.bf16 %v12148_v25  ;;  %v12149_v19 = vunpack.i.l.bf16 %v12148_v25 }
 0x866   : > { %12437 = vrot.lane.b32.xlu1 %v12391_v55, %s12824_s14  ;;  %v17078_v55 = vld [vmem:[#allocation3 + $0x141] sm:$0xff]  ;;  %v8520_v11 = vsel %vm6288_vm2, %v8488_v43, %v12124_v48  ;;  %v8521_v42 = vsel %vm6288_vm2, %v8489_v6, %v12125_v13 }
 0x867   : > { %v12133_v50 = vpop.permute.xlu0 %12132  ;;  %v12431_v32 = vpack.i.bf16 %v17078_v55, %v17076_v20  ;;  %v8395_v25 = vsel %vm582_vm0, %v16831_v53, %v12150_v18  ;;  %v8394_v34 = vsel %vm582_vm0, %v16829_v27, %v12149_v19  ;;  %v17131_v19 = vld [vmem:[#allocation3 + $0x168] sm:$0xff] }
 0x868   : > { %v12158_v3 = vpop.permute.xlu1 %12157  ;;  %v12135_v36 = vunpack.i.h.bf16 %v12133_v50  ;;  %v12134_v60 = vunpack.i.l.bf16 %v12133_v50 }
 0x869   : > { %12422 = vrot.lane.b32.xlu0 %v12421_v45, %s12823_s19  ;;  %v12160_v7 = vunpack.i.h.bf16 %v12158_v3  ;;  %v12159_v22 = vunpack.i.l.bf16 %v12158_v3 }
 0x86a   : > { %12447 = vrot.lane.b32.xlu1 %v12401_v40, %s12822_s18  ;;  %v8552_v29 = vsel %vm6321_vm3, %v8520_v11, %v12134_v60  ;;  %v8553_v9 = vsel %vm6321_vm3, %v8521_v42, %v12135_v36  ;;  %v17114_v36 = vld [vmem:[#allocation3 + $0x159] sm:$0xff] }
 0x86b   : > { %v12143_v17 = vpop.permute.xlu0 %12142  ;;  %v8586_v49 = vpack.c.bf16 %v8553_v9, %v8552_v29  ;;  %v8426_v53 = vsel %vm6288_vm2, %v8394_v34, %v12159_v22  ;;  %v8427_v27 = vsel %vm6288_vm2, %v8395_v25, %v12160_v7 }
 0x86c   : > { %v12168_v15 = vpop.permute.xlu1 %12167  ;;  %v12145_v33 = vunpack.i.h.bf16 %v12143_v17  ;;  %v12144_v56 = vunpack.i.l.bf16 %v12143_v17 }
 0x86d   : > { %12432 = vrot.lane.b32.xlu0 %v12431_v32, %s12824_s14  ;;  %8862 = vmatprep.mubr.bf16.mxu1 %v8586_v49  ;;  %v12170_v48 = vunpack.i.h.bf16 %v12168_v15 }
 0x86e   : > { %12457 = vrot.lane.b32.xlu1 %v16883_v12, %s12823_s19  ;;  %8863 = vmatmul.mubr.bf16.gmra.mxu1 %v8585_v58  ;;  %v12169_v12 = vunpack.i.l.bf16 %v12168_v15  ;;  %v8491_v50 = vsel %vm582_vm0, %v16917_v41, %v12145_v33  ;;  %v8490_v3 = vsel %vm582_vm0, %v16915_v44, %v12144_v56 }
 0x86f   : > { %v12153_v40 = vpop.permute.xlu0 %12152  ;;  %v8459_v44 = vsel %vm6321_vm3, %v8427_v27, %v12170_v48 }
 0x870   : > { %v12178_v4 = vpop.permute.xlu1 %12177  ;;  %v12155_v26 = vunpack.i.h.bf16 %v12153_v40  ;;  %v12154_v13 = vunpack.i.l.bf16 %v12153_v40  ;;  %v8458_v41 = vsel %vm6321_vm3, %v8426_v53, %v12169_v12  ;;  %v17133_v40 = vld [vmem:[#allocation3 + $0x170] sm:$0xff] }
 0x871   : > { %12442 = vrot.lane.b32.xlu0 %v16892_v31, %s12822_s18  ;;  %v8588_v9 = vpack.c.bf16 %v8459_v44, %v8458_v41  ;;  %v12180_v17 = vunpack.i.h.bf16 %v12178_v4  ;;  %v12179_v15 = vunpack.i.l.bf16 %v12178_v4  ;;  %v12481_v25 = vpack.i.bf16 %v17133_v40, %v17131_v19 }
 0x872   : > { %12467 = vrot.lane.b32.xlu1 %v12421_v45, %s12824_s14  ;;  %v17112_v45 = vld [vmem:[#allocation3 + $0x151] sm:$0xff]  ;;  %v8522_v60 = vsel %vm6288_vm2, %v8490_v3, %v12154_v13  ;;  %v8523_v46 = vsel %vm6288_vm2, %v8491_v50, %v12155_v26 }
 0x873   : > { %v12163_v0 = vpop.permute.xlu0 %12162  ;;  %v12461_v21 = vpack.i.bf16 %v17114_v36, %v17112_v45  ;;  %v8397_v4 = vsel %vm582_vm0, %v16894_v38, %v12180_v17  ;;  %v8396_v13 = vsel %vm582_vm0, %v16886_v16, %v12179_v15  ;;  %v17150_v3 = vld [vmem:[#allocation3 + $0x171] sm:$0xff]  ;;  %v7554_v15 = vld [vmem:[#allocation3 + $0x180] sm:$0xff] }
 0x874   : > { %v12188_v39 = vpop.permute.xlu1 %12187  ;;  %v12165_v6 = vunpack.i.h.bf16 %v12163_v0  ;;  %v12164_v43 = vunpack.i.l.bf16 %v12163_v0 }
 0x875   : > { %12452 = vrot.lane.b32.xlu0 %v12451_v47, %s12823_s19  ;;  %v12190_v33 = vunpack.i.h.bf16 %v12188_v39  ;;  %v12189_v56 = vunpack.i.l.bf16 %v12188_v39 }
 0x876   : > { %12477 = vrot.lane.b32.xlu1 %v12431_v32, %s12822_s18  ;;  %v8554_v54 = vsel %vm6321_vm3, %v8522_v60, %v12164_v43  ;;  %v8555_v11 = vsel %vm6321_vm3, %v8523_v46, %v12165_v6 }
 0x877   : > { %v12173_v42 = vpop.permute.xlu0 %12172  ;;  %v8589_v29 = vpack.c.bf16 %v8555_v11, %v8554_v54  ;;  %v8428_v38 = vsel %vm6288_vm2, %v8396_v13, %v12189_v56  ;;  %v8429_v16 = vsel %vm6288_vm2, %v8397_v4, %v12190_v33  ;;  %v17179_v13 = vld [vmem:[#allocation3 + $0x189] sm:$0xff] }
 0x878   : > { %v12198_v59 = vpop.permute.xlu1 %12197  ;;  %v12175_v58 = vunpack.i.h.bf16 %v12173_v42  ;;  %v12174_v18 = vunpack.i.l.bf16 %v12173_v42 }
 0x879   : > { %12462 = vrot.lane.b32.xlu0 %v12461_v21, %s12824_s14  ;;  %8870 = vmatprep.mubr.bf16.mxu1 %v8589_v29  ;;  %v12200_v26 = vunpack.i.h.bf16 %v12198_v59 }
 0x87a   : > { %12487 = vrot.lane.b32.xlu1 %v16892_v31, %s12823_s19  ;;  %8871 = vmatmul.mubr.bf16.gmra.mxu1 %v8588_v9  ;;  %v12199_v31 = vunpack.i.l.bf16 %v12198_v59  ;;  %v8493_v34 = vsel %vm582_vm0, %v16947_v37, %v12175_v58  ;;  %v8492_v0 = vsel %vm582_vm0, %v16945_v62, %v12174_v18 }
 0x87b   : > { %v12183_v32 = vpop.permute.xlu0 %12182  ;;  %v8461_v62 = vsel %vm6321_vm3, %v8429_v16, %v12200_v26 }
 0x87c   : > { %v12208_v49 = vpop.permute.xlu1 %12207  ;;  %v12185_v7 = vunpack.i.h.bf16 %v12183_v32  ;;  %v12184_v22 = vunpack.i.l.bf16 %v12183_v32  ;;  %v8460_v37 = vsel %vm6321_vm3, %v8428_v38, %v12199_v31  ;;  %v7555_v32 = vld [vmem:[#allocation3 + $0x188] sm:$0xff] }
 0x87d   : > { %12472 = vrot.lane.b32.xlu0 %v16901_v30, %s12822_s18  ;;  %v8591_v54 = vpack.c.bf16 %v8461_v62, %v8460_v37  ;;  %v12209_v11 = vunpack.i.l.bf16 %v12208_v49  ;;  %v12210_v42 = vunpack.i.h.bf16 %v12208_v49  ;;  %v12511_v4 = vpack.i.bf16 %v7555_v32, %v7554_v15 }
 0x87e   : > { %12497 = vrot.lane.b32.xlu1 %v12451_v47, %s12824_s14  ;;  %v17148_v47 = vld [vmem:[#allocation3 + $0x169] sm:$0xff]  ;;  %v8524_v6 = vsel %vm6288_vm2, %v8492_v0, %v12184_v22  ;;  %v8525_v43 = vsel %vm6288_vm2, %v8493_v34, %v12185_v7 }
 0x87f   : > { %v12193_v48 = vpop.permute.xlu0 %12192  ;;  %v12491_v41 = vpack.i.bf16 %v17150_v3, %v17148_v47  ;;  %v8399_v7 = vsel %vm582_vm0, %v16937_v10, %v12210_v42 }
 0x880   : > { %v12218_v12 = vpop.permute.xlu1 %12217  ;;  %v12195_v39 = vunpack.i.h.bf16 %v12193_v48  ;;  %v12194_v50 = vunpack.i.l.bf16 %v12193_v48  ;;  %v17185_v48 = vld [vmem:[#allocation3 + $0x181] sm:$0xff] }
 0x881   : > { %12482 = vrot.lane.b32.xlu0 %v12481_v25, %s12823_s19  ;;  %v12219_v59 = vunpack.i.l.bf16 %v12218_v12  ;;  %v12220_v58 = vunpack.i.h.bf16 %v12218_v12  ;;  %v7620_v12 = vld [vmem:[#allocation3 + $0x19a] sm:$0xff]  ;;  %v12521_v62 = vpack.i.bf16 %v17179_v13, %v17185_v48 }
 0x882   : > { %12507 = vrot.lane.b32.xlu1 %v12461_v21, %s12822_s18  ;;  %v8556_v53 = vsel %vm6321_vm3, %v8524_v6, %v12194_v50  ;;  %v8557_v27 = vsel %vm6321_vm3, %v8525_v43, %v12195_v39  ;;  %v7428_v39 = vld [vmem:[#allocation3 + $0x16a] sm:$0xff]  ;;  %v7429_v50 = vld [vmem:[#allocation3 + $0x172] sm:$0xff] }
 0x883   : > { %v12203_v60 = vpop.permute.xlu0 %12202  ;;  %v8592_v44 = vpack.c.bf16 %v8557_v27, %v8556_v53  ;;  %v8431_v10 = vsel %vm6288_vm2, %v8399_v7, %v12220_v58  ;;  %v12541_v27 = vpack.i.bf16 %v7429_v50, %v7428_v39 }
 0x884   : > { %v12228_v46 = vpop.permute.xlu1 %12227  ;;  %v12205_v9 = vunpack.i.h.bf16 %v12203_v60  ;;  %v12204_v17 = vunpack.i.l.bf16 %v12203_v60  ;;  %v7524_v60 = vld [vmem:[#allocation3 + $0x182] sm:$0xff] }
 0x885   : > { %12492 = vrot.lane.b32.xlu0 %v12491_v41, %s12824_s14  ;;  %8878 = vmatprep.mubr.bf16.mxu1 %v8592_v44  ;;  %v12230_v49 = vunpack.i.h.bf16 %v12228_v46  ;;  %v12229_v56 = vunpack.i.l.bf16 %v12228_v46  ;;  %v7525_v46 = vld [vmem:[#allocation3 + $0x18a] sm:$0xff] }
 0x886   : > { %12517 = vrot.lane.b32.xlu1 %v16901_v30, %s12823_s19  ;;  %8879 = vmatmul.mubr.bf16.gmra.mxu1 %v8591_v54  ;;  %v8398_v30 = vsel %vm582_vm0, %v16935_v51, %v12209_v11  ;;  %v8495_v5 = vsel %vm582_vm0, %v16966_v8, %v12205_v9  ;;  %v8494_v28 = vsel %vm582_vm0, %v16964_v24, %v12204_v17  ;;  %v7589_v54 = vld [vmem:[#allocation3 + $0x1a1] sm:$0xff] }
 0x887   : > { %v12213_v21 = vpop.permute.xlu0 %12212  ;;  %v8430_v22 = vsel %vm6288_vm2, %v8398_v30, %v12219_v59  ;;  %v8463_v24 = vsel %vm6321_vm3, %v8431_v10, %v12230_v49  ;;  %v12531_v15 = vpack.i.bf16 %v7525_v46, %v7524_v60  ;;  %v7345_v30 = vld [vmem:[#allocation3 + $0x80] sm:$0xff]  ;;  %v7346_v46 = vld [vmem:[#allocation3 + $0x90] sm:$0xff] }
 0x888   : > { %v17167_v29 = vpop.permute.xlu1 %12237  ;;  %v12215_v18 = vunpack.i.h.bf16 %v12213_v21  ;;  %v12214_v33 = vunpack.i.l.bf16 %v12213_v21  ;;  %v8462_v38 = vsel %vm6321_vm3, %v8430_v22, %v12229_v56 }
 0x889   : > { %12502 = vrot.lane.b32.xlu0 %v12501_v35, %s12822_s18  ;;  %v8594_v44 = vpack.c.bf16 %v8463_v24, %v8462_v38  ;;  %v12240_v11 = vunpack.i.h.bf16 %v17167_v29  ;;  %v12239_v42 = vunpack.i.l.bf16 %v17167_v29 }
 0x88a   : > { %12527 = vrot.lane.b32.xlu1 %v12481_v25, %s12824_s14  ;;  %v7621_v25 = vld [vmem:[#allocation3 + $0x1a2] sm:$0xff]  ;;  %v8526_v34 = vsel %vm6288_vm2, %v8494_v28, %v12214_v33  ;;  %v8527_v0 = vsel %vm6288_vm2, %v8495_v5, %v12215_v18  ;;  %v7344_v33 = vld [vmem:[#allocation3 + $0x78] sm:$0xff] }
 0x88b   : > { %v12223_v26 = vpop.permute.xlu0 %12222  ;;  %v8629_v8 = vpack.c.bf16 %v7621_v25, %v7620_v12  ;;  %v8401_v29 = vsel %vm582_vm0, %v7345_v30, %v12240_v11 }
 0x88c   : > { %v12248_v31 = vpop.permute.xlu1 %12247  ;;  %v12225_v35 = vunpack.i.h.bf16 %v12223_v26  ;;  %v12224_v51 = vunpack.i.l.bf16 %v12223_v26  ;;  %v8400_v26 = vsel %vm582_vm0, %v7344_v33, %v12239_v42 }
 0x88d   : > { %12512 = vrot.lane.b32.xlu0 %v12511_v4, %s12823_s19  ;;  %11506 = vmatmul.mubr.msk.bf16.gmra.mxu0 %vm582_vm0, %v8629_v8  ;;  %v12250_v59 = vunpack.i.h.bf16 %v12248_v31  ;;  %v12249_v21 = vunpack.i.l.bf16 %v12248_v31 }
 0x88e   : > { %12537 = vrot.lane.b32.xlu1 %v12491_v41, %s12822_s18  ;;  %v8558_v16 = vsel %vm6321_vm3, %v8526_v34, %v12224_v51  ;;  %v8559_v6 = vsel %vm6321_vm3, %v8527_v0, %v12225_v35  ;;  %v7588_v41 = vld [vmem:[#allocation3 + $0x199] sm:$0xff] }
 0x88f   : > { %v12233_v43 = vpop.permute.xlu0 %12232  ;;  %v8595_v53 = vpack.c.bf16 %v8559_v6, %v8558_v16  ;;  %v12546_v18 = vpack.i.bf16 %v7589_v54, %v7588_v41  ;;  %v8432_v31 = vsel %vm6288_vm2, %v8400_v26, %v12249_v21  ;;  %v8433_v5 = vsel %vm6288_vm2, %v8401_v29, %v12250_v59 }
 0x890   : > { %v12258_v37 = vpop.permute.xlu1 %12257  ;;  %v12235_v32 = vunpack.i.h.bf16 %v12233_v43  ;;  %v12234_v58 = vunpack.i.l.bf16 %v12233_v43 }
 0x891   : > { %12522 = vrot.lane.b32.xlu0 %v12521_v62, %s12824_s14  ;;  %8886 = vmatprep.mubr.bf16.mxu1 %v8595_v53  ;;  %v12260_v49 = vunpack.i.h.bf16 %v12258_v37  ;;  %v12259_v56 = vunpack.i.l.bf16 %v12258_v37 }
 0x892   : > { %12542 = vrot.lane.b32.xlu1 %v12541_v27, %s12823_s19  ;;  %8887 = vmatmul.mubr.bf16.gmra.mxu1 %v8594_v44  ;;  %v8497_v51 = vsel %vm582_vm0, %v16987_v57, %v12235_v32  ;;  %v8496_v12 = vsel %vm582_vm0, %v16985_v52, %v12234_v58  ;;  %v7347_v44 = vld [vmem:[#allocation3 + $0x98] sm:$0xff] }
 0x893   : > { %v12243_v9 = vpop.permute.xlu0 %12242  ;;  %v8464_v34 = vsel %vm6321_vm3, %v8432_v31, %v12259_v56  ;;  %v8465_v0 = vsel %vm6321_vm3, %v8433_v5, %v12260_v49  ;;  %v7475_v32 = vld [vmem:[#allocation3 + $0xb1] sm:$0xff] }
 0x894   : > { %v12268_v17 = vpop.permute.xlu1 %12267  ;;  %v12245_v7 = vunpack.i.h.bf16 %v12243_v9  ;;  %v12244_v22 = vunpack.i.l.bf16 %v12243_v9  ;;  %v8597_v52 = vpack.c.bf16 %v8465_v0, %v8464_v34 }
 0x895   : > { %12532 = vrot.lane.b32.xlu0 %v12531_v15, %s12822_s18  ;;  %v12270_v16 = vunpack.i.h.bf16 %v12268_v17  ;;  %v12269_v6 = vunpack.i.l.bf16 %v12268_v17  ;;  %v7474_v15 = vld [vmem:[#allocation3 + $0xa9] sm:$0xff] }
 0x896   : > { %12552 = vrot.lane.b32.xlu1 %v12511_v4, %s12824_s14  ;;  %v8528_v4 = vsel %vm6288_vm2, %v8496_v12, %v12244_v22  ;;  %v8529_v39 = vsel %vm6288_vm2, %v8497_v51, %v12245_v7 }
 0x897   : > { %v12253_v28 = vpop.permute.xlu0 %12252  ;;  %v8403_v59 = vsel %vm582_vm0, %v7347_v44, %v12270_v16  ;;  %v8402_v21 = vsel %vm582_vm0, %v7346_v46, %v12269_v6 }
 0x898   : > { %v12278_v35 = vpop.permute.xlu1 %12277  ;;  %v12255_v25 = vunpack.i.h.bf16 %v12253_v28  ;;  %v12254_v10 = vunpack.i.l.bf16 %v12253_v28 }
 0x899   : > { %12547 = vrot.lane.b32.xlu0 %v12546_v18, %s12824_s14  ;;  %v12280_v43 = vunpack.i.h.bf16 %v12278_v35  ;;  %v12279_v37 = vunpack.i.l.bf16 %v12278_v35 }
 0x89a   : > { %v8560_v50 = vsel %vm6321_vm3, %v8528_v4, %v12254_v10  ;;  %v8561_v8 = vsel %vm6321_vm3, %v8529_v39, %v12255_v25 }
 0x89b   : > { %v12263_v57 = vpop.permute.xlu0 %12262  ;;  %v8598_v24 = vpack.c.bf16 %v8561_v8, %v8560_v50  ;;  %v8434_v9 = vsel %vm6288_vm2, %v8402_v21, %v12279_v37  ;;  %v8435_v17 = vsel %vm6288_vm2, %v8403_v59, %v12280_v43 }
 0x89c   : > { %v12288_v38 = vpop.permute.xlu1 %12287  ;;  %v12265_v27 = vunpack.i.h.bf16 %v12263_v57  ;;  %v12264_v60 = vunpack.i.l.bf16 %v12263_v57  ;;  %v7348_v57 = vld [vmem:[#allocation3 + $0xa8] sm:$0xff] }
 0x89d   : > { %8894 = vmatprep.mubr.bf16.mxu1 %v8598_v24  ;;  %v12290_v41 = vunpack.i.h.bf16 %v12288_v38  ;;  %v12289_v54 = vunpack.i.l.bf16 %v12288_v38  ;;  %v7349_v38 = vld [vmem:[#allocation3 + $0xb0] sm:$0xff] }
 0x89e   : > { %8895 = vmatmul.mubr.bf16.gmra.mxu1 %v8597_v52  ;;  %v8499_v33 = vsel %vm582_vm0, %v7475_v32, %v12265_v27  ;;  %v8498_v30 = vsel %vm582_vm0, %v7474_v15, %v12264_v60  ;;  %v7476_v27 = vld [vmem:[#allocation3 + $0xc1] sm:$0xff]  ;;  %v7477_v60 = vld [vmem:[#allocation3 + $0xc9] sm:$0xff] }
 0x89f   : > { %v12273_v62 = vpop.permute.xlu0 %12272  ;;  %v8466_v7 = vsel %vm6321_vm3, %v8434_v9, %v12289_v54  ;;  %v8467_v22 = vsel %vm6321_vm3, %v8435_v17, %v12290_v41 }
 0x8a0   : > { %v12298_v53 = vpop.permute.xlu1 %12297  ;;  %v12275_v11 = vunpack.i.h.bf16 %v12273_v62  ;;  %v12274_v42 = vunpack.i.l.bf16 %v12273_v62  ;;  %v8600_v12 = vpack.c.bf16 %v8467_v22, %v8466_v7 }
 0x8a1   : > { %v12300_v25 = vunpack.i.h.bf16 %v12298_v53  ;;  %v12299_v10 = vunpack.i.l.bf16 %v12298_v53 }
 0x8a2   : > { %v8530_v29 = vsel %vm6288_vm2, %v8498_v30, %v12274_v42  ;;  %v8531_v26 = vsel %vm6288_vm2, %v8499_v33, %v12275_v11 }
 0x8a3   : > { %v12283_v58 = vpop.permute.xlu0 %12282  ;;  %v8405_v43 = vsel %vm582_vm0, %v7349_v38, %v12300_v25  ;;  %v8404_v37 = vsel %vm582_vm0, %v7348_v57, %v12299_v10 }
 0x8a4   : > { %v12308_v18 = vpop.permute.xlu1 %12307  ;;  %v12285_v49 = vunpack.i.h.bf16 %v12283_v58  ;;  %v12284_v56 = vunpack.i.l.bf16 %v12283_v58 }
 0x8a5   : > { %v12310_v34 = vunpack.i.h.bf16 %v12308_v18  ;;  %v12309_v0 = vunpack.i.l.bf16 %v12308_v18 }
 0x8a6   : > { %v8562_v31 = vsel %vm6321_vm3, %v8530_v29, %v12284_v56  ;;  %v8563_v5 = vsel %vm6321_vm3, %v8531_v26, %v12285_v49 }
 0x8a7   : > { %v12293_v28 = vpop.permute.xlu0 %12292  ;;  %v8601_v51 = vpack.c.bf16 %v8563_v5, %v8562_v31  ;;  %v8436_v62 = vsel %vm6288_vm2, %v8404_v37, %v12309_v0  ;;  %v8437_v53 = vsel %vm6288_vm2, %v8405_v43, %v12310_v34 }
 0x8a8   : > { %v12318_v35 = vpop.permute.xlu1 %12317  ;;  %v12295_v50 = vunpack.i.h.bf16 %v12293_v28  ;;  %v12294_v8 = vunpack.i.l.bf16 %v12293_v28  ;;  %v7350_v28 = vld [vmem:[#allocation3 + $0xc0] sm:$0xff] }
 0x8a9   : > { %8902 = vmatprep.mubr.bf16.mxu1 %v8601_v51  ;;  %v12320_v24 = vunpack.i.h.bf16 %v12318_v35  ;;  %v12319_v52 = vunpack.i.l.bf16 %v12318_v35  ;;  %v7351_v35 = vld [vmem:[#allocation3 + $0xc8] sm:$0xff] }
 0x8aa   : > { %8903 = vmatmul.mubr.bf16.gmra.mxu1 %v8600_v12  ;;  %v8501_v41 = vsel %vm582_vm0, %v7477_v60, %v12295_v50  ;;  %v8500_v54 = vsel %vm582_vm0, %v7476_v27, %v12294_v8  ;;  %v7478_v50 = vld [vmem:[#allocation3 + $0xd9] sm:$0xff]  ;;  %v7479_v8 = vld [vmem:[#allocation3 + $0xe1] sm:$0xff] }
 0x8ab   : > { %v12303_v4 = vpop.permute.xlu0 %12302  ;;  %v8468_v59 = vsel %vm6321_vm3, %v8436_v62, %v12319_v52  ;;  %v8469_v21 = vsel %vm6321_vm3, %v8437_v53, %v12320_v24 }
 0x8ac   : > { %v12328_v39 = vpop.permute.xlu1 %12327  ;;  %v12305_v16 = vunpack.i.h.bf16 %v12303_v4  ;;  %v12304_v6 = vunpack.i.l.bf16 %v12303_v4  ;;  %v8603_v30 = vpack.c.bf16 %v8469_v21, %v8468_v59 }
 0x8ad   : > { %v12330_v49 = vunpack.i.h.bf16 %v12328_v39  ;;  %v12329_v56 = vunpack.i.l.bf16 %v12328_v39 }
 0x8ae   : > { %v8532_v9 = vsel %vm6288_vm2, %v8500_v54, %v12304_v6  ;;  %v8533_v17 = vsel %vm6288_vm2, %v8501_v41, %v12305_v16 }
 0x8af   : > { %v12313_v46 = vpop.permute.xlu0 %12312  ;;  %v8407_v34 = vsel %vm582_vm0, %v7351_v35, %v12330_v49  ;;  %v8406_v0 = vsel %vm582_vm0, %v7350_v28, %v12329_v56 }
 0x8b0   : > { %v12338_v44 = vpop.permute.xlu1 %12337  ;;  %v12315_v11 = vunpack.i.h.bf16 %v12313_v46  ;;  %v12314_v42 = vunpack.i.l.bf16 %v12313_v46 }
 0x8b1   : > { %v12340_v7 = vunpack.i.h.bf16 %v12338_v44  ;;  %v12339_v22 = vunpack.i.l.bf16 %v12338_v44 }
 0x8b2   : > { %v8564_v15 = vsel %vm6321_vm3, %v8532_v9, %v12314_v42  ;;  %v8565_v32 = vsel %vm6321_vm3, %v8533_v17, %v12315_v11 }
 0x8b3   : > { %v12323_v58 = vpop.permute.xlu0 %12322  ;;  %v8604_v33 = vpack.c.bf16 %v8565_v32, %v8564_v15  ;;  %v8438_v4 = vsel %vm6288_vm2, %v8406_v0, %v12339_v22  ;;  %v8439_v39 = vsel %vm6288_vm2, %v8407_v34, %v12340_v7 }
 0x8b4   : > { %v12348_v18 = vpop.permute.xlu1 %12347  ;;  %v12325_v31 = vunpack.i.h.bf16 %v12323_v58  ;;  %v12324_v5 = vunpack.i.l.bf16 %v12323_v58  ;;  %v7352_v58 = vld [vmem:[#allocation3 + $0xd8] sm:$0xff] }
 0x8b5   : > { %8910 = vmatprep.mubr.bf16.mxu1 %v8604_v33  ;;  %v12350_v51 = vunpack.i.h.bf16 %v12348_v18  ;;  %v12349_v12 = vunpack.i.l.bf16 %v12348_v18  ;;  %v7353_v18 = vld [vmem:[#allocation3 + $0xe0] sm:$0xff] }
 0x8b6   : > { %8911 = vmatmul.mubr.bf16.gmra.mxu1 %v8603_v30  ;;  %v8503_v24 = vsel %vm582_vm0, %v7479_v8, %v12325_v31  ;;  %v8502_v52 = vsel %vm582_vm0, %v7478_v50, %v12324_v5  ;;  %v7480_v31 = vld [vmem:[#allocation3 + $0xf1] sm:$0xff]  ;;  %v7481_v5 = vld [vmem:[#allocation3 + $0xf9] sm:$0xff] }
 0x8b7   : > { %v12333_v29 = vpop.permute.xlu0 %12332  ;;  %v8470_v43 = vsel %vm6321_vm3, %v8438_v4, %v12349_v12  ;;  %v8471_v37 = vsel %vm6321_vm3, %v8439_v39, %v12350_v51 }
 0x8b8   : > { %v12358_v26 = vpop.permute.xlu1 %12357  ;;  %v12335_v25 = vunpack.i.h.bf16 %v12333_v29  ;;  %v12334_v10 = vunpack.i.l.bf16 %v12333_v29  ;;  %v8606_v54 = vpack.c.bf16 %v8471_v37, %v8470_v43 }
 0x8b9   : > { %v12360_v11 = vunpack.i.h.bf16 %v12358_v26  ;;  %v12359_v42 = vunpack.i.l.bf16 %v12358_v26 }
 0x8ba   : > { %v8534_v62 = vsel %vm6288_vm2, %v8502_v52, %v12334_v10  ;;  %v8535_v53 = vsel %vm6288_vm2, %v8503_v24, %v12335_v25 }
 0x8bb   : > { %v12343_v57 = vpop.permute.xlu0 %12342  ;;  %v8409_v7 = vsel %vm582_vm0, %v7353_v18, %v12360_v11  ;;  %v8408_v22 = vsel %vm582_vm0, %v7352_v58, %v12359_v42 }
 0x8bc   : > { %v12368_v38 = vpop.permute.xlu1 %12367  ;;  %v12345_v16 = vunpack.i.h.bf16 %v12343_v57  ;;  %v12344_v6 = vunpack.i.l.bf16 %v12343_v57 }
 0x8bd   : > { %v12370_v59 = vunpack.i.h.bf16 %v12368_v38  ;;  %v12369_v21 = vunpack.i.l.bf16 %v12368_v38 }
 0x8be   : > { %v8566_v27 = vsel %vm6321_vm3, %v8534_v62, %v12344_v6  ;;  %v8567_v60 = vsel %vm6321_vm3, %v8535_v53, %v12345_v16 }
 0x8bf   : > { %v12353_v46 = vpop.permute.xlu0 %12352  ;;  %v8607_v41 = vpack.c.bf16 %v8567_v60, %v8566_v27  ;;  %v8440_v29 = vsel %vm6288_vm2, %v8408_v22, %v12369_v21  ;;  %v8441_v26 = vsel %vm6288_vm2, %v8409_v7, %v12370_v59 }
 0x8c0   : > { %v12378_v44 = vpop.permute.xlu1 %12377  ;;  %v12355_v15 = vunpack.i.h.bf16 %v12353_v46  ;;  %v12354_v32 = vunpack.i.l.bf16 %v12353_v46  ;;  %v7354_v46 = vld [vmem:[#allocation3 + $0xf0] sm:$0xff] }
 0x8c1   : > { %8918 = vmatprep.mubr.bf16.mxu1 %v8607_v41  ;;  %v12380_v33 = vunpack.i.h.bf16 %v12378_v44  ;;  %v12379_v30 = vunpack.i.l.bf16 %v12378_v44  ;;  %v7355_v44 = vld [vmem:[#allocation3 + $0xf8] sm:$0xff] }
 0x8c2   : > { %8919 = vmatmul.mubr.bf16.gmra.mxu1 %v8606_v54  ;;  %v8505_v51 = vsel %vm582_vm0, %v7481_v5, %v12355_v15  ;;  %v8504_v12 = vsel %vm582_vm0, %v7480_v31, %v12354_v32  ;;  %v7482_v15 = vld [vmem:[#allocation3 + $0x109] sm:$0xff]  ;;  %v7483_v32 = vld [vmem:[#allocation3 + $0x111] sm:$0xff] }
 0x8c3   : > { %v12363_v9 = vpop.permute.xlu0 %12362  ;;  %v8472_v34 = vsel %vm6321_vm3, %v8440_v29, %v12379_v30  ;;  %v8473_v0 = vsel %vm6321_vm3, %v8441_v26, %v12380_v33 }
 0x8c4   : > { %v12388_v17 = vpop.permute.xlu1 %12387  ;;  %v12365_v49 = vunpack.i.h.bf16 %v12363_v9  ;;  %v12364_v56 = vunpack.i.l.bf16 %v12363_v9  ;;  %v8609_v52 = vpack.c.bf16 %v8473_v0, %v8472_v34 }
 0x8c5   : > { %v12390_v16 = vunpack.i.h.bf16 %v12388_v17  ;;  %v12389_v6 = vunpack.i.l.bf16 %v12388_v17 }
 0x8c6   : > { %v8536_v4 = vsel %vm6288_vm2, %v8504_v12, %v12364_v56  ;;  %v8537_v39 = vsel %vm6288_vm2, %v8505_v51, %v12365_v49 }
 0x8c7   : > { %v12373_v28 = vpop.permute.xlu0 %12372  ;;  %v8411_v59 = vsel %vm582_vm0, %v7355_v44, %v12390_v16  ;;  %v8410_v21 = vsel %vm582_vm0, %v7354_v46, %v12389_v6 }
 0x8c8   : > { %v12398_v35 = vpop.permute.xlu1 %12397  ;;  %v12375_v25 = vunpack.i.h.bf16 %v12373_v28  ;;  %v12374_v10 = vunpack.i.l.bf16 %v12373_v28 }
 0x8c9   : > { %v12400_v43 = vunpack.i.h.bf16 %v12398_v35  ;;  %v12399_v37 = vunpack.i.l.bf16 %v12398_v35 }
 0x8ca   : > { %v8568_v50 = vsel %vm6321_vm3, %v8536_v4, %v12374_v10  ;;  %v8569_v8 = vsel %vm6321_vm3, %v8537_v39, %v12375_v25 }
 0x8cb   : > { %v12383_v57 = vpop.permute.xlu0 %12382  ;;  %v8610_v24 = vpack.c.bf16 %v8569_v8, %v8568_v50  ;;  %v8442_v9 = vsel %vm6288_vm2, %v8410_v21, %v12399_v37  ;;  %v8443_v17 = vsel %vm6288_vm2, %v8411_v59, %v12400_v43 }
 0x8cc   : > { %v12408_v38 = vpop.permute.xlu1 %12407  ;;  %v12385_v27 = vunpack.i.h.bf16 %v12383_v57  ;;  %v12384_v60 = vunpack.i.l.bf16 %v12383_v57  ;;  %v7356_v57 = vld [vmem:[#allocation3 + $0x108] sm:$0xff] }
 0x8cd   : > { %8926 = vmatprep.mubr.bf16.mxu1 %v8610_v24  ;;  %v12410_v41 = vunpack.i.h.bf16 %v12408_v38  ;;  %v12409_v54 = vunpack.i.l.bf16 %v12408_v38  ;;  %v7357_v38 = vld [vmem:[#allocation3 + $0x110] sm:$0xff] }
 0x8ce   : > { %8927 = vmatmul.mubr.bf16.gmra.mxu1 %v8609_v52  ;;  %v8507_v18 = vsel %vm582_vm0, %v7483_v32, %v12385_v27  ;;  %v8506_v33 = vsel %vm582_vm0, %v7482_v15, %v12384_v60 }
 0x8cf   : > { %v12393_v62 = vpop.permute.xlu0 %12392  ;;  %v8474_v7 = vsel %vm6321_vm3, %v8442_v9, %v12409_v54  ;;  %v8475_v22 = vsel %vm6321_vm3, %v8443_v17, %v12410_v41 }
 0x8d0   : > { %v12418_v53 = vpop.permute.xlu1 %12417  ;;  %v12395_v11 = vunpack.i.h.bf16 %v12393_v62  ;;  %v12394_v42 = vunpack.i.l.bf16 %v12393_v62  ;;  %v8612_v51 = vpack.c.bf16 %v8475_v22, %v8474_v7 }
 0x8d1   : > { %v12420_v25 = vunpack.i.h.bf16 %v12418_v53  ;;  %v12419_v10 = vunpack.i.l.bf16 %v12418_v53 }
 0x8d2   : > { %v8538_v29 = vsel %vm6288_vm2, %v8506_v33, %v12394_v42  ;;  %v8539_v26 = vsel %vm6288_vm2, %v8507_v18, %v12395_v11 }
 0x8d3   : > { %v12403_v58 = vpop.permute.xlu0 %12402  ;;  %v8413_v43 = vsel %vm582_vm0, %v7357_v38, %v12420_v25  ;;  %v8412_v37 = vsel %vm582_vm0, %v7356_v57, %v12419_v10 }
 0x8d4   : > { %v12405_v30 = vunpack.i.h.bf16 %v12403_v58  ;;  %v12404_v49 = vunpack.i.l.bf16 %v12403_v58  ;;  %v12428_v56 = vpop.permute.xlu1 %12427 }
 0x8d5   : > { %v12430_v34 = vunpack.i.h.bf16 %v12428_v56  ;;  %v12429_v0 = vunpack.i.l.bf16 %v12428_v56 }
 0x8d6   : > { %v8570_v31 = vsel %vm6321_vm3, %v8538_v29, %v12404_v49  ;;  %v8571_v5 = vsel %vm6321_vm3, %v8539_v26, %v12405_v30  ;;  %v7358_v29 = vld [vmem:[#allocation3 + $0x120] sm:$0xff]  ;;  %v7359_v26 = vld [vmem:[#allocation3 + $0x128] sm:$0xff] }
 0x8d7   : > { %v12413_v28 = vpop.permute.xlu0 %12412  ;;  %v8613_v35 = vpack.c.bf16 %v8571_v5, %v8570_v31  ;;  %v8444_v62 = vsel %vm6288_vm2, %v8412_v37, %v12429_v0  ;;  %v8445_v53 = vsel %vm6288_vm2, %v8413_v43, %v12430_v34 }
 0x8d8   : > { %v12438_v12 = vpop.permute.xlu1 %12437  ;;  %v12415_v39 = vunpack.i.h.bf16 %v12413_v28  ;;  %v12414_v50 = vunpack.i.l.bf16 %v12413_v28 }
 0x8d9   : > { %8934 = vmatprep.mubr.bf16.mxu1 %v8613_v35  ;;  %v12440_v24 = vunpack.i.h.bf16 %v12438_v12  ;;  %v12439_v52 = vunpack.i.l.bf16 %v12438_v12 }
 0x8da   : > { %8935 = vmatmul.mubr.bf16.gmra.mxu1 %v8612_v51  ;;  %v8509_v60 = vsel %vm582_vm0, %v17050_v61, %v12415_v39  ;;  %v8508_v46 = vsel %vm582_vm0, %v17048_v2, %v12414_v50 }
 0x8db   : > { %v12423_v4 = vpop.permute.xlu0 %12422  ;;  %v8476_v11 = vsel %vm6321_vm3, %v8444_v62, %v12439_v52  ;;  %v8477_v42 = vsel %vm6321_vm3, %v8445_v53, %v12440_v24 }
 0x8dc   : > { %v12448_v8 = vpop.permute.xlu1 %12447  ;;  %v12425_v16 = vunpack.i.h.bf16 %v12423_v4  ;;  %v12424_v6 = vunpack.i.l.bf16 %v12423_v4  ;;  %v8615_v32 = vpack.c.bf16 %v8477_v42, %v8476_v11  ;;  %v7360_v11 = vld [vmem:[#allocation3 + $0x138] sm:$0xff]  ;;  %v7361_v42 = vld [vmem:[#allocation3 + $0x140] sm:$0xff] }
 0x8dd   : > { %v12450_v2 = vunpack.i.h.bf16 %v12448_v8  ;;  %v12449_v18 = vunpack.i.l.bf16 %v12448_v8 }
 0x8de   : > { %v8540_v59 = vsel %vm6288_vm2, %v8508_v46, %v12424_v6  ;;  %v8541_v21 = vsel %vm6288_vm2, %v8509_v60, %v12425_v16 }
 0x8df   : > { %v12433_v27 = vpop.permute.xlu0 %12432  ;;  %v8415_v51 = vsel %vm582_vm0, %v7359_v26, %v12450_v2  ;;  %v8414_v12 = vsel %vm582_vm0, %v7358_v29, %v12449_v18 }
 0x8e0   : > { %v12435_v44 = vunpack.i.h.bf16 %v12433_v27  ;;  %v12434_v41 = vunpack.i.l.bf16 %v12433_v27  ;;  %v12458_v54 = vpop.permute.xlu1 %12457 }
 0x8e1   : > { %v12460_v33 = vunpack.i.h.bf16 %v12458_v54  ;;  %v12459_v30 = vunpack.i.l.bf16 %v12458_v54 }
 0x8e2   : > { %v8572_v9 = vsel %vm6321_vm3, %v8540_v59, %v12434_v41  ;;  %v8573_v17 = vsel %vm6321_vm3, %v8541_v21, %v12435_v44 }
 0x8e3   : > { %v12443_v15 = vpop.permute.xlu0 %12442  ;;  %v8616_v61 = vpack.c.bf16 %v8573_v17, %v8572_v9  ;;  %v8446_v25 = vsel %vm6288_vm2, %v8414_v12, %v12459_v30  ;;  %v8447_v10 = vsel %vm6288_vm2, %v8415_v51, %v12460_v33 }
 0x8e4   : > { %v12468_v58 = vpop.permute.xlu1 %12467  ;;  %v12445_v56 = vunpack.i.h.bf16 %v12443_v15  ;;  %v12444_v7 = vunpack.i.l.bf16 %v12443_v15 }
 0x8e5   : > { %8942 = vmatprep.mubr.bf16.mxu1 %v8616_v61  ;;  %v12470_v31 = vunpack.i.h.bf16 %v12468_v58  ;;  %v12469_v5 = vunpack.i.l.bf16 %v12468_v58 }
 0x8e6   : > { %8943 = vmatmul.mubr.bf16.gmra.mxu1 %v8615_v32  ;;  %v8511_v0 = vsel %vm582_vm0, %v17078_v55, %v12445_v56  ;;  %v8510_v4 = vsel %vm582_vm0, %v17076_v20, %v12444_v7 }
 0x8e7   : > { %v12453_v49 = vpop.permute.xlu0 %12452  ;;  %v8478_v57 = vsel %vm6321_vm3, %v8446_v25, %v12469_v5  ;;  %v8479_v38 = vsel %vm6321_vm3, %v8447_v10, %v12470_v31 }
 0x8e8   : > { %v12478_v22 = vpop.permute.xlu1 %12477  ;;  %v12455_v28 = vunpack.i.h.bf16 %v12453_v49  ;;  %v12454_v35 = vunpack.i.l.bf16 %v12453_v49  ;;  %v8618_v37 = vpack.c.bf16 %v8479_v38, %v8478_v57 }
 0x8e9   : > { %v12480_v20 = vunpack.i.h.bf16 %v12478_v22  ;;  %v12479_v53 = vunpack.i.l.bf16 %v12478_v22 }
 0x8ea   : > { %v8542_v24 = vsel %vm6288_vm2, %v8510_v4, %v12454_v35  ;;  %v8543_v52 = vsel %vm6288_vm2, %v8511_v0, %v12455_v28 }
 0x8eb   : > { %v12463_v34 = vpop.permute.xlu0 %12462  ;;  %v8417_v15 = vsel %vm582_vm0, %v7361_v42, %v12480_v20  ;;  %v8416_v61 = vsel %vm582_vm0, %v7360_v11, %v12479_v53 }
 0x8ec   : > { %v12465_v39 = vunpack.i.h.bf16 %v12463_v34  ;;  %v12464_v50 = vunpack.i.l.bf16 %v12463_v34  ;;  %v12488_v8 = vpop.permute.xlu1 %12487 }
 0x8ed   : > { %v12490_v27 = vunpack.i.h.bf16 %v12488_v8  ;;  %v12489_v60 = vunpack.i.l.bf16 %v12488_v8 }
 0x8ee   : > { %v8574_v16 = vsel %vm6321_vm3, %v8542_v24, %v12464_v50  ;;  %v8575_v6 = vsel %vm6321_vm3, %v8543_v52, %v12465_v39 }
 0x8ef   : > { %v12473_v43 = vpop.permute.xlu0 %12472  ;;  %v8619_v55 = vpack.c.bf16 %v8575_v6, %v8574_v16  ;;  %v8448_v32 = vsel %vm6288_vm2, %v8416_v61, %v12489_v60  ;;  %v8449_v58 = vsel %vm6288_vm2, %v8417_v15, %v12490_v27 }
 0x8f0   : > { %v12498_v62 = vpop.permute.xlu1 %12497  ;;  %v12475_v44 = vunpack.i.h.bf16 %v12473_v43  ;;  %v12474_v41 = vunpack.i.l.bf16 %v12473_v43 }
 0x8f1   : > { %8950 = vmatprep.mubr.bf16.mxu1 %v8619_v55  ;;  %v12500_v59 = vunpack.i.h.bf16 %v12498_v62  ;;  %v12499_v21 = vunpack.i.l.bf16 %v12498_v62 }
 0x8f2   : > { %8951 = vmatmul.mubr.bf16.gmra.mxu1 %v8618_v37  ;;  %v8513_v18 = vsel %vm582_vm0, %v17114_v36, %v12475_v44  ;;  %v8512_v33 = vsel %vm582_vm0, %v17112_v45, %v12474_v41 }
 0x8f3   : > { %v12483_v46 = vpop.permute.xlu0 %12482  ;;  %v8480_v7 = vsel %vm6321_vm3, %v8448_v32, %v12499_v21  ;;  %v8481_v22 = vsel %vm6321_vm3, %v8449_v58, %v12500_v59 }
 0x8f4   : > { %v12508_v54 = vpop.permute.xlu1 %12507  ;;  %v12485_v9 = vunpack.i.h.bf16 %v12483_v46  ;;  %v12484_v17 = vunpack.i.l.bf16 %v12483_v46  ;;  %v8621_v35 = vpack.c.bf16 %v8481_v22, %v8480_v7 }
 0x8f5   : > { %v12510_v45 = vunpack.i.h.bf16 %v12508_v54  ;;  %v12509_v12 = vunpack.i.l.bf16 %v12508_v54 }
 0x8f6   : > { %v8544_v29 = vsel %vm6288_vm2, %v8512_v33, %v12484_v17  ;;  %v8545_v26 = vsel %vm6288_vm2, %v8513_v18, %v12485_v9  ;;  %v12089_v18 = vunpack.i.l.bf16 %v17030_v1 }
 0x8f7   : > { %v12493_v2 = vpop.permute.xlu0 %12492  ;;  %v8419_v24 = vsel %vm582_vm0, %v17097_v14, %v12510_v45  ;;  %v8418_v52 = vsel %vm582_vm0, %v17095_v63, %v12509_v12 }
 0x8f8   : > { %v12495_v30 = vunpack.i.h.bf16 %v12493_v2  ;;  %v12494_v49 = vunpack.i.l.bf16 %v12493_v2  ;;  %v12518_v56 = vpop.permute.xlu1 %12517  ;;  %v12090_v2 = vunpack.i.h.bf16 %v17030_v1 }
 0x8f9   : > { %v12520_v25 = vunpack.i.h.bf16 %v12518_v56  ;;  %v12519_v10 = vunpack.i.l.bf16 %v12518_v56 }
 0x8fa   : > { %v8576_v31 = vsel %vm6321_vm3, %v8544_v29, %v12494_v49  ;;  %v8577_v5 = vsel %vm6321_vm3, %v8545_v26, %v12495_v30 }
 0x8fb   : > { %v12503_v28 = vpop.permute.xlu0 %12502  ;;  %v8622_v36 = vpack.c.bf16 %v8577_v5, %v8576_v31  ;;  %v8450_v16 = vsel %vm6288_vm2, %v8418_v52, %v12519_v10  ;;  %v8451_v6 = vsel %vm6288_vm2, %v8419_v24, %v12520_v25 }
 0x8fc   : > { %v12528_v51 = vpop.permute.xlu1 %12527  ;;  %v12505_v34 = vunpack.i.h.bf16 %v12503_v28  ;;  %v12504_v0 = vunpack.i.l.bf16 %v12503_v28 }
 0x8fd   : > { %8958 = vmatprep.mubr.bf16.mxu1 %v8622_v36  ;;  %v12530_v39 = vunpack.i.h.bf16 %v12528_v51  ;;  %v12529_v50 = vunpack.i.l.bf16 %v12528_v51 }
 0x8fe   : > { %8959 = vmatmul.mubr.bf16.gmra.mxu1 %v8621_v35  ;;  %v8515_v43 = vsel %vm582_vm0, %v17150_v3, %v12505_v34  ;;  %v8514_v55 = vsel %vm582_vm0, %v17148_v47, %v12504_v0 }
 0x8ff   : > { %v12513_v4 = vpop.permute.xlu0 %12512  ;;  %v8482_v62 = vsel %vm6321_vm3, %v8450_v16, %v12529_v50  ;;  %v8483_v20 = vsel %vm6321_vm3, %v8451_v6, %v12530_v39  ;;  %v11479_v6 = vpop.f32.mrf.mxu0 }
 0x900   : > { %v12538_v8 = vpop.permute.xlu1 %12537  ;;  %v12515_v57 = vunpack.i.h.bf16 %v12513_v4  ;;  %v12514_v38 = vunpack.i.l.bf16 %v12513_v4  ;;  %v8624_v3 = vpack.c.bf16 %v8483_v20, %v8482_v62 }
 0x901   : > { %v12540_v41 = vunpack.i.h.bf16 %v12538_v8  ;;  %v12539_v54 = vunpack.i.l.bf16 %v12538_v8 }
 0x902   : > { %v8546_v63 = vsel %vm6288_vm2, %v8514_v55, %v12514_v38  ;;  %v8547_v60 = vsel %vm6288_vm2, %v8515_v43, %v12515_v57  ;;  %v12736_v55 = vld [vmem:[%s17995_s13 + $0x8] sm:$0xff]  }
 0x903   : > { %v12523_v37 = vpop.permute.xlu0 %12522  ;;  %v8421_v33 = vsel %vm582_vm0, %v17133_v40, %v12540_v41  ;;  %v8420_v30 = vsel %vm582_vm0, %v17131_v19, %v12539_v54  ;;  %11509 = vmatprep.subr.bf16.mxu0 %v12736_v55 }
 0x904   : > { %v12525_v53 = vunpack.i.h.bf16 %v12523_v37  ;;  %v12524_v14 = vunpack.i.l.bf16 %v12523_v37  ;;  %v12543_v27 = vpop.permute.xlu1 %12542  ;;  %11510 = vmatpush3.bf16.msra.mxu0 %v12736_v55  ;;  %v9017_v37 = vpop.f32.mrf.mxu0 }
 0x905   : > { %v12545_v42 = vunpack.i.h.bf16 %v12543_v27  ;;  %v12544_v59 = vunpack.i.l.bf16 %v12543_v27 }
 0x906   : > { %v8578_v46 = vsel %vm6321_vm3, %v8546_v63, %v12524_v14  ;;  %v8579_v44 = vsel %vm6321_vm3, %v8547_v60, %v12525_v53  ;;  %v11480_v53 = vpop.f32.mrf.mxu0 }
 0x907   : > { %v12533_v47 = vpop.permute.xlu0 %12532  ;;  %v8625_v11 = vpack.c.bf16 %v8579_v44, %v8578_v46  ;;  %v8452_v56 = vsel %vm6288_vm2, %v8420_v30, %v12544_v59  ;;  %v8453_v7 = vsel %vm6288_vm2, %v8421_v33, %v12545_v42 }
 0x908   : > { %v12535_v21 = vunpack.i.h.bf16 %v12533_v47  ;;  %v12534_v9 = vunpack.i.l.bf16 %v12533_v47  ;;  %v12553_v17 = vpop.permute.xlu1 %12552  ;;  %v9020_v27 = vpop.f32.mrf.mxu0 }
 0x909   : > { %v12555_v15 = vunpack.i.h.bf16 %v12553_v17  ;;  %v12554_v61 = vunpack.i.l.bf16 %v12553_v17  ;;  %8966 = vmatprep.mubr.bf16.mxu1 %v8625_v11 }
 0x90a   : > { %v8517_v32 = vsel %vm582_vm0, %v17179_v13, %v12535_v21  ;;  %v8516_v58 = vsel %vm582_vm0, %v17185_v48, %v12534_v9  ;;  %8967 = vmatmul.mubr.bf16.gmra.mxu1 %v8624_v3  ;;  %v17383_v60 = vpop.f32.mrf.mxu0 }
 0x90b   : > { %v12548_v49 = vpop.permute.xlu0 %12547  ;;  %v8484_v48 = vsel %vm6321_vm3, %v8452_v56, %v12554_v61  ;;  %v8485_v29 = vsel %vm6321_vm3, %v8453_v7, %v12555_v15  ;;  %v8548_v26 = vsel %vm6288_vm2, %v8516_v58, %v12089_v18  ;;  %v8549_v1 = vsel %vm6288_vm2, %v8517_v32, %v12090_v2 }
 0x90c   : > { %v12550_v13 = vunpack.i.h.bf16 %v12548_v49  ;;  %v12549_v22 = vunpack.i.l.bf16 %v12548_v49  ;;  %v8627_v5 = vpack.c.bf16 %v8485_v29, %v8484_v48  ;;  %v9033_v3 = vpop.f32.mrf.mxu0 }
 0x90e   : > { %v8580_v40 = vsel %vm6321_vm3, %v8548_v26, %v12549_v22  ;;  %v8581_v31 = vsel %vm6321_vm3, %v8549_v1, %v12550_v13  ;;  %v17391_v54 = vpop.f32.mrf.mxu0 }
 0x90f   : > { %v8628_v19 = vpack.c.bf16 %v8581_v31, %v8580_v40 }
 0x910   : > { %v9036_v11 = vpop.f32.mrf.mxu0 }
 0x911   : > { %8974 = vmatprep.mubr.bf16.mxu1 %v8628_v19 }
 0x912   : > { %8975 = vmatmul.mubr.bf16.gmra.mxu1 %v8627_v5  ;;  %v17399_v21 = vpop.f32.mrf.mxu0 }
 0x914   : > { %v17403_v17 = vpop.f32.mrf.mxu0 }
 0x916   : > { %v17407_v61 = vpop.f32.mrf.mxu0 }
 0x918   : > { %v17413_v2 = vpop.f32.mrf.mxu0 }
 0x91a   : > { %v17417_v33 = vpop.f32.mrf.mxu0 }
 0x91c   : > { %v17421_v49 = vpop.f32.mrf.mxu0 }
 0x91e   : > { %v17427_v13 = vpop.f32.mrf.mxu0 }
 0x920   : > { %v17431_v48 = vpop.f32.mrf.mxu0 }
 0x922   : > { %v11209_v28 = vpop.f32.mrf.mxu1  ;;  %v17435_v40 = vpop.f32.mrf.mxu0 }
 0x924   : > { %v11210_v36 = vpop.f32.mrf.mxu1 }
 0x925   : > { %v17356_v35 = vadd.f32 %v11210_v36, %v11209_v28 }
 0x926   : > { %v11212_v51 = vpop.f32.mrf.mxu1 }
 0x927   : > { %v17442_v28 = vadd.f32 %v17356_v35, %v9017_v37 }
 0x928   : > { %v11213_v45 = vpop.f32.mrf.mxu1 }
 0x929   : > { %v11214_v26 = vadd.f32 %v11213_v45, %v11212_v51 }
 0x92b   : > { %v17439_v19 = vadd.f32 %v11214_v26, %v9020_v27 }
 0x92d   : > { %v9214_v51 = vmul.f32 %v17439_v19, %v17439_v19 }
 0x92e   : > { %v11215_v12 = vpop.f32.mrf.mxu1 }
 0x930   : > { %v11216_v25 = vpop.f32.mrf.mxu1 }
 0x931   : > { %v11217_v1 = vadd.f32 %v11216_v25, %v11215_v12  ;;  %v9213_v25 = vmul.f32 %v17442_v28, %v17442_v28 }
 0x932   : > { %v11218_v10 = vpop.f32.mrf.mxu1 }
 0x933   : > { %v17446_v23 = vadd.f32 %v11479_v6, %v11217_v1 }
 0x934   : > { %v11219_v34 = vpop.f32.mrf.mxu1 }
 0x935   : > { %v11220_v5 = vadd.f32 %v11219_v34, %v11218_v10  ;;  %v12737_v10 = vld [vmem:[%s17995_s13] sm:$0xff]   ;;  %v9145_v34 = vsel %vm582_vm0, %v17439_v19, 0.0  ;;  %v9147_v27 = vsel %vm582_vm0, %v17446_v23, 0.0 }
 0x936   : > { %11511 = vmatprep.subr.bf16.mxu0 %v12737_v10 }
 0x937   : > { %v17454_v45 = vadd.f32 %v11480_v53, %v11220_v5  ;;  %v9246_v53 = vsel %vm582_vm0, %v9214_v51, 0.0  ;;  %11512 = vmatpush3.bf16.msra.mxu0 %v12737_v10 }
 0x939   : > { %v9149_v1 = vsel %vm582_vm0, %v17454_v45, 0.0 }
 0x93a   : > { %v11221_v0 = vpop.f32.mrf.mxu1 }
 0x93c   : > { %v11222_v4 = vpop.f32.mrf.mxu1 }
 0x93d   : > { %v11223_v36 = vadd.f32 %v11222_v4, %v11221_v0  ;;  %v9215_v0 = vmul.f32 %v17446_v23, %v17446_v23 }
 0x93e   : > { %v11224_v39 = vpop.f32.mrf.mxu1 }
 0x93f   : > { %v17458_v35 = vadd.f32 %v11223_v36, %v9033_v3  ;;  %v9216_v3 = vmul.f32 %v17454_v45, %v17454_v45 }
 0x940   : > { %v11225_v50 = vpop.f32.mrf.mxu1 }
 0x941   : > { %v11226_v12 = vadd.f32 %v11225_v50, %v11224_v39  ;;  %v9144_v39 = vsel %vm582_vm0, %v17442_v28, 0.0 }
 0x942   : > { %v9146_v26 = vadd.f32 %v9145_v34, %v9144_v39  ;;  %v9250_v34 = vsel %vm582_vm0, %v9216_v3, 0.0 }
 0x946   : > { %v17358_v8 = vpop.f32.mrf.mxu1 }
 0x948   : > { %v17360_v57 = vpop.f32.mrf.mxu1 }
 0x949   : > { %v11229_v4 = vadd.f32 %v17360_v57, %v17358_v8  ;;  %v17482_v8 = vadd.f32 %v11226_v12, %v9036_v11  ;;  %v9245_v57 = vsel %vm582_vm0, %v9213_v25, 0.0  ;;  %v9148_v12 = vadd.f32 %v9147_v27, %v9146_v26 }
 0x94a   : > { %v17362_v38 = vpop.f32.mrf.mxu1  ;;  %v9247_v51 = vadd.f32 %v9246_v53, %v9245_v57 }
 0x94b   : > { %v17491_v5 = vadd.f32 %v17383_v60, %v11229_v4  ;;  %v9218_v60 = vmul.f32 %v17482_v8, %v17482_v8  ;;  %v9150_v4 = vadd.f32 %v9149_v1, %v9148_v12 }
 0x94c   : > { %v17364_v24 = vpop.f32.mrf.mxu1 }
 0x94d   : > { %v11232_v50 = vadd.f32 %v17364_v24, %v17362_v38  ;;  %v9217_v38 = vmul.f32 %v17458_v35, %v17458_v35  ;;  %v9248_v24 = vsel %vm582_vm0, %v9215_v0, 0.0  ;;  %v9151_v0 = vsel %vm582_vm0, %v17458_v35, 0.0 }
 0x94e   : > { %v9155_v1 = vsel %vm582_vm0, %v17491_v5, 0.0 }
 0x94f   : > { %v17498_v25 = vadd.f32 %v17391_v54, %v11232_v50  ;;  %v9252_v39 = vsel %vm582_vm0, %v9217_v38, 0.0  ;;  %v9153_v54 = vsel %vm582_vm0, %v17482_v8, 0.0  ;;  %v9219_v50 = vmul.f32 %v17491_v5, %v17491_v5 }
 0x951   : > { %v9220_v26 = vmul.f32 %v17498_v25, %v17498_v25  ;;  %v9256_v12 = vsel %vm582_vm0, %v9219_v50, 0.0 }
 0x952   : > { %v17366_v52 = vpop.f32.mrf.mxu1 }
 0x954   : > { %v17368_v16 = vpop.f32.mrf.mxu1 }
 0x955   : > { %v11235_v36 = vadd.f32 %v17368_v16, %v17366_v52  ;;  %v9249_v16 = vadd.f32 %v9248_v24, %v9247_v51  ;;  %v9254_v24 = vsel %vm582_vm0, %v9218_v60, 0.0 }
 0x956   : > { %v17370_v43 = vpop.f32.mrf.mxu1 }
 0x957   : > { %v17517_v27 = vadd.f32 %v11235_v36, %v17403_v17 }
 0x958   : > { %v17375_v62 = vpop.f32.mrf.mxu1 }
 0x959   : > { %v11238_v52 = vadd.f32 %v17375_v62, %v17370_v43  ;;  %v9251_v43 = vadd.f32 %v9250_v34, %v9249_v16  ;;  %v9152_v62 = vadd.f32 %v9151_v0, %v9150_v4  ;;  %v9157_v34 = vsel %vm582_vm0, %v17498_v25, 0.0 }
 0x95a   : > { %v9221_v0 = vmul.f32 %v17517_v27, %v17517_v27 }
 0x95b   : > { %v17531_v17 = vadd.f32 %v11238_v52, %v17413_v2  ;;  %v9154_v36 = vadd.f32 %v9153_v54, %v9152_v62 }
 0x95e   : > { %v17377_v20 = vpop.f32.mrf.mxu1 }
 0x960   : > { %v17379_v14 = vpop.f32.mrf.mxu1 }
 0x961   : > { %v11241_v3 = vadd.f32 %v17379_v14, %v17377_v20  ;;  %v9253_v14 = vadd.f32 %v9252_v39, %v9251_v43  ;;  %v9161_v43 = vsel %vm582_vm0, %v17531_v17, 0.0 }
 0x962   : > { %v17381_v63 = vpop.f32.mrf.mxu1 }
 0x963   : > { %v17543_v60 = vadd.f32 %v17399_v21, %v11241_v3  ;;  %v9255_v52 = vadd.f32 %v9254_v24, %v9253_v14  ;;  %v9260_v3 = vsel %vm582_vm0, %v9221_v0, 0.0 }
 0x964   : > { %v17385_v46 = vpop.f32.mrf.mxu1 }
 0x965   : > { %v11244_v20 = vadd.f32 %v17385_v46, %v17381_v63  ;;  %v9156_v63 = vadd.f32 %v9155_v1, %v9154_v36  ;;  %v9258_v46 = vsel %vm582_vm0, %v9220_v26, 0.0  ;;  %v9257_v39 = vadd.f32 %v9256_v12, %v9255_v52 }
 0x966   : > { %v9223_v62 = vmul.f32 %v17543_v60, %v17543_v60 }
 0x967   : > { %v17555_v4 = vadd.f32 %v17407_v61, %v11244_v20  ;;  %v9158_v54 = vadd.f32 %v9157_v34, %v9156_v63  ;;  %v9259_v24 = vadd.f32 %v9258_v46, %v9257_v39  ;;  %v9163_v20 = vsel %vm582_vm0, %v17543_v60, 0.0 }
 0x969   : > { %v9224_v14 = vmul.f32 %v17555_v4, %v17555_v4 }
 0x96a   : > { %v17387_v44 = vpop.f32.mrf.mxu1 }
 0x96c   : > { %v17389_v41 = vpop.f32.mrf.mxu1 }
 0x96d   : > { %v11247_v51 = vadd.f32 %v17389_v41, %v17387_v44  ;;  %v9159_v44 = vsel %vm582_vm0, %v17517_v27, 0.0  ;;  %v9222_v41 = vmul.f32 %v17531_v17, %v17531_v17 }
 0x96e   : > { %v17393_v47 = vpop.f32.mrf.mxu1 }
 0x96f   : > { %v17560_v50 = vadd.f32 %v11247_v51, %v17421_v49  ;;  %v9262_v1 = vsel %vm582_vm0, %v9222_v41, 0.0  ;;  %v9266_v41 = vsel %vm582_vm0, %v9224_v14, 0.0 }
 0x970   : > { %v17395_v42 = vpop.f32.mrf.mxu1 }
 0x971   : > { %v11250_v21 = vadd.f32 %v17395_v42, %v17393_v47  ;;  %v9160_v47 = vadd.f32 %v9159_v44, %v9158_v54  ;;  %v9225_v51 = vmul.f32 %v17560_v50, %v17560_v50 }
 0x973   : > { %v17581_v36 = vadd.f32 %v11250_v21, %v17431_v48  ;;  %v9167_v21 = vsel %vm582_vm0, %v17560_v50, 0.0 }
 0x975   : > { %v9226_v39 = vmul.f32 %v17581_v36, %v17581_v36 }
 0x976   : > { %v17397_v59 = vpop.f32.mrf.mxu1 }
 0x978   : > { %v17401_v9 = vpop.f32.mrf.mxu1 }
 0x979   : > { %v11253_v61 = vadd.f32 %v17401_v9, %v17397_v59  ;;  %v9261_v59 = vadd.f32 %v9260_v3, %v9259_v24  ;;  %v9162_v9 = vadd.f32 %v9161_v43, %v9160_v47 }
 0x97a   : > { %v17405_v15 = vpop.f32.mrf.mxu1 }
 0x97b   : > { %v17591_v34 = vadd.f32 %v17417_v33, %v11253_v61  ;;  %v9263_v52 = vadd.f32 %v9262_v1, %v9261_v59  ;;  %v9164_v63 = vadd.f32 %v9163_v20, %v9162_v9  ;;  %v9270_v1 = vsel %vm582_vm0, %v9226_v39, 0.0 }
 0x97c   : > { %v17409_v32 = vpop.f32.mrf.mxu1 }
 0x97d   : > { %v11256_v42 = vadd.f32 %v17409_v32, %v17405_v15  ;;  %v9264_v15 = vsel %vm582_vm0, %v9223_v62, 0.0  ;;  %v9165_v32 = vsel %vm582_vm0, %v17555_v4, 0.0  ;;  %v9227_v3 = vmul.f32 %v17591_v34, %v17591_v34 }
 0x97e   : > { %v9265_v54 = vadd.f32 %v9264_v15, %v9263_v52  ;;  %v9171_v20 = vsel %vm582_vm0, %v17591_v34, 0.0 }
 0x97f   : > { %v17596_v46 = vadd.f32 %v17427_v13, %v11256_v42  ;;  %v9169_v13 = vsel %vm582_vm0, %v17581_v36, 0.0  ;;  %v9272_v15 = vsel %vm582_vm0, %v9227_v3, 0.0 }
 0x980   : > { %v9267_v47 = vadd.f32 %v9266_v41, %v9265_v54 }
 0x982   : > { %v17411_v58 = vpop.f32.mrf.mxu1 }
 0x984   : > { %v17415_v18 = vpop.f32.mrf.mxu1 }
 0x985   : > { %v11259_v0 = vadd.f32 %v17415_v18, %v17411_v58  ;;  %v9166_v58 = vadd.f32 %v9165_v32, %v9164_v63  ;;  %v9268_v18 = vsel %vm582_vm0, %v9225_v51, 0.0  ;;  %v9173_v32 = vsel %vm582_vm0, %v17596_v46, 0.0 }
 0x986   : > { %v17419_v30 = vpop.f32.mrf.mxu1 }
 0x988   : > { %v17423_v56 = vpop.f32.mrf.mxu1 }
 0x989   : > { %v11262_v33 = vadd.f32 %v17423_v56, %v17419_v30  ;;  %v9168_v30 = vadd.f32 %v9167_v21, %v9166_v58  ;;  %v9228_v56 = vmul.f32 %v17596_v46, %v17596_v46 }
 0x98b   : > { %v9170_v9 = vadd.f32 %v9169_v13, %v9168_v30 }
 0x98d   : > { %v9172_v41 = vadd.f32 %v9171_v20, %v9170_v9 }
 0x98e   : > { %v17425_v7 = vpop.f32.mrf.mxu1 }
 0x98f   : > { %v9174_v54 = vadd.f32 %v9173_v32, %v9172_v41 }
 0x990   : > { %v17429_v22 = vpop.f32.mrf.mxu1 }
 0x991   : > { %18227 = vst [vmem:[#allocation28_spill] sm:$0xff] %v17429_v22  ;;  %v17448_v22 = vpop.f32.mrf.mxu0 }
 0x992   : > { %v17433_v29 = vpop.f32.mrf.mxu1  ;;  %v17611_v43 = vadd.f32 %v11259_v0, %v17448_v22 }
 0x993   : > { %18228 = vst [vmem:[#allocation29_spill] sm:$0xff] %v17433_v29  ;;  %v17469_v6 = vpop.f32.mrf.mxu0 }
 0x994   : > { %v17437_v31 = vpop.f32.mrf.mxu1  ;;  %v9229_v0 = vmul.f32 %v17611_v43, %v17611_v43 }
 0x995   : > { %v17495_v11 = vpop.f32.mrf.mxu0 }
 0x996   : > { %v17623_v14 = vadd.f32 %v11262_v33, %v17495_v11  ;;  %v9276_v13 = vsel %vm582_vm0, %v9229_v0, 0.0 }
 0x997   : > { %v17521_v57 = vpop.f32.mrf.mxu0 }
 0x998   : > { %v18229_v62 = vld [vmem:[#allocation28_spill] sm:$0xff]  ;;  %v9177_v3 = vsel %vm582_vm0, %v17623_v14, 0.0 }
 0x999   : > { %v17545_v2 = vpop.f32.mrf.mxu0  ;;  %v11265_v61 = vadd.f32 %v18229_v62, %v17425_v7  ;;  %v9269_v7 = vadd.f32 %v9268_v18, %v9267_v47 }
 0x99a   : > { %v17444_v55 = vpop.f32.mrf.mxu1  ;;  %v18230_v22 = vld [vmem:[#allocation29_spill] sm:$0xff] }
 0x99b   : > { %v17569_v26 = vpop.f32.mrf.mxu0  ;;  %v11268_v59 = vadd.f32 %v17437_v31, %v18230_v22  ;;  %v17635_v52 = vadd.f32 %v17435_v40, %v11265_v61  ;;  %v9271_v63 = vadd.f32 %v9270_v1, %v9269_v7  ;;  %v9274_v31 = vsel %vm582_vm0, %v9228_v56, 0.0 }
 0x99c   : > { %v17450_v29 = vpop.f32.mrf.mxu1 }
 0x99d   : > { %v9100_v48 = vpop.f32.mrf.mxu0  ;;  %v11271_v51 = vadd.f32 %v17450_v29, %v17444_v55  ;;  %v9175_v29 = vsel %vm582_vm0, %v17611_v43, 0.0  ;;  %v9230_v55 = vmul.f32 %v17623_v14, %v17623_v14  ;;  %v17643_v39 = vadd.f32 %v17469_v6, %v11268_v59 }
 0x99e   : > { %v17475_v37 = vpop.f32.mrf.mxu1  ;;  %v9273_v40 = vadd.f32 %v9272_v15, %v9271_v63  ;;  %v9231_v62 = vmul.f32 %v17635_v52, %v17635_v52  ;;  %v9179_v56 = vsel %vm582_vm0, %v17635_v52, 0.0 }
 0x99f   : > { %v17615_v24 = vpop.f32.mrf.mxu0  ;;  %v17648_v58 = vadd.f32 %v11271_v51, %v17545_v2  ;;  %v9278_v30 = vsel %vm582_vm0, %v9230_v55, 0.0  ;;  %v9232_v1 = vmul.f32 %v17643_v39, %v17643_v39 }
 0x9a0   : > { %v17500_v10 = vpop.f32.mrf.mxu1  ;;  %v9275_v47 = vadd.f32 %v9274_v31, %v9273_v40  ;;  %v9280_v7 = vsel %vm582_vm0, %v9231_v62, 0.0 }
 0x9a1   : > { %v9113_v11 = vpop.f32.mrf.mxu0  ;;  %v11274_v33 = vadd.f32 %v17500_v10, %v17475_v37  ;;  %v9176_v37 = vadd.f32 %v9175_v29, %v9174_v54  ;;  %v9282_v0 = vsel %vm582_vm0, %v9232_v1, 0.0  ;;  %v9183_v63 = vsel %vm582_vm0, %v17648_v58, 0.0 }
 0x9a2   : > { %v9277_v22 = vadd.f32 %v9276_v13, %v9275_v47 }
 0x9a3   : > { %v11504_v61 = vpop.f32.mrf.mxu0  ;;  %v17664_v20 = vadd.f32 %v11274_v33, %v9100_v48  ;;  %v9178_v59 = vadd.f32 %v9177_v3, %v9176_v37 }
 0x9a4   : > { %v9279_v15 = vadd.f32 %v9278_v30, %v9277_v22 }
 0x9a5   : > { %v9116_v51 = vpop.f32.mrf.mxu0  ;;  %v9180_v48 = vadd.f32 %v9179_v56, %v9178_v59  ;;  %v9234_v41 = vmul.f32 %v17664_v20, %v17664_v20 }
 0x9a6   : > { %v17510_v53 = vpop.f32.mrf.mxu1  ;;  %v9281_v29 = vadd.f32 %v9280_v7, %v9279_v15 }
 0x9a8   : > { %v17525_v38 = vpop.f32.mrf.mxu1  ;;  %v9283_v13 = vadd.f32 %v9282_v0, %v9281_v29 }
 0x9a9   : > { %v11277_v6 = vadd.f32 %v17525_v38, %v17510_v53  ;;  %v9233_v53 = vmul.f32 %v17648_v58, %v17648_v58 }
 0x9aa   : > { %v17548_v16 = vpop.f32.mrf.mxu1 }
 0x9ab   : > { %v9284_v55 = vsel %vm582_vm0, %v9233_v53, 0.0 }
 0x9ac   : > { %v17573_v49 = vpop.f32.mrf.mxu1  ;;  %v9285_v37 = vadd.f32 %v9284_v55, %v9283_v13 }
 0x9ad   : > { %v11280_v10 = vadd.f32 %v17573_v49, %v17548_v16  ;;  %v9181_v16 = vsel %vm582_vm0, %v17643_v39, 0.0  ;;  %v17672_v49 = vadd.f32 %v17521_v57, %v11277_v6 }
 0x9ae   : > { %v9182_v57 = vadd.f32 %v9181_v16, %v9180_v48 }
 0x9af   : > { %v17676_v32 = vadd.f32 %v17569_v26, %v11280_v10  ;;  %v9185_v26 = vsel %vm582_vm0, %v17664_v20, 0.0  ;;  %v9235_v33 = vmul.f32 %v17672_v49, %v17672_v49  ;;  %v9187_v62 = vsel %vm582_vm0, %v17672_v49, 0.0 }
 0x9b0   : > { %v9184_v3 = vadd.f32 %v9183_v63, %v9182_v57 }
 0x9b2   : > { %v17585_v12 = vpop.f32.mrf.mxu1  ;;  %v9186_v10 = vadd.f32 %v9185_v26, %v9184_v3 }
 0x9b4   : > { %v11282_v44 = vpop.f32.mrf.mxu1  ;;  %v9188_v59 = vadd.f32 %v9187_v62, %v9186_v10 }
 0x9b5   : > { %v11283_v9 = vadd.f32 %v11282_v44, %v17585_v12  ;;  %v17684_v44 = vpop.f32.mrf.mxu0 }
 0x9b6   : > { %v11284_v42 = vpop.f32.mrf.mxu1 }
 0x9b7   : > { %v17690_v40 = vadd.f32 %v11283_v9, %v9113_v11  ;;  %v9129_v56 = vpop.f32.mrf.mxu0  ;;  %v9288_v11 = vsel %vm582_vm0, %v9235_v33, 0.0 }
 0x9b8   : > { %v11285_v21 = vpop.f32.mrf.mxu1 }
 0x9b9   : > { %v11286_v31 = vadd.f32 %v11285_v21, %v11284_v42  ;;  %v9236_v42 = vmul.f32 %v17676_v32, %v17676_v32  ;;  %v9286_v21 = vsel %vm582_vm0, %v9234_v41, 0.0  ;;  %v9191_v7 = vsel %vm582_vm0, %v17690_v40, 0.0  ;;  %v11508_v63 = vpop.f32.mrf.mxu0 }
 0x9ba   : > { %v9287_v22 = vadd.f32 %v9286_v21, %v9285_v37 }
 0x9bb   : > { %v17697_v6 = vadd.f32 %v11286_v31, %v9116_v51  ;;  %v9290_v53 = vsel %vm582_vm0, %v9236_v42, 0.0  ;;  %v9132_v42 = vpop.f32.mrf.mxu0 }
 0x9bc   : > { %v9289_v15 = vadd.f32 %v9288_v11, %v9287_v22 }
 0x9bd   : > { %v9238_v16 = vmul.f32 %v17697_v6, %v17697_v6  ;;  %v9193_v41 = vsel %vm582_vm0, %v17697_v6, 0.0 }
 0x9be   : > { %v11287_v18 = vpop.f32.mrf.mxu1  ;;  %v9291_v57 = vadd.f32 %v9290_v53, %v9289_v15 }
 0x9c0   : > { %v11288_v2 = vpop.f32.mrf.mxu1 }
 0x9c1   : > { %v11289_v54 = vadd.f32 %v11288_v2, %v11287_v18  ;;  %v9189_v18 = vsel %vm582_vm0, %v17676_v32, 0.0  ;;  %v9237_v2 = vmul.f32 %v17690_v40, %v17690_v40 }
 0x9c2   : > { %v11290_v38 = vpop.f32.mrf.mxu1  ;;  %v9190_v48 = vadd.f32 %v9189_v18, %v9188_v59 }
 0x9c3   : > { %v17705_v1 = vadd.f32 %v17615_v24, %v11289_v54  ;;  %v9292_v24 = vsel %vm582_vm0, %v9237_v2, 0.0 }
 0x9c4   : > { %v11291_v12 = vpop.f32.mrf.mxu1  ;;  %v9192_v55 = vadd.f32 %v9191_v7, %v9190_v48  ;;  %v9293_v13 = vadd.f32 %v9292_v24, %v9291_v57 }
 0x9c5   : > { %v11292_v47 = vadd.f32 %v11291_v12, %v11290_v38  ;;  %v9239_v31 = vmul.f32 %v17705_v1, %v17705_v1  ;;  %v9195_v26 = vsel %vm582_vm0, %v17705_v1, 0.0 }
 0x9c6   : > { %v9194_v3 = vadd.f32 %v9193_v41, %v9192_v55 }
 0x9c7   : > { %v17712_v9 = vadd.f32 %v11504_v61, %v11292_v47  ;;  %v9294_v61 = vsel %vm582_vm0, %v9238_v16, 0.0  ;;  %v9296_v62 = vsel %vm582_vm0, %v9239_v31, 0.0 }
 0x9c9   : > { %v9240_v33 = vmul.f32 %v17712_v9, %v17712_v9  ;;  %v9197_v47 = vsel %vm582_vm0, %v17712_v9, 0.0 }
 0x9ca   : > { %v11293_v30 = vpop.f32.mrf.mxu1 }
 0x9cb   : > { %v9298_v18 = vsel %vm582_vm0, %v9240_v33, 0.0 }
 0x9cc   : > { %v11294_v38 = vpop.f32.mrf.mxu1 }
 0x9cd   : > { %v11295_v51 = vadd.f32 %v11294_v38, %v11293_v30  ;;  %v9295_v30 = vadd.f32 %v9294_v61, %v9293_v13 }
 0x9ce   : > { %v11296_v0 = vpop.f32.mrf.mxu1 }
 0x9cf   : > { %v17719_v29 = vadd.f32 %v11295_v51, %v9129_v56  ;;  %v9196_v56 = vadd.f32 %v9195_v26, %v9194_v3  ;;  %v9297_v53 = vadd.f32 %v9296_v62, %v9295_v30 }
 0x9d0   : > { %v11297_v12 = vpop.f32.mrf.mxu1 }
 0x9d1   : > { %v11298_v54 = vadd.f32 %v11297_v12, %v11296_v0  ;;  %v9241_v37 = vmul.f32 %v17719_v29, %v17719_v29  ;;  %v9199_v2 = vsel %vm582_vm0, %v17719_v29, 0.0  ;;  %v9198_v38 = vadd.f32 %v9197_v47, %v9196_v56 }
 0x9d2   : > { %v11299_v21 = vpop.f32.mrf.mxu1  ;;  %v9299_v0 = vadd.f32 %v9298_v18, %v9297_v53 }
 0x9d3   : > { %v17731_v10 = vadd.f32 %v11298_v54, %v9132_v42  ;;  %v9300_v16 = vsel %vm582_vm0, %v9241_v37, 0.0  ;;  %v9200_v48 = vadd.f32 %v9199_v2, %v9198_v38 }
 0x9d4   : > { %v11300_v11 = vpop.f32.mrf.mxu1  ;;  %v9301_v12 = vadd.f32 %v9300_v16, %v9299_v0 }
 0x9d5   : > { %v9242_v22 = vmul.f32 %v17731_v10, %v17731_v10  ;;  %v11301_v59 = vadd.f32 %v11300_v11, %v11299_v21  ;;  %v9201_v51 = vsel %vm582_vm0, %v17731_v10, 0.0 }
 0x9d6   : > { %v11302_v7 = vpop.f32.mrf.mxu1  ;;  %v9202_v61 = vadd.f32 %v9201_v51, %v9200_v48 }
 0x9d7   : > { %v9138_v15 = vadd.f32 %v17684_v44, %v11301_v59  ;;  %v9302_v41 = vsel %vm582_vm0, %v9242_v22, 0.0 }
 0x9d8   : > { %v11303_v24 = vpop.f32.mrf.mxu1  ;;  %v9303_v54 = vadd.f32 %v9302_v41, %v9301_v12  ;;  %v9323_v12 = vld [vmem:[%s17994_s12] sm:$0x1] }
 0x9d9   : > { %v9203_v31 = vsel %vm582_vm0, %v9138_v15, 0.0  ;;  %v9243_v57 = vmul.f32 %v9138_v15, %v9138_v15  ;;  %v11304_v55 = vadd.f32 %v11303_v24, %v11302_v7 }
 0x9da   : > { %v9204_v13 = vadd.f32 %v9203_v31, %v9202_v61  ;;  %v9319_v31 = vld [vmem:[%s17993_s11] sm:$0x1] }
 0x9db   : > { %v9304_v26 = vsel %vm582_vm0, %v9243_v57, 0.0  ;;  %v9141_v33 = vadd.f32 %v11508_v63, %v11304_v55 }
 0x9dc   : > { %v9305_v44 = vadd.f32 %v9304_v26, %v9303_v54  ;;  %v18231_v26 = vld [vmem:[#allocation43_spill] sm:$0xff] }
 0x9dd   : > { %v9205_v3 = vsel %vm582_vm0, %v9141_v33, 0.0  ;;  %v9244_v42 = vmul.f32 %v9141_v33, %v9141_v33 }
 0x9de   : > { %v9206_v21 = vadd.f32 %v9205_v3, %v9204_v13 }
 0x9df   : > { %v9306_v62 = vsel %vm582_vm0, %v9244_v42, 0.0 }
 0x9e0   : > { %v9207_v47 = vrot.slane %v9206_v21, 4  ;;  %v9307_v37 = vadd.f32 %v9306_v62, %v9305_v44 }
 0x9e2   : > { %v9208_v30 = vadd.f32 %v9207_v47, %v9206_v21  ;;  %v9308_v56 = vrot.slane %v9307_v37, 4 }
 0x9e4   : > { %v9209_v11 = vrot.slane %v9208_v30, 2  ;;  %v9309_v18 = vadd.f32 %v9308_v56, %v9307_v37 }
 0x9e6   : > { %v9210_v2 = vadd.f32 %v9209_v11, %v9208_v30  ;;  %v9310_v22 = vrot.slane %v9309_v18, 2 }
 0x9e8   : > { %v9211_v59 = vrot.slane %v9210_v2, 1  ;;  %v9311_v53 = vadd.f32 %v9310_v22, %v9309_v18 }
 0x9ea   : > { %v9212_v63 = vadd.f32 %v9211_v59, %v9210_v2  ;;  %v9312_v38 = vrot.slane %v9311_v53, 1 }
 0x9ec   : > { %v9313_v7 = vadd.f32 %v9312_v38, %v9311_v53  ;;  %v9314_v16 = vmul.f32 0.00390625, %v9212_v63 }
 0x9ee   : > { %v9315_v51 = vmul.f32 0.00390625, %v9313_v7  ;;  %v9316_v48 = vmul.f32 %v9314_v16, %v9314_v16 }
 0x9f0   : > { %v9317_v0 = vsub.f32 %v9315_v51, %v9316_v48 }
 0x9f2   : > { %v9318_v24 = vmax.f32 %v9317_v0, 0.0 }
 0x9f4   : > { %v9320_v41 = vadd.f32 1e-05, %v9318_v24 }
 0x9f6   : > { %12744 = vrsqrt.f32 %v9320_v41 }
 0xa03   : > { %v12745_v57 = vpop.eup %12744 }
 0xa04   : > { %v9322_v55 = vmul.f32 %v12745_v57, %v9319_v31 }
 0xa06   : > { %v9324_v61 = vmul.f32 %v9322_v55, %v9314_v16  ;;  %v17754_v54 = vrot.slane %v9322_v55, %v18231_v26 }
 0xa08   : > { %v9325_v13 = vsub.f32 %v9323_v12, %v9324_v61  ;;  %v9362_v3 = vmul.f32 %v17754_v54, %v9138_v15  ;;  %v9363_v42 = vmul.f32 %v17754_v54, %v9141_v33  ;;  %v9334_v56 = vmul.f32 %v17754_v54, %v17446_v23 }
 0xa09   : > { %v9335_v11 = vmul.f32 %v17754_v54, %v17454_v45  ;;  %v9360_v15 = vmul.f32 %v17754_v54, %v17719_v29  ;;  %v9361_v33 = vmul.f32 %v17754_v54, %v17731_v10  ;;  %v9332_v22 = vmul.f32 %v17754_v54, %v17442_v28 }
 0xa0a   : > { %v17759_v44 = vrot.slane %v9325_v13, %v18231_v26  ;;  %v9333_v59 = vmul.f32 %v17754_v54, %v17439_v19  ;;  %v9336_v23 = vmul.f32 %v17754_v54, %v17458_v35  ;;  %v9337_v45 = vmul.f32 %v17754_v54, %v17482_v8 }
 0xa0b   : > { %v9338_v24 = vmul.f32 %v17754_v54, %v17491_v5  ;;  %v9339_v41 = vmul.f32 %v17754_v54, %v17498_v25  ;;  %v9340_v57 = vmul.f32 %v17754_v54, %v17517_v27  ;;  %v9341_v55 = vmul.f32 %v17754_v54, %v17531_v17 }
 0xa0c   : > { %v9400_v21 = vadd.f32 %v17759_v44, %v9362_v3  ;;  %v9401_v62 = vadd.f32 %v17759_v44, %v9363_v42  ;;  %v9372_v18 = vadd.f32 %v17759_v44, %v9334_v56  ;;  %v9373_v2 = vadd.f32 %v17759_v44, %v9335_v11 }
 0xa0d   : > { %v9398_v29 = vadd.f32 %v17759_v44, %v9360_v15  ;;  %v9399_v10 = vadd.f32 %v17759_v44, %v9361_v33  ;;  %v9370_v53 = vadd.f32 %v17759_v44, %v9332_v22  ;;  %v9371_v63 = vadd.f32 %v17759_v44, %v9333_v59 }
 0xa0e   : > { %v9432_v47 = vmax.f32 %v9400_v21, 0.0  ;;  %v9433_v37 = vmax.f32 %v9401_v62, 0.0  ;;  %v9374_v38 = vadd.f32 %v17759_v44, %v9336_v23  ;;  %v9375_v28 = vadd.f32 %v17759_v44, %v9337_v45 }
 0xa0f   : > { %v9404_v7 = vmax.f32 %v9372_v18, 0.0  ;;  %v9405_v19 = vmax.f32 %v9373_v2, 0.0  ;;  %v9430_v16 = vmax.f32 %v9398_v29, 0.0  ;;  %v9431_v51 = vmax.f32 %v9399_v10, 0.0 }
 0xa10   : > { %v17763_v30 = vpack.c.bf16 %v9433_v37, %v9432_v47  ;;  %v9402_v35 = vmax.f32 %v9370_v53, 0.0  ;;  %v9403_v48 = vmax.f32 %v9371_v63, 0.0  ;;  %v9406_v0 = vmax.f32 %v9374_v38, 0.0 }
 0xa11   : > { %v9407_v8 = vmax.f32 %v9375_v28, 0.0  ;;  %v9435_v31 = vpack.c.bf16 %v9405_v19, %v9404_v7  ;;  %v9376_v61 = vadd.f32 %v17759_v44, %v9338_v24  ;;  %v9377_v26 = vadd.f32 %v17759_v44, %v9339_v41 }
 0xa12   : > { %v9434_v12 = vpack.c.bf16 %v9403_v48, %v9402_v35  ;;  %v9378_v13 = vadd.f32 %v17759_v44, %v9340_v57  ;;  %v9379_v3 = vadd.f32 %v17759_v44, %v9341_v55  ;;  %v17802_v25 = vpack.c.bf16 %v9431_v51, %v9430_v16 }
 0xa13   : > { %v9436_v5 = vpack.c.bf16 %v9407_v8, %v9406_v0  ;;  %v9408_v27 = vmax.f32 %v9376_v61, 0.0  ;;  %v9409_v17 = vmax.f32 %v9377_v26, 0.0  ;;  %v9342_v62 = vmul.f32 %v17754_v54, %v17543_v60 }
 0xa14   : > { %11513 = vmatprep.mubr.msk.bf16.mxu0 %vm582_vm0, %v9434_v12  ;;  %v9410_v42 = vmax.f32 %v9378_v13, 0.0  ;;  %v9411_v21 = vmax.f32 %v9379_v3, 0.0  ;;  %v9343_v47 = vmul.f32 %v17754_v54, %v17555_v4  ;;  %v9344_v37 = vmul.f32 %v17754_v54, %v17560_v50 }
 0xa15   : > { %11514 = vmatmul.mubr.msk.bf16.vlgmr.msra.gmra.mxu0 %vm582_vm0, %v9435_v31  ;;  %v9345_v56 = vmul.f32 %v17754_v54, %v17581_v36  ;;  %v9380_v11 = vadd.f32 %v17759_v44, %v9342_v62  ;;  %v9437_v33 = vpack.c.bf16 %v9409_v17, %v9408_v27  ;;  %v9346_v36 = vmul.f32 %v17754_v54, %v17591_v34 }
 0xa16   : > { %11517 = vmatprep.mubr.msk.bf16.mxu0 %vm582_vm0, %v9436_v5  ;;  %v9381_v15 = vadd.f32 %v17759_v44, %v9343_v47  ;;  %v9382_v18 = vadd.f32 %v17759_v44, %v9344_v37  ;;  %v9438_v22 = vpack.c.bf16 %v9411_v21, %v9410_v42  ;;  %v9347_v23 = vmul.f32 %v17754_v54, %v17596_v46 }
 0xa17   : > { %v9383_v2 = vadd.f32 %v17759_v44, %v9345_v56  ;;  %v9412_v60 = vmax.f32 %v9380_v11, 0.0  ;;  %v9348_v45 = vmul.f32 %v17754_v54, %v17611_v43  ;;  %v9349_v29 = vmul.f32 %v17754_v54, %v17623_v14 }
 0xa18   : > { %v9413_v4 = vmax.f32 %v9381_v15, 0.0  ;;  %v9414_v50 = vmax.f32 %v9382_v18, 0.0  ;;  %v9384_v10 = vadd.f32 %v17759_v44, %v9346_v36  ;;  %v9385_v53 = vadd.f32 %v17759_v44, %v9347_v23 }
 0xa19   : > { %v9415_v59 = vmax.f32 %v9383_v2, 0.0  ;;  %v9386_v38 = vadd.f32 %v17759_v44, %v9348_v45  ;;  %v9387_v28 = vadd.f32 %v17759_v44, %v9349_v29  ;;  %v9350_v14 = vmul.f32 %v17754_v54, %v17635_v52 }
 0xa1a   : > { %v9439_v63 = vpack.c.bf16 %v9413_v4, %v9412_v60  ;;  %v9416_v34 = vmax.f32 %v9384_v10, 0.0  ;;  %v9417_v46 = vmax.f32 %v9385_v53, 0.0  ;;  %v9351_v16 = vmul.f32 %v17754_v54, %v17643_v39 }
 0xa1b   : > { %v9440_v7 = vpack.c.bf16 %v9415_v59, %v9414_v50  ;;  %v9418_v43 = vmax.f32 %v9386_v38, 0.0  ;;  %v9419_v19 = vmax.f32 %v9387_v28, 0.0  ;;  %v9352_v51 = vmul.f32 %v17754_v54, %v17648_v58 }
 0xa1c   : > { %v9353_v35 = vmul.f32 %v17754_v54, %v17664_v20  ;;  %v9388_v48 = vadd.f32 %v17759_v44, %v9350_v14  ;;  %v9389_v0 = vadd.f32 %v17759_v44, %v9351_v16  ;;  %v9441_v8 = vpack.c.bf16 %v9417_v46, %v9416_v34 }
 0xa1d   : > { %11518 = vmatmul.mubr.msk.bf16.gmra.mxu0 %vm582_vm0, %v9437_v33  ;;  %v9390_v24 = vadd.f32 %v17759_v44, %v9352_v51  ;;  %v9442_v31 = vpack.c.bf16 %v9419_v19, %v9418_v43  ;;  %v9354_v20 = vmul.f32 %v17754_v54, %v17672_v49  ;;  %v9355_v55 = vmul.f32 %v17754_v54, %v17676_v32 }
 0xa1e   : > { %11521 = vmatprep.mubr.msk.bf16.mxu0 %vm582_vm0, %v9438_v22  ;;  %v9391_v41 = vadd.f32 %v17759_v44, %v9353_v35  ;;  %v9420_v52 = vmax.f32 %v9388_v48, 0.0  ;;  %v9421_v39 = vmax.f32 %v9389_v0, 0.0  ;;  %v9356_v12 = vmul.f32 %v17754_v54, %v17690_v40 }
 0xa1f   : > { %v9422_v58 = vmax.f32 %v9390_v24, 0.0  ;;  %v9357_v61 = vmul.f32 %v17754_v54, %v17697_v6  ;;  %v9392_v26 = vadd.f32 %v17759_v44, %v9354_v20  ;;  %v9393_v13 = vadd.f32 %v17759_v44, %v9355_v55 }
 0xa20   : > { %v9423_v57 = vmax.f32 %v9391_v41, 0.0  ;;  %v9443_v3 = vpack.c.bf16 %v9421_v39, %v9420_v52  ;;  %v9394_v5 = vadd.f32 %v17759_v44, %v9356_v12  ;;  %v9358_v6 = vmul.f32 %v17754_v54, %v17705_v1  ;;  %v17876_v1 = vld [vmem:[#allocation4] ss:$0 sm:$0xff] }
 0xa21   : > { %v9395_v27 = vadd.f32 %v17759_v44, %v9357_v61  ;;  %v9424_v49 = vmax.f32 %v9392_v26, 0.0  ;;  %v9425_v32 = vmax.f32 %v9393_v13, 0.0  ;;  %v9359_v21 = vmul.f32 %v17754_v54, %v17712_v9 }
 0xa22   : > { %v9444_v17 = vpack.c.bf16 %v9423_v57, %v9422_v58  ;;  %v9426_v40 = vmax.f32 %v9394_v5, 0.0  ;;  %v9396_v62 = vadd.f32 %v17759_v44, %v9358_v6 }
 0xa23   : > { %v9427_v42 = vmax.f32 %v9395_v27, 0.0  ;;  %v9397_v47 = vadd.f32 %v17759_v44, %v9359_v21  ;;  %v9445_v37 = vpack.c.bf16 %v9425_v32, %v9424_v49 }
 0xa24   : > { %v9428_v11 = vmax.f32 %v9396_v62, 0.0 }
 0xa25   : > { %11522 = vmatmul.mubr.msk.bf16.gmra.mxu0 %vm582_vm0, %v9439_v63  ;;  %v9446_v56 = vpack.c.bf16 %v9427_v42, %v9426_v40  ;;  %v9429_v15 = vmax.f32 %v9397_v47, 0.0 }
 0xa26   : > { %11525 = vmatprep.mubr.msk.bf16.mxu0 %vm582_vm0, %v9440_v7 }
 0xa27   : > { %v9447_v33 = vpack.c.bf16 %v9429_v15, %v9428_v11 }
 0xa2d   : > { %11526 = vmatmul.mubr.msk.bf16.gmra.mxu0 %vm582_vm0, %v9441_v8 }
 0xa2e   : > { %11529 = vmatprep.mubr.msk.bf16.mxu0 %vm582_vm0, %v9442_v31 }
 0xa35   : > { %11530 = vmatmul.mubr.msk.bf16.gmra.mxu0 %vm582_vm0, %v9443_v3 }
 0xa36   : > { %11533 = vmatprep.mubr.msk.bf16.mxu0 %vm582_vm0, %v9444_v17 }
 0xa3d   : > { %11534 = vmatmul.mubr.msk.bf16.gmra.mxu0 %vm582_vm0, %v9445_v37 }
 0xa3e   : > { %11537 = vmatprep.mubr.msk.bf16.mxu0 %vm582_vm0, %v9446_v56 }
 0xa45   : > { %11538 = vmatmul.mubr.msk.bf16.gmra.mxu0 %vm582_vm0, %v9447_v33 }
 0xa46   : > { %11541 = vmatprep.mubr.msk.bf16.mxu0 %vm582_vm0, %v17802_v25 }
 0xa4d   : > { %11542 = vmatmul.mubr.msk.bf16.gmra.mxu0 %vm582_vm0, %v17763_v30 }
 0xad5   : > { %v11515_v9 = vpop.f32.mrf.mxu0 }
 0xad6   : > { %v9564_v54 = vadd.f32 %v11515_v9, %v17876_v1 }
 0xad7   : > { %v9555_v44 = vpop.f32.mrf.mxu0 }
 0xad8   : > { %9685 = vst.msk [vmem:[%s17881_s29 + $0x10] sm:$0xff] %vm9682_vm4, %v9564_v54  ;;  %v9556_v30 = vadd.f32 %v17876_v1, %v9555_v44 }
 0xad9   : > { %v11516_v25 = vpop.f32.mrf.mxu0 }
 0xada   : > { %9683 = vst.msk [vmem:[%s17881_s29] sm:$0xff] %vm9682_vm4, %v9556_v30  ;;  %v9567_v18 = vadd.f32 %v11516_v25, %v17876_v1 }
 0xadb   : > { %v9558_v2 = vpop.f32.mrf.mxu0 }
 0xadc   : > { %9686 = vst.msk [vmem:[%s17881_s29 + $0x18] sm:$0xff] %vm9682_vm4, %v9567_v18  ;;  %v9559_v22 = vadd.f32 %v17876_v1, %v9558_v2 }
 0xadd   : > { %v11519_v60 = vpop.f32.mrf.mxu0 }
 0xade   : > { %9684 = vst.msk [vmem:[%s17881_s29 + $0x8] sm:$0xff] %vm9682_vm4, %v9559_v22  ;;  %v9580_v4 = vadd.f32 %v11519_v60, %v17876_v1 }
 0xadf   : > { %v9571_v50 = vpop.f32.mrf.mxu0 }
 0xae0   : > { %9689 = vst.msk [vmem:[%s17881_s29 + $0x30] sm:$0xff] %vm9682_vm4, %v9580_v4  ;;  %v9572_v59 = vadd.f32 %v17876_v1, %v9571_v50 }
 0xae1   : > { %v11520_v36 = vpop.f32.mrf.mxu0 }
 0xae2   : > { %9687 = vst.msk [vmem:[%s17881_s29 + $0x20] sm:$0xff] %vm9682_vm4, %v9572_v59  ;;  %v9583_v23 = vadd.f32 %v11520_v36, %v17876_v1 }
 0xae3   : > { %v9574_v45 = vpop.f32.mrf.mxu0 }
 0xae4   : > { %9690 = vst.msk [vmem:[%s17881_s29 + $0x38] sm:$0xff] %vm9682_vm4, %v9583_v23  ;;  %v9575_v29 = vadd.f32 %v17876_v1, %v9574_v45 }
 0xae5   : > { %v11523_v10 = vpop.f32.mrf.mxu0 }
 0xae6   : > { %9688 = vst.msk [vmem:[%s17881_s29 + $0x28] sm:$0xff] %vm9682_vm4, %v9575_v29  ;;  %v9596_v53 = vadd.f32 %v11523_v10, %v17876_v1 }
 0xae7   : > { %v9587_v63 = vpop.f32.mrf.mxu0 }
 0xae8   : > { %9693 = vst.msk [vmem:[%s17881_s29 + $0x50] sm:$0xff] %vm9682_vm4, %v9596_v53  ;;  %v9588_v38 = vadd.f32 %v17876_v1, %v9587_v63 }
 0xae9   : > { %v11524_v28 = vpop.f32.mrf.mxu0 }
 0xaea   : > { %9691 = vst.msk [vmem:[%s17881_s29 + $0x40] sm:$0xff] %vm9682_vm4, %v9588_v38  ;;  %v9599_v7 = vadd.f32 %v11524_v28, %v17876_v1 }
 0xaeb   : > { %v9590_v34 = vpop.f32.mrf.mxu0 }
 0xaec   : > { %9694 = vst.msk [vmem:[%s17881_s29 + $0x58] sm:$0xff] %vm9682_vm4, %v9599_v7  ;;  %v9591_v46 = vadd.f32 %v17876_v1, %v9590_v34 }
 0xaed   : > { %v11527_v43 = vpop.f32.mrf.mxu0 }
 0xaee   : > { %9692 = vst.msk [vmem:[%s17881_s29 + $0x48] sm:$0xff] %vm9682_vm4, %v9591_v46  ;;  %v9612_v19 = vadd.f32 %v11527_v43, %v17876_v1 }
 0xaef   : > { %v9603_v14 = vpop.f32.mrf.mxu0 }
 0xaf0   : > { %9697 = vst.msk [vmem:[%s17881_s29 + $0x70] sm:$0xff] %vm9682_vm4, %v9612_v19  ;;  %v9604_v16 = vadd.f32 %v17876_v1, %v9603_v14 }
 0xaf1   : > { %v11528_v51 = vpop.f32.mrf.mxu0 }
 0xaf2   : > { %9695 = vst.msk [vmem:[%s17881_s29 + $0x60] sm:$0xff] %vm9682_vm4, %v9604_v16  ;;  %v9615_v35 = vadd.f32 %v11528_v51, %v17876_v1 }
 0xaf3   : > { %v9606_v48 = vpop.f32.mrf.mxu0 }
 0xaf4   : > { %9698 = vst.msk [vmem:[%s17881_s29 + $0x78] sm:$0xff] %vm9682_vm4, %v9615_v35  ;;  %v9607_v0 = vadd.f32 %v17876_v1, %v9606_v48 }
 0xaf5   : > { %v11531_v8 = vpop.f32.mrf.mxu0 }
 0xaf6   : > { %9696 = vst.msk [vmem:[%s17881_s29 + $0x68] sm:$0xff] %vm9682_vm4, %v9607_v0  ;;  %v9628_v24 = vadd.f32 %v11531_v8, %v17876_v1 }
 0xaf7   : > { %v9619_v41 = vpop.f32.mrf.mxu0 }
 0xaf8   : > { %9701 = vst.msk [vmem:[%s17881_s29 + $0x90] sm:$0xff] %vm9682_vm4, %v9628_v24  ;;  %v9620_v31 = vadd.f32 %v17876_v1, %v9619_v41 }
 0xaf9   : > { %v11532_v52 = vpop.f32.mrf.mxu0 }
 0xafa   : > { %9699 = vst.msk [vmem:[%s17881_s29 + $0x80] sm:$0xff] %vm9682_vm4, %v9620_v31  ;;  %v9631_v39 = vadd.f32 %v11532_v52, %v17876_v1 }
 0xafb   : > { %v9622_v58 = vpop.f32.mrf.mxu0 }
 0xafc   : > { %9702 = vst.msk [vmem:[%s17881_s29 + $0x98] sm:$0xff] %vm9682_vm4, %v9631_v39  ;;  %v9623_v57 = vadd.f32 %v17876_v1, %v9622_v58 }
 0xafd   : > { %v11535_v20 = vpop.f32.mrf.mxu0 }
 0xafe   : > { %9700 = vst.msk [vmem:[%s17881_s29 + $0x88] sm:$0xff] %vm9682_vm4, %v9623_v57  ;;  %v9644_v55 = vadd.f32 %v11535_v20, %v17876_v1 }
 0xaff   : > { %v9635_v12 = vpop.f32.mrf.mxu0 }
 0xb00   : > { %9705 = vst.msk [vmem:[%s17881_s29 + $0xb0] sm:$0xff] %vm9682_vm4, %v9644_v55  ;;  %v9636_v61 = vadd.f32 %v17876_v1, %v9635_v12 }
 0xb01   : > { %v11536_v26 = vpop.f32.mrf.mxu0 }
 0xb02   : > { %9703 = vst.msk [vmem:[%s17881_s29 + $0xa0] sm:$0xff] %vm9682_vm4, %v9636_v61  ;;  %v9647_v13 = vadd.f32 %v11536_v26, %v17876_v1 }
 0xb03   : > { %v9638_v3 = vpop.f32.mrf.mxu0 }
 0xb04   : > { %9706 = vst.msk [vmem:[%s17881_s29 + $0xb8] sm:$0xff] %vm9682_vm4, %v9647_v13  ;;  %v9639_v5 = vadd.f32 %v17876_v1, %v9638_v3 }
 0xb05   : > { %v11539_v27 = vpop.f32.mrf.mxu0 }
 0xb06   : > { %9704 = vst.msk [vmem:[%s17881_s29 + $0xa8] sm:$0xff] %vm9682_vm4, %v9639_v5  ;;  %v9660_v17 = vadd.f32 %v11539_v27, %v17876_v1 }
 0xb07   : > { %v9651_v49 = vpop.f32.mrf.mxu0 }
 0xb08   : > { %9709 = vst.msk [vmem:[%s17881_s29 + $0xd0] sm:$0xff] %vm9682_vm4, %v9660_v17  ;;  %v9652_v32 = vadd.f32 %v17876_v1, %v9651_v49 }
 0xb09   : > { %v11540_v40 = vpop.f32.mrf.mxu0 }
 0xb0a   : > { %9707 = vst.msk [vmem:[%s17881_s29 + $0xc0] sm:$0xff] %vm9682_vm4, %v9652_v32  ;;  %v9663_v42 = vadd.f32 %v11540_v40, %v17876_v1 }
 0xb0b   : > { %v9654_v6 = vpop.f32.mrf.mxu0 }
 0xb0c   : > { %9710 = vst.msk [vmem:[%s17881_s29 + $0xd8] sm:$0xff] %vm9682_vm4, %v9663_v42  ;;  %v9655_v21 = vadd.f32 %v17876_v1, %v9654_v6 }
 0xb0d   : > { %v11543_v62 = vpop.f32.mrf.mxu0 }
 0xb0e   : > { %9708 = vst.msk [vmem:[%s17881_s29 + $0xc8] sm:$0xff] %vm9682_vm4, %v9655_v21  ;;  %v9676_v47 = vadd.f32 %v11543_v62, %v17876_v1 }
 0xb0f   : > { %v9667_v37 = vpop.f32.mrf.mxu0 }
 0xb10   : > { %9713 = vst.msk [vmem:[%s17881_s29 + $0xf0] sm:$0xff] %vm9682_vm4, %v9676_v47  ;;  %v9668_v56 = vadd.f32 %v17876_v1, %v9667_v37 }
 0xb11   : > { %v11544_v11 = vpop.f32.mrf.mxu0 }
 0xb12   : > { %9711 = vst.msk [vmem:[%s17881_s29 + $0xe0] sm:$0xff] %vm9682_vm4, %v9668_v56  ;;  %v9679_v15 = vadd.f32 %v11544_v11, %v17876_v1 }
 0xb13   : > { %v9670_v33 = vpop.f32.mrf.mxu0 }
 0xb14   : > { %9714 = vst.msk [vmem:[%s17881_s29 + $0xf8] sm:$0xff] %vm9682_vm4, %v9679_v15  ;;  %v9671_v9 = vadd.f32 %v17876_v1, %v9670_v33 }
 0xb16   : > { %9712 = vst.msk [vmem:[%s17881_s29 + $0xe8] sm:$0xff] %vm9682_vm4, %v9671_v9 }
 0xb17 PF: > { %s29_s20 = sadd.s32 1, %s12814_s20  }
 0xb18   : > { %p26_p3 = scmp.ge.s32.totalorder %s29_s20, 4  }
 0xb1a   :  { %28 = sbr.rel (!%p26_p3) target bundleno = 5 (0x5), region = 123 }
 0xb1f   :  { %9736 = vsyncpa [#allocation6], 1 }
 0xb20   :  { %9738 = vsyncpa [#allocation6 + $0x1], 1 }
 0xb21   :  { %9739 = vsyncpa [#allocation8], 1 }

</bundles_post_ra>
